<compile_context>
chip_gen: v7x
topology: tpu7x:2x2x1
jax: 0.10.0
libtpu: 0.0.40
codegen_flags: <defaults>
</compile_context>

<pallas_src>
import jax
import jax.numpy as jnp
from jax import lax
from jax.experimental import pallas as pl
from jax.experimental.pallas import tpu as pltpu


# ----------------------------------------------------------------------------
# Fused forward kernel (one grid step == one image)
# ----------------------------------------------------------------------------
def _lenet_kernel(x_ref, w1_ref, b1_ref, s28e_ref, s28o_ref,
                  w2_ref, b2_ref, s10e_ref, s10o_ref,
                  f1w_ref, f1b_ref, f2w_ref, f2b_ref, f3w_ref, f3b_ref,
                  o_ref, p1_ref, a_ref):
    f32 = jnp.float32

    # ---------------- conv1 (1->6, k5) + ReLU + 2x2 max-pool -> p1_ref -------
    w1 = w1_ref[...]          # (40, 5)   rows = kw*8 + oc (oc padded 6->8)
    b1 = b1_ref[...]          # (8, 1)
    s28e = s28e_ref[...]      # (28, 14)  selects even columns
    s28o = s28o_ref[...]      # (28, 14)  selects odd columns

    def conv1_row(oh):
        # 5 consecutive input rows; contraction over kh via one matmul,
        # kw handled by shifted lane slices of the result.
        s = x_ref[0, 0, oh:oh + 5, :]                               # (5, 32)
        m = jnp.dot(w1, s, preferred_element_type=f32)              # (40, 32)
        r = m[0:8, 0:28]
        for kw in range(1, 5):
            r = r + m[kw * 8:(kw + 1) * 8, kw:kw + 28]
        return jnp.maximum(r + b1, 0.0)                             # (8, 28)

    for i in range(14):                     # pooled output row i
        rm = jnp.maximum(conv1_row(2 * i), conv1_row(2 * i + 1))    # H-pool
        pooled = jnp.maximum(                                       # W-pool
            jnp.dot(rm, s28e, preferred_element_type=f32),
            jnp.dot(rm, s28o, preferred_element_type=f32))          # (8, 14)
        p1_ref[i * 8:(i + 1) * 8, :] = pooled   # row layout: h*8 + ic

    # ---------------- conv2 (6->16, k5) + ReLU + 2x2 max-pool ----------------
    w2 = w2_ref[...]          # (80, 40)  rows = kw*16 + oc, cols = kh*8 + ic
    b2 = b2_ref[...]          # (16, 1)
    s10e = s10e_ref[...]      # (10, 5)
    s10o = s10o_ref[...]      # (10, 5)

    def conv2_row(oh):
        s = p1_ref[oh * 8:oh * 8 + 40, :]                           # (40, 14)
        m = jnp.dot(w2, s, preferred_element_type=f32)              # (80, 14)
        r = m[0:16, 0:10]
        for kw in range(1, 5):
            r = r + m[kw * 16:(kw + 1) * 16, kw:kw + 10]
        return jnp.maximum(r + b2, 0.0)                             # (16, 10)

    for i in range(5):
        rm = jnp.maximum(conv2_row(2 * i), conv2_row(2 * i + 1))
        pooled = jnp.maximum(
            jnp.dot(rm, s10e, preferred_element_type=f32),
            jnp.dot(rm, s10o, preferred_element_type=f32))          # (16, 5)
        # flatten into the FC activation column; ordering (h*5 + w)*16 + c
        # (the matching permutation is folded into the packed fc1 weight).
        for w in range(5):
            base = (i * 5 + w) * 16
            a_ref[base:base + 16, :] = pooled[:, w:w + 1]

    # ---------------- fc1 -> fc2 -> fc3 (column form, padded to 128) ---------
    a = a_ref[...]                                                  # (400, 1)
    h1 = jnp.maximum(
        jnp.dot(f1w_ref[...], a, preferred_element_type=f32) + f1b_ref[...], 0.0)
    h2 = jnp.maximum(
        jnp.dot(f2w_ref[...], h1, preferred_element_type=f32) + f2b_ref[...], 0.0)
    o_ref[0] = jnp.dot(f3w_ref[...], h2, preferred_element_type=f32) + f3b_ref[...]


# ----------------------------------------------------------------------------
# One-time parameter repacking (transposes / permutations / padding folded here)
# ----------------------------------------------------------------------------
def pack_params(p):
    f32 = jnp.float32
    # conv1: rows = kw*8 + oc (oc padded 6->8), cols = kh
    w1 = jnp.transpose(p["conv1_w"][:, 0], (2, 0, 1))               # (kw, oc, kh)
    w1 = jnp.pad(w1, ((0, 0), (0, 2), (0, 0))).reshape(40, 5)
    b1 = jnp.pad(p["conv1_b"], (0, 2)).reshape(8, 1)
    # conv2: rows = kw*16 + oc, cols = kh*8 + ic (ic padded 6->8)
    w2 = jnp.transpose(p["conv2_w"], (3, 0, 2, 1))                  # (kw, oc, kh, ic)
    w2 = jnp.pad(w2, ((0, 0), (0, 0), (0, 0), (0, 2))).reshape(80, 40)
    b2 = p["conv2_b"].reshape(16, 1)
    # constant 0/1 column-selection matrices for the 2x2 pool (stride-2 pick)
    sel28e = (jnp.arange(28)[:, None] == 2 * jnp.arange(14)[None, :]).astype(f32)
    sel28o = (jnp.arange(28)[:, None] == 2 * jnp.arange(14)[None, :] + 1).astype(f32)
    sel10e = (jnp.arange(10)[:, None] == 2 * jnp.arange(5)[None, :]).astype(f32)
    sel10o = (jnp.arange(10)[:, None] == 2 * jnp.arange(5)[None, :] + 1).astype(f32)
    # fc1: permute input columns from torch order c*25+h*5+w to (h*5+w)*16+c,
    # pad out-dim 120->128
    f1w = p["fc1_w"].reshape(120, 16, 5, 5)
    f1w = jnp.transpose(f1w, (0, 2, 3, 1)).reshape(120, 400)
    f1w = jnp.pad(f1w, ((0, 8), (0, 0)))                            # (128, 400)
    f1b = jnp.pad(p["fc1_b"], (0, 8)).reshape(128, 1)
    # fc2: pad 84x120 -> 128x128 ; fc3: pad 10x84 -> 16x128
    f2w = jnp.pad(p["fc2_w"], ((0, 44), (0, 8)))                    # (128, 128)
    f2b = jnp.pad(p["fc2_b"], (0, 44)).reshape(128, 1)
    f3w = jnp.pad(p["fc3_w"], ((0, 6), (0, 44)))                    # (16, 128)
    f3b = jnp.pad(p["fc3_b"], (0, 6)).reshape(16, 1)
    return dict(w1=w1, b1=b1, w2=w2, b2=b2,
                sel28e=sel28e, sel28o=sel28o, sel10e=sel10e, sel10o=sel10o,
                f1w=f1w, f1b=f1b, f2w=f2w, f2b=f2b, f3w=f3w, f3b=f3b)


# ----------------------------------------------------------------------------
# Forward pass: one fused pallas_call over the batch
# ----------------------------------------------------------------------------
def net_forward(x_nchw, pk):
    n = x_nchw.shape[0]
    full2d = lambda i: (0, 0)  # noqa: E731  (whole-array weight blocks)
    out = pl.pallas_call(
        _lenet_kernel,
        out_shape=jax.ShapeDtypeStruct((n, 16, 1), jnp.float32),
        grid=(n,),
        in_specs=[
            pl.BlockSpec((1, 1, 32, 32), lambda i: (i, 0, 0, 0)),   # x
            pl.BlockSpec((40, 5), full2d),                          # conv1 w
            pl.BlockSpec((8, 1), full2d),                           # conv1 b
            pl.BlockSpec((28, 14), full2d),                         # pool1 even sel
            pl.BlockSpec((28, 14), full2d),                         # pool1 odd  sel
            pl.BlockSpec((80, 40), full2d),                         # conv2 w
            pl.BlockSpec((16, 1), full2d),                          # conv2 b
            pl.BlockSpec((10, 5), full2d),                          # pool2 even sel
            pl.BlockSpec((10, 5), full2d),                          # pool2 odd  sel
            pl.BlockSpec((128, 400), full2d),                       # fc1 w
            pl.BlockSpec((128, 1), full2d),                         # fc1 b
            pl.BlockSpec((128, 128), full2d),                       # fc2 w
            pl.BlockSpec((128, 1), full2d),                         # fc2 b
            pl.BlockSpec((16, 128), full2d),                        # fc3 w
            pl.BlockSpec((16, 1), full2d),                          # fc3 b
        ],
        out_specs=pl.BlockSpec((1, 16, 1), lambda i: (i, 0, 0)),
        scratch_shapes=[
            pltpu.VMEM((112, 14), jnp.float32),   # pooled conv1 (14*8 rows x 14 cols)
            pltpu.VMEM((400, 1), jnp.float32),    # flattened FC activation column
        ],
        compiler_params=pltpu.CompilerParams(dimension_semantics=("parallel",)),
    )(x_nchw, pk["w1"], pk["b1"], pk["sel28e"], pk["sel28o"],
      pk["w2"], pk["b2"], pk["sel10e"], pk["sel10o"],
      pk["f1w"], pk["f1b"], pk["f2w"], pk["f2b"], pk["f3w"], pk["f3b"])
    return out[:, :10, 0]


# ----------------------------------------------------------------------------
# Pure-JAX reference (mirrors the PyTorch module) and synthetic params
# ----------------------------------------------------------------------------
def net_reference(x, p):
    dn = ("NCHW", "OIHW", "NCHW")
    y = lax.conv_general_dilated(x, p["conv1_w"], (1, 1), "VALID", dimension_numbers=dn)
    y = jax.nn.relu(y + p["conv1_b"][None, :, None, None])
    n, c, h, w = y.shape
    y = y.reshape(n, c, h // 2, 2, w // 2, 2).max(axis=(3, 5))
    y = lax.conv_general_dilated(y, p["conv2_w"], (1, 1), "VALID", dimension_numbers=dn)
    y = jax.nn.relu(y + p["conv2_b"][None, :, None, None])
    n, c, h, w = y.shape
    y = y.reshape(n, c, h // 2, 2, w // 2, 2).max(axis=(3, 5))
    y = y.reshape(n, -1)
    y = jax.nn.relu(y @ p["fc1_w"].T + p["fc1_b"])
    y = jax.nn.relu(y @ p["fc2_w"].T + p["fc2_b"])
    return y @ p["fc3_w"].T + p["fc3_b"]


def init_params():
    key = jax.random.PRNGKey(42)
    ks = jax.random.split(key, 10)
    f32 = jnp.float32
    return {
        "conv1_w": 0.1 * jax.random.normal(ks[0], (6, 1, 5, 5), f32),
        "conv1_b": 0.1 * jax.random.normal(ks[1], (6,), f32),
        "conv2_w": 0.1 * jax.random.normal(ks[2], (16, 6, 5, 5), f32),
        "conv2_b": 0.1 * jax.random.normal(ks[3], (16,), f32),
        "fc1_w": 0.05 * jax.random.normal(ks[4], (120, 400), f32),
        "fc1_b": 0.05 * jax.random.normal(ks[5], (120,), f32),
        "fc2_w": 0.05 * jax.random.normal(ks[6], (84, 120), f32),
        "fc2_b": 0.05 * jax.random.normal(ks[7], (84,), f32),
        "fc3_w": 0.05 * jax.random.normal(ks[8], (10, 84), f32),
        "fc3_b": 0.05 * jax.random.normal(ks[9], (10,), f32),
    }


if __name__ == "__main__":
    params = init_params()
    packed = pack_params(params)          # one-time repack (outside jit)
    x = jax.random.normal(jax.random.PRNGKey(0), (2, 1, 32, 32), jnp.float32)

    fwd = jax.jit(net_forward)
    out = jax.block_until_ready(fwd(x, packed))
    assert out.shape == (2, 10), out.shape
    assert out.dtype == jnp.float32

    ref = net_reference(x, params)
    err = float(jnp.max(jnp.abs(out - ref)))
    assert jnp.allclose(out, ref, atol=2e-4, rtol=2e-4), f"max abs err {err}"
    print("KERNEL_OK")
</pallas_src>

<mosaic_0001>
module attributes {stable_mosaic.version = 11 : i64} {
  func.func @_lenet_kernel(%arg0: i32, %arg1: memref<1x1x32x32xf32, #tpu.memory_space<vmem>>, %arg2: memref<40x5xf32, #tpu.memory_space<vmem>>, %arg3: memref<8x1xf32, #tpu.memory_space<vmem>>, %arg4: memref<28x14xf32, #tpu.memory_space<vmem>>, %arg5: memref<28x14xf32, #tpu.memory_space<vmem>>, %arg6: memref<80x40xf32, #tpu.memory_space<vmem>>, %arg7: memref<16x1xf32, #tpu.memory_space<vmem>>, %arg8: memref<10x5xf32, #tpu.memory_space<vmem>>, %arg9: memref<10x5xf32, #tpu.memory_space<vmem>>, %arg10: memref<128x400xf32, #tpu.memory_space<vmem>>, %arg11: memref<128x1xf32, #tpu.memory_space<vmem>>, %arg12: memref<128x128xf32, #tpu.memory_space<vmem>>, %arg13: memref<128x1xf32, #tpu.memory_space<vmem>>, %arg14: memref<16x128xf32, #tpu.memory_space<vmem>>, %arg15: memref<16x1xf32, #tpu.memory_space<vmem>>, %arg16: memref<1x16x1xf32, #tpu.memory_space<vmem>>, %arg17: memref<112x14xf32, #tpu.memory_space<vmem>>, %arg18: memref<400x1xf32, #tpu.memory_space<vmem>>) attributes {dimension_semantics = [#tpu.dimension_semantics<parallel>], iteration_bounds = array<i64: 2>, scalar_prefetch = 0 : i64, scratch_operands = 2 : i64, tpu.core_type = #tpu.core_type<tc>, window_params = [{transform_indices = @transform_0, window_bounds = array<i64: 1, 1, 32, 32>}, {pipeline_mode = #tpu.pipeline_mode<synchronous>, transform_indices = @transform_1, window_bounds = array<i64: 40, 5>}, {pipeline_mode = #tpu.pipeline_mode<synchronous>, transform_indices = @transform_2, window_bounds = array<i64: 8, 1>}, {pipeline_mode = #tpu.pipeline_mode<synchronous>, transform_indices = @transform_3, window_bounds = array<i64: 28, 14>}, {pipeline_mode = #tpu.pipeline_mode<synchronous>, transform_indices = @transform_4, window_bounds = array<i64: 28, 14>}, {pipeline_mode = #tpu.pipeline_mode<synchronous>, transform_indices = @transform_5, window_bounds = array<i64: 80, 40>}, {pipeline_mode = #tpu.pipeline_mode<synchronous>, transform_indices = @transform_6, window_bounds = array<i64: 16, 1>}, {pipeline_mode = #tpu.pipeline_mode<synchronous>, transform_indices = @transform_7, window_bounds = array<i64: 10, 5>}, {pipeline_mode = #tpu.pipeline_mode<synchronous>, transform_indices = @transform_8, window_bounds = array<i64: 10, 5>}, {pipeline_mode = #tpu.pipeline_mode<synchronous>, transform_indices = @transform_9, window_bounds = array<i64: 128, 400>}, {pipeline_mode = #tpu.pipeline_mode<synchronous>, transform_indices = @transform_10, window_bounds = array<i64: 128, 1>}, {pipeline_mode = #tpu.pipeline_mode<synchronous>, transform_indices = @transform_11, window_bounds = array<i64: 128, 128>}, {pipeline_mode = #tpu.pipeline_mode<synchronous>, transform_indices = @transform_12, window_bounds = array<i64: 128, 1>}, {pipeline_mode = #tpu.pipeline_mode<synchronous>, transform_indices = @transform_13, window_bounds = array<i64: 16, 128>}, {pipeline_mode = #tpu.pipeline_mode<synchronous>, transform_indices = @transform_14, window_bounds = array<i64: 16, 1>}, {transform_indices = @transform_15, window_bounds = array<i64: 1, 16, 1>}]} {
    %c0 = arith.constant 0 : index
    %c0_0 = arith.constant 0 : index
    %0 = vector.load %arg2[%c0, %c0_0] : memref<40x5xf32, #tpu.memory_space<vmem>>, vector<40x5xf32>
    %c0_1 = arith.constant 0 : index
    %c0_2 = arith.constant 0 : index
    %1 = vector.load %arg3[%c0_1, %c0_2] : memref<8x1xf32, #tpu.memory_space<vmem>>, vector<8x1xf32>
    %c0_3 = arith.constant 0 : index
    %c0_4 = arith.constant 0 : index
    %2 = vector.load %arg4[%c0_3, %c0_4] : memref<28x14xf32, #tpu.memory_space<vmem>>, vector<28x14xf32>
    %c0_5 = arith.constant 0 : index
    %c0_6 = arith.constant 0 : index
    %3 = vector.load %arg5[%c0_5, %c0_6] : memref<28x14xf32, #tpu.memory_space<vmem>>, vector<28x14xf32>
    %c0_7 = arith.constant 0 : index
    %c0_8 = arith.constant 0 : index
    %c0_9 = arith.constant 0 : index
    %c0_10 = arith.constant 0 : index
    %4 = vector.load %arg1[%c0_7, %c0_8, %c0_9, %c0_10] : memref<1x1x32x32xf32, #tpu.memory_space<vmem>>, vector<1x1x5x32xf32>
    %5 = vector.shape_cast %4 : vector<1x1x5x32xf32> to vector<5x32xf32>
    %cst = arith.constant dense<0.000000e+00> : vector<40x32xf32>
    %6 = tpu.matmul %0, %5, %cst {dimension_numbers = #tpu.dot_dimension_numbers<[1], [0], [0], [1], [0, 0, 1, 1], [], []>} : vector<40x5xf32>, vector<5x32xf32>, vector<40x32xf32> -> vector<40x32xf32>
    %7 = vector.extract_strided_slice %6 {offsets = [0, 0], sizes = [8, 28], strides = [1, 1]} : vector<40x32xf32> to vector<8x28xf32>
    %8 = vector.extract_strided_slice %6 {offsets = [8, 1], sizes = [8, 28], strides = [1, 1]} : vector<40x32xf32> to vector<8x28xf32>
    %9 = arith.addf %7, %8 : vector<8x28xf32>
    %10 = vector.extract_strided_slice %6 {offsets = [16, 2], sizes = [8, 28], strides = [1, 1]} : vector<40x32xf32> to vector<8x28xf32>
    %11 = arith.addf %9, %10 : vector<8x28xf32>
    %12 = vector.extract_strided_slice %6 {offsets = [24, 3], sizes = [8, 28], strides = [1, 1]} : vector<40x32xf32> to vector<8x28xf32>
    %13 = arith.addf %11, %12 : vector<8x28xf32>
    %14 = vector.extract_strided_slice %6 {offsets = [32, 4], sizes = [8, 28], strides = [1, 1]} : vector<40x32xf32> to vector<8x28xf32>
    %15 = arith.addf %13, %14 : vector<8x28xf32>
    %16 = vector.broadcast %1 : vector<8x1xf32> to vector<8x28xf32>
    %17 = arith.addf %15, %16 : vector<8x28xf32>
    %cst_11 = arith.constant 0.000000e+00 : f32
    %18 = vector.broadcast %cst_11 : f32 to vector<8x28xf32>
    %19 = arith.maximumf %17, %18 : vector<8x28xf32>
    %c0_12 = arith.constant 0 : index
    %c0_13 = arith.constant 0 : index
    %c1 = arith.constant 1 : index
    %c0_14 = arith.constant 0 : index
    %20 = vector.load %arg1[%c0_12, %c0_13, %c1, %c0_14] : memref<1x1x32x32xf32, #tpu.memory_space<vmem>>, vector<1x1x5x32xf32>
    %21 = vector.shape_cast %20 : vector<1x1x5x32xf32> to vector<5x32xf32>
    %cst_15 = arith.constant dense<0.000000e+00> : vector<40x32xf32>
    %22 = tpu.matmul %0, %21, %cst_15 {dimension_numbers = #tpu.dot_dimension_numbers<[1], [0], [0], [1], [0, 0, 1, 1], [], []>} : vector<40x5xf32>, vector<5x32xf32>, vector<40x32xf32> -> vector<40x32xf32>
    %23 = vector.extract_strided_slice %22 {offsets = [0, 0], sizes = [8, 28], strides = [1, 1]} : vector<40x32xf32> to vector<8x28xf32>
    %24 = vector.extract_strided_slice %22 {offsets = [8, 1], sizes = [8, 28], strides = [1, 1]} : vector<40x32xf32> to vector<8x28xf32>
    %25 = arith.addf %23, %24 : vector<8x28xf32>
    %26 = vector.extract_strided_slice %22 {offsets = [16, 2], sizes = [8, 28], strides = [1, 1]} : vector<40x32xf32> to vector<8x28xf32>
    %27 = arith.addf %25, %26 : vector<8x28xf32>
    %28 = vector.extract_strided_slice %22 {offsets = [24, 3], sizes = [8, 28], strides = [1, 1]} : vector<40x32xf32> to vector<8x28xf32>
    %29 = arith.addf %27, %28 : vector<8x28xf32>
    %30 = vector.extract_strided_slice %22 {offsets = [32, 4], sizes = [8, 28], strides = [1, 1]} : vector<40x32xf32> to vector<8x28xf32>
    %31 = arith.addf %29, %30 : vector<8x28xf32>
    %32 = vector.broadcast %1 : vector<8x1xf32> to vector<8x28xf32>
    %33 = arith.addf %31, %32 : vector<8x28xf32>
    %cst_16 = arith.constant 0.000000e+00 : f32
    %34 = vector.broadcast %cst_16 : f32 to vector<8x28xf32>
    %35 = arith.maximumf %33, %34 : vector<8x28xf32>
    %36 = arith.maximumf %19, %35 : vector<8x28xf32>
    %cst_17 = arith.constant dense<0.000000e+00> : vector<8x14xf32>
    %37 = tpu.matmul %36, %2, %cst_17 {dimension_numbers = #tpu.dot_dimension_numbers<[1], [0], [0], [1], [0, 0, 1, 1], [], []>} : vector<8x28xf32>, vector<28x14xf32>, vector<8x14xf32> -> vector<8x14xf32>
    %cst_18 = arith.constant dense<0.000000e+00> : vector<8x14xf32>
    %38 = tpu.matmul %36, %3, %cst_18 {dimension_numbers = #tpu.dot_dimension_numbers<[1], [0], [0], [1], [0, 0, 1, 1], [], []>} : vector<8x28xf32>, vector<28x14xf32>, vector<8x14xf32> -> vector<8x14xf32>
    %39 = arith.maximumf %37, %38 : vector<8x14xf32>
    %c0_19 = arith.constant 0 : index
    %c0_20 = arith.constant 0 : index
    %40 = vector.load %arg17[%c0_19, %c0_20] : memref<112x14xf32, #tpu.memory_space<vmem>>, vector<8x14xf32>
    tpu.vector_store %arg17[%c0_19, %c0_20], %39 {strides = array<i32>} : memref<112x14xf32, #tpu.memory_space<vmem>>, vector<8x14xf32>,
    %c0_21 = arith.constant 0 : index
    %c0_22 = arith.constant 0 : index
    %c2 = arith.constant 2 : index
    %c0_23 = arith.constant 0 : index
    %41 = vector.load %arg1[%c0_21, %c0_22, %c2, %c0_23] : memref<1x1x32x32xf32, #tpu.memory_space<vmem>>, vector<1x1x5x32xf32>
    %42 = vector.shape_cast %41 : vector<1x1x5x32xf32> to vector<5x32xf32>
    %cst_24 = arith.constant dense<0.000000e+00> : vector<40x32xf32>
    %43 = tpu.matmul %0, %42, %cst_24 {dimension_numbers = #tpu.dot_dimension_numbers<[1], [0], [0], [1], [0, 0, 1, 1], [], []>} : vector<40x5xf32>, vector<5x32xf32>, vector<40x32xf32> -> vector<40x32xf32>
    %44 = vector.extract_strided_slice %43 {offsets = [0, 0], sizes = [8, 28], strides = [1, 1]} : vector<40x32xf32> to vector<8x28xf32>
    %45 = vector.extract_strided_slice %43 {offsets = [8, 1], sizes = [8, 28], strides = [1, 1]} : vector<40x32xf32> to vector<8x28xf32>
    %46 = arith.addf %44, %45 : vector<8x28xf32>
    %47 = vector.extract_strided_slice %43 {offsets = [16, 2], sizes = [8, 28], strides = [1, 1]} : vector<40x32xf32> to vector<8x28xf32>
    %48 = arith.addf %46, %47 : vector<8x28xf32>
    %49 = vector.extract_strided_slice %43 {offsets = [24, 3], sizes = [8, 28], strides = [1, 1]} : vector<40x32xf32> to vector<8x28xf32>
    %50 = arith.addf %48, %49 : vector<8x28xf32>
    %51 = vector.extract_strided_slice %43 {offsets = [32, 4], sizes = [8, 28], strides = [1, 1]} : vector<40x32xf32> to vector<8x28xf32>
    %52 = arith.addf %50, %51 : vector<8x28xf32>
    %53 = vector.broadcast %1 : vector<8x1xf32> to vector<8x28xf32>
    %54 = arith.addf %52, %53 : vector<8x28xf32>
    %cst_25 = arith.constant 0.000000e+00 : f32
    %55 = vector.broadcast %cst_25 : f32 to vector<8x28xf32>
    %56 = arith.maximumf %54, %55 : vector<8x28xf32>
    %c0_26 = arith.constant 0 : index
    %c0_27 = arith.constant 0 : index
    %c3 = arith.constant 3 : index
    %c0_28 = arith.constant 0 : index
    %57 = vector.load %arg1[%c0_26, %c0_27, %c3, %c0_28] : memref<1x1x32x32xf32, #tpu.memory_space<vmem>>, vector<1x1x5x32xf32>
    %58 = vector.shape_cast %57 : vector<1x1x5x32xf32> to vector<5x32xf32>
    %cst_29 = arith.constant dense<0.000000e+00> : vector<40x32xf32>
    %59 = tpu.matmul %0, %58, %cst_29 {dimension_numbers = #tpu.dot_dimension_numbers<[1], [0], [0], [1], [0, 0, 1, 1], [], []>} : vector<40x5xf32>, vector<5x32xf32>, vector<40x32xf32> -> vector<40x32xf32>
    %60 = vector.extract_strided_slice %59 {offsets = [0, 0], sizes = [8, 28], strides = [1, 1]} : vector<40x32xf32> to vector<8x28xf32>
    %61 = vector.extract_strided_slice %59 {offsets = [8, 1], sizes = [8, 28], strides = [1, 1]} : vector<40x32xf32> to vector<8x28xf32>
    %62 = arith.addf %60, %61 : vector<8x28xf32>
    %63 = vector.extract_strided_slice %59 {offsets = [16, 2], sizes = [8, 28], strides = [1, 1]} : vector<40x32xf32> to vector<8x28xf32>
    %64 = arith.addf %62, %63 : vector<8x28xf32>
    %65 = vector.extract_strided_slice %59 {offsets = [24, 3], sizes = [8, 28], strides = [1, 1]} : vector<40x32xf32> to vector<8x28xf32>
    %66 = arith.addf %64, %65 : vector<8x28xf32>
    %67 = vector.extract_strided_slice %59 {offsets = [32, 4], sizes = [8, 28], strides = [1, 1]} : vector<40x32xf32> to vector<8x28xf32>
    %68 = arith.addf %66, %67 : vector<8x28xf32>
    %69 = vector.broadcast %1 : vector<8x1xf32> to vector<8x28xf32>
    %70 = arith.addf %68, %69 : vector<8x28xf32>
    %cst_30 = arith.constant 0.000000e+00 : f32
    %71 = vector.broadcast %cst_30 : f32 to vector<8x28xf32>
    %72 = arith.maximumf %70, %71 : vector<8x28xf32>
    %73 = arith.maximumf %56, %72 : vector<8x28xf32>
    %cst_31 = arith.constant dense<0.000000e+00> : vector<8x14xf32>
    %74 = tpu.matmul %73, %2, %cst_31 {dimension_numbers = #tpu.dot_dimension_numbers<[1], [0], [0], [1], [0, 0, 1, 1], [], []>} : vector<8x28xf32>, vector<28x14xf32>, vector<8x14xf32> -> vector<8x14xf32>
    %cst_32 = arith.constant dense<0.000000e+00> : vector<8x14xf32>
    %75 = tpu.matmul %73, %3, %cst_32 {dimension_numbers = #tpu.dot_dimension_numbers<[1], [0], [0], [1], [0, 0, 1, 1], [], []>} : vector<8x28xf32>, vector<28x14xf32>, vector<8x14xf32> -> vector<8x14xf32>
    %76 = arith.maximumf %74, %75 : vector<8x14xf32>
    %c8 = arith.constant 8 : index
    %c0_33 = arith.constant 0 : index
    %77 = vector.load %arg17[%c8, %c0_33] : memref<112x14xf32, #tpu.memory_space<vmem>>, vector<8x14xf32>
    tpu.vector_store %arg17[%c8, %c0_33], %76 {strides = array<i32>} : memref<112x14xf32, #tpu.memory_space<vmem>>, vector<8x14xf32>,
    %c0_34 = arith.constant 0 : index
    %c0_35 = arith.constant 0 : index
    %c4 = arith.constant 4 : index
    %c0_36 = arith.constant 0 : index
    %78 = vector.load %arg1[%c0_34, %c0_35, %c4, %c0_36] : memref<1x1x32x32xf32, #tpu.memory_space<vmem>>, vector<1x1x5x32xf32>
    %79 = vector.shape_cast %78 : vector<1x1x5x32xf32> to vector<5x32xf32>
    %cst_37 = arith.constant dense<0.000000e+00> : vector<40x32xf32>
    %80 = tpu.matmul %0, %79, %cst_37 {dimension_numbers = #tpu.dot_dimension_numbers<[1], [0], [0], [1], [0, 0, 1, 1], [], []>} : vector<40x5xf32>, vector<5x32xf32>, vector<40x32xf32> -> vector<40x32xf32>
    %81 = vector.extract_strided_slice %80 {offsets = [0, 0], sizes = [8, 28], strides = [1, 1]} : vector<40x32xf32> to vector<8x28xf32>
    %82 = vector.extract_strided_slice %80 {offsets = [8, 1], sizes = [8, 28], strides = [1, 1]} : vector<40x32xf32> to vector<8x28xf32>
    %83 = arith.addf %81, %82 : vector<8x28xf32>
    %84 = vector.extract_strided_slice %80 {offsets = [16, 2], sizes = [8, 28], strides = [1, 1]} : vector<40x32xf32> to vector<8x28xf32>
    %85 = arith.addf %83, %84 : vector<8x28xf32>
    %86 = vector.extract_strided_slice %80 {offsets = [24, 3], sizes = [8, 28], strides = [1, 1]} : vector<40x32xf32> to vector<8x28xf32>
    %87 = arith.addf %85, %86 : vector<8x28xf32>
    %88 = vector.extract_strided_slice %80 {offsets = [32, 4], sizes = [8, 28], strides = [1, 1]} : vector<40x32xf32> to vector<8x28xf32>
    %89 = arith.addf %87, %88 : vector<8x28xf32>
    %90 = vector.broadcast %1 : vector<8x1xf32> to vector<8x28xf32>
    %91 = arith.addf %89, %90 : vector<8x28xf32>
    %cst_38 = arith.constant 0.000000e+00 : f32
    %92 = vector.broadcast %cst_38 : f32 to vector<8x28xf32>
    %93 = arith.maximumf %91, %92 : vector<8x28xf32>
    %c0_39 = arith.constant 0 : index
    %c0_40 = arith.constant 0 : index
    %c5 = arith.constant 5 : index
    %c0_41 = arith.constant 0 : index
    %94 = vector.load %arg1[%c0_39, %c0_40, %c5, %c0_41] : memref<1x1x32x32xf32, #tpu.memory_space<vmem>>, vector<1x1x5x32xf32>
    %95 = vector.shape_cast %94 : vector<1x1x5x32xf32> to vector<5x32xf32>
    %cst_42 = arith.constant dense<0.000000e+00> : vector<40x32xf32>
    %96 = tpu.matmul %0, %95, %cst_42 {dimension_numbers = #tpu.dot_dimension_numbers<[1], [0], [0], [1], [0, 0, 1, 1], [], []>} : vector<40x5xf32>, vector<5x32xf32>, vector<40x32xf32> -> vector<40x32xf32>
    %97 = vector.extract_strided_slice %96 {offsets = [0, 0], sizes = [8, 28], strides = [1, 1]} : vector<40x32xf32> to vector<8x28xf32>
    %98 = vector.extract_strided_slice %96 {offsets = [8, 1], sizes = [8, 28], strides = [1, 1]} : vector<40x32xf32> to vector<8x28xf32>
    %99 = arith.addf %97, %98 : vector<8x28xf32>
    %100 = vector.extract_strided_slice %96 {offsets = [16, 2], sizes = [8, 28], strides = [1, 1]} : vector<40x32xf32> to vector<8x28xf32>
    %101 = arith.addf %99, %100 : vector<8x28xf32>
    %102 = vector.extract_strided_slice %96 {offsets = [24, 3], sizes = [8, 28], strides = [1, 1]} : vector<40x32xf32> to vector<8x28xf32>
    %103 = arith.addf %101, %102 : vector<8x28xf32>
    %104 = vector.extract_strided_slice %96 {offsets = [32, 4], sizes = [8, 28], strides = [1, 1]} : vector<40x32xf32> to vector<8x28xf32>
    %105 = arith.addf %103, %104 : vector<8x28xf32>
    %106 = vector.broadcast %1 : vector<8x1xf32> to vector<8x28xf32>
    %107 = arith.addf %105, %106 : vector<8x28xf32>
    %cst_43 = arith.constant 0.000000e+00 : f32
    %108 = vector.broadcast %cst_43 : f32 to vector<8x28xf32>
    %109 = arith.maximumf %107, %108 : vector<8x28xf32>
    %110 = arith.maximumf %93, %109 : vector<8x28xf32>
    %cst_44 = arith.constant dense<0.000000e+00> : vector<8x14xf32>
    %111 = tpu.matmul %110, %2, %cst_44 {dimension_numbers = #tpu.dot_dimension_numbers<[1], [0], [0], [1], [0, 0, 1, 1], [], []>} : vector<8x28xf32>, vector<28x14xf32>, vector<8x14xf32> -> vector<8x14xf32>
    %cst_45 = arith.constant dense<0.000000e+00> : vector<8x14xf32>
    %112 = tpu.matmul %110, %3, %cst_45 {dimension_numbers = #tpu.dot_dimension_numbers<[1], [0], [0], [1], [0, 0, 1, 1], [], []>} : vector<8x28xf32>, vector<28x14xf32>, vector<8x14xf32> -> vector<8x14xf32>
    %113 = arith.maximumf %111, %112 : vector<8x14xf32>
    %c16 = arith.constant 16 : index
    %c0_46 = arith.constant 0 : index
    %114 = vector.load %arg17[%c16, %c0_46] : memref<112x14xf32, #tpu.memory_space<vmem>>, vector<8x14xf32>
    tpu.vector_store %arg17[%c16, %c0_46], %113 {strides = array<i32>} : memref<112x14xf32, #tpu.memory_space<vmem>>, vector<8x14xf32>,
    %c0_47 = arith.constant 0 : index
    %c0_48 = arith.constant 0 : index
    %c6 = arith.constant 6 : index
    %c0_49 = arith.constant 0 : index
    %115 = vector.load %arg1[%c0_47, %c0_48, %c6, %c0_49] : memref<1x1x32x32xf32, #tpu.memory_space<vmem>>, vector<1x1x5x32xf32>
    %116 = vector.shape_cast %115 : vector<1x1x5x32xf32> to vector<5x32xf32>
    %cst_50 = arith.constant dense<0.000000e+00> : vector<40x32xf32>
    %117 = tpu.matmul %0, %116, %cst_50 {dimension_numbers = #tpu.dot_dimension_numbers<[1], [0], [0], [1], [0, 0, 1, 1], [], []>} : vector<40x5xf32>, vector<5x32xf32>, vector<40x32xf32> -> vector<40x32xf32>
    %118 = vector.extract_strided_slice %117 {offsets = [0, 0], sizes = [8, 28], strides = [1, 1]} : vector<40x32xf32> to vector<8x28xf32>
    %119 = vector.extract_strided_slice %117 {offsets = [8, 1], sizes = [8, 28], strides = [1, 1]} : vector<40x32xf32> to vector<8x28xf32>
    %120 = arith.addf %118, %119 : vector<8x28xf32>
    %121 = vector.extract_strided_slice %117 {offsets = [16, 2], sizes = [8, 28], strides = [1, 1]} : vector<40x32xf32> to vector<8x28xf32>
    %122 = arith.addf %120, %121 : vector<8x28xf32>
    %123 = vector.extract_strided_slice %117 {offsets = [24, 3], sizes = [8, 28], strides = [1, 1]} : vector<40x32xf32> to vector<8x28xf32>
    %124 = arith.addf %122, %123 : vector<8x28xf32>
    %125 = vector.extract_strided_slice %117 {offsets = [32, 4], sizes = [8, 28], strides = [1, 1]} : vector<40x32xf32> to vector<8x28xf32>
    %126 = arith.addf %124, %125 : vector<8x28xf32>
    %127 = vector.broadcast %1 : vector<8x1xf32> to vector<8x28xf32>
    %128 = arith.addf %126, %127 : vector<8x28xf32>
    %cst_51 = arith.constant 0.000000e+00 : f32
    %129 = vector.broadcast %cst_51 : f32 to vector<8x28xf32>
    %130 = arith.maximumf %128, %129 : vector<8x28xf32>
    %c0_52 = arith.constant 0 : index
    %c0_53 = arith.constant 0 : index
    %c7 = arith.constant 7 : index
    %c0_54 = arith.constant 0 : index
    %131 = vector.load %arg1[%c0_52, %c0_53, %c7, %c0_54] : memref<1x1x32x32xf32, #tpu.memory_space<vmem>>, vector<1x1x5x32xf32>
    %132 = vector.shape_cast %131 : vector<1x1x5x32xf32> to vector<5x32xf32>
    %cst_55 = arith.constant dense<0.000000e+00> : vector<40x32xf32>
    %133 = tpu.matmul %0, %132, %cst_55 {dimension_numbers = #tpu.dot_dimension_numbers<[1], [0], [0], [1], [0, 0, 1, 1], [], []>} : vector<40x5xf32>, vector<5x32xf32>, vector<40x32xf32> -> vector<40x32xf32>
    %134 = vector.extract_strided_slice %133 {offsets = [0, 0], sizes = [8, 28], strides = [1, 1]} : vector<40x32xf32> to vector<8x28xf32>
    %135 = vector.extract_strided_slice %133 {offsets = [8, 1], sizes = [8, 28], strides = [1, 1]} : vector<40x32xf32> to vector<8x28xf32>
    %136 = arith.addf %134, %135 : vector<8x28xf32>
    %137 = vector.extract_strided_slice %133 {offsets = [16, 2], sizes = [8, 28], strides = [1, 1]} : vector<40x32xf32> to vector<8x28xf32>
    %138 = arith.addf %136, %137 : vector<8x28xf32>
    %139 = vector.extract_strided_slice %133 {offsets = [24, 3], sizes = [8, 28], strides = [1, 1]} : vector<40x32xf32> to vector<8x28xf32>
    %140 = arith.addf %138, %139 : vector<8x28xf32>
    %141 = vector.extract_strided_slice %133 {offsets = [32, 4], sizes = [8, 28], strides = [1, 1]} : vector<40x32xf32> to vector<8x28xf32>
    %142 = arith.addf %140, %141 : vector<8x28xf32>
    %143 = vector.broadcast %1 : vector<8x1xf32> to vector<8x28xf32>
    %144 = arith.addf %142, %143 : vector<8x28xf32>
    %cst_56 = arith.constant 0.000000e+00 : f32
    %145 = vector.broadcast %cst_56 : f32 to vector<8x28xf32>
    %146 = arith.maximumf %144, %145 : vector<8x28xf32>
    %147 = arith.maximumf %130, %146 : vector<8x28xf32>
    %cst_57 = arith.constant dense<0.000000e+00> : vector<8x14xf32>
    %148 = tpu.matmul %147, %2, %cst_57 {dimension_numbers = #tpu.dot_dimension_numbers<[1], [0], [0], [1], [0, 0, 1, 1], [], []>} : vector<8x28xf32>, vector<28x14xf32>, vector<8x14xf32> -> vector<8x14xf32>
    %cst_58 = arith.constant dense<0.000000e+00> : vector<8x14xf32>
    %149 = tpu.matmul %147, %3, %cst_58 {dimension_numbers = #tpu.dot_dimension_numbers<[1], [0], [0], [1], [0, 0, 1, 1], [], []>} : vector<8x28xf32>, vector<28x14xf32>, vector<8x14xf32> -> vector<8x14xf32>
    %150 = arith.maximumf %148, %149 : vector<8x14xf32>
    %c24 = arith.constant 24 : index
    %c0_59 = arith.constant 0 : index
    %151 = vector.load %arg17[%c24, %c0_59] : memref<112x14xf32, #tpu.memory_space<vmem>>, vector<8x14xf32>
    tpu.vector_store %arg17[%c24, %c0_59], %150 {strides = array<i32>} : memref<112x14xf32, #tpu.memory_space<vmem>>, vector<8x14xf32>,
    %c0_60 = arith.constant 0 : index
    %c0_61 = arith.constant 0 : index
    %c8_62 = arith.constant 8 : index
    %c0_63 = arith.constant 0 : index
    %152 = vector.load %arg1[%c0_60, %c0_61, %c8_62, %c0_63] : memref<1x1x32x32xf32, #tpu.memory_space<vmem>>, vector<1x1x5x32xf32>
    %153 = vector.shape_cast %152 : vector<1x1x5x32xf32> to vector<5x32xf32>
    %cst_64 = arith.constant dense<0.000000e+00> : vector<40x32xf32>
    %154 = tpu.matmul %0, %153, %cst_64 {dimension_numbers = #tpu.dot_dimension_numbers<[1], [0], [0], [1], [0, 0, 1, 1], [], []>} : vector<40x5xf32>, vector<5x32xf32>, vector<40x32xf32> -> vector<40x32xf32>
    %155 = vector.extract_strided_slice %154 {offsets = [0, 0], sizes = [8, 28], strides = [1, 1]} : vector<40x32xf32> to vector<8x28xf32>
    %156 = vector.extract_strided_slice %154 {offsets = [8, 1], sizes = [8, 28], strides = [1, 1]} : vector<40x32xf32> to vector<8x28xf32>
    %157 = arith.addf %155, %156 : vector<8x28xf32>
    %158 = vector.extract_strided_slice %154 {offsets = [16, 2], sizes = [8, 28], strides = [1, 1]} : vector<40x32xf32> to vector<8x28xf32>
    %159 = arith.addf %157, %158 : vector<8x28xf32>
    %160 = vector.extract_strided_slice %154 {offsets = [24, 3], sizes = [8, 28], strides = [1, 1]} : vector<40x32xf32> to vector<8x28xf32>
    %161 = arith.addf %159, %160 : vector<8x28xf32>
    %162 = vector.extract_strided_slice %154 {offsets = [32, 4], sizes = [8, 28], strides = [1, 1]} : vector<40x32xf32> to vector<8x28xf32>
    %163 = arith.addf %161, %162 : vector<8x28xf32>
    %164 = vector.broadcast %1 : vector<8x1xf32> to vector<8x28xf32>
    %165 = arith.addf %163, %164 : vector<8x28xf32>
    %cst_65 = arith.constant 0.000000e+00 : f32
    %166 = vector.broadcast %cst_65 : f32 to vector<8x28xf32>
    %167 = arith.maximumf %165, %166 : vector<8x28xf32>
    %c0_66 = arith.constant 0 : index
    %c0_67 = arith.constant 0 : index
    %c9 = arith.constant 9 : index
    %c0_68 = arith.constant 0 : index
    %168 = vector.load %arg1[%c0_66, %c0_67, %c9, %c0_68] : memref<1x1x32x32xf32, #tpu.memory_space<vmem>>, vector<1x1x5x32xf32>
    %169 = vector.shape_cast %168 : vector<1x1x5x32xf32> to vector<5x32xf32>
    %cst_69 = arith.constant dense<0.000000e+00> : vector<40x32xf32>
    %170 = tpu.matmul %0, %169, %cst_69 {dimension_numbers = #tpu.dot_dimension_numbers<[1], [0], [0], [1], [0, 0, 1, 1], [], []>} : vector<40x5xf32>, vector<5x32xf32>, vector<40x32xf32> -> vector<40x32xf32>
    %171 = vector.extract_strided_slice %170 {offsets = [0, 0], sizes = [8, 28], strides = [1, 1]} : vector<40x32xf32> to vector<8x28xf32>
    %172 = vector.extract_strided_slice %170 {offsets = [8, 1], sizes = [8, 28], strides = [1, 1]} : vector<40x32xf32> to vector<8x28xf32>
    %173 = arith.addf %171, %172 : vector<8x28xf32>
    %174 = vector.extract_strided_slice %170 {offsets = [16, 2], sizes = [8, 28], strides = [1, 1]} : vector<40x32xf32> to vector<8x28xf32>
    %175 = arith.addf %173, %174 : vector<8x28xf32>
    %176 = vector.extract_strided_slice %170 {offsets = [24, 3], sizes = [8, 28], strides = [1, 1]} : vector<40x32xf32> to vector<8x28xf32>
    %177 = arith.addf %175, %176 : vector<8x28xf32>
    %178 = vector.extract_strided_slice %170 {offsets = [32, 4], sizes = [8, 28], strides = [1, 1]} : vector<40x32xf32> to vector<8x28xf32>
    %179 = arith.addf %177, %178 : vector<8x28xf32>
    %180 = vector.broadcast %1 : vector<8x1xf32> to vector<8x28xf32>
    %181 = arith.addf %179, %180 : vector<8x28xf32>
    %cst_70 = arith.constant 0.000000e+00 : f32
    %182 = vector.broadcast %cst_70 : f32 to vector<8x28xf32>
    %183 = arith.maximumf %181, %182 : vector<8x28xf32>
    %184 = arith.maximumf %167, %183 : vector<8x28xf32>
    %cst_71 = arith.constant dense<0.000000e+00> : vector<8x14xf32>
    %185 = tpu.matmul %184, %2, %cst_71 {dimension_numbers = #tpu.dot_dimension_numbers<[1], [0], [0], [1], [0, 0, 1, 1], [], []>} : vector<8x28xf32>, vector<28x14xf32>, vector<8x14xf32> -> vector<8x14xf32>
    %cst_72 = arith.constant dense<0.000000e+00> : vector<8x14xf32>
    %186 = tpu.matmul %184, %3, %cst_72 {dimension_numbers = #tpu.dot_dimension_numbers<[1], [0], [0], [1], [0, 0, 1, 1], [], []>} : vector<8x28xf32>, vector<28x14xf32>, vector<8x14xf32> -> vector<8x14xf32>
    %187 = arith.maximumf %185, %186 : vector<8x14xf32>
    %c32 = arith.constant 32 : index
    %c0_73 = arith.constant 0 : index
    %188 = vector.load %arg17[%c32, %c0_73] : memref<112x14xf32, #tpu.memory_space<vmem>>, vector<8x14xf32>
    tpu.vector_store %arg17[%c32, %c0_73], %187 {strides = array<i32>} : memref<112x14xf32, #tpu.memory_space<vmem>>, vector<8x14xf32>,
    %c0_74 = arith.constant 0 : index
    %c0_75 = arith.constant 0 : index
    %c10 = arith.constant 10 : index
    %c0_76 = arith.constant 0 : index
    %189 = vector.load %arg1[%c0_74, %c0_75, %c10, %c0_76] : memref<1x1x32x32xf32, #tpu.memory_space<vmem>>, vector<1x1x5x32xf32>
    %190 = vector.shape_cast %189 : vector<1x1x5x32xf32> to vector<5x32xf32>
    %cst_77 = arith.constant dense<0.000000e+00> : vector<40x32xf32>
    %191 = tpu.matmul %0, %190, %cst_77 {dimension_numbers = #tpu.dot_dimension_numbers<[1], [0], [0], [1], [0, 0, 1, 1], [], []>} : vector<40x5xf32>, vector<5x32xf32>, vector<40x32xf32> -> vector<40x32xf32>
    %192 = vector.extract_strided_slice %191 {offsets = [0, 0], sizes = [8, 28], strides = [1, 1]} : vector<40x32xf32> to vector<8x28xf32>
    %193 = vector.extract_strided_slice %191 {offsets = [8, 1], sizes = [8, 28], strides = [1, 1]} : vector<40x32xf32> to vector<8x28xf32>
    %194 = arith.addf %192, %193 : vector<8x28xf32>
    %195 = vector.extract_strided_slice %191 {offsets = [16, 2], sizes = [8, 28], strides = [1, 1]} : vector<40x32xf32> to vector<8x28xf32>
    %196 = arith.addf %194, %195 : vector<8x28xf32>
    %197 = vector.extract_strided_slice %191 {offsets = [24, 3], sizes = [8, 28], strides = [1, 1]} : vector<40x32xf32> to vector<8x28xf32>
    %198 = arith.addf %196, %197 : vector<8x28xf32>
    %199 = vector.extract_strided_slice %191 {offsets = [32, 4], sizes = [8, 28], strides = [1, 1]} : vector<40x32xf32> to vector<8x28xf32>
    %200 = arith.addf %198, %199 : vector<8x28xf32>
    %201 = vector.broadcast %1 : vector<8x1xf32> to vector<8x28xf32>
    %202 = arith.addf %200, %201 : vector<8x28xf32>
    %cst_78 = arith.constant 0.000000e+00 : f32
    %203 = vector.broadcast %cst_78 : f32 to vector<8x28xf32>
    %204 = arith.maximumf %202, %203 : vector<8x28xf32>
    %c0_79 = arith.constant 0 : index
    %c0_80 = arith.constant 0 : index
    %c11 = arith.constant 11 : index
    %c0_81 = arith.constant 0 : index
    %205 = vector.load %arg1[%c0_79, %c0_80, %c11, %c0_81] : memref<1x1x32x32xf32, #tpu.memory_space<vmem>>, vector<1x1x5x32xf32>
    %206 = vector.shape_cast %205 : vector<1x1x5x32xf32> to vector<5x32xf32>
    %cst_82 = arith.constant dense<0.000000e+00> : vector<40x32xf32>
    %207 = tpu.matmul %0, %206, %cst_82 {dimension_numbers = #tpu.dot_dimension_numbers<[1], [0], [0], [1], [0, 0, 1, 1], [], []>} : vector<40x5xf32>, vector<5x32xf32>, vector<40x32xf32> -> vector<40x32xf32>
    %208 = vector.extract_strided_slice %207 {offsets = [0, 0], sizes = [8, 28], strides = [1, 1]} : vector<40x32xf32> to vector<8x28xf32>
    %209 = vector.extract_strided_slice %207 {offsets = [8, 1], sizes = [8, 28], strides = [1, 1]} : vector<40x32xf32> to vector<8x28xf32>
    %210 = arith.addf %208, %209 : vector<8x28xf32>
    %211 = vector.extract_strided_slice %207 {offsets = [16, 2], sizes = [8, 28], strides = [1, 1]} : vector<40x32xf32> to vector<8x28xf32>
    %212 = arith.addf %210, %211 : vector<8x28xf32>
    %213 = vector.extract_strided_slice %207 {offsets = [24, 3], sizes = [8, 28], strides = [1, 1]} : vector<40x32xf32> to vector<8x28xf32>
    %214 = arith.addf %212, %213 : vector<8x28xf32>
    %215 = vector.extract_strided_slice %207 {offsets = [32, 4], sizes = [8, 28], strides = [1, 1]} : vector<40x32xf32> to vector<8x28xf32>
    %216 = arith.addf %214, %215 : vector<8x28xf32>
    %217 = vector.broadcast %1 : vector<8x1xf32> to vector<8x28xf32>
    %218 = arith.addf %216, %217 : vector<8x28xf32>
    %cst_83 = arith.constant 0.000000e+00 : f32
    %219 = vector.broadcast %cst_83 : f32 to vector<8x28xf32>
    %220 = arith.maximumf %218, %219 : vector<8x28xf32>
    %221 = arith.maximumf %204, %220 : vector<8x28xf32>
    %cst_84 = arith.constant dense<0.000000e+00> : vector<8x14xf32>
    %222 = tpu.matmul %221, %2, %cst_84 {dimension_numbers = #tpu.dot_dimension_numbers<[1], [0], [0], [1], [0, 0, 1, 1], [], []>} : vector<8x28xf32>, vector<28x14xf32>, vector<8x14xf32> -> vector<8x14xf32>
    %cst_85 = arith.constant dense<0.000000e+00> : vector<8x14xf32>
    %223 = tpu.matmul %221, %3, %cst_85 {dimension_numbers = #tpu.dot_dimension_numbers<[1], [0], [0], [1], [0, 0, 1, 1], [], []>} : vector<8x28xf32>, vector<28x14xf32>, vector<8x14xf32> -> vector<8x14xf32>
    %224 = arith.maximumf %222, %223 : vector<8x14xf32>
    %c40 = arith.constant 40 : index
    %c0_86 = arith.constant 0 : index
    %225 = vector.load %arg17[%c40, %c0_86] : memref<112x14xf32, #tpu.memory_space<vmem>>, vector<8x14xf32>
    tpu.vector_store %arg17[%c40, %c0_86], %224 {strides = array<i32>} : memref<112x14xf32, #tpu.memory_space<vmem>>, vector<8x14xf32>,
    %c0_87 = arith.constant 0 : index
    %c0_88 = arith.constant 0 : index
    %c12 = arith.constant 12 : index
    %c0_89 = arith.constant 0 : index
    %226 = vector.load %arg1[%c0_87, %c0_88, %c12, %c0_89] : memref<1x1x32x32xf32, #tpu.memory_space<vmem>>, vector<1x1x5x32xf32>
    %227 = vector.shape_cast %226 : vector<1x1x5x32xf32> to vector<5x32xf32>
    %cst_90 = arith.constant dense<0.000000e+00> : vector<40x32xf32>
    %228 = tpu.matmul %0, %227, %cst_90 {dimension_numbers = #tpu.dot_dimension_numbers<[1], [0], [0], [1], [0, 0, 1, 1], [], []>} : vector<40x5xf32>, vector<5x32xf32>, vector<40x32xf32> -> vector<40x32xf32>
    %229 = vector.extract_strided_slice %228 {offsets = [0, 0], sizes = [8, 28], strides = [1, 1]} : vector<40x32xf32> to vector<8x28xf32>
    %230 = vector.extract_strided_slice %228 {offsets = [8, 1], sizes = [8, 28], strides = [1, 1]} : vector<40x32xf32> to vector<8x28xf32>
    %231 = arith.addf %229, %230 : vector<8x28xf32>
    %232 = vector.extract_strided_slice %228 {offsets = [16, 2], sizes = [8, 28], strides = [1, 1]} : vector<40x32xf32> to vector<8x28xf32>
    %233 = arith.addf %231, %232 : vector<8x28xf32>
    %234 = vector.extract_strided_slice %228 {offsets = [24, 3], sizes = [8, 28], strides = [1, 1]} : vector<40x32xf32> to vector<8x28xf32>
    %235 = arith.addf %233, %234 : vector<8x28xf32>
    %236 = vector.extract_strided_slice %228 {offsets = [32, 4], sizes = [8, 28], strides = [1, 1]} : vector<40x32xf32> to vector<8x28xf32>
    %237 = arith.addf %235, %236 : vector<8x28xf32>
    %238 = vector.broadcast %1 : vector<8x1xf32> to vector<8x28xf32>
    %239 = arith.addf %237, %238 : vector<8x28xf32>
    %cst_91 = arith.constant 0.000000e+00 : f32
    %240 = vector.broadcast %cst_91 : f32 to vector<8x28xf32>
    %241 = arith.maximumf %239, %240 : vector<8x28xf32>
    %c0_92 = arith.constant 0 : index
    %c0_93 = arith.constant 0 : index
    %c13 = arith.constant 13 : index
    %c0_94 = arith.constant 0 : index
    %242 = vector.load %arg1[%c0_92, %c0_93, %c13, %c0_94] : memref<1x1x32x32xf32, #tpu.memory_space<vmem>>, vector<1x1x5x32xf32>
    %243 = vector.shape_cast %242 : vector<1x1x5x32xf32> to vector<5x32xf32>
    %cst_95 = arith.constant dense<0.000000e+00> : vector<40x32xf32>
    %244 = tpu.matmul %0, %243, %cst_95 {dimension_numbers = #tpu.dot_dimension_numbers<[1], [0], [0], [1], [0, 0, 1, 1], [], []>} : vector<40x5xf32>, vector<5x32xf32>, vector<40x32xf32> -> vector<40x32xf32>
    %245 = vector.extract_strided_slice %244 {offsets = [0, 0], sizes = [8, 28], strides = [1, 1]} : vector<40x32xf32> to vector<8x28xf32>
    %246 = vector.extract_strided_slice %244 {offsets = [8, 1], sizes = [8, 28], strides = [1, 1]} : vector<40x32xf32> to vector<8x28xf32>
    %247 = arith.addf %245, %246 : vector<8x28xf32>
    %248 = vector.extract_strided_slice %244 {offsets = [16, 2], sizes = [8, 28], strides = [1, 1]} : vector<40x32xf32> to vector<8x28xf32>
    %249 = arith.addf %247, %248 : vector<8x28xf32>
    %250 = vector.extract_strided_slice %244 {offsets = [24, 3], sizes = [8, 28], strides = [1, 1]} : vector<40x32xf32> to vector<8x28xf32>
    %251 = arith.addf %249, %250 : vector<8x28xf32>
    %252 = vector.extract_strided_slice %244 {offsets = [32, 4], sizes = [8, 28], strides = [1, 1]} : vector<40x32xf32> to vector<8x28xf32>
    %253 = arith.addf %251, %252 : vector<8x28xf32>
    %254 = vector.broadcast %1 : vector<8x1xf32> to vector<8x28xf32>
    %255 = arith.addf %253, %254 : vector<8x28xf32>
    %cst_96 = arith.constant 0.000000e+00 : f32
    %256 = vector.broadcast %cst_96 : f32 to vector<8x28xf32>
    %257 = arith.maximumf %255, %256 : vector<8x28xf32>
    %258 = arith.maximumf %241, %257 : vector<8x28xf32>
    %cst_97 = arith.constant dense<0.000000e+00> : vector<8x14xf32>
    %259 = tpu.matmul %258, %2, %cst_97 {dimension_numbers = #tpu.dot_dimension_numbers<[1], [0], [0], [1], [0, 0, 1, 1], [], []>} : vector<8x28xf32>, vector<28x14xf32>, vector<8x14xf32> -> vector<8x14xf32>
    %cst_98 = arith.constant dense<0.000000e+00> : vector<8x14xf32>
    %260 = tpu.matmul %258, %3, %cst_98 {dimension_numbers = #tpu.dot_dimension_numbers<[1], [0], [0], [1], [0, 0, 1, 1], [], []>} : vector<8x28xf32>, vector<28x14xf32>, vector<8x14xf32> -> vector<8x14xf32>
    %261 = arith.maximumf %259, %260 : vector<8x14xf32>
    %c48 = arith.constant 48 : index
    %c0_99 = arith.constant 0 : index
    %262 = vector.load %arg17[%c48, %c0_99] : memref<112x14xf32, #tpu.memory_space<vmem>>, vector<8x14xf32>
    tpu.vector_store %arg17[%c48, %c0_99], %261 {strides = array<i32>} : memref<112x14xf32, #tpu.memory_space<vmem>>, vector<8x14xf32>,
    %c0_100 = arith.constant 0 : index
    %c0_101 = arith.constant 0 : index
    %c14 = arith.constant 14 : index
    %c0_102 = arith.constant 0 : index
    %263 = vector.load %arg1[%c0_100, %c0_101, %c14, %c0_102] : memref<1x1x32x32xf32, #tpu.memory_space<vmem>>, vector<1x1x5x32xf32>
    %264 = vector.shape_cast %263 : vector<1x1x5x32xf32> to vector<5x32xf32>
    %cst_103 = arith.constant dense<0.000000e+00> : vector<40x32xf32>
    %265 = tpu.matmul %0, %264, %cst_103 {dimension_numbers = #tpu.dot_dimension_numbers<[1], [0], [0], [1], [0, 0, 1, 1], [], []>} : vector<40x5xf32>, vector<5x32xf32>, vector<40x32xf32> -> vector<40x32xf32>
    %266 = vector.extract_strided_slice %265 {offsets = [0, 0], sizes = [8, 28], strides = [1, 1]} : vector<40x32xf32> to vector<8x28xf32>
    %267 = vector.extract_strided_slice %265 {offsets = [8, 1], sizes = [8, 28], strides = [1, 1]} : vector<40x32xf32> to vector<8x28xf32>
    %268 = arith.addf %266, %267 : vector<8x28xf32>
    %269 = vector.extract_strided_slice %265 {offsets = [16, 2], sizes = [8, 28], strides = [1, 1]} : vector<40x32xf32> to vector<8x28xf32>
    %270 = arith.addf %268, %269 : vector<8x28xf32>
    %271 = vector.extract_strided_slice %265 {offsets = [24, 3], sizes = [8, 28], strides = [1, 1]} : vector<40x32xf32> to vector<8x28xf32>
    %272 = arith.addf %270, %271 : vector<8x28xf32>
    %273 = vector.extract_strided_slice %265 {offsets = [32, 4], sizes = [8, 28], strides = [1, 1]} : vector<40x32xf32> to vector<8x28xf32>
    %274 = arith.addf %272, %273 : vector<8x28xf32>
    %275 = vector.broadcast %1 : vector<8x1xf32> to vector<8x28xf32>
    %276 = arith.addf %274, %275 : vector<8x28xf32>
    %cst_104 = arith.constant 0.000000e+00 : f32
    %277 = vector.broadcast %cst_104 : f32 to vector<8x28xf32>
    %278 = arith.maximumf %276, %277 : vector<8x28xf32>
    %c0_105 = arith.constant 0 : index
    %c0_106 = arith.constant 0 : index
    %c15 = arith.constant 15 : index
    %c0_107 = arith.constant 0 : index
    %279 = vector.load %arg1[%c0_105, %c0_106, %c15, %c0_107] : memref<1x1x32x32xf32, #tpu.memory_space<vmem>>, vector<1x1x5x32xf32>
    %280 = vector.shape_cast %279 : vector<1x1x5x32xf32> to vector<5x32xf32>
    %cst_108 = arith.constant dense<0.000000e+00> : vector<40x32xf32>
    %281 = tpu.matmul %0, %280, %cst_108 {dimension_numbers = #tpu.dot_dimension_numbers<[1], [0], [0], [1], [0, 0, 1, 1], [], []>} : vector<40x5xf32>, vector<5x32xf32>, vector<40x32xf32> -> vector<40x32xf32>
    %282 = vector.extract_strided_slice %281 {offsets = [0, 0], sizes = [8, 28], strides = [1, 1]} : vector<40x32xf32> to vector<8x28xf32>
    %283 = vector.extract_strided_slice %281 {offsets = [8, 1], sizes = [8, 28], strides = [1, 1]} : vector<40x32xf32> to vector<8x28xf32>
    %284 = arith.addf %282, %283 : vector<8x28xf32>
    %285 = vector.extract_strided_slice %281 {offsets = [16, 2], sizes = [8, 28], strides = [1, 1]} : vector<40x32xf32> to vector<8x28xf32>
    %286 = arith.addf %284, %285 : vector<8x28xf32>
    %287 = vector.extract_strided_slice %281 {offsets = [24, 3], sizes = [8, 28], strides = [1, 1]} : vector<40x32xf32> to vector<8x28xf32>
    %288 = arith.addf %286, %287 : vector<8x28xf32>
    %289 = vector.extract_strided_slice %281 {offsets = [32, 4], sizes = [8, 28], strides = [1, 1]} : vector<40x32xf32> to vector<8x28xf32>
    %290 = arith.addf %288, %289 : vector<8x28xf32>
    %291 = vector.broadcast %1 : vector<8x1xf32> to vector<8x28xf32>
    %292 = arith.addf %290, %291 : vector<8x28xf32>
    %cst_109 = arith.constant 0.000000e+00 : f32
    %293 = vector.broadcast %cst_109 : f32 to vector<8x28xf32>
    %294 = arith.maximumf %292, %293 : vector<8x28xf32>
    %295 = arith.maximumf %278, %294 : vector<8x28xf32>
    %cst_110 = arith.constant dense<0.000000e+00> : vector<8x14xf32>
    %296 = tpu.matmul %295, %2, %cst_110 {dimension_numbers = #tpu.dot_dimension_numbers<[1], [0], [0], [1], [0, 0, 1, 1], [], []>} : vector<8x28xf32>, vector<28x14xf32>, vector<8x14xf32> -> vector<8x14xf32>
    %cst_111 = arith.constant dense<0.000000e+00> : vector<8x14xf32>
    %297 = tpu.matmul %295, %3, %cst_111 {dimension_numbers = #tpu.dot_dimension_numbers<[1], [0], [0], [1], [0, 0, 1, 1], [], []>} : vector<8x28xf32>, vector<28x14xf32>, vector<8x14xf32> -> vector<8x14xf32>
    %298 = arith.maximumf %296, %297 : vector<8x14xf32>
    %c56 = arith.constant 56 : index
    %c0_112 = arith.constant 0 : index
    %299 = vector.load %arg17[%c56, %c0_112] : memref<112x14xf32, #tpu.memory_space<vmem>>, vector<8x14xf32>
    tpu.vector_store %arg17[%c56, %c0_112], %298 {strides = array<i32>} : memref<112x14xf32, #tpu.memory_space<vmem>>, vector<8x14xf32>,
    %c0_113 = arith.constant 0 : index
    %c0_114 = arith.constant 0 : index
    %c16_115 = arith.constant 16 : index
    %c0_116 = arith.constant 0 : index
    %300 = vector.load %arg1[%c0_113, %c0_114, %c16_115, %c0_116] : memref<1x1x32x32xf32, #tpu.memory_space<vmem>>, vector<1x1x5x32xf32>
    %301 = vector.shape_cast %300 : vector<1x1x5x32xf32> to vector<5x32xf32>
    %cst_117 = arith.constant dense<0.000000e+00> : vector<40x32xf32>
    %302 = tpu.matmul %0, %301, %cst_117 {dimension_numbers = #tpu.dot_dimension_numbers<[1], [0], [0], [1], [0, 0, 1, 1], [], []>} : vector<40x5xf32>, vector<5x32xf32>, vector<40x32xf32> -> vector<40x32xf32>
    %303 = vector.extract_strided_slice %302 {offsets = [0, 0], sizes = [8, 28], strides = [1, 1]} : vector<40x32xf32> to vector<8x28xf32>
    %304 = vector.extract_strided_slice %302 {offsets = [8, 1], sizes = [8, 28], strides = [1, 1]} : vector<40x32xf32> to vector<8x28xf32>
    %305 = arith.addf %303, %304 : vector<8x28xf32>
    %306 = vector.extract_strided_slice %302 {offsets = [16, 2], sizes = [8, 28], strides = [1, 1]} : vector<40x32xf32> to vector<8x28xf32>
    %307 = arith.addf %305, %306 : vector<8x28xf32>
    %308 = vector.extract_strided_slice %302 {offsets = [24, 3], sizes = [8, 28], strides = [1, 1]} : vector<40x32xf32> to vector<8x28xf32>
    %309 = arith.addf %307, %308 : vector<8x28xf32>
    %310 = vector.extract_strided_slice %302 {offsets = [32, 4], sizes = [8, 28], strides = [1, 1]} : vector<40x32xf32> to vector<8x28xf32>
    %311 = arith.addf %309, %310 : vector<8x28xf32>
    %312 = vector.broadcast %1 : vector<8x1xf32> to vector<8x28xf32>
    %313 = arith.addf %311, %312 : vector<8x28xf32>
    %cst_118 = arith.constant 0.000000e+00 : f32
    %314 = vector.broadcast %cst_118 : f32 to vector<8x28xf32>
    %315 = arith.maximumf %313, %314 : vector<8x28xf32>
    %c0_119 = arith.constant 0 : index
    %c0_120 = arith.constant 0 : index
    %c17 = arith.constant 17 : index
    %c0_121 = arith.constant 0 : index
    %316 = vector.load %arg1[%c0_119, %c0_120, %c17, %c0_121] : memref<1x1x32x32xf32, #tpu.memory_space<vmem>>, vector<1x1x5x32xf32>
    %317 = vector.shape_cast %316 : vector<1x1x5x32xf32> to vector<5x32xf32>
    %cst_122 = arith.constant dense<0.000000e+00> : vector<40x32xf32>
    %318 = tpu.matmul %0, %317, %cst_122 {dimension_numbers = #tpu.dot_dimension_numbers<[1], [0], [0], [1], [0, 0, 1, 1], [], []>} : vector<40x5xf32>, vector<5x32xf32>, vector<40x32xf32> -> vector<40x32xf32>
    %319 = vector.extract_strided_slice %318 {offsets = [0, 0], sizes = [8, 28], strides = [1, 1]} : vector<40x32xf32> to vector<8x28xf32>
    %320 = vector.extract_strided_slice %318 {offsets = [8, 1], sizes = [8, 28], strides = [1, 1]} : vector<40x32xf32> to vector<8x28xf32>
    %321 = arith.addf %319, %320 : vector<8x28xf32>
    %322 = vector.extract_strided_slice %318 {offsets = [16, 2], sizes = [8, 28], strides = [1, 1]} : vector<40x32xf32> to vector<8x28xf32>
    %323 = arith.addf %321, %322 : vector<8x28xf32>
    %324 = vector.extract_strided_slice %318 {offsets = [24, 3], sizes = [8, 28], strides = [1, 1]} : vector<40x32xf32> to vector<8x28xf32>
    %325 = arith.addf %323, %324 : vector<8x28xf32>
    %326 = vector.extract_strided_slice %318 {offsets = [32, 4], sizes = [8, 28], strides = [1, 1]} : vector<40x32xf32> to vector<8x28xf32>
    %327 = arith.addf %325, %326 : vector<8x28xf32>
    %328 = vector.broadcast %1 : vector<8x1xf32> to vector<8x28xf32>
    %329 = arith.addf %327, %328 : vector<8x28xf32>
    %cst_123 = arith.constant 0.000000e+00 : f32
    %330 = vector.broadcast %cst_123 : f32 to vector<8x28xf32>
    %331 = arith.maximumf %329, %330 : vector<8x28xf32>
    %332 = arith.maximumf %315, %331 : vector<8x28xf32>
    %cst_124 = arith.constant dense<0.000000e+00> : vector<8x14xf32>
    %333 = tpu.matmul %332, %2, %cst_124 {dimension_numbers = #tpu.dot_dimension_numbers<[1], [0], [0], [1], [0, 0, 1, 1], [], []>} : vector<8x28xf32>, vector<28x14xf32>, vector<8x14xf32> -> vector<8x14xf32>
    %cst_125 = arith.constant dense<0.000000e+00> : vector<8x14xf32>
    %334 = tpu.matmul %332, %3, %cst_125 {dimension_numbers = #tpu.dot_dimension_numbers<[1], [0], [0], [1], [0, 0, 1, 1], [], []>} : vector<8x28xf32>, vector<28x14xf32>, vector<8x14xf32> -> vector<8x14xf32>
    %335 = arith.maximumf %333, %334 : vector<8x14xf32>
    %c64 = arith.constant 64 : index
    %c0_126 = arith.constant 0 : index
    %336 = vector.load %arg17[%c64, %c0_126] : memref<112x14xf32, #tpu.memory_space<vmem>>, vector<8x14xf32>
    tpu.vector_store %arg17[%c64, %c0_126], %335 {strides = array<i32>} : memref<112x14xf32, #tpu.memory_space<vmem>>, vector<8x14xf32>,
    %c0_127 = arith.constant 0 : index
    %c0_128 = arith.constant 0 : index
    %c18 = arith.constant 18 : index
    %c0_129 = arith.constant 0 : index
    %337 = vector.load %arg1[%c0_127, %c0_128, %c18, %c0_129] : memref<1x1x32x32xf32, #tpu.memory_space<vmem>>, vector<1x1x5x32xf32>
    %338 = vector.shape_cast %337 : vector<1x1x5x32xf32> to vector<5x32xf32>
    %cst_130 = arith.constant dense<0.000000e+00> : vector<40x32xf32>
    %339 = tpu.matmul %0, %338, %cst_130 {dimension_numbers = #tpu.dot_dimension_numbers<[1], [0], [0], [1], [0, 0, 1, 1], [], []>} : vector<40x5xf32>, vector<5x32xf32>, vector<40x32xf32> -> vector<40x32xf32>
    %340 = vector.extract_strided_slice %339 {offsets = [0, 0], sizes = [8, 28], strides = [1, 1]} : vector<40x32xf32> to vector<8x28xf32>
    %341 = vector.extract_strided_slice %339 {offsets = [8, 1], sizes = [8, 28], strides = [1, 1]} : vector<40x32xf32> to vector<8x28xf32>
    %342 = arith.addf %340, %341 : vector<8x28xf32>
    %343 = vector.extract_strided_slice %339 {offsets = [16, 2], sizes = [8, 28], strides = [1, 1]} : vector<40x32xf32> to vector<8x28xf32>
    %344 = arith.addf %342, %343 : vector<8x28xf32>
    %345 = vector.extract_strided_slice %339 {offsets = [24, 3], sizes = [8, 28], strides = [1, 1]} : vector<40x32xf32> to vector<8x28xf32>
    %346 = arith.addf %344, %345 : vector<8x28xf32>
    %347 = vector.extract_strided_slice %339 {offsets = [32, 4], sizes = [8, 28], strides = [1, 1]} : vector<40x32xf32> to vector<8x28xf32>
    %348 = arith.addf %346, %347 : vector<8x28xf32>
    %349 = vector.broadcast %1 : vector<8x1xf32> to vector<8x28xf32>
    %350 = arith.addf %348, %349 : vector<8x28xf32>
    %cst_131 = arith.constant 0.000000e+00 : f32
    %351 = vector.broadcast %cst_131 : f32 to vector<8x28xf32>
    %352 = arith.maximumf %350, %351 : vector<8x28xf32>
    %c0_132 = arith.constant 0 : index
    %c0_133 = arith.constant 0 : index
    %c19 = arith.constant 19 : index
    %c0_134 = arith.constant 0 : index
    %353 = vector.load %arg1[%c0_132, %c0_133, %c19, %c0_134] : memref<1x1x32x32xf32, #tpu.memory_space<vmem>>, vector<1x1x5x32xf32>
    %354 = vector.shape_cast %353 : vector<1x1x5x32xf32> to vector<5x32xf32>
    %cst_135 = arith.constant dense<0.000000e+00> : vector<40x32xf32>
    %355 = tpu.matmul %0, %354, %cst_135 {dimension_numbers = #tpu.dot_dimension_numbers<[1], [0], [0], [1], [0, 0, 1, 1], [], []>} : vector<40x5xf32>, vector<5x32xf32>, vector<40x32xf32> -> vector<40x32xf32>
    %356 = vector.extract_strided_slice %355 {offsets = [0, 0], sizes = [8, 28], strides = [1, 1]} : vector<40x32xf32> to vector<8x28xf32>
    %357 = vector.extract_strided_slice %355 {offsets = [8, 1], sizes = [8, 28], strides = [1, 1]} : vector<40x32xf32> to vector<8x28xf32>
    %358 = arith.addf %356, %357 : vector<8x28xf32>
    %359 = vector.extract_strided_slice %355 {offsets = [16, 2], sizes = [8, 28], strides = [1, 1]} : vector<40x32xf32> to vector<8x28xf32>
    %360 = arith.addf %358, %359 : vector<8x28xf32>
    %361 = vector.extract_strided_slice %355 {offsets = [24, 3], sizes = [8, 28], strides = [1, 1]} : vector<40x32xf32> to vector<8x28xf32>
    %362 = arith.addf %360, %361 : vector<8x28xf32>
    %363 = vector.extract_strided_slice %355 {offsets = [32, 4], sizes = [8, 28], strides = [1, 1]} : vector<40x32xf32> to vector<8x28xf32>
    %364 = arith.addf %362, %363 : vector<8x28xf32>
    %365 = vector.broadcast %1 : vector<8x1xf32> to vector<8x28xf32>
    %366 = arith.addf %364, %365 : vector<8x28xf32>
    %cst_136 = arith.constant 0.000000e+00 : f32
    %367 = vector.broadcast %cst_136 : f32 to vector<8x28xf32>
    %368 = arith.maximumf %366, %367 : vector<8x28xf32>
    %369 = arith.maximumf %352, %368 : vector<8x28xf32>
    %cst_137 = arith.constant dense<0.000000e+00> : vector<8x14xf32>
    %370 = tpu.matmul %369, %2, %cst_137 {dimension_numbers = #tpu.dot_dimension_numbers<[1], [0], [0], [1], [0, 0, 1, 1], [], []>} : vector<8x28xf32>, vector<28x14xf32>, vector<8x14xf32> -> vector<8x14xf32>
    %cst_138 = arith.constant dense<0.000000e+00> : vector<8x14xf32>
    %371 = tpu.matmul %369, %3, %cst_138 {dimension_numbers = #tpu.dot_dimension_numbers<[1], [0], [0], [1], [0, 0, 1, 1], [], []>} : vector<8x28xf32>, vector<28x14xf32>, vector<8x14xf32> -> vector<8x14xf32>
    %372 = arith.maximumf %370, %371 : vector<8x14xf32>
    %c72 = arith.constant 72 : index
    %c0_139 = arith.constant 0 : index
    %373 = vector.load %arg17[%c72, %c0_139] : memref<112x14xf32, #tpu.memory_space<vmem>>, vector<8x14xf32>
    tpu.vector_store %arg17[%c72, %c0_139], %372 {strides = array<i32>} : memref<112x14xf32, #tpu.memory_space<vmem>>, vector<8x14xf32>,
    %c0_140 = arith.constant 0 : index
    %c0_141 = arith.constant 0 : index
    %c20 = arith.constant 20 : index
    %c0_142 = arith.constant 0 : index
    %374 = vector.load %arg1[%c0_140, %c0_141, %c20, %c0_142] : memref<1x1x32x32xf32, #tpu.memory_space<vmem>>, vector<1x1x5x32xf32>
    %375 = vector.shape_cast %374 : vector<1x1x5x32xf32> to vector<5x32xf32>
    %cst_143 = arith.constant dense<0.000000e+00> : vector<40x32xf32>
    %376 = tpu.matmul %0, %375, %cst_143 {dimension_numbers = #tpu.dot_dimension_numbers<[1], [0], [0], [1], [0, 0, 1, 1], [], []>} : vector<40x5xf32>, vector<5x32xf32>, vector<40x32xf32> -> vector<40x32xf32>
    %377 = vector.extract_strided_slice %376 {offsets = [0, 0], sizes = [8, 28], strides = [1, 1]} : vector<40x32xf32> to vector<8x28xf32>
    %378 = vector.extract_strided_slice %376 {offsets = [8, 1], sizes = [8, 28], strides = [1, 1]} : vector<40x32xf32> to vector<8x28xf32>
    %379 = arith.addf %377, %378 : vector<8x28xf32>
    %380 = vector.extract_strided_slice %376 {offsets = [16, 2], sizes = [8, 28], strides = [1, 1]} : vector<40x32xf32> to vector<8x28xf32>
    %381 = arith.addf %379, %380 : vector<8x28xf32>
    %382 = vector.extract_strided_slice %376 {offsets = [24, 3], sizes = [8, 28], strides = [1, 1]} : vector<40x32xf32> to vector<8x28xf32>
    %383 = arith.addf %381, %382 : vector<8x28xf32>
    %384 = vector.extract_strided_slice %376 {offsets = [32, 4], sizes = [8, 28], strides = [1, 1]} : vector<40x32xf32> to vector<8x28xf32>
    %385 = arith.addf %383, %384 : vector<8x28xf32>
    %386 = vector.broadcast %1 : vector<8x1xf32> to vector<8x28xf32>
    %387 = arith.addf %385, %386 : vector<8x28xf32>
    %cst_144 = arith.constant 0.000000e+00 : f32
    %388 = vector.broadcast %cst_144 : f32 to vector<8x28xf32>
    %389 = arith.maximumf %387, %388 : vector<8x28xf32>
    %c0_145 = arith.constant 0 : index
    %c0_146 = arith.constant 0 : index
    %c21 = arith.constant 21 : index
    %c0_147 = arith.constant 0 : index
    %390 = vector.load %arg1[%c0_145, %c0_146, %c21, %c0_147] : memref<1x1x32x32xf32, #tpu.memory_space<vmem>>, vector<1x1x5x32xf32>
    %391 = vector.shape_cast %390 : vector<1x1x5x32xf32> to vector<5x32xf32>
    %cst_148 = arith.constant dense<0.000000e+00> : vector<40x32xf32>
    %392 = tpu.matmul %0, %391, %cst_148 {dimension_numbers = #tpu.dot_dimension_numbers<[1], [0], [0], [1], [0, 0, 1, 1], [], []>} : vector<40x5xf32>, vector<5x32xf32>, vector<40x32xf32> -> vector<40x32xf32>
    %393 = vector.extract_strided_slice %392 {offsets = [0, 0], sizes = [8, 28], strides = [1, 1]} : vector<40x32xf32> to vector<8x28xf32>
    %394 = vector.extract_strided_slice %392 {offsets = [8, 1], sizes = [8, 28], strides = [1, 1]} : vector<40x32xf32> to vector<8x28xf32>
    %395 = arith.addf %393, %394 : vector<8x28xf32>
    %396 = vector.extract_strided_slice %392 {offsets = [16, 2], sizes = [8, 28], strides = [1, 1]} : vector<40x32xf32> to vector<8x28xf32>
    %397 = arith.addf %395, %396 : vector<8x28xf32>
    %398 = vector.extract_strided_slice %392 {offsets = [24, 3], sizes = [8, 28], strides = [1, 1]} : vector<40x32xf32> to vector<8x28xf32>
    %399 = arith.addf %397, %398 : vector<8x28xf32>
    %400 = vector.extract_strided_slice %392 {offsets = [32, 4], sizes = [8, 28], strides = [1, 1]} : vector<40x32xf32> to vector<8x28xf32>
    %401 = arith.addf %399, %400 : vector<8x28xf32>
    %402 = vector.broadcast %1 : vector<8x1xf32> to vector<8x28xf32>
    %403 = arith.addf %401, %402 : vector<8x28xf32>
    %cst_149 = arith.constant 0.000000e+00 : f32
    %404 = vector.broadcast %cst_149 : f32 to vector<8x28xf32>
    %405 = arith.maximumf %403, %404 : vector<8x28xf32>
    %406 = arith.maximumf %389, %405 : vector<8x28xf32>
    %cst_150 = arith.constant dense<0.000000e+00> : vector<8x14xf32>
    %407 = tpu.matmul %406, %2, %cst_150 {dimension_numbers = #tpu.dot_dimension_numbers<[1], [0], [0], [1], [0, 0, 1, 1], [], []>} : vector<8x28xf32>, vector<28x14xf32>, vector<8x14xf32> -> vector<8x14xf32>
    %cst_151 = arith.constant dense<0.000000e+00> : vector<8x14xf32>
    %408 = tpu.matmul %406, %3, %cst_151 {dimension_numbers = #tpu.dot_dimension_numbers<[1], [0], [0], [1], [0, 0, 1, 1], [], []>} : vector<8x28xf32>, vector<28x14xf32>, vector<8x14xf32> -> vector<8x14xf32>
    %409 = arith.maximumf %407, %408 : vector<8x14xf32>
    %c80 = arith.constant 80 : index
    %c0_152 = arith.constant 0 : index
    %410 = vector.load %arg17[%c80, %c0_152] : memref<112x14xf32, #tpu.memory_space<vmem>>, vector<8x14xf32>
    tpu.vector_store %arg17[%c80, %c0_152], %409 {strides = array<i32>} : memref<112x14xf32, #tpu.memory_space<vmem>>, vector<8x14xf32>,
    %c0_153 = arith.constant 0 : index
    %c0_154 = arith.constant 0 : index
    %c22 = arith.constant 22 : index
    %c0_155 = arith.constant 0 : index
    %411 = vector.load %arg1[%c0_153, %c0_154, %c22, %c0_155] : memref<1x1x32x32xf32, #tpu.memory_space<vmem>>, vector<1x1x5x32xf32>
    %412 = vector.shape_cast %411 : vector<1x1x5x32xf32> to vector<5x32xf32>
    %cst_156 = arith.constant dense<0.000000e+00> : vector<40x32xf32>
    %413 = tpu.matmul %0, %412, %cst_156 {dimension_numbers = #tpu.dot_dimension_numbers<[1], [0], [0], [1], [0, 0, 1, 1], [], []>} : vector<40x5xf32>, vector<5x32xf32>, vector<40x32xf32> -> vector<40x32xf32>
    %414 = vector.extract_strided_slice %413 {offsets = [0, 0], sizes = [8, 28], strides = [1, 1]} : vector<40x32xf32> to vector<8x28xf32>
    %415 = vector.extract_strided_slice %413 {offsets = [8, 1], sizes = [8, 28], strides = [1, 1]} : vector<40x32xf32> to vector<8x28xf32>
    %416 = arith.addf %414, %415 : vector<8x28xf32>
    %417 = vector.extract_strided_slice %413 {offsets = [16, 2], sizes = [8, 28], strides = [1, 1]} : vector<40x32xf32> to vector<8x28xf32>
    %418 = arith.addf %416, %417 : vector<8x28xf32>
    %419 = vector.extract_strided_slice %413 {offsets = [24, 3], sizes = [8, 28], strides = [1, 1]} : vector<40x32xf32> to vector<8x28xf32>
    %420 = arith.addf %418, %419 : vector<8x28xf32>
    %421 = vector.extract_strided_slice %413 {offsets = [32, 4], sizes = [8, 28], strides = [1, 1]} : vector<40x32xf32> to vector<8x28xf32>
    %422 = arith.addf %420, %421 : vector<8x28xf32>
    %423 = vector.broadcast %1 : vector<8x1xf32> to vector<8x28xf32>
    %424 = arith.addf %422, %423 : vector<8x28xf32>
    %cst_157 = arith.constant 0.000000e+00 : f32
    %425 = vector.broadcast %cst_157 : f32 to vector<8x28xf32>
    %426 = arith.maximumf %424, %425 : vector<8x28xf32>
    %c0_158 = arith.constant 0 : index
    %c0_159 = arith.constant 0 : index
    %c23 = arith.constant 23 : index
    %c0_160 = arith.constant 0 : index
    %427 = vector.load %arg1[%c0_158, %c0_159, %c23, %c0_160] : memref<1x1x32x32xf32, #tpu.memory_space<vmem>>, vector<1x1x5x32xf32>
    %428 = vector.shape_cast %427 : vector<1x1x5x32xf32> to vector<5x32xf32>
    %cst_161 = arith.constant dense<0.000000e+00> : vector<40x32xf32>
    %429 = tpu.matmul %0, %428, %cst_161 {dimension_numbers = #tpu.dot_dimension_numbers<[1], [0], [0], [1], [0, 0, 1, 1], [], []>} : vector<40x5xf32>, vector<5x32xf32>, vector<40x32xf32> -> vector<40x32xf32>
    %430 = vector.extract_strided_slice %429 {offsets = [0, 0], sizes = [8, 28], strides = [1, 1]} : vector<40x32xf32> to vector<8x28xf32>
    %431 = vector.extract_strided_slice %429 {offsets = [8, 1], sizes = [8, 28], strides = [1, 1]} : vector<40x32xf32> to vector<8x28xf32>
    %432 = arith.addf %430, %431 : vector<8x28xf32>
    %433 = vector.extract_strided_slice %429 {offsets = [16, 2], sizes = [8, 28], strides = [1, 1]} : vector<40x32xf32> to vector<8x28xf32>
    %434 = arith.addf %432, %433 : vector<8x28xf32>
    %435 = vector.extract_strided_slice %429 {offsets = [24, 3], sizes = [8, 28], strides = [1, 1]} : vector<40x32xf32> to vector<8x28xf32>
    %436 = arith.addf %434, %435 : vector<8x28xf32>
    %437 = vector.extract_strided_slice %429 {offsets = [32, 4], sizes = [8, 28], strides = [1, 1]} : vector<40x32xf32> to vector<8x28xf32>
    %438 = arith.addf %436, %437 : vector<8x28xf32>
    %439 = vector.broadcast %1 : vector<8x1xf32> to vector<8x28xf32>
    %440 = arith.addf %438, %439 : vector<8x28xf32>
    %cst_162 = arith.constant 0.000000e+00 : f32
    %441 = vector.broadcast %cst_162 : f32 to vector<8x28xf32>
    %442 = arith.maximumf %440, %441 : vector<8x28xf32>
    %443 = arith.maximumf %426, %442 : vector<8x28xf32>
    %cst_163 = arith.constant dense<0.000000e+00> : vector<8x14xf32>
    %444 = tpu.matmul %443, %2, %cst_163 {dimension_numbers = #tpu.dot_dimension_numbers<[1], [0], [0], [1], [0, 0, 1, 1], [], []>} : vector<8x28xf32>, vector<28x14xf32>, vector<8x14xf32> -> vector<8x14xf32>
    %cst_164 = arith.constant dense<0.000000e+00> : vector<8x14xf32>
    %445 = tpu.matmul %443, %3, %cst_164 {dimension_numbers = #tpu.dot_dimension_numbers<[1], [0], [0], [1], [0, 0, 1, 1], [], []>} : vector<8x28xf32>, vector<28x14xf32>, vector<8x14xf32> -> vector<8x14xf32>
    %446 = arith.maximumf %444, %445 : vector<8x14xf32>
    %c88 = arith.constant 88 : index
    %c0_165 = arith.constant 0 : index
    %447 = vector.load %arg17[%c88, %c0_165] : memref<112x14xf32, #tpu.memory_space<vmem>>, vector<8x14xf32>
    tpu.vector_store %arg17[%c88, %c0_165], %446 {strides = array<i32>} : memref<112x14xf32, #tpu.memory_space<vmem>>, vector<8x14xf32>,
    %c0_166 = arith.constant 0 : index
    %c0_167 = arith.constant 0 : index
    %c24_168 = arith.constant 24 : index
    %c0_169 = arith.constant 0 : index
    %448 = vector.load %arg1[%c0_166, %c0_167, %c24_168, %c0_169] : memref<1x1x32x32xf32, #tpu.memory_space<vmem>>, vector<1x1x5x32xf32>
    %449 = vector.shape_cast %448 : vector<1x1x5x32xf32> to vector<5x32xf32>
    %cst_170 = arith.constant dense<0.000000e+00> : vector<40x32xf32>
    %450 = tpu.matmul %0, %449, %cst_170 {dimension_numbers = #tpu.dot_dimension_numbers<[1], [0], [0], [1], [0, 0, 1, 1], [], []>} : vector<40x5xf32>, vector<5x32xf32>, vector<40x32xf32> -> vector<40x32xf32>
    %451 = vector.extract_strided_slice %450 {offsets = [0, 0], sizes = [8, 28], strides = [1, 1]} : vector<40x32xf32> to vector<8x28xf32>
    %452 = vector.extract_strided_slice %450 {offsets = [8, 1], sizes = [8, 28], strides = [1, 1]} : vector<40x32xf32> to vector<8x28xf32>
    %453 = arith.addf %451, %452 : vector<8x28xf32>
    %454 = vector.extract_strided_slice %450 {offsets = [16, 2], sizes = [8, 28], strides = [1, 1]} : vector<40x32xf32> to vector<8x28xf32>
    %455 = arith.addf %453, %454 : vector<8x28xf32>
    %456 = vector.extract_strided_slice %450 {offsets = [24, 3], sizes = [8, 28], strides = [1, 1]} : vector<40x32xf32> to vector<8x28xf32>
    %457 = arith.addf %455, %456 : vector<8x28xf32>
    %458 = vector.extract_strided_slice %450 {offsets = [32, 4], sizes = [8, 28], strides = [1, 1]} : vector<40x32xf32> to vector<8x28xf32>
    %459 = arith.addf %457, %458 : vector<8x28xf32>
    %460 = vector.broadcast %1 : vector<8x1xf32> to vector<8x28xf32>
    %461 = arith.addf %459, %460 : vector<8x28xf32>
    %cst_171 = arith.constant 0.000000e+00 : f32
    %462 = vector.broadcast %cst_171 : f32 to vector<8x28xf32>
    %463 = arith.maximumf %461, %462 : vector<8x28xf32>
    %c0_172 = arith.constant 0 : index
    %c0_173 = arith.constant 0 : index
    %c25 = arith.constant 25 : index
    %c0_174 = arith.constant 0 : index
    %464 = vector.load %arg1[%c0_172, %c0_173, %c25, %c0_174] : memref<1x1x32x32xf32, #tpu.memory_space<vmem>>, vector<1x1x5x32xf32>
    %465 = vector.shape_cast %464 : vector<1x1x5x32xf32> to vector<5x32xf32>
    %cst_175 = arith.constant dense<0.000000e+00> : vector<40x32xf32>
    %466 = tpu.matmul %0, %465, %cst_175 {dimension_numbers = #tpu.dot_dimension_numbers<[1], [0], [0], [1], [0, 0, 1, 1], [], []>} : vector<40x5xf32>, vector<5x32xf32>, vector<40x32xf32> -> vector<40x32xf32>
    %467 = vector.extract_strided_slice %466 {offsets = [0, 0], sizes = [8, 28], strides = [1, 1]} : vector<40x32xf32> to vector<8x28xf32>
    %468 = vector.extract_strided_slice %466 {offsets = [8, 1], sizes = [8, 28], strides = [1, 1]} : vector<40x32xf32> to vector<8x28xf32>
    %469 = arith.addf %467, %468 : vector<8x28xf32>
    %470 = vector.extract_strided_slice %466 {offsets = [16, 2], sizes = [8, 28], strides = [1, 1]} : vector<40x32xf32> to vector<8x28xf32>
    %471 = arith.addf %469, %470 : vector<8x28xf32>
    %472 = vector.extract_strided_slice %466 {offsets = [24, 3], sizes = [8, 28], strides = [1, 1]} : vector<40x32xf32> to vector<8x28xf32>
    %473 = arith.addf %471, %472 : vector<8x28xf32>
    %474 = vector.extract_strided_slice %466 {offsets = [32, 4], sizes = [8, 28], strides = [1, 1]} : vector<40x32xf32> to vector<8x28xf32>
    %475 = arith.addf %473, %474 : vector<8x28xf32>
    %476 = vector.broadcast %1 : vector<8x1xf32> to vector<8x28xf32>
    %477 = arith.addf %475, %476 : vector<8x28xf32>
    %cst_176 = arith.constant 0.000000e+00 : f32
    %478 = vector.broadcast %cst_176 : f32 to vector<8x28xf32>
    %479 = arith.maximumf %477, %478 : vector<8x28xf32>
    %480 = arith.maximumf %463, %479 : vector<8x28xf32>
    %cst_177 = arith.constant dense<0.000000e+00> : vector<8x14xf32>
    %481 = tpu.matmul %480, %2, %cst_177 {dimension_numbers = #tpu.dot_dimension_numbers<[1], [0], [0], [1], [0, 0, 1, 1], [], []>} : vector<8x28xf32>, vector<28x14xf32>, vector<8x14xf32> -> vector<8x14xf32>
    %cst_178 = arith.constant dense<0.000000e+00> : vector<8x14xf32>
    %482 = tpu.matmul %480, %3, %cst_178 {dimension_numbers = #tpu.dot_dimension_numbers<[1], [0], [0], [1], [0, 0, 1, 1], [], []>} : vector<8x28xf32>, vector<28x14xf32>, vector<8x14xf32> -> vector<8x14xf32>
    %483 = arith.maximumf %481, %482 : vector<8x14xf32>
    %c96 = arith.constant 96 : index
    %c0_179 = arith.constant 0 : index
    %484 = vector.load %arg17[%c96, %c0_179] : memref<112x14xf32, #tpu.memory_space<vmem>>, vector<8x14xf32>
    tpu.vector_store %arg17[%c96, %c0_179], %483 {strides = array<i32>} : memref<112x14xf32, #tpu.memory_space<vmem>>, vector<8x14xf32>,
    %c0_180 = arith.constant 0 : index
    %c0_181 = arith.constant 0 : index
    %c26 = arith.constant 26 : index
    %c0_182 = arith.constant 0 : index
    %485 = vector.load %arg1[%c0_180, %c0_181, %c26, %c0_182] : memref<1x1x32x32xf32, #tpu.memory_space<vmem>>, vector<1x1x5x32xf32>
    %486 = vector.shape_cast %485 : vector<1x1x5x32xf32> to vector<5x32xf32>
    %cst_183 = arith.constant dense<0.000000e+00> : vector<40x32xf32>
    %487 = tpu.matmul %0, %486, %cst_183 {dimension_numbers = #tpu.dot_dimension_numbers<[1], [0], [0], [1], [0, 0, 1, 1], [], []>} : vector<40x5xf32>, vector<5x32xf32>, vector<40x32xf32> -> vector<40x32xf32>
    %488 = vector.extract_strided_slice %487 {offsets = [0, 0], sizes = [8, 28], strides = [1, 1]} : vector<40x32xf32> to vector<8x28xf32>
    %489 = vector.extract_strided_slice %487 {offsets = [8, 1], sizes = [8, 28], strides = [1, 1]} : vector<40x32xf32> to vector<8x28xf32>
    %490 = arith.addf %488, %489 : vector<8x28xf32>
    %491 = vector.extract_strided_slice %487 {offsets = [16, 2], sizes = [8, 28], strides = [1, 1]} : vector<40x32xf32> to vector<8x28xf32>
    %492 = arith.addf %490, %491 : vector<8x28xf32>
    %493 = vector.extract_strided_slice %487 {offsets = [24, 3], sizes = [8, 28], strides = [1, 1]} : vector<40x32xf32> to vector<8x28xf32>
    %494 = arith.addf %492, %493 : vector<8x28xf32>
    %495 = vector.extract_strided_slice %487 {offsets = [32, 4], sizes = [8, 28], strides = [1, 1]} : vector<40x32xf32> to vector<8x28xf32>
    %496 = arith.addf %494, %495 : vector<8x28xf32>
    %497 = vector.broadcast %1 : vector<8x1xf32> to vector<8x28xf32>
    %498 = arith.addf %496, %497 : vector<8x28xf32>
    %cst_184 = arith.constant 0.000000e+00 : f32
    %499 = vector.broadcast %cst_184 : f32 to vector<8x28xf32>
    %500 = arith.maximumf %498, %499 : vector<8x28xf32>
    %c0_185 = arith.constant 0 : index
    %c0_186 = arith.constant 0 : index
    %c27 = arith.constant 27 : index
    %c0_187 = arith.constant 0 : index
    %501 = vector.load %arg1[%c0_185, %c0_186, %c27, %c0_187] : memref<1x1x32x32xf32, #tpu.memory_space<vmem>>, vector<1x1x5x32xf32>
    %502 = vector.shape_cast %501 : vector<1x1x5x32xf32> to vector<5x32xf32>
    %cst_188 = arith.constant dense<0.000000e+00> : vector<40x32xf32>
    %503 = tpu.matmul %0, %502, %cst_188 {dimension_numbers = #tpu.dot_dimension_numbers<[1], [0], [0], [1], [0, 0, 1, 1], [], []>} : vector<40x5xf32>, vector<5x32xf32>, vector<40x32xf32> -> vector<40x32xf32>
    %504 = vector.extract_strided_slice %503 {offsets = [0, 0], sizes = [8, 28], strides = [1, 1]} : vector<40x32xf32> to vector<8x28xf32>
    %505 = vector.extract_strided_slice %503 {offsets = [8, 1], sizes = [8, 28], strides = [1, 1]} : vector<40x32xf32> to vector<8x28xf32>
    %506 = arith.addf %504, %505 : vector<8x28xf32>
    %507 = vector.extract_strided_slice %503 {offsets = [16, 2], sizes = [8, 28], strides = [1, 1]} : vector<40x32xf32> to vector<8x28xf32>
    %508 = arith.addf %506, %507 : vector<8x28xf32>
    %509 = vector.extract_strided_slice %503 {offsets = [24, 3], sizes = [8, 28], strides = [1, 1]} : vector<40x32xf32> to vector<8x28xf32>
    %510 = arith.addf %508, %509 : vector<8x28xf32>
    %511 = vector.extract_strided_slice %503 {offsets = [32, 4], sizes = [8, 28], strides = [1, 1]} : vector<40x32xf32> to vector<8x28xf32>
    %512 = arith.addf %510, %511 : vector<8x28xf32>
    %513 = vector.broadcast %1 : vector<8x1xf32> to vector<8x28xf32>
    %514 = arith.addf %512, %513 : vector<8x28xf32>
    %cst_189 = arith.constant 0.000000e+00 : f32
    %515 = vector.broadcast %cst_189 : f32 to vector<8x28xf32>
    %516 = arith.maximumf %514, %515 : vector<8x28xf32>
    %517 = arith.maximumf %500, %516 : vector<8x28xf32>
    %cst_190 = arith.constant dense<0.000000e+00> : vector<8x14xf32>
    %518 = tpu.matmul %517, %2, %cst_190 {dimension_numbers = #tpu.dot_dimension_numbers<[1], [0], [0], [1], [0, 0, 1, 1], [], []>} : vector<8x28xf32>, vector<28x14xf32>, vector<8x14xf32> -> vector<8x14xf32>
    %cst_191 = arith.constant dense<0.000000e+00> : vector<8x14xf32>
    %519 = tpu.matmul %517, %3, %cst_191 {dimension_numbers = #tpu.dot_dimension_numbers<[1], [0], [0], [1], [0, 0, 1, 1], [], []>} : vector<8x28xf32>, vector<28x14xf32>, vector<8x14xf32> -> vector<8x14xf32>
    %520 = arith.maximumf %518, %519 : vector<8x14xf32>
    %c104 = arith.constant 104 : index
    %c0_192 = arith.constant 0 : index
    %521 = vector.load %arg17[%c104, %c0_192] : memref<112x14xf32, #tpu.memory_space<vmem>>, vector<8x14xf32>
    tpu.vector_store %arg17[%c104, %c0_192], %520 {strides = array<i32>} : memref<112x14xf32, #tpu.memory_space<vmem>>, vector<8x14xf32>,
    %c0_193 = arith.constant 0 : index
    %c0_194 = arith.constant 0 : index
    %522 = vector.load %arg6[%c0_193, %c0_194] : memref<80x40xf32, #tpu.memory_space<vmem>>, vector<80x40xf32>
    %c0_195 = arith.constant 0 : index
    %c0_196 = arith.constant 0 : index
    %523 = vector.load %arg7[%c0_195, %c0_196] : memref<16x1xf32, #tpu.memory_space<vmem>>, vector<16x1xf32>
    %c0_197 = arith.constant 0 : index
    %c0_198 = arith.constant 0 : index
    %524 = vector.load %arg8[%c0_197, %c0_198] : memref<10x5xf32, #tpu.memory_space<vmem>>, vector<10x5xf32>
    %c0_199 = arith.constant 0 : index
    %c0_200 = arith.constant 0 : index
    %525 = vector.load %arg9[%c0_199, %c0_200] : memref<10x5xf32, #tpu.memory_space<vmem>>, vector<10x5xf32>
    %c0_201 = arith.constant 0 : index
    %c0_202 = arith.constant 0 : index
    %526 = vector.load %arg17[%c0_201, %c0_202] : memref<112x14xf32, #tpu.memory_space<vmem>>, vector<40x14xf32>
    %cst_203 = arith.constant dense<0.000000e+00> : vector<80x14xf32>
    %527 = tpu.matmul %522, %526, %cst_203 {dimension_numbers = #tpu.dot_dimension_numbers<[1], [0], [0], [1], [0, 0, 1, 1], [], []>} : vector<80x40xf32>, vector<40x14xf32>, vector<80x14xf32> -> vector<80x14xf32>
    %528 = vector.extract_strided_slice %527 {offsets = [0, 0], sizes = [16, 10], strides = [1, 1]} : vector<80x14xf32> to vector<16x10xf32>
    %529 = vector.extract_strided_slice %527 {offsets = [16, 1], sizes = [16, 10], strides = [1, 1]} : vector<80x14xf32> to vector<16x10xf32>
    %530 = arith.addf %528, %529 : vector<16x10xf32>
    %531 = vector.extract_strided_slice %527 {offsets = [32, 2], sizes = [16, 10], strides = [1, 1]} : vector<80x14xf32> to vector<16x10xf32>
    %532 = arith.addf %530, %531 : vector<16x10xf32>
    %533 = vector.extract_strided_slice %527 {offsets = [48, 3], sizes = [16, 10], strides = [1, 1]} : vector<80x14xf32> to vector<16x10xf32>
    %534 = arith.addf %532, %533 : vector<16x10xf32>
    %535 = vector.extract_strided_slice %527 {offsets = [64, 4], sizes = [16, 10], strides = [1, 1]} : vector<80x14xf32> to vector<16x10xf32>
    %536 = arith.addf %534, %535 : vector<16x10xf32>
    %537 = vector.broadcast %523 : vector<16x1xf32> to vector<16x10xf32>
    %538 = arith.addf %536, %537 : vector<16x10xf32>
    %cst_204 = arith.constant 0.000000e+00 : f32
    %539 = vector.broadcast %cst_204 : f32 to vector<16x10xf32>
    %540 = arith.maximumf %538, %539 : vector<16x10xf32>
    %c8_205 = arith.constant 8 : index
    %c0_206 = arith.constant 0 : index
    %541 = vector.load %arg17[%c8_205, %c0_206] : memref<112x14xf32, #tpu.memory_space<vmem>>, vector<40x14xf32>
    %cst_207 = arith.constant dense<0.000000e+00> : vector<80x14xf32>
    %542 = tpu.matmul %522, %541, %cst_207 {dimension_numbers = #tpu.dot_dimension_numbers<[1], [0], [0], [1], [0, 0, 1, 1], [], []>} : vector<80x40xf32>, vector<40x14xf32>, vector<80x14xf32> -> vector<80x14xf32>
    %543 = vector.extract_strided_slice %542 {offsets = [0, 0], sizes = [16, 10], strides = [1, 1]} : vector<80x14xf32> to vector<16x10xf32>
    %544 = vector.extract_strided_slice %542 {offsets = [16, 1], sizes = [16, 10], strides = [1, 1]} : vector<80x14xf32> to vector<16x10xf32>
    %545 = arith.addf %543, %544 : vector<16x10xf32>
    %546 = vector.extract_strided_slice %542 {offsets = [32, 2], sizes = [16, 10], strides = [1, 1]} : vector<80x14xf32> to vector<16x10xf32>
    %547 = arith.addf %545, %546 : vector<16x10xf32>
    %548 = vector.extract_strided_slice %542 {offsets = [48, 3], sizes = [16, 10], strides = [1, 1]} : vector<80x14xf32> to vector<16x10xf32>
    %549 = arith.addf %547, %548 : vector<16x10xf32>
    %550 = vector.extract_strided_slice %542 {offsets = [64, 4], sizes = [16, 10], strides = [1, 1]} : vector<80x14xf32> to vector<16x10xf32>
    %551 = arith.addf %549, %550 : vector<16x10xf32>
    %552 = vector.broadcast %523 : vector<16x1xf32> to vector<16x10xf32>
    %553 = arith.addf %551, %552 : vector<16x10xf32>
    %cst_208 = arith.constant 0.000000e+00 : f32
    %554 = vector.broadcast %cst_208 : f32 to vector<16x10xf32>
    %555 = arith.maximumf %553, %554 : vector<16x10xf32>
    %556 = arith.maximumf %540, %555 : vector<16x10xf32>
    %cst_209 = arith.constant dense<0.000000e+00> : vector<16x5xf32>
    %557 = tpu.matmul %556, %524, %cst_209 {dimension_numbers = #tpu.dot_dimension_numbers<[1], [0], [0], [1], [0, 0, 1, 1], [], []>} : vector<16x10xf32>, vector<10x5xf32>, vector<16x5xf32> -> vector<16x5xf32>
    %cst_210 = arith.constant dense<0.000000e+00> : vector<16x5xf32>
    %558 = tpu.matmul %556, %525, %cst_210 {dimension_numbers = #tpu.dot_dimension_numbers<[1], [0], [0], [1], [0, 0, 1, 1], [], []>} : vector<16x10xf32>, vector<10x5xf32>, vector<16x5xf32> -> vector<16x5xf32>
    %559 = arith.maximumf %557, %558 : vector<16x5xf32>
    %560 = vector.extract_strided_slice %559 {offsets = [0, 0], sizes = [16, 1], strides = [1, 1]} : vector<16x5xf32> to vector<16x1xf32>
    %c0_211 = arith.constant 0 : index
    %c0_212 = arith.constant 0 : index
    %561 = vector.load %arg18[%c0_211, %c0_212] : memref<400x1xf32, #tpu.memory_space<vmem>>, vector<16x1xf32>
    tpu.vector_store %arg18[%c0_211, %c0_212], %560 {strides = array<i32>} : memref<400x1xf32, #tpu.memory_space<vmem>>, vector<16x1xf32>,
    %562 = vector.extract_strided_slice %559 {offsets = [0, 1], sizes = [16, 1], strides = [1, 1]} : vector<16x5xf32> to vector<16x1xf32>
    %c16_213 = arith.constant 16 : index
    %c0_214 = arith.constant 0 : index
    %563 = vector.load %arg18[%c16_213, %c0_214] : memref<400x1xf32, #tpu.memory_space<vmem>>, vector<16x1xf32>
    tpu.vector_store %arg18[%c16_213, %c0_214], %562 {strides = array<i32>} : memref<400x1xf32, #tpu.memory_space<vmem>>, vector<16x1xf32>,
    %564 = vector.extract_strided_slice %559 {offsets = [0, 2], sizes = [16, 1], strides = [1, 1]} : vector<16x5xf32> to vector<16x1xf32>
    %c32_215 = arith.constant 32 : index
    %c0_216 = arith.constant 0 : index
    %565 = vector.load %arg18[%c32_215, %c0_216] : memref<400x1xf32, #tpu.memory_space<vmem>>, vector<16x1xf32>
    tpu.vector_store %arg18[%c32_215, %c0_216], %564 {strides = array<i32>} : memref<400x1xf32, #tpu.memory_space<vmem>>, vector<16x1xf32>,
    %566 = vector.extract_strided_slice %559 {offsets = [0, 3], sizes = [16, 1], strides = [1, 1]} : vector<16x5xf32> to vector<16x1xf32>
    %c48_217 = arith.constant 48 : index
    %c0_218 = arith.constant 0 : index
    %567 = vector.load %arg18[%c48_217, %c0_218] : memref<400x1xf32, #tpu.memory_space<vmem>>, vector<16x1xf32>
    tpu.vector_store %arg18[%c48_217, %c0_218], %566 {strides = array<i32>} : memref<400x1xf32, #tpu.memory_space<vmem>>, vector<16x1xf32>,
    %568 = vector.extract_strided_slice %559 {offsets = [0, 4], sizes = [16, 1], strides = [1, 1]} : vector<16x5xf32> to vector<16x1xf32>
    %c64_219 = arith.constant 64 : index
    %c0_220 = arith.constant 0 : index
    %569 = vector.load %arg18[%c64_219, %c0_220] : memref<400x1xf32, #tpu.memory_space<vmem>>, vector<16x1xf32>
    tpu.vector_store %arg18[%c64_219, %c0_220], %568 {strides = array<i32>} : memref<400x1xf32, #tpu.memory_space<vmem>>, vector<16x1xf32>,
    %c16_221 = arith.constant 16 : index
    %c0_222 = arith.constant 0 : index
    %570 = vector.load %arg17[%c16_221, %c0_222] : memref<112x14xf32, #tpu.memory_space<vmem>>, vector<40x14xf32>
    %cst_223 = arith.constant dense<0.000000e+00> : vector<80x14xf32>
    %571 = tpu.matmul %522, %570, %cst_223 {dimension_numbers = #tpu.dot_dimension_numbers<[1], [0], [0], [1], [0, 0, 1, 1], [], []>} : vector<80x40xf32>, vector<40x14xf32>, vector<80x14xf32> -> vector<80x14xf32>
    %572 = vector.extract_strided_slice %571 {offsets = [0, 0], sizes = [16, 10], strides = [1, 1]} : vector<80x14xf32> to vector<16x10xf32>
    %573 = vector.extract_strided_slice %571 {offsets = [16, 1], sizes = [16, 10], strides = [1, 1]} : vector<80x14xf32> to vector<16x10xf32>
    %574 = arith.addf %572, %573 : vector<16x10xf32>
    %575 = vector.extract_strided_slice %571 {offsets = [32, 2], sizes = [16, 10], strides = [1, 1]} : vector<80x14xf32> to vector<16x10xf32>
    %576 = arith.addf %574, %575 : vector<16x10xf32>
    %577 = vector.extract_strided_slice %571 {offsets = [48, 3], sizes = [16, 10], strides = [1, 1]} : vector<80x14xf32> to vector<16x10xf32>
    %578 = arith.addf %576, %577 : vector<16x10xf32>
    %579 = vector.extract_strided_slice %571 {offsets = [64, 4], sizes = [16, 10], strides = [1, 1]} : vector<80x14xf32> to vector<16x10xf32>
    %580 = arith.addf %578, %579 : vector<16x10xf32>
    %581 = vector.broadcast %523 : vector<16x1xf32> to vector<16x10xf32>
    %582 = arith.addf %580, %581 : vector<16x10xf32>
    %cst_224 = arith.constant 0.000000e+00 : f32
    %583 = vector.broadcast %cst_224 : f32 to vector<16x10xf32>
    %584 = arith.maximumf %582, %583 : vector<16x10xf32>
    %c24_225 = arith.constant 24 : index
    %c0_226 = arith.constant 0 : index
    %585 = vector.load %arg17[%c24_225, %c0_226] : memref<112x14xf32, #tpu.memory_space<vmem>>, vector<40x14xf32>
    %cst_227 = arith.constant dense<0.000000e+00> : vector<80x14xf32>
    %586 = tpu.matmul %522, %585, %cst_227 {dimension_numbers = #tpu.dot_dimension_numbers<[1], [0], [0], [1], [0, 0, 1, 1], [], []>} : vector<80x40xf32>, vector<40x14xf32>, vector<80x14xf32> -> vector<80x14xf32>
    %587 = vector.extract_strided_slice %586 {offsets = [0, 0], sizes = [16, 10], strides = [1, 1]} : vector<80x14xf32> to vector<16x10xf32>
    %588 = vector.extract_strided_slice %586 {offsets = [16, 1], sizes = [16, 10], strides = [1, 1]} : vector<80x14xf32> to vector<16x10xf32>
    %589 = arith.addf %587, %588 : vector<16x10xf32>
    %590 = vector.extract_strided_slice %586 {offsets = [32, 2], sizes = [16, 10], strides = [1, 1]} : vector<80x14xf32> to vector<16x10xf32>
    %591 = arith.addf %589, %590 : vector<16x10xf32>
    %592 = vector.extract_strided_slice %586 {offsets = [48, 3], sizes = [16, 10], strides = [1, 1]} : vector<80x14xf32> to vector<16x10xf32>
    %593 = arith.addf %591, %592 : vector<16x10xf32>
    %594 = vector.extract_strided_slice %586 {offsets = [64, 4], sizes = [16, 10], strides = [1, 1]} : vector<80x14xf32> to vector<16x10xf32>
    %595 = arith.addf %593, %594 : vector<16x10xf32>
    %596 = vector.broadcast %523 : vector<16x1xf32> to vector<16x10xf32>
    %597 = arith.addf %595, %596 : vector<16x10xf32>
    %cst_228 = arith.constant 0.000000e+00 : f32
    %598 = vector.broadcast %cst_228 : f32 to vector<16x10xf32>
    %599 = arith.maximumf %597, %598 : vector<16x10xf32>
    %600 = arith.maximumf %584, %599 : vector<16x10xf32>
    %cst_229 = arith.constant dense<0.000000e+00> : vector<16x5xf32>
    %601 = tpu.matmul %600, %524, %cst_229 {dimension_numbers = #tpu.dot_dimension_numbers<[1], [0], [0], [1], [0, 0, 1, 1], [], []>} : vector<16x10xf32>, vector<10x5xf32>, vector<16x5xf32> -> vector<16x5xf32>
    %cst_230 = arith.constant dense<0.000000e+00> : vector<16x5xf32>
    %602 = tpu.matmul %600, %525, %cst_230 {dimension_numbers = #tpu.dot_dimension_numbers<[1], [0], [0], [1], [0, 0, 1, 1], [], []>} : vector<16x10xf32>, vector<10x5xf32>, vector<16x5xf32> -> vector<16x5xf32>
    %603 = arith.maximumf %601, %602 : vector<16x5xf32>
    %604 = vector.extract_strided_slice %603 {offsets = [0, 0], sizes = [16, 1], strides = [1, 1]} : vector<16x5xf32> to vector<16x1xf32>
    %c80_231 = arith.constant 80 : index
    %c0_232 = arith.constant 0 : index
    %605 = vector.load %arg18[%c80_231, %c0_232] : memref<400x1xf32, #tpu.memory_space<vmem>>, vector<16x1xf32>
    tpu.vector_store %arg18[%c80_231, %c0_232], %604 {strides = array<i32>} : memref<400x1xf32, #tpu.memory_space<vmem>>, vector<16x1xf32>,
    %606 = vector.extract_strided_slice %603 {offsets = [0, 1], sizes = [16, 1], strides = [1, 1]} : vector<16x5xf32> to vector<16x1xf32>
    %c96_233 = arith.constant 96 : index
    %c0_234 = arith.constant 0 : index
    %607 = vector.load %arg18[%c96_233, %c0_234] : memref<400x1xf32, #tpu.memory_space<vmem>>, vector<16x1xf32>
    tpu.vector_store %arg18[%c96_233, %c0_234], %606 {strides = array<i32>} : memref<400x1xf32, #tpu.memory_space<vmem>>, vector<16x1xf32>,
    %608 = vector.extract_strided_slice %603 {offsets = [0, 2], sizes = [16, 1], strides = [1, 1]} : vector<16x5xf32> to vector<16x1xf32>
    %c112 = arith.constant 112 : index
    %c0_235 = arith.constant 0 : index
    %609 = vector.load %arg18[%c112, %c0_235] : memref<400x1xf32, #tpu.memory_space<vmem>>, vector<16x1xf32>
    tpu.vector_store %arg18[%c112, %c0_235], %608 {strides = array<i32>} : memref<400x1xf32, #tpu.memory_space<vmem>>, vector<16x1xf32>,
    %610 = vector.extract_strided_slice %603 {offsets = [0, 3], sizes = [16, 1], strides = [1, 1]} : vector<16x5xf32> to vector<16x1xf32>
    %c128 = arith.constant 128 : index
    %c0_236 = arith.constant 0 : index
    %611 = vector.load %arg18[%c128, %c0_236] : memref<400x1xf32, #tpu.memory_space<vmem>>, vector<16x1xf32>
    tpu.vector_store %arg18[%c128, %c0_236], %610 {strides = array<i32>} : memref<400x1xf32, #tpu.memory_space<vmem>>, vector<16x1xf32>,
    %612 = vector.extract_strided_slice %603 {offsets = [0, 4], sizes = [16, 1], strides = [1, 1]} : vector<16x5xf32> to vector<16x1xf32>
    %c144 = arith.constant 144 : index
    %c0_237 = arith.constant 0 : index
    %613 = vector.load %arg18[%c144, %c0_237] : memref<400x1xf32, #tpu.memory_space<vmem>>, vector<16x1xf32>
    tpu.vector_store %arg18[%c144, %c0_237], %612 {strides = array<i32>} : memref<400x1xf32, #tpu.memory_space<vmem>>, vector<16x1xf32>,
    %c32_238 = arith.constant 32 : index
    %c0_239 = arith.constant 0 : index
    %614 = vector.load %arg17[%c32_238, %c0_239] : memref<112x14xf32, #tpu.memory_space<vmem>>, vector<40x14xf32>
    %cst_240 = arith.constant dense<0.000000e+00> : vector<80x14xf32>
    %615 = tpu.matmul %522, %614, %cst_240 {dimension_numbers = #tpu.dot_dimension_numbers<[1], [0], [0], [1], [0, 0, 1, 1], [], []>} : vector<80x40xf32>, vector<40x14xf32>, vector<80x14xf32> -> vector<80x14xf32>
    %616 = vector.extract_strided_slice %615 {offsets = [0, 0], sizes = [16, 10], strides = [1, 1]} : vector<80x14xf32> to vector<16x10xf32>
    %617 = vector.extract_strided_slice %615 {offsets = [16, 1], sizes = [16, 10], strides = [1, 1]} : vector<80x14xf32> to vector<16x10xf32>
    %618 = arith.addf %616, %617 : vector<16x10xf32>
    %619 = vector.extract_strided_slice %615 {offsets = [32, 2], sizes = [16, 10], strides = [1, 1]} : vector<80x14xf32> to vector<16x10xf32>
    %620 = arith.addf %618, %619 : vector<16x10xf32>
    %621 = vector.extract_strided_slice %615 {offsets = [48, 3], sizes = [16, 10], strides = [1, 1]} : vector<80x14xf32> to vector<16x10xf32>
    %622 = arith.addf %620, %621 : vector<16x10xf32>
    %623 = vector.extract_strided_slice %615 {offsets = [64, 4], sizes = [16, 10], strides = [1, 1]} : vector<80x14xf32> to vector<16x10xf32>
    %624 = arith.addf %622, %623 : vector<16x10xf32>
    %625 = vector.broadcast %523 : vector<16x1xf32> to vector<16x10xf32>
    %626 = arith.addf %624, %625 : vector<16x10xf32>
    %cst_241 = arith.constant 0.000000e+00 : f32
    %627 = vector.broadcast %cst_241 : f32 to vector<16x10xf32>
    %628 = arith.maximumf %626, %627 : vector<16x10xf32>
    %c40_242 = arith.constant 40 : index
    %c0_243 = arith.constant 0 : index
    %629 = vector.load %arg17[%c40_242, %c0_243] : memref<112x14xf32, #tpu.memory_space<vmem>>, vector<40x14xf32>
    %cst_244 = arith.constant dense<0.000000e+00> : vector<80x14xf32>
    %630 = tpu.matmul %522, %629, %cst_244 {dimension_numbers = #tpu.dot_dimension_numbers<[1], [0], [0], [1], [0, 0, 1, 1], [], []>} : vector<80x40xf32>, vector<40x14xf32>, vector<80x14xf32> -> vector<80x14xf32>
    %631 = vector.extract_strided_slice %630 {offsets = [0, 0], sizes = [16, 10], strides = [1, 1]} : vector<80x14xf32> to vector<16x10xf32>
    %632 = vector.extract_strided_slice %630 {offsets = [16, 1], sizes = [16, 10], strides = [1, 1]} : vector<80x14xf32> to vector<16x10xf32>
    %633 = arith.addf %631, %632 : vector<16x10xf32>
    %634 = vector.extract_strided_slice %630 {offsets = [32, 2], sizes = [16, 10], strides = [1, 1]} : vector<80x14xf32> to vector<16x10xf32>
    %635 = arith.addf %633, %634 : vector<16x10xf32>
    %636 = vector.extract_strided_slice %630 {offsets = [48, 3], sizes = [16, 10], strides = [1, 1]} : vector<80x14xf32> to vector<16x10xf32>
    %637 = arith.addf %635, %636 : vector<16x10xf32>
    %638 = vector.extract_strided_slice %630 {offsets = [64, 4], sizes = [16, 10], strides = [1, 1]} : vector<80x14xf32> to vector<16x10xf32>
    %639 = arith.addf %637, %638 : vector<16x10xf32>
    %640 = vector.broadcast %523 : vector<16x1xf32> to vector<16x10xf32>
    %641 = arith.addf %639, %640 : vector<16x10xf32>
    %cst_245 = arith.constant 0.000000e+00 : f32
    %642 = vector.broadcast %cst_245 : f32 to vector<16x10xf32>
    %643 = arith.maximumf %641, %642 : vector<16x10xf32>
    %644 = arith.maximumf %628, %643 : vector<16x10xf32>
    %cst_246 = arith.constant dense<0.000000e+00> : vector<16x5xf32>
    %645 = tpu.matmul %644, %524, %cst_246 {dimension_numbers = #tpu.dot_dimension_numbers<[1], [0], [0], [1], [0, 0, 1, 1], [], []>} : vector<16x10xf32>, vector<10x5xf32>, vector<16x5xf32> -> vector<16x5xf32>
    %cst_247 = arith.constant dense<0.000000e+00> : vector<16x5xf32>
    %646 = tpu.matmul %644, %525, %cst_247 {dimension_numbers = #tpu.dot_dimension_numbers<[1], [0], [0], [1], [0, 0, 1, 1], [], []>} : vector<16x10xf32>, vector<10x5xf32>, vector<16x5xf32> -> vector<16x5xf32>
    %647 = arith.maximumf %645, %646 : vector<16x5xf32>
    %648 = vector.extract_strided_slice %647 {offsets = [0, 0], sizes = [16, 1], strides = [1, 1]} : vector<16x5xf32> to vector<16x1xf32>
    %c160 = arith.constant 160 : index
    %c0_248 = arith.constant 0 : index
    %649 = vector.load %arg18[%c160, %c0_248] : memref<400x1xf32, #tpu.memory_space<vmem>>, vector<16x1xf32>
    tpu.vector_store %arg18[%c160, %c0_248], %648 {strides = array<i32>} : memref<400x1xf32, #tpu.memory_space<vmem>>, vector<16x1xf32>,
    %650 = vector.extract_strided_slice %647 {offsets = [0, 1], sizes = [16, 1], strides = [1, 1]} : vector<16x5xf32> to vector<16x1xf32>
    %c176 = arith.constant 176 : index
    %c0_249 = arith.constant 0 : index
    %651 = vector.load %arg18[%c176, %c0_249] : memref<400x1xf32, #tpu.memory_space<vmem>>, vector<16x1xf32>
    tpu.vector_store %arg18[%c176, %c0_249], %650 {strides = array<i32>} : memref<400x1xf32, #tpu.memory_space<vmem>>, vector<16x1xf32>,
    %652 = vector.extract_strided_slice %647 {offsets = [0, 2], sizes = [16, 1], strides = [1, 1]} : vector<16x5xf32> to vector<16x1xf32>
    %c192 = arith.constant 192 : index
    %c0_250 = arith.constant 0 : index
    %653 = vector.load %arg18[%c192, %c0_250] : memref<400x1xf32, #tpu.memory_space<vmem>>, vector<16x1xf32>
    tpu.vector_store %arg18[%c192, %c0_250], %652 {strides = array<i32>} : memref<400x1xf32, #tpu.memory_space<vmem>>, vector<16x1xf32>,
    %654 = vector.extract_strided_slice %647 {offsets = [0, 3], sizes = [16, 1], strides = [1, 1]} : vector<16x5xf32> to vector<16x1xf32>
    %c208 = arith.constant 208 : index
    %c0_251 = arith.constant 0 : index
    %655 = vector.load %arg18[%c208, %c0_251] : memref<400x1xf32, #tpu.memory_space<vmem>>, vector<16x1xf32>
    tpu.vector_store %arg18[%c208, %c0_251], %654 {strides = array<i32>} : memref<400x1xf32, #tpu.memory_space<vmem>>, vector<16x1xf32>,
    %656 = vector.extract_strided_slice %647 {offsets = [0, 4], sizes = [16, 1], strides = [1, 1]} : vector<16x5xf32> to vector<16x1xf32>
    %c224 = arith.constant 224 : index
    %c0_252 = arith.constant 0 : index
    %657 = vector.load %arg18[%c224, %c0_252] : memref<400x1xf32, #tpu.memory_space<vmem>>, vector<16x1xf32>
    tpu.vector_store %arg18[%c224, %c0_252], %656 {strides = array<i32>} : memref<400x1xf32, #tpu.memory_space<vmem>>, vector<16x1xf32>,
    %c48_253 = arith.constant 48 : index
    %c0_254 = arith.constant 0 : index
    %658 = vector.load %arg17[%c48_253, %c0_254] : memref<112x14xf32, #tpu.memory_space<vmem>>, vector<40x14xf32>
    %cst_255 = arith.constant dense<0.000000e+00> : vector<80x14xf32>
    %659 = tpu.matmul %522, %658, %cst_255 {dimension_numbers = #tpu.dot_dimension_numbers<[1], [0], [0], [1], [0, 0, 1, 1], [], []>} : vector<80x40xf32>, vector<40x14xf32>, vector<80x14xf32> -> vector<80x14xf32>
    %660 = vector.extract_strided_slice %659 {offsets = [0, 0], sizes = [16, 10], strides = [1, 1]} : vector<80x14xf32> to vector<16x10xf32>
    %661 = vector.extract_strided_slice %659 {offsets = [16, 1], sizes = [16, 10], strides = [1, 1]} : vector<80x14xf32> to vector<16x10xf32>
    %662 = arith.addf %660, %661 : vector<16x10xf32>
    %663 = vector.extract_strided_slice %659 {offsets = [32, 2], sizes = [16, 10], strides = [1, 1]} : vector<80x14xf32> to vector<16x10xf32>
    %664 = arith.addf %662, %663 : vector<16x10xf32>
    %665 = vector.extract_strided_slice %659 {offsets = [48, 3], sizes = [16, 10], strides = [1, 1]} : vector<80x14xf32> to vector<16x10xf32>
    %666 = arith.addf %664, %665 : vector<16x10xf32>
    %667 = vector.extract_strided_slice %659 {offsets = [64, 4], sizes = [16, 10], strides = [1, 1]} : vector<80x14xf32> to vector<16x10xf32>
    %668 = arith.addf %666, %667 : vector<16x10xf32>
    %669 = vector.broadcast %523 : vector<16x1xf32> to vector<16x10xf32>
    %670 = arith.addf %668, %669 : vector<16x10xf32>
    %cst_256 = arith.constant 0.000000e+00 : f32
    %671 = vector.broadcast %cst_256 : f32 to vector<16x10xf32>
    %672 = arith.maximumf %670, %671 : vector<16x10xf32>
    %c56_257 = arith.constant 56 : index
    %c0_258 = arith.constant 0 : index
    %673 = vector.load %arg17[%c56_257, %c0_258] : memref<112x14xf32, #tpu.memory_space<vmem>>, vector<40x14xf32>
    %cst_259 = arith.constant dense<0.000000e+00> : vector<80x14xf32>
    %674 = tpu.matmul %522, %673, %cst_259 {dimension_numbers = #tpu.dot_dimension_numbers<[1], [0], [0], [1], [0, 0, 1, 1], [], []>} : vector<80x40xf32>, vector<40x14xf32>, vector<80x14xf32> -> vector<80x14xf32>
    %675 = vector.extract_strided_slice %674 {offsets = [0, 0], sizes = [16, 10], strides = [1, 1]} : vector<80x14xf32> to vector<16x10xf32>
    %676 = vector.extract_strided_slice %674 {offsets = [16, 1], sizes = [16, 10], strides = [1, 1]} : vector<80x14xf32> to vector<16x10xf32>
    %677 = arith.addf %675, %676 : vector<16x10xf32>
    %678 = vector.extract_strided_slice %674 {offsets = [32, 2], sizes = [16, 10], strides = [1, 1]} : vector<80x14xf32> to vector<16x10xf32>
    %679 = arith.addf %677, %678 : vector<16x10xf32>
    %680 = vector.extract_strided_slice %674 {offsets = [48, 3], sizes = [16, 10], strides = [1, 1]} : vector<80x14xf32> to vector<16x10xf32>
    %681 = arith.addf %679, %680 : vector<16x10xf32>
    %682 = vector.extract_strided_slice %674 {offsets = [64, 4], sizes = [16, 10], strides = [1, 1]} : vector<80x14xf32> to vector<16x10xf32>
    %683 = arith.addf %681, %682 : vector<16x10xf32>
    %684 = vector.broadcast %523 : vector<16x1xf32> to vector<16x10xf32>
    %685 = arith.addf %683, %684 : vector<16x10xf32>
    %cst_260 = arith.constant 0.000000e+00 : f32
    %686 = vector.broadcast %cst_260 : f32 to vector<16x10xf32>
    %687 = arith.maximumf %685, %686 : vector<16x10xf32>
    %688 = arith.maximumf %672, %687 : vector<16x10xf32>
    %cst_261 = arith.constant dense<0.000000e+00> : vector<16x5xf32>
    %689 = tpu.matmul %688, %524, %cst_261 {dimension_numbers = #tpu.dot_dimension_numbers<[1], [0], [0], [1], [0, 0, 1, 1], [], []>} : vector<16x10xf32>, vector<10x5xf32>, vector<16x5xf32> -> vector<16x5xf32>
    %cst_262 = arith.constant dense<0.000000e+00> : vector<16x5xf32>
    %690 = tpu.matmul %688, %525, %cst_262 {dimension_numbers = #tpu.dot_dimension_numbers<[1], [0], [0], [1], [0, 0, 1, 1], [], []>} : vector<16x10xf32>, vector<10x5xf32>, vector<16x5xf32> -> vector<16x5xf32>
    %691 = arith.maximumf %689, %690 : vector<16x5xf32>
    %692 = vector.extract_strided_slice %691 {offsets = [0, 0], sizes = [16, 1], strides = [1, 1]} : vector<16x5xf32> to vector<16x1xf32>
    %c240 = arith.constant 240 : index
    %c0_263 = arith.constant 0 : index
    %693 = vector.load %arg18[%c240, %c0_263] : memref<400x1xf32, #tpu.memory_space<vmem>>, vector<16x1xf32>
    tpu.vector_store %arg18[%c240, %c0_263], %692 {strides = array<i32>} : memref<400x1xf32, #tpu.memory_space<vmem>>, vector<16x1xf32>,
    %694 = vector.extract_strided_slice %691 {offsets = [0, 1], sizes = [16, 1], strides = [1, 1]} : vector<16x5xf32> to vector<16x1xf32>
    %c256 = arith.constant 256 : index
    %c0_264 = arith.constant 0 : index
    %695 = vector.load %arg18[%c256, %c0_264] : memref<400x1xf32, #tpu.memory_space<vmem>>, vector<16x1xf32>
    tpu.vector_store %arg18[%c256, %c0_264], %694 {strides = array<i32>} : memref<400x1xf32, #tpu.memory_space<vmem>>, vector<16x1xf32>,
    %696 = vector.extract_strided_slice %691 {offsets = [0, 2], sizes = [16, 1], strides = [1, 1]} : vector<16x5xf32> to vector<16x1xf32>
    %c272 = arith.constant 272 : index
    %c0_265 = arith.constant 0 : index
    %697 = vector.load %arg18[%c272, %c0_265] : memref<400x1xf32, #tpu.memory_space<vmem>>, vector<16x1xf32>
    tpu.vector_store %arg18[%c272, %c0_265], %696 {strides = array<i32>} : memref<400x1xf32, #tpu.memory_space<vmem>>, vector<16x1xf32>,
    %698 = vector.extract_strided_slice %691 {offsets = [0, 3], sizes = [16, 1], strides = [1, 1]} : vector<16x5xf32> to vector<16x1xf32>
    %c288 = arith.constant 288 : index
    %c0_266 = arith.constant 0 : index
    %699 = vector.load %arg18[%c288, %c0_266] : memref<400x1xf32, #tpu.memory_space<vmem>>, vector<16x1xf32>
    tpu.vector_store %arg18[%c288, %c0_266], %698 {strides = array<i32>} : memref<400x1xf32, #tpu.memory_space<vmem>>, vector<16x1xf32>,
    %700 = vector.extract_strided_slice %691 {offsets = [0, 4], sizes = [16, 1], strides = [1, 1]} : vector<16x5xf32> to vector<16x1xf32>
    %c304 = arith.constant 304 : index
    %c0_267 = arith.constant 0 : index
    %701 = vector.load %arg18[%c304, %c0_267] : memref<400x1xf32, #tpu.memory_space<vmem>>, vector<16x1xf32>
    tpu.vector_store %arg18[%c304, %c0_267], %700 {strides = array<i32>} : memref<400x1xf32, #tpu.memory_space<vmem>>, vector<16x1xf32>,
    %c64_268 = arith.constant 64 : index
    %c0_269 = arith.constant 0 : index
    %702 = vector.load %arg17[%c64_268, %c0_269] : memref<112x14xf32, #tpu.memory_space<vmem>>, vector<40x14xf32>
    %cst_270 = arith.constant dense<0.000000e+00> : vector<80x14xf32>
    %703 = tpu.matmul %522, %702, %cst_270 {dimension_numbers = #tpu.dot_dimension_numbers<[1], [0], [0], [1], [0, 0, 1, 1], [], []>} : vector<80x40xf32>, vector<40x14xf32>, vector<80x14xf32> -> vector<80x14xf32>
    %704 = vector.extract_strided_slice %703 {offsets = [0, 0], sizes = [16, 10], strides = [1, 1]} : vector<80x14xf32> to vector<16x10xf32>
    %705 = vector.extract_strided_slice %703 {offsets = [16, 1], sizes = [16, 10], strides = [1, 1]} : vector<80x14xf32> to vector<16x10xf32>
    %706 = arith.addf %704, %705 : vector<16x10xf32>
    %707 = vector.extract_strided_slice %703 {offsets = [32, 2], sizes = [16, 10], strides = [1, 1]} : vector<80x14xf32> to vector<16x10xf32>
    %708 = arith.addf %706, %707 : vector<16x10xf32>
    %709 = vector.extract_strided_slice %703 {offsets = [48, 3], sizes = [16, 10], strides = [1, 1]} : vector<80x14xf32> to vector<16x10xf32>
    %710 = arith.addf %708, %709 : vector<16x10xf32>
    %711 = vector.extract_strided_slice %703 {offsets = [64, 4], sizes = [16, 10], strides = [1, 1]} : vector<80x14xf32> to vector<16x10xf32>
    %712 = arith.addf %710, %711 : vector<16x10xf32>
    %713 = vector.broadcast %523 : vector<16x1xf32> to vector<16x10xf32>
    %714 = arith.addf %712, %713 : vector<16x10xf32>
    %cst_271 = arith.constant 0.000000e+00 : f32
    %715 = vector.broadcast %cst_271 : f32 to vector<16x10xf32>
    %716 = arith.maximumf %714, %715 : vector<16x10xf32>
    %c72_272 = arith.constant 72 : index
    %c0_273 = arith.constant 0 : index
    %717 = vector.load %arg17[%c72_272, %c0_273] : memref<112x14xf32, #tpu.memory_space<vmem>>, vector<40x14xf32>
    %cst_274 = arith.constant dense<0.000000e+00> : vector<80x14xf32>
    %718 = tpu.matmul %522, %717, %cst_274 {dimension_numbers = #tpu.dot_dimension_numbers<[1], [0], [0], [1], [0, 0, 1, 1], [], []>} : vector<80x40xf32>, vector<40x14xf32>, vector<80x14xf32> -> vector<80x14xf32>
    %719 = vector.extract_strided_slice %718 {offsets = [0, 0], sizes = [16, 10], strides = [1, 1]} : vector<80x14xf32> to vector<16x10xf32>
    %720 = vector.extract_strided_slice %718 {offsets = [16, 1], sizes = [16, 10], strides = [1, 1]} : vector<80x14xf32> to vector<16x10xf32>
    %721 = arith.addf %719, %720 : vector<16x10xf32>
    %722 = vector.extract_strided_slice %718 {offsets = [32, 2], sizes = [16, 10], strides = [1, 1]} : vector<80x14xf32> to vector<16x10xf32>
    %723 = arith.addf %721, %722 : vector<16x10xf32>
    %724 = vector.extract_strided_slice %718 {offsets = [48, 3], sizes = [16, 10], strides = [1, 1]} : vector<80x14xf32> to vector<16x10xf32>
    %725 = arith.addf %723, %724 : vector<16x10xf32>
    %726 = vector.extract_strided_slice %718 {offsets = [64, 4], sizes = [16, 10], strides = [1, 1]} : vector<80x14xf32> to vector<16x10xf32>
    %727 = arith.addf %725, %726 : vector<16x10xf32>
    %728 = vector.broadcast %523 : vector<16x1xf32> to vector<16x10xf32>
    %729 = arith.addf %727, %728 : vector<16x10xf32>
    %cst_275 = arith.constant 0.000000e+00 : f32
    %730 = vector.broadcast %cst_275 : f32 to vector<16x10xf32>
    %731 = arith.maximumf %729, %730 : vector<16x10xf32>
    %732 = arith.maximumf %716, %731 : vector<16x10xf32>
    %cst_276 = arith.constant dense<0.000000e+00> : vector<16x5xf32>
    %733 = tpu.matmul %732, %524, %cst_276 {dimension_numbers = #tpu.dot_dimension_numbers<[1], [0], [0], [1], [0, 0, 1, 1], [], []>} : vector<16x10xf32>, vector<10x5xf32>, vector<16x5xf32> -> vector<16x5xf32>
    %cst_277 = arith.constant dense<0.000000e+00> : vector<16x5xf32>
    %734 = tpu.matmul %732, %525, %cst_277 {dimension_numbers = #tpu.dot_dimension_numbers<[1], [0], [0], [1], [0, 0, 1, 1], [], []>} : vector<16x10xf32>, vector<10x5xf32>, vector<16x5xf32> -> vector<16x5xf32>
    %735 = arith.maximumf %733, %734 : vector<16x5xf32>
    %736 = vector.extract_strided_slice %735 {offsets = [0, 0], sizes = [16, 1], strides = [1, 1]} : vector<16x5xf32> to vector<16x1xf32>
    %c320 = arith.constant 320 : index
    %c0_278 = arith.constant 0 : index
    %737 = vector.load %arg18[%c320, %c0_278] : memref<400x1xf32, #tpu.memory_space<vmem>>, vector<16x1xf32>
    tpu.vector_store %arg18[%c320, %c0_278], %736 {strides = array<i32>} : memref<400x1xf32, #tpu.memory_space<vmem>>, vector<16x1xf32>,
    %738 = vector.extract_strided_slice %735 {offsets = [0, 1], sizes = [16, 1], strides = [1, 1]} : vector<16x5xf32> to vector<16x1xf32>
    %c336 = arith.constant 336 : index
    %c0_279 = arith.constant 0 : index
    %739 = vector.load %arg18[%c336, %c0_279] : memref<400x1xf32, #tpu.memory_space<vmem>>, vector<16x1xf32>
    tpu.vector_store %arg18[%c336, %c0_279], %738 {strides = array<i32>} : memref<400x1xf32, #tpu.memory_space<vmem>>, vector<16x1xf32>,
    %740 = vector.extract_strided_slice %735 {offsets = [0, 2], sizes = [16, 1], strides = [1, 1]} : vector<16x5xf32> to vector<16x1xf32>
    %c352 = arith.constant 352 : index
    %c0_280 = arith.constant 0 : index
    %741 = vector.load %arg18[%c352, %c0_280] : memref<400x1xf32, #tpu.memory_space<vmem>>, vector<16x1xf32>
    tpu.vector_store %arg18[%c352, %c0_280], %740 {strides = array<i32>} : memref<400x1xf32, #tpu.memory_space<vmem>>, vector<16x1xf32>,
    %742 = vector.extract_strided_slice %735 {offsets = [0, 3], sizes = [16, 1], strides = [1, 1]} : vector<16x5xf32> to vector<16x1xf32>
    %c368 = arith.constant 368 : index
    %c0_281 = arith.constant 0 : index
    %743 = vector.load %arg18[%c368, %c0_281] : memref<400x1xf32, #tpu.memory_space<vmem>>, vector<16x1xf32>
    tpu.vector_store %arg18[%c368, %c0_281], %742 {strides = array<i32>} : memref<400x1xf32, #tpu.memory_space<vmem>>, vector<16x1xf32>,
    %744 = vector.extract_strided_slice %735 {offsets = [0, 4], sizes = [16, 1], strides = [1, 1]} : vector<16x5xf32> to vector<16x1xf32>
    %c384 = arith.constant 384 : index
    %c0_282 = arith.constant 0 : index
    %745 = vector.load %arg18[%c384, %c0_282] : memref<400x1xf32, #tpu.memory_space<vmem>>, vector<16x1xf32>
    tpu.vector_store %arg18[%c384, %c0_282], %744 {strides = array<i32>} : memref<400x1xf32, #tpu.memory_space<vmem>>, vector<16x1xf32>,
    %c0_283 = arith.constant 0 : index
    %c0_284 = arith.constant 0 : index
    %746 = vector.load %arg18[%c0_283, %c0_284] : memref<400x1xf32, #tpu.memory_space<vmem>>, vector<400x1xf32>
    %c0_285 = arith.constant 0 : index
    %c0_286 = arith.constant 0 : index
    %747 = vector.load %arg10[%c0_285, %c0_286] : memref<128x400xf32, #tpu.memory_space<vmem>>, vector<128x400xf32>
    %cst_287 = arith.constant dense<0.000000e+00> : vector<128x1xf32>
    %748 = tpu.matmul %747, %746, %cst_287 {dimension_numbers = #tpu.dot_dimension_numbers<[1], [0], [0], [1], [0, 0, 1, 1], [], []>} : vector<128x400xf32>, vector<400x1xf32>, vector<128x1xf32> -> vector<128x1xf32>
    %c0_288 = arith.constant 0 : index
    %c0_289 = arith.constant 0 : index
    %749 = vector.load %arg11[%c0_288, %c0_289] : memref<128x1xf32, #tpu.memory_space<vmem>>, vector<128x1xf32>
    %750 = arith.addf %748, %749 : vector<128x1xf32>
    %cst_290 = arith.constant 0.000000e+00 : f32
    %751 = vector.broadcast %cst_290 : f32 to vector<128x1xf32>
    %752 = arith.maximumf %750, %751 : vector<128x1xf32>
    %c0_291 = arith.constant 0 : index
    %c0_292 = arith.constant 0 : index
    %753 = vector.load %arg12[%c0_291, %c0_292] : memref<128x128xf32, #tpu.memory_space<vmem>>, vector<128x128xf32>
    %cst_293 = arith.constant dense<0.000000e+00> : vector<128x1xf32>
    %754 = tpu.matmul %753, %752, %cst_293 {dimension_numbers = #tpu.dot_dimension_numbers<[1], [0], [0], [1], [0, 0, 1, 1], [], []>} : vector<128x128xf32>, vector<128x1xf32>, vector<128x1xf32> -> vector<128x1xf32>
    %c0_294 = arith.constant 0 : index
    %c0_295 = arith.constant 0 : index
    %755 = vector.load %arg13[%c0_294, %c0_295] : memref<128x1xf32, #tpu.memory_space<vmem>>, vector<128x1xf32>
    %756 = arith.addf %754, %755 : vector<128x1xf32>
    %cst_296 = arith.constant 0.000000e+00 : f32
    %757 = vector.broadcast %cst_296 : f32 to vector<128x1xf32>
    %758 = arith.maximumf %756, %757 : vector<128x1xf32>
    %c0_297 = arith.constant 0 : index
    %c0_298 = arith.constant 0 : index
    %759 = vector.load %arg14[%c0_297, %c0_298] : memref<16x128xf32, #tpu.memory_space<vmem>>, vector<16x128xf32>
    %cst_299 = arith.constant dense<0.000000e+00> : vector<16x1xf32>
    %760 = tpu.matmul %759, %758, %cst_299 {dimension_numbers = #tpu.dot_dimension_numbers<[1], [0], [0], [1], [0, 0, 1, 1], [], []>} : vector<16x128xf32>, vector<128x1xf32>, vector<16x1xf32> -> vector<16x1xf32>
    %c0_300 = arith.constant 0 : index
    %c0_301 = arith.constant 0 : index
    %761 = vector.load %arg15[%c0_300, %c0_301] : memref<16x1xf32, #tpu.memory_space<vmem>>, vector<16x1xf32>
    %762 = arith.addf %760, %761 : vector<16x1xf32>
    %c0_302 = arith.constant 0 : index
    %c0_303 = arith.constant 0 : index
    %c0_304 = arith.constant 0 : index
    %763 = vector.load %arg16[%c0_302, %c0_303, %c0_304] : memref<1x16x1xf32, #tpu.memory_space<vmem>>, vector<1x16x1xf32>
    %764 = vector.shape_cast %763 : vector<1x16x1xf32> to vector<16x1xf32>
    %765 = vector.shape_cast %762 : vector<16x1xf32> to vector<1x16x1xf32>
    tpu.vector_store %arg16[%c0_302, %c0_303, %c0_304], %765 {strides = array<i32>} : memref<1x16x1xf32, #tpu.memory_space<vmem>>, vector<1x16x1xf32>,
    return
  }
  func.func @transform_0(%arg0: i32) -> (i32, i32, i32, i32) {
    %c0_i32 = arith.constant 0 : i32
    %c0_i32_0 = arith.constant 0 : i32
    %c0_i32_1 = arith.constant 0 : i32
    %c0_i32_2 = arith.constant 0 : i32
    return %arg0, %c0_i32, %c0_i32_0, %c0_i32_1 : i32, i32, i32, i32
  }
  func.func @transform_1(%arg0: i32) -> (i32, i32) {
    %c0_i32 = arith.constant 0 : i32
    %c0_i32_0 = arith.constant 0 : i32
    %c0_i32_1 = arith.constant 0 : i32
    return %c0_i32, %c0_i32_0 : i32, i32
  }
  func.func @transform_2(%arg0: i32) -> (i32, i32) {
    %c0_i32 = arith.constant 0 : i32
    %c0_i32_0 = arith.constant 0 : i32
    %c0_i32_1 = arith.constant 0 : i32
    return %c0_i32, %c0_i32_0 : i32, i32
  }
  func.func @transform_3(%arg0: i32) -> (i32, i32) {
    %c0_i32 = arith.constant 0 : i32
    %c0_i32_0 = arith.constant 0 : i32
    %c0_i32_1 = arith.constant 0 : i32
    return %c0_i32, %c0_i32_0 : i32, i32
  }
  func.func @transform_4(%arg0: i32) -> (i32, i32) {
    %c0_i32 = arith.constant 0 : i32
    %c0_i32_0 = arith.constant 0 : i32
    %c0_i32_1 = arith.constant 0 : i32
    return %c0_i32, %c0_i32_0 : i32, i32
  }
  func.func @transform_5(%arg0: i32) -> (i32, i32) {
    %c0_i32 = arith.constant 0 : i32
    %c0_i32_0 = arith.constant 0 : i32
    %c0_i32_1 = arith.constant 0 : i32
    return %c0_i32, %c0_i32_0 : i32, i32
  }
  func.func @transform_6(%arg0: i32) -> (i32, i32) {
    %c0_i32 = arith.constant 0 : i32
    %c0_i32_0 = arith.constant 0 : i32
    %c0_i32_1 = arith.constant 0 : i32
    return %c0_i32, %c0_i32_0 : i32, i32
  }
  func.func @transform_7(%arg0: i32) -> (i32, i32) {
    %c0_i32 = arith.constant 0 : i32
    %c0_i32_0 = arith.constant 0 : i32
    %c0_i32_1 = arith.constant 0 : i32
    return %c0_i32, %c0_i32_0 : i32, i32
  }
  func.func @transform_8(%arg0: i32) -> (i32, i32) {
    %c0_i32 = arith.constant 0 : i32
    %c0_i32_0 = arith.constant 0 : i32
    %c0_i32_1 = arith.constant 0 : i32
    return %c0_i32, %c0_i32_0 : i32, i32
  }
  func.func @transform_9(%arg0: i32) -> (i32, i32) {
    %c0_i32 = arith.constant 0 : i32
    %c0_i32_0 = arith.constant 0 : i32
    %c0_i32_1 = arith.constant 0 : i32
    return %c0_i32, %c0_i32_0 : i32, i32
  }
  func.func @transform_10(%arg0: i32) -> (i32, i32) {
    %c0_i32 = arith.constant 0 : i32
    %c0_i32_0 = arith.constant 0 : i32
    %c0_i32_1 = arith.constant 0 : i32
    return %c0_i32, %c0_i32_0 : i32, i32
  }
  func.func @transform_11(%arg0: i32) -> (i32, i32) {
    %c0_i32 = arith.constant 0 : i32
    %c0_i32_0 = arith.constant 0 : i32
    %c0_i32_1 = arith.constant 0 : i32
    return %c0_i32, %c0_i32_0 : i32, i32
  }
  func.func @transform_12(%arg0: i32) -> (i32, i32) {
    %c0_i32 = arith.constant 0 : i32
    %c0_i32_0 = arith.constant 0 : i32
    %c0_i32_1 = arith.constant 0 : i32
    return %c0_i32, %c0_i32_0 : i32, i32
  }
  func.func @transform_13(%arg0: i32) -> (i32, i32) {
    %c0_i32 = arith.constant 0 : i32
    %c0_i32_0 = arith.constant 0 : i32
    %c0_i32_1 = arith.constant 0 : i32
    return %c0_i32, %c0_i32_0 : i32, i32
  }
  func.func @transform_14(%arg0: i32) -> (i32, i32) {
    %c0_i32 = arith.constant 0 : i32
    %c0_i32_0 = arith.constant 0 : i32
    %c0_i32_1 = arith.constant 0 : i32
    return %c0_i32, %c0_i32_0 : i32, i32
  }
  func.func @transform_15(%arg0: i32) -> (i32, i32, i32) {
    %c0_i32 = arith.constant 0 : i32
    %c0_i32_0 = arith.constant 0 : i32
    %c0_i32_1 = arith.constant 0 : i32
    return %arg0, %c0_i32, %c0_i32_0 : i32, i32, i32
  }
}

</mosaic_0001>

<bundles_post_ra>
// kernel: net_forward.1
= control target key start
LH: loop header
LB: loop body
LE: loop exit
PB: predicated region body
PF: predicated region fallthrough
CT: control target
= control target key end

     0   :  { %s12133_s18 = smov 0   ;;  %s14457_s0 = inlined_call_operand.vmem [shape: f32[2,1,32,32], index: 0, kind: input, shape index: {}]   ;;  %s14458_s1 = inlined_call_operand.vmem [shape: f32[40,5], index: 1, kind: input, shape index: {}]   ;;  %s14459_s2 = inlined_call_operand.vmem [shape: f32[8,1], index: 2, kind: input, shape index: {}]   ;;  %s14460_s3 = inlined_call_operand.vmem [shape: f32[28,14], index: 3, kind: input, shape index: {}]   ;;  %s14461_s4 = inlined_call_operand.vmem [shape: f32[28,14], index: 4, kind: input, shape index: {}]   ;;  %s14462_s5 = inlined_call_operand.vmem [shape: f32[80,40], index: 5, kind: input, shape index: {}]   ;;  %s14463_s6 = inlined_call_operand.vmem [shape: f32[16,1], index: 6, kind: input, shape index: {}]   ;;  %s14464_s7 = inlined_call_operand.vmem [shape: f32[10,5], index: 7, kind: input, shape index: {}]   ;;  %s14465_s8 = inlined_call_operand.vmem [shape: f32[10,5], index: 8, kind: input, shape index: {}]   ;;  %s14466_s9 = inlined_call_operand.vmem [shape: f32[128,400], index: 9, kind: input, shape index: {}]   ;;  %s14467_s10 = inlined_call_operand.vmem [shape: f32[128,1], index: 10, kind: input, shape index: {}]   ;;  %s14468_s11 = inlined_call_operand.vmem [shape: f32[128,128], index: 11, kind: input, shape index: {}]   ;;  %s14469_s12 = inlined_call_operand.vmem [shape: f32[128,1], index: 12, kind: input, shape index: {}]   ;;  %s14470_s13 = inlined_call_operand.vmem [shape: f32[16,128], index: 13, kind: input, shape index: {}]   ;;  %s14471_s14 = inlined_call_operand.vmem [shape: f32[16,1], index: 14, kind: input, shape index: {}]   ;;  %s14472_s15 = inlined_call_operand.vmem [shape: f32[2,16,1], index: 15, kind: output, shape index: {}]  }
   0x1 LB: > { %s9332_s19 = sadd.s32 4294967295, %s12042_s18   ;;  %p9336_p0 = scmp.ge.s32.totalorder %s12042_s18, 1  ;;  %s12042_s18 = sphi %s12133_s18, %s25_s18  }
   0x2   : > { %p437_p1 = scmp.lt.s32.totalorder %s12042_s18, 3 }
   0x4   : > { %p438_p2 = pnand %p9336_p0, %p437_p1 }
   0x5   : > { %p485_p3 = scmp.lt.s32.totalorder (!%p438_p2), %s9332_s19, 1  ;;  %v12044_v0 = vmov (!%p438_p2), 0.0   ;;  %vm12045_vm0 = vmmov (!%p438_p2), 0   ;;  %v500_v1 = vld [vmem:[%s14459_s2] sm:$0xff] (!%p438_p2)  ;;  %v12046_v2 = vmov (!%p438_p2), 0   ;;  %vm526_vm1 = vcmask (!%p438_p2), 1044480  }
   0x6   : > { %441 = sbr.rel (%p438_p2) target bundleno = 7993 (0x1f39), region = 80  ;;  %10343 = vmatprep.subr.mxu0 (!%p438_p2), %v12044_v0  ;;  %10345 = vmatprep.mubr.msk.f32.mxu0 (!%p438_p2), %vm12045_vm0, %v12044_v0  ;;  %v12161_v3 = vld [vmem:[%s14458_s1] sm:$0xff] (!%p438_p2)  ;;  %vm510_vm2 = vcmask (!%p438_p2), 39936   ;;  %v12176_v6 = vld [vmem:[%s14458_s1 + $0x8] sm:$0xff] (!%p438_p2)  ;;  %v12189_v7 = vld [vmem:[%s14458_s1 + $0x10] sm:$0xff] (!%p438_p2)  ;;  %s12047_s23 = smov (!%p438_p2), 127  }
   0x7   : > { %10360 = vmatprep.subr.mxu1 (!%p438_p2), %v12044_v0  ;;  %10362 = vmatprep.mubr.msk.f32.mxu1 (!%p438_p2), %vm12045_vm0, %v12044_v0  ;;  %v12202_v8 = vld [vmem:[%s14458_s1 + $0x18] sm:$0xff] (!%p438_p2)  ;;  %v12215_v9 = vld [vmem:[%s14458_s1 + $0x20] sm:$0xff] (!%p438_p2)  ;;  %v502_v19 = vld [vmem:[%s14460_s3 + $0x8] sm:$0xff] (!%p438_p2)  ;;  %v12048_v25 = vmov (!%p438_p2), 0.0|0.0   ;;  %s12049_s20 = smov (!%p438_p2), 126   ;;  %vm768_vm3 = vcmask (!%p438_p2), 1043456  }
   0x8   : > { %12014 = vset.pattern.permute.xlu1 (!%p438_p2), %v12046_v2  ;;  %12015 = vset.pattern.permute.xlu0 (!%p438_p2), %v12046_v2  ;;  %v501_v18 = vld [vmem:[%s14460_s3] sm:$0xff] (!%p438_p2)  ;;  %v506_v22 = vld [vmem:[%s14461_s4 + $0x8] sm:$0xff] (!%p438_p2)  ;;  %v503_v29 = vld [vmem:[%s14460_s3 + $0x10] sm:$0xff] (!%p438_p2)  ;;  %vm12050_vm4 = vmmov (!%p438_p2), 1   ;;  %s12051_s16 = smov (!%p438_p2), 125   ;;  %s12052_s17 = smov (!%p438_p2), 124  }
   0x9   : > { %642 = vperm.xlu1 (!%p438_p2), %12014, %v500_v1   ;;  %v505_v20 = vld [vmem:[%s14461_s4] sm:$0xff] (!%p438_p2)  ;;  %v12239_v21 = vpack.c.bf16 (!%p438_p2), %v502_v19, %v501_v18  ;;  %v504_v30 = vld [vmem:[%s14460_s3 + $0x18] sm:$0xf] (!%p438_p2)  ;;  %v507_v31 = vld [vmem:[%s14461_s4 + $0x10] sm:$0xff] (!%p438_p2)  ;;  %vm764_vm6 = vcmask (!%p438_p2), 228352   ;;  %vm916_vm7 = vcmask (!%p438_p2), 113664  }
   0xa   : > { %v12246_v26 = vpack.c.bf16 (!%p438_p2), %v506_v22, %v505_v20  ;;  %v12263_v32 = vpack.c.bf16 (!%p438_p2), %v504_v30, %v503_v29  ;;  %v508_v33 = vld [vmem:[%s14461_s4 + $0x18] sm:$0xf] (!%p438_p2)  ;;  %vm12269_vm5 = vmpackc.low (!%p438_p2), %vm768_vm3, %vm12050_vm4  ;;  %vm5853_vm8 = vcmask (!%p438_p2), 326656   ;;  %vm6226_vm9 = vcmask (!%p438_p2), 1041408  }
   0xb   : > { %v12273_v37 = vpack.c.bf16 (!%p438_p2), %v508_v33, %v507_v31  ;;  %vm13382_vm10 = vmpackc.low (!%p438_p2), %vm6226_vm9, %vm12050_vm4  ;;  %vm6219_vm11 = vcmask (!%p438_p2), 80896   ;;  %vm6385_vm12 = vcmask (!%p438_p2), 7168   ;;  %vm8648_vm13 = vcmask (!%p438_p2), 130048  }
   0xd   : > { %s14478_s19 = smov (!%p485_p3, %s9332_s19), 1 }
   0xe   : > { %s9713_s22 = sshll.u32 %s14478_s19, 5  ;;  %s9714_s30 = sshll.u32 %s14478_s19, 4 }
   0xf   : > { %s12156_s25 = scalar_lea.vmem %s14457_s0, %s9713_s22 }
  0x10   : > { %v509_v4 = vld [vmem:[%s12156_s25] sm:$0x1f] }
  0x11   : > { %v647_v5 = vld [vmem:[%s12156_s25 + $0x1] sm:$0x1f]  ;;  %10344 = vmatpush3.msk.msra.mxu0 %vm526_vm1, %v509_v4 }
  0x12   : > { %10361 = vmatpush3.msk.msra.mxu1 %vm526_vm1, %v647_v5  ;;  %10346 = vmatmul.mubr.msk.f32.vlgmr.msra.gmra.mrb[0].mxu0 %vm510_vm2, %v12161_v3  ;;  %v918_v4 = vld [vmem:[%s12156_s25 + $0x2] sm:$0x1f] }
  0x13   : > { %10363 = vmatmul.mubr.msk.f32.vlgmr.msra.gmra.mrb[0].mxu1 %vm510_vm2, %v12161_v3  ;;  %10348 = vmatprep.mubr.msk.f32.mxu0 %vm12045_vm0, %v12044_v0  ;;  %v1034_v5 = vld [vmem:[%s12156_s25 + $0x3] sm:$0x1f] }
  0x14   : > { %10365 = vmatprep.mubr.msk.f32.mxu1 %vm12045_vm0, %v12044_v0  ;;  %11538 = vmatprep.subr.bf16.mxu0 %v12048_v25 }
  0x15   : > { %11545 = vmatprep.subr.bf16.mxu1 %v12048_v25  ;;  %11540 = vmatpush3.bf16.msra.mxu0 %v12239_v21 }
  0x16   : > { %10349 = vmatmul.mubr.msk.f32.gmra.mrb[2].mxu0 %vm510_vm2, %v12176_v6  ;;  %11547 = vmatpush3.bf16.msra.mxu1 %v12246_v26 }
  0x17   : > { %10366 = vmatmul.mubr.msk.f32.gmra.mrb[2].mxu1 %vm510_vm2, %v12176_v6  ;;  %10351 = vmatprep.mubr.msk.f32.mxu0 %vm12045_vm0, %v12044_v0 }
  0x18   : > { %10368 = vmatprep.mubr.msk.f32.mxu1 %vm12045_vm0, %v12044_v0  ;;  %11541 = vmatprep.subr.bf16.mxu0 %v12048_v25 }
  0x19   : > { %11548 = vmatprep.subr.bf16.mxu1 %v12048_v25  ;;  %11544 = vmatpush3.bf16.msk.msra.mxu0 %vm12269_vm5, %v12263_v32 }
  0x1a   : > { %10352 = vmatmul.mubr.msk.f32.gmra.mrb[4].mxu0 %vm510_vm2, %v12189_v7  ;;  %11551 = vmatpush3.bf16.msk.msra.mxu1 %vm12269_vm5, %v12273_v37 }
  0x1b   : > { %10369 = vmatmul.mubr.msk.f32.gmra.mrb[4].mxu1 %vm510_vm2, %v12189_v7  ;;  %10354 = vmatprep.mubr.msk.f32.mxu0 %vm12045_vm0, %v12044_v0 }
  0x1c   : > { %10371 = vmatprep.mubr.msk.f32.mxu1 %vm12045_vm0, %v12044_v0  ;;  %10399 = vmatprep.subr.mxu0 %v12044_v0 }
  0x1d   : > { %10416 = vmatprep.subr.mxu1 %v12044_v0 }
  0x1e   : > { %10355 = vmatmul.mubr.msk.f32.gmra.mrb[6].mxu0 %vm510_vm2, %v12202_v8 }
  0x1f   : > { %10372 = vmatmul.mubr.msk.f32.gmra.mrb[6].mxu1 %vm510_vm2, %v12202_v8  ;;  %10357 = vmatprep.mubr.msk.f32.mxu0 %vm12045_vm0, %v12044_v0 }
  0x20   : > { %10374 = vmatprep.mubr.msk.f32.mxu1 %vm12045_vm0, %v12044_v0 }
  0x22   : > { %10358 = vmatmul.mubr.msk.f32.gmra.mrb[8].mxu0 %vm510_vm2, %v12215_v9 }
  0x23   : > { %10375 = vmatmul.mubr.msk.f32.gmra.mrb[8].mxu1 %vm510_vm2, %v12215_v9  ;;  %10385 = vmatprep.mubr.msk.f32.mxu0 %vm12045_vm0, %v12044_v0 }
  0x24   : > { %10396 = vmatprep.mubr.msk.f32.mxu1 %vm12045_vm0, %v12044_v0 }
  0x88   : > { %v12288_v44 = vpop.permute.xlu1 %642 }
  0xe5   : > { %v596_v10 = vpop.f32.mrb[0].mxu0 }
  0xe6   : > { %v12227_v11 = vpop.f32.mrb[0].mxu1  ;;  %v10347_v12 = vpop.f32.mrb[1].mxu0 }
  0xe7   : > { %v10364_v13 = vpop.f32.mrb[1].mxu1 }
  0xe9   : > { %v601_v14 = vpop.f32.mrb[2].mxu0 }
  0xea   : > { %v722_v15 = vpop.f32.mrb[2].mxu1  ;;  %621 = vrot.lane.b32.xlu0 %v601_v14, %s12047_s23  ;;  %v10350_v16 = vpop.f32.mrb[3].mxu0 }
  0xeb   : > { %v10367_v17 = vpop.f32.mrb[3].mxu1 }
  0xed   : > { %v606_v23 = vpop.f32.mrb[4].mxu0 }
  0xee   : > { %v727_v24 = vpop.f32.mrb[4].mxu1  ;;  %742 = vrot.lane.b32.xlu0 %v722_v15, %s12047_s23  ;;  %626 = vrot.lane.b32.xlu1 %v606_v23, %s12049_s20  ;;  %v10353_v27 = vpop.f32.mrb[5].mxu0 }
  0xef   : > { %v10370_v28 = vpop.f32.mrb[5].mxu1 }
  0xf1   : > { %v611_v34 = vpop.f32.mrb[6].mxu0 }
  0xf2   : > { %v732_v35 = vpop.f32.mrb[6].mxu1  ;;  %747 = vrot.lane.b32.xlu0 %v727_v24, %s12049_s20  ;;  %631 = vrot.lane.b32.xlu1 %v611_v34, %s12051_s16  ;;  %v10356_v38 = vpop.f32.mrb[7].mxu0 }
  0xf3   : > { %v10373_v39 = vpop.f32.mrb[7].mxu1 }
  0xf5   : > { %v616_v40 = vpop.f32.mrb[8].mxu0 }
  0xf6   : > { %v737_v41 = vpop.f32.mrb[8].mxu1  ;;  %752 = vrot.lane.b32.xlu0 %v732_v35, %s12051_s16  ;;  %636 = vrot.lane.b32.xlu1 %v616_v40, %s12052_s17  ;;  %v10359_v42 = vpop.f32.mrb[9].mxu0 }
  0xf7   : > { %v10376_v43 = vpop.f32.mrb[9].mxu1 }
  0xfa   : > { %757 = vrot.lane.b32.xlu0 %v737_v41, %s12052_s17 }
 0x15c   : > { %v622_v45 = vpop.permute.xlu0 %621 }
 0x15d   : > { %v624_v48 = vadd.f32 %v622_v45, %v596_v10 }
 0x160   : > { %v743_v46 = vpop.permute.xlu0 %742  ;;  %v627_v47 = vpop.permute.xlu1 %626 }
 0x161   : > { %v629_v51 = vadd.f32 %v627_v47, %v624_v48  ;;  %v745_v52 = vadd.f32 %v743_v46, %v12227_v11 }
 0x164   : > { %v748_v49 = vpop.permute.xlu0 %747  ;;  %v632_v50 = vpop.permute.xlu1 %631 }
 0x165   : > { %v634_v53 = vadd.f32 %v632_v50, %v629_v51  ;;  %v750_v56 = vadd.f32 %v748_v49, %v745_v52 }
 0x168   : > { %v753_v54 = vpop.permute.xlu0 %752  ;;  %v637_v55 = vpop.permute.xlu1 %636 }
 0x169   : > { %v639_v57 = vadd.f32 %v637_v55, %v634_v53  ;;  %v755_v58 = vadd.f32 %v753_v54, %v750_v56 }
 0x16b   : > { %v645_v60 = vadd.f32 %v12288_v44, %v639_v57 }
 0x16c   : > { %v758_v59 = vpop.permute.xlu0 %757 }
 0x16d   : > { %v760_v61 = vadd.f32 %v758_v59, %v755_v58  ;;  %v646_v63 = vmax.f32 %v645_v60, 0.0 }
 0x16f   : > { %v761_v62 = vadd.f32 %v760_v61, %v12288_v44 }
 0x171   : > { %v762_v1 = vmax.f32 %v761_v62, 0.0 }
 0x173   : > { %v763_v2 = vmax.f32 %v646_v63, %v762_v1  ;;  %v1296_v63 = vld [vmem:[%s12156_s25 + $0x4] sm:$0x1f] }
 0x174   : > { %v1412_v1 = vld [vmem:[%s12156_s25 + $0x5] sm:$0x1f] }
 0x175   : > { %10386 = vmatmul.mubr.msk.f32.vlgmr.msra.gmra.mrb[10].mxu0 %vm764_vm6, %v763_v2  ;;  %10397 = vmatmul.mubr.msk.f32.vlgmr.msra.gmra.mrb[10].mxu1 %vm764_vm6, %v763_v2 }
 0x176   : > { %10400 = vmatpush3.msk.msra.mxu0 %vm526_vm1, %v918_v4  ;;  %10401 = vmatprep.mubr.msk.f32.mxu0 %vm12045_vm0, %v12044_v0 }
 0x177   : > { %10417 = vmatpush3.msk.msra.mxu1 %vm526_vm1, %v1034_v5  ;;  %10418 = vmatprep.mubr.msk.f32.mxu1 %vm12045_vm0, %v12044_v0 }
 0x178   : > { %11552 = vmatprep.subr.bf16.mxu0 %v12048_v25  ;;  %11559 = vmatprep.subr.bf16.mxu1 %v12048_v25 }
 0x179   : > { %10402 = vmatmul.mubr.msk.f32.vlgmr.msra.gmra.mrb[12].mxu0 %vm510_vm2, %v12161_v3  ;;  %10419 = vmatmul.mubr.msk.f32.vlgmr.msra.gmra.mrb[12].mxu1 %vm510_vm2, %v12161_v3 }
 0x17a   : > { %10404 = vmatprep.mubr.msk.f32.mxu0 %vm12045_vm0, %v12044_v0  ;;  %10421 = vmatprep.mubr.msk.f32.mxu1 %vm12045_vm0, %v12044_v0 }
 0x17b   : > { %11554 = vmatpush3.bf16.msra.mxu0 %v12239_v21  ;;  %11561 = vmatpush3.bf16.msra.mxu1 %v12246_v26 }
 0x17c   : > { %11555 = vmatprep.subr.bf16.mxu0 %v12048_v25  ;;  %11562 = vmatprep.subr.bf16.mxu1 %v12048_v25 }
 0x17d   : > { %10405 = vmatmul.mubr.msk.f32.gmra.mrb[14].mxu0 %vm510_vm2, %v12176_v6  ;;  %10422 = vmatmul.mubr.msk.f32.gmra.mrb[14].mxu1 %vm510_vm2, %v12176_v6 }
 0x17e   : > { %10407 = vmatprep.mubr.msk.f32.mxu0 %vm12045_vm0, %v12044_v0  ;;  %10424 = vmatprep.mubr.msk.f32.mxu1 %vm12045_vm0, %v12044_v0 }
 0x17f   : > { %11558 = vmatpush3.bf16.msk.msra.mxu0 %vm12269_vm5, %v12263_v32  ;;  %11565 = vmatpush3.bf16.msk.msra.mxu1 %vm12269_vm5, %v12273_v37 }
 0x180   : > { %10455 = vmatprep.subr.mxu0 %v12044_v0  ;;  %10472 = vmatprep.subr.mxu1 %v12044_v0 }
 0x181   : > { %10408 = vmatmul.mubr.msk.f32.gmra.mrb[16].mxu0 %vm510_vm2, %v12189_v7  ;;  %10425 = vmatmul.mubr.msk.f32.gmra.mrb[16].mxu1 %vm510_vm2, %v12189_v7 }
 0x182   : > { %10410 = vmatprep.mubr.msk.f32.mxu0 %vm12045_vm0, %v12044_v0  ;;  %10427 = vmatprep.mubr.msk.f32.mxu1 %vm12045_vm0, %v12044_v0 }
 0x185   : > { %10411 = vmatmul.mubr.msk.f32.gmra.mrb[18].mxu0 %vm510_vm2, %v12202_v8  ;;  %10428 = vmatmul.mubr.msk.f32.gmra.mrb[18].mxu1 %vm510_vm2, %v12202_v8 }
 0x186   : > { %10413 = vmatprep.mubr.msk.f32.mxu0 %vm12045_vm0, %v12044_v0  ;;  %10430 = vmatprep.mubr.msk.f32.mxu1 %vm12045_vm0, %v12044_v0 }
 0x189   : > { %10414 = vmatmul.mubr.msk.f32.gmra.mrb[20].mxu0 %vm510_vm2, %v12215_v9  ;;  %10431 = vmatmul.mubr.msk.f32.gmra.mrb[20].mxu1 %vm510_vm2, %v12215_v9 }
 0x18a   : > { %10441 = vmatprep.mubr.msk.f32.mxu0 %vm12045_vm0, %v12044_v0  ;;  %10452 = vmatprep.mubr.msk.f32.mxu1 %vm12045_vm0, %v12044_v0 }
 0x248   : > { %v838_v10 = vpop.f32.mrb[10].mxu0  ;;  %v911_v11 = vpop.f32.mrb[10].mxu1 }
 0x249   : > { %v915_v12 = vmax.f32 %v838_v10, %v911_v11  ;;  %v10387_v13 = vpop.f32.mrb[11].mxu0  ;;  %v10398_v14 = vpop.f32.mrb[11].mxu1 }
 0x24b   : > { %917 = vst.msk [vmem:[#allocation2] sm:$0xff] %vm916_vm7, %v915_v12 }
 0x24c   : > { %v988_v15 = vpop.f32.mrb[12].mxu0  ;;  %v1104_v16 = vpop.f32.mrb[12].mxu1 }
 0x24d   : > { %v10403_v17 = vpop.f32.mrb[13].mxu0  ;;  %v10420_v18 = vpop.f32.mrb[13].mxu1 }
 0x250   : > { %v993_v19 = vpop.f32.mrb[14].mxu0  ;;  %v1109_v20 = vpop.f32.mrb[14].mxu1 }
 0x251   : > { %1129 = vrot.lane.b32.xlu0 %v1109_v20, %s12047_s23  ;;  %v10423_v22 = vpop.f32.mrb[15].mxu1  ;;  %1013 = vrot.lane.b32.xlu1 %v993_v19, %s12047_s23  ;;  %v10406_v23 = vpop.f32.mrb[15].mxu0 }
 0x254   : > { %v998_v24 = vpop.f32.mrb[16].mxu0  ;;  %v1114_v27 = vpop.f32.mrb[16].mxu1 }
 0x255   : > { %1134 = vrot.lane.b32.xlu0 %v1114_v27, %s12049_s20  ;;  %v10426_v28 = vpop.f32.mrb[17].mxu1  ;;  %1018 = vrot.lane.b32.xlu1 %v998_v24, %s12049_s20  ;;  %v10409_v29 = vpop.f32.mrb[17].mxu0 }
 0x258   : > { %v1003_v30 = vpop.f32.mrb[18].mxu0  ;;  %v1119_v31 = vpop.f32.mrb[18].mxu1 }
 0x259   : > { %1139 = vrot.lane.b32.xlu0 %v1119_v31, %s12051_s16  ;;  %v10429_v33 = vpop.f32.mrb[19].mxu1  ;;  %1023 = vrot.lane.b32.xlu1 %v1003_v30, %s12051_s16  ;;  %v10412_v34 = vpop.f32.mrb[19].mxu0 }
 0x25c   : > { %v1008_v35 = vpop.f32.mrb[20].mxu0  ;;  %v1124_v38 = vpop.f32.mrb[20].mxu1 }
 0x25d   : > { %1144 = vrot.lane.b32.xlu0 %v1124_v38, %s12052_s17  ;;  %v10432_v39 = vpop.f32.mrb[21].mxu1  ;;  %1028 = vrot.lane.b32.xlu1 %v1008_v35, %s12052_s17  ;;  %v10415_v40 = vpop.f32.mrb[21].mxu0 }
 0x2c3   : > { %v1130_v41 = vpop.permute.xlu0 %1129  ;;  %v1014_v42 = vpop.permute.xlu1 %1013 }
 0x2c4   : > { %v1132_v46 = vadd.f32 %v1130_v41, %v1104_v16  ;;  %v1016_v47 = vadd.f32 %v1014_v42, %v988_v15 }
 0x2c7   : > { %v1135_v43 = vpop.permute.xlu0 %1134  ;;  %v1019_v45 = vpop.permute.xlu1 %1018 }
 0x2c8   : > { %v1137_v50 = vadd.f32 %v1135_v43, %v1132_v46  ;;  %v1021_v51 = vadd.f32 %v1019_v45, %v1016_v47 }
 0x2cb   : > { %v1140_v48 = vpop.permute.xlu0 %1139  ;;  %v1024_v49 = vpop.permute.xlu1 %1023 }
 0x2cc   : > { %v1142_v52 = vadd.f32 %v1140_v48, %v1137_v50  ;;  %v1026_v53 = vadd.f32 %v1024_v49, %v1021_v51 }
 0x2cf   : > { %v1145_v54 = vpop.permute.xlu0 %1144  ;;  %v1029_v55 = vpop.permute.xlu1 %1028 }
 0x2d0   : > { %v1147_v56 = vadd.f32 %v1145_v54, %v1142_v52  ;;  %v1031_v57 = vadd.f32 %v1029_v55, %v1026_v53 }
 0x2d2   : > { %v1148_v58 = vadd.f32 %v1147_v56, %v12288_v44  ;;  %v1032_v59 = vadd.f32 %v1031_v57, %v12288_v44 }
 0x2d4   : > { %v1149_v60 = vmax.f32 %v1148_v58, 0.0  ;;  %v1033_v61 = vmax.f32 %v1032_v59, 0.0 }
 0x2d6   : > { %v1150_v62 = vmax.f32 %v1033_v61, %v1149_v60  ;;  %v1674_v60 = vld [vmem:[%s12156_s25 + $0x6] sm:$0x1f] }
 0x2d7   : > { %v1790_v61 = vld [vmem:[%s12156_s25 + $0x7] sm:$0x1f] }
 0x2d8   : > { %10442 = vmatmul.mubr.msk.f32.vlgmr.msra.gmra.mrb[22].mxu0 %vm764_vm6, %v1150_v62  ;;  %10453 = vmatmul.mubr.msk.f32.vlgmr.msra.gmra.mrb[22].mxu1 %vm764_vm6, %v1150_v62 }
 0x2d9   : > { %10456 = vmatpush3.msk.msra.mxu0 %vm526_vm1, %v1296_v63  ;;  %10457 = vmatprep.mubr.msk.f32.mxu0 %vm12045_vm0, %v12044_v0 }
 0x2da   : > { %10473 = vmatpush3.msk.msra.mxu1 %vm526_vm1, %v1412_v1  ;;  %10474 = vmatprep.mubr.msk.f32.mxu1 %vm12045_vm0, %v12044_v0 }
 0x2db   : > { %11566 = vmatprep.subr.bf16.mxu0 %v12048_v25  ;;  %11573 = vmatprep.subr.bf16.mxu1 %v12048_v25 }
 0x2dc   : > { %10458 = vmatmul.mubr.msk.f32.vlgmr.msra.gmra.mrb[24].mxu0 %vm510_vm2, %v12161_v3  ;;  %10475 = vmatmul.mubr.msk.f32.vlgmr.msra.gmra.mrb[24].mxu1 %vm510_vm2, %v12161_v3 }
 0x2dd   : > { %10460 = vmatprep.mubr.msk.f32.mxu0 %vm12045_vm0, %v12044_v0  ;;  %10477 = vmatprep.mubr.msk.f32.mxu1 %vm12045_vm0, %v12044_v0 }
 0x2de   : > { %11568 = vmatpush3.bf16.msra.mxu0 %v12239_v21  ;;  %11575 = vmatpush3.bf16.msra.mxu1 %v12246_v26 }
 0x2df   : > { %11569 = vmatprep.subr.bf16.mxu0 %v12048_v25  ;;  %11576 = vmatprep.subr.bf16.mxu1 %v12048_v25 }
 0x2e0   : > { %10461 = vmatmul.mubr.msk.f32.gmra.mrb[26].mxu0 %vm510_vm2, %v12176_v6  ;;  %10478 = vmatmul.mubr.msk.f32.gmra.mrb[26].mxu1 %vm510_vm2, %v12176_v6 }
 0x2e1   : > { %10463 = vmatprep.mubr.msk.f32.mxu0 %vm12045_vm0, %v12044_v0  ;;  %10480 = vmatprep.mubr.msk.f32.mxu1 %vm12045_vm0, %v12044_v0 }
 0x2e2   : > { %11572 = vmatpush3.bf16.msk.msra.mxu0 %vm12269_vm5, %v12263_v32  ;;  %11579 = vmatpush3.bf16.msk.msra.mxu1 %vm12269_vm5, %v12273_v37 }
 0x2e3   : > { %10511 = vmatprep.subr.mxu0 %v12044_v0  ;;  %10528 = vmatprep.subr.mxu1 %v12044_v0 }
 0x2e4   : > { %10464 = vmatmul.mubr.msk.f32.gmra.mrb[28].mxu0 %vm510_vm2, %v12189_v7  ;;  %10481 = vmatmul.mubr.msk.f32.gmra.mrb[28].mxu1 %vm510_vm2, %v12189_v7 }
 0x2e5   : > { %10466 = vmatprep.mubr.msk.f32.mxu0 %vm12045_vm0, %v12044_v0  ;;  %10483 = vmatprep.mubr.msk.f32.mxu1 %vm12045_vm0, %v12044_v0 }
 0x2e8   : > { %10467 = vmatmul.mubr.msk.f32.gmra.mrb[30].mxu0 %vm510_vm2, %v12202_v8  ;;  %10484 = vmatmul.mubr.msk.f32.gmra.mrb[30].mxu1 %vm510_vm2, %v12202_v8 }
 0x2e9   : > { %10469 = vmatprep.mubr.msk.f32.mxu0 %vm12045_vm0, %v12044_v0  ;;  %10486 = vmatprep.mubr.msk.f32.mxu1 %vm12045_vm0, %v12044_v0 }
 0x2ec   : > { %10470 = vmatmul.mubr.msk.f32.gmra.mrb[32].mxu0 %vm510_vm2, %v12215_v9  ;;  %10487 = vmatmul.mubr.msk.f32.gmra.mrb[32].mxu1 %vm510_vm2, %v12215_v9 }
 0x2ed   : > { %10497 = vmatprep.mubr.msk.f32.mxu0 %vm12045_vm0, %v12044_v0  ;;  %10508 = vmatprep.mubr.msk.f32.mxu1 %vm12045_vm0, %v12044_v0 }
 0x3ab   : > { %v1220_v2 = vpop.f32.mrb[22].mxu0  ;;  %v1290_v4 = vpop.f32.mrb[22].mxu1 }
 0x3ac   : > { %v1294_v5 = vmax.f32 %v1220_v2, %v1290_v4  ;;  %v10443_v10 = vpop.f32.mrb[23].mxu0  ;;  %v10454_v11 = vpop.f32.mrb[23].mxu1 }
 0x3ae   : > { %1295 = vst.msk [vmem:[#allocation2 + $0x8] sm:$0xff] %vm916_vm7, %v1294_v5 }
 0x3af   : > { %v1366_v12 = vpop.f32.mrb[24].mxu0  ;;  %v1482_v13 = vpop.f32.mrb[24].mxu1 }
 0x3b0   : > { %v10459_v14 = vpop.f32.mrb[25].mxu0  ;;  %v10476_v15 = vpop.f32.mrb[25].mxu1 }
 0x3b3   : > { %v1371_v16 = vpop.f32.mrb[26].mxu0  ;;  %v1487_v17 = vpop.f32.mrb[26].mxu1 }
 0x3b4   : > { %1507 = vrot.lane.b32.xlu0 %v1487_v17, %s12047_s23  ;;  %v10479_v18 = vpop.f32.mrb[27].mxu1  ;;  %1391 = vrot.lane.b32.xlu1 %v1371_v16, %s12047_s23  ;;  %v10462_v19 = vpop.f32.mrb[27].mxu0 }
 0x3b7   : > { %v1376_v20 = vpop.f32.mrb[28].mxu0  ;;  %v1492_v22 = vpop.f32.mrb[28].mxu1 }
 0x3b8   : > { %1512 = vrot.lane.b32.xlu0 %v1492_v22, %s12049_s20  ;;  %v10482_v23 = vpop.f32.mrb[29].mxu1  ;;  %1396 = vrot.lane.b32.xlu1 %v1376_v20, %s12049_s20  ;;  %v10465_v24 = vpop.f32.mrb[29].mxu0 }
 0x3bb   : > { %v1381_v27 = vpop.f32.mrb[30].mxu0  ;;  %v1497_v28 = vpop.f32.mrb[30].mxu1 }
 0x3bc   : > { %1517 = vrot.lane.b32.xlu0 %v1497_v28, %s12051_s16  ;;  %v10485_v29 = vpop.f32.mrb[31].mxu1  ;;  %1401 = vrot.lane.b32.xlu1 %v1381_v27, %s12051_s16  ;;  %v10468_v30 = vpop.f32.mrb[31].mxu0 }
 0x3bf   : > { %v1386_v31 = vpop.f32.mrb[32].mxu0  ;;  %v1502_v33 = vpop.f32.mrb[32].mxu1 }
 0x3c0   : > { %1522 = vrot.lane.b32.xlu0 %v1502_v33, %s12052_s17  ;;  %v10488_v34 = vpop.f32.mrb[33].mxu1  ;;  %1406 = vrot.lane.b32.xlu1 %v1386_v31, %s12052_s17  ;;  %v10471_v35 = vpop.f32.mrb[33].mxu0 }
 0x426   : > { %v1508_v38 = vpop.permute.xlu0 %1507  ;;  %v1392_v39 = vpop.permute.xlu1 %1391 }
 0x427   : > { %v1510_v42 = vadd.f32 %v1508_v38, %v1482_v13  ;;  %v1394_v43 = vadd.f32 %v1392_v39, %v1366_v12 }
 0x42a   : > { %v1513_v40 = vpop.permute.xlu0 %1512  ;;  %v1397_v41 = vpop.permute.xlu1 %1396 }
 0x42b   : > { %v1515_v47 = vadd.f32 %v1513_v40, %v1510_v42  ;;  %v1399_v48 = vadd.f32 %v1397_v41, %v1394_v43 }
 0x42e   : > { %v1518_v45 = vpop.permute.xlu0 %1517  ;;  %v1402_v46 = vpop.permute.xlu1 %1401 }
 0x42f   : > { %v1520_v49 = vadd.f32 %v1518_v45, %v1515_v47  ;;  %v1404_v50 = vadd.f32 %v1402_v46, %v1399_v48 }
 0x432   : > { %v1523_v51 = vpop.permute.xlu0 %1522  ;;  %v1407_v52 = vpop.permute.xlu1 %1406 }
 0x433   : > { %v1525_v53 = vadd.f32 %v1523_v51, %v1520_v49  ;;  %v1409_v54 = vadd.f32 %v1407_v52, %v1404_v50 }
 0x435   : > { %v1526_v55 = vadd.f32 %v1525_v53, %v12288_v44  ;;  %v1410_v56 = vadd.f32 %v1409_v54, %v12288_v44 }
 0x437   : > { %v1527_v57 = vmax.f32 %v1526_v55, 0.0  ;;  %v1411_v58 = vmax.f32 %v1410_v56, 0.0 }
 0x439   : > { %v1528_v59 = vmax.f32 %v1411_v58, %v1527_v57  ;;  %v2052_v57 = vld [vmem:[%s12156_s25 + $0x8] sm:$0x1f] }
 0x43a   : > { %v2168_v58 = vld [vmem:[%s12156_s25 + $0x9] sm:$0x1f] }
 0x43b   : > { %10498 = vmatmul.mubr.msk.f32.vlgmr.msra.gmra.mrb[34].mxu0 %vm764_vm6, %v1528_v59  ;;  %10509 = vmatmul.mubr.msk.f32.vlgmr.msra.gmra.mrb[34].mxu1 %vm764_vm6, %v1528_v59 }
 0x43c   : > { %10512 = vmatpush3.msk.msra.mxu0 %vm526_vm1, %v1674_v60  ;;  %10513 = vmatprep.mubr.msk.f32.mxu0 %vm12045_vm0, %v12044_v0 }
 0x43d   : > { %10529 = vmatpush3.msk.msra.mxu1 %vm526_vm1, %v1790_v61  ;;  %10530 = vmatprep.mubr.msk.f32.mxu1 %vm12045_vm0, %v12044_v0 }
 0x43e   : > { %11580 = vmatprep.subr.bf16.mxu0 %v12048_v25  ;;  %11587 = vmatprep.subr.bf16.mxu1 %v12048_v25 }
 0x43f   : > { %10514 = vmatmul.mubr.msk.f32.vlgmr.msra.gmra.mrb[36].mxu0 %vm510_vm2, %v12161_v3  ;;  %10531 = vmatmul.mubr.msk.f32.vlgmr.msra.gmra.mrb[36].mxu1 %vm510_vm2, %v12161_v3 }
 0x440   : > { %10516 = vmatprep.mubr.msk.f32.mxu0 %vm12045_vm0, %v12044_v0  ;;  %10533 = vmatprep.mubr.msk.f32.mxu1 %vm12045_vm0, %v12044_v0 }
 0x441   : > { %11582 = vmatpush3.bf16.msra.mxu0 %v12239_v21  ;;  %11589 = vmatpush3.bf16.msra.mxu1 %v12246_v26 }
 0x442   : > { %11583 = vmatprep.subr.bf16.mxu0 %v12048_v25  ;;  %11590 = vmatprep.subr.bf16.mxu1 %v12048_v25 }
 0x443   : > { %10517 = vmatmul.mubr.msk.f32.gmra.mrb[38].mxu0 %vm510_vm2, %v12176_v6  ;;  %10534 = vmatmul.mubr.msk.f32.gmra.mrb[38].mxu1 %vm510_vm2, %v12176_v6 }
 0x444   : > { %10519 = vmatprep.mubr.msk.f32.mxu0 %vm12045_vm0, %v12044_v0  ;;  %10536 = vmatprep.mubr.msk.f32.mxu1 %vm12045_vm0, %v12044_v0 }
 0x445   : > { %11586 = vmatpush3.bf16.msk.msra.mxu0 %vm12269_vm5, %v12263_v32  ;;  %11593 = vmatpush3.bf16.msk.msra.mxu1 %vm12269_vm5, %v12273_v37 }
 0x446   : > { %10567 = vmatprep.subr.mxu0 %v12044_v0  ;;  %10584 = vmatprep.subr.mxu1 %v12044_v0 }
 0x447   : > { %10520 = vmatmul.mubr.msk.f32.gmra.mrb[40].mxu0 %vm510_vm2, %v12189_v7  ;;  %10537 = vmatmul.mubr.msk.f32.gmra.mrb[40].mxu1 %vm510_vm2, %v12189_v7 }
 0x448   : > { %10522 = vmatprep.mubr.msk.f32.mxu0 %vm12045_vm0, %v12044_v0  ;;  %10539 = vmatprep.mubr.msk.f32.mxu1 %vm12045_vm0, %v12044_v0 }
 0x44b   : > { %10523 = vmatmul.mubr.msk.f32.gmra.mrb[42].mxu0 %vm510_vm2, %v12202_v8  ;;  %10540 = vmatmul.mubr.msk.f32.gmra.mrb[42].mxu1 %vm510_vm2, %v12202_v8 }
 0x44c   : > { %10525 = vmatprep.mubr.msk.f32.mxu0 %vm12045_vm0, %v12044_v0  ;;  %10542 = vmatprep.mubr.msk.f32.mxu1 %vm12045_vm0, %v12044_v0 }
 0x44f   : > { %10526 = vmatmul.mubr.msk.f32.gmra.mrb[44].mxu0 %vm510_vm2, %v12215_v9  ;;  %10543 = vmatmul.mubr.msk.f32.gmra.mrb[44].mxu1 %vm510_vm2, %v12215_v9 }
 0x450   : > { %10553 = vmatprep.mubr.msk.f32.mxu0 %vm12045_vm0, %v12044_v0  ;;  %10564 = vmatprep.mubr.msk.f32.mxu1 %vm12045_vm0, %v12044_v0 }
 0x50e   : > { %v1598_v62 = vpop.f32.mrb[34].mxu0  ;;  %v1668_v63 = vpop.f32.mrb[34].mxu1 }
 0x50f   : > { %v1672_v1 = vmax.f32 %v1598_v62, %v1668_v63  ;;  %v10499_v2 = vpop.f32.mrb[35].mxu0  ;;  %v10510_v4 = vpop.f32.mrb[35].mxu1 }
 0x511   : > { %1673 = vst.msk [vmem:[#allocation2 + $0x10] sm:$0xff] %vm916_vm7, %v1672_v1 }
 0x512   : > { %v1744_v5 = vpop.f32.mrb[36].mxu0  ;;  %v1860_v10 = vpop.f32.mrb[36].mxu1 }
 0x513   : > { %v10515_v11 = vpop.f32.mrb[37].mxu0  ;;  %v10532_v12 = vpop.f32.mrb[37].mxu1 }
 0x516   : > { %v1749_v13 = vpop.f32.mrb[38].mxu0  ;;  %v1865_v14 = vpop.f32.mrb[38].mxu1 }
 0x517   : > { %1885 = vrot.lane.b32.xlu0 %v1865_v14, %s12047_s23  ;;  %v10535_v15 = vpop.f32.mrb[39].mxu1  ;;  %1769 = vrot.lane.b32.xlu1 %v1749_v13, %s12047_s23  ;;  %v10518_v16 = vpop.f32.mrb[39].mxu0 }
 0x51a   : > { %v1754_v17 = vpop.f32.mrb[40].mxu0  ;;  %v1870_v18 = vpop.f32.mrb[40].mxu1 }
 0x51b   : > { %1890 = vrot.lane.b32.xlu0 %v1870_v18, %s12049_s20  ;;  %v10538_v19 = vpop.f32.mrb[41].mxu1  ;;  %1774 = vrot.lane.b32.xlu1 %v1754_v17, %s12049_s20  ;;  %v10521_v20 = vpop.f32.mrb[41].mxu0 }
 0x51e   : > { %v1759_v22 = vpop.f32.mrb[42].mxu0  ;;  %v1875_v23 = vpop.f32.mrb[42].mxu1 }
 0x51f   : > { %1895 = vrot.lane.b32.xlu0 %v1875_v23, %s12051_s16  ;;  %v10541_v24 = vpop.f32.mrb[43].mxu1  ;;  %1779 = vrot.lane.b32.xlu1 %v1759_v22, %s12051_s16  ;;  %v10524_v27 = vpop.f32.mrb[43].mxu0 }
 0x522   : > { %v1764_v28 = vpop.f32.mrb[44].mxu0  ;;  %v1880_v29 = vpop.f32.mrb[44].mxu1 }
 0x523   : > { %1900 = vrot.lane.b32.xlu0 %v1880_v29, %s12052_s17  ;;  %v10544_v30 = vpop.f32.mrb[45].mxu1  ;;  %1784 = vrot.lane.b32.xlu1 %v1764_v28, %s12052_s17  ;;  %v10527_v31 = vpop.f32.mrb[45].mxu0 }
 0x589   : > { %v1886_v33 = vpop.permute.xlu0 %1885  ;;  %v1770_v34 = vpop.permute.xlu1 %1769 }
 0x58a   : > { %v1888_v39 = vadd.f32 %v1886_v33, %v1860_v10  ;;  %v1772_v40 = vadd.f32 %v1770_v34, %v1744_v5 }
 0x58d   : > { %v1891_v35 = vpop.permute.xlu0 %1890  ;;  %v1775_v38 = vpop.permute.xlu1 %1774 }
 0x58e   : > { %v1893_v43 = vadd.f32 %v1891_v35, %v1888_v39  ;;  %v1777_v45 = vadd.f32 %v1775_v38, %v1772_v40 }
 0x591   : > { %v1896_v41 = vpop.permute.xlu0 %1895  ;;  %v1780_v42 = vpop.permute.xlu1 %1779 }
 0x592   : > { %v1898_v46 = vadd.f32 %v1896_v41, %v1893_v43  ;;  %v1782_v47 = vadd.f32 %v1780_v42, %v1777_v45 }
 0x595   : > { %v1901_v48 = vpop.permute.xlu0 %1900  ;;  %v1785_v49 = vpop.permute.xlu1 %1784 }
 0x596   : > { %v1903_v50 = vadd.f32 %v1901_v48, %v1898_v46  ;;  %v1787_v51 = vadd.f32 %v1785_v49, %v1782_v47 }
 0x598   : > { %v1904_v52 = vadd.f32 %v1903_v50, %v12288_v44  ;;  %v1788_v53 = vadd.f32 %v1787_v51, %v12288_v44 }
 0x59a   : > { %v1905_v54 = vmax.f32 %v1904_v52, 0.0  ;;  %v1789_v55 = vmax.f32 %v1788_v53, 0.0 }
 0x59c   : > { %v1906_v56 = vmax.f32 %v1789_v55, %v1905_v54  ;;  %v2430_v54 = vld [vmem:[%s12156_s25 + $0xa] sm:$0x1f] }
 0x59d   : > { %v2546_v55 = vld [vmem:[%s12156_s25 + $0xb] sm:$0x1f] }
 0x59e   : > { %10554 = vmatmul.mubr.msk.f32.vlgmr.msra.gmra.mrb[46].mxu0 %vm764_vm6, %v1906_v56  ;;  %10565 = vmatmul.mubr.msk.f32.vlgmr.msra.gmra.mrb[46].mxu1 %vm764_vm6, %v1906_v56 }
 0x59f   : > { %10568 = vmatpush3.msk.msra.mxu0 %vm526_vm1, %v2052_v57  ;;  %10569 = vmatprep.mubr.msk.f32.mxu0 %vm12045_vm0, %v12044_v0 }
 0x5a0   : > { %10585 = vmatpush3.msk.msra.mxu1 %vm526_vm1, %v2168_v58  ;;  %10586 = vmatprep.mubr.msk.f32.mxu1 %vm12045_vm0, %v12044_v0 }
 0x5a1   : > { %11594 = vmatprep.subr.bf16.mxu0 %v12048_v25  ;;  %11601 = vmatprep.subr.bf16.mxu1 %v12048_v25 }
 0x5a2   : > { %10570 = vmatmul.mubr.msk.f32.vlgmr.msra.gmra.mrb[48].mxu0 %vm510_vm2, %v12161_v3  ;;  %10587 = vmatmul.mubr.msk.f32.vlgmr.msra.gmra.mrb[48].mxu1 %vm510_vm2, %v12161_v3 }
 0x5a3   : > { %10572 = vmatprep.mubr.msk.f32.mxu0 %vm12045_vm0, %v12044_v0  ;;  %10589 = vmatprep.mubr.msk.f32.mxu1 %vm12045_vm0, %v12044_v0 }
 0x5a4   : > { %11596 = vmatpush3.bf16.msra.mxu0 %v12239_v21  ;;  %11603 = vmatpush3.bf16.msra.mxu1 %v12246_v26 }
 0x5a5   : > { %11597 = vmatprep.subr.bf16.mxu0 %v12048_v25  ;;  %11604 = vmatprep.subr.bf16.mxu1 %v12048_v25 }
 0x5a6   : > { %10573 = vmatmul.mubr.msk.f32.gmra.mrb[50].mxu0 %vm510_vm2, %v12176_v6  ;;  %10590 = vmatmul.mubr.msk.f32.gmra.mrb[50].mxu1 %vm510_vm2, %v12176_v6 }
 0x5a7   : > { %10575 = vmatprep.mubr.msk.f32.mxu0 %vm12045_vm0, %v12044_v0  ;;  %10592 = vmatprep.mubr.msk.f32.mxu1 %vm12045_vm0, %v12044_v0 }
 0x5a8   : > { %11600 = vmatpush3.bf16.msk.msra.mxu0 %vm12269_vm5, %v12263_v32  ;;  %11607 = vmatpush3.bf16.msk.msra.mxu1 %vm12269_vm5, %v12273_v37 }
 0x5a9   : > { %10623 = vmatprep.subr.mxu0 %v12044_v0  ;;  %10640 = vmatprep.subr.mxu1 %v12044_v0 }
 0x5aa   : > { %10576 = vmatmul.mubr.msk.f32.gmra.mrb[52].mxu0 %vm510_vm2, %v12189_v7  ;;  %10593 = vmatmul.mubr.msk.f32.gmra.mrb[52].mxu1 %vm510_vm2, %v12189_v7 }
 0x5ab   : > { %10578 = vmatprep.mubr.msk.f32.mxu0 %vm12045_vm0, %v12044_v0  ;;  %10595 = vmatprep.mubr.msk.f32.mxu1 %vm12045_vm0, %v12044_v0 }
 0x5ae   : > { %10579 = vmatmul.mubr.msk.f32.gmra.mrb[54].mxu0 %vm510_vm2, %v12202_v8  ;;  %10596 = vmatmul.mubr.msk.f32.gmra.mrb[54].mxu1 %vm510_vm2, %v12202_v8 }
 0x5af   : > { %10581 = vmatprep.mubr.msk.f32.mxu0 %vm12045_vm0, %v12044_v0  ;;  %10598 = vmatprep.mubr.msk.f32.mxu1 %vm12045_vm0, %v12044_v0 }
 0x5b2   : > { %10582 = vmatmul.mubr.msk.f32.gmra.mrb[56].mxu0 %vm510_vm2, %v12215_v9  ;;  %10599 = vmatmul.mubr.msk.f32.gmra.mrb[56].mxu1 %vm510_vm2, %v12215_v9 }
 0x5b3   : > { %10609 = vmatprep.mubr.msk.f32.mxu0 %vm12045_vm0, %v12044_v0  ;;  %10620 = vmatprep.mubr.msk.f32.mxu1 %vm12045_vm0, %v12044_v0 }
 0x671   : > { %v1976_v59 = vpop.f32.mrb[46].mxu0  ;;  %v2046_v60 = vpop.f32.mrb[46].mxu1 }
 0x672   : > { %v2050_v61 = vmax.f32 %v1976_v59, %v2046_v60  ;;  %v10555_v62 = vpop.f32.mrb[47].mxu0  ;;  %v10566_v63 = vpop.f32.mrb[47].mxu1 }
 0x674   : > { %2051 = vst.msk [vmem:[#allocation2 + $0x18] sm:$0xff] %vm916_vm7, %v2050_v61 }
 0x675   : > { %v2122_v1 = vpop.f32.mrb[48].mxu0  ;;  %v2238_v2 = vpop.f32.mrb[48].mxu1 }
 0x676   : > { %v10571_v4 = vpop.f32.mrb[49].mxu0  ;;  %v10588_v5 = vpop.f32.mrb[49].mxu1 }
 0x679   : > { %v2127_v10 = vpop.f32.mrb[50].mxu0  ;;  %v2243_v11 = vpop.f32.mrb[50].mxu1 }
 0x67a   : > { %2263 = vrot.lane.b32.xlu0 %v2243_v11, %s12047_s23  ;;  %v10591_v12 = vpop.f32.mrb[51].mxu1  ;;  %2147 = vrot.lane.b32.xlu1 %v2127_v10, %s12047_s23  ;;  %v10574_v13 = vpop.f32.mrb[51].mxu0 }
 0x67d   : > { %v2132_v14 = vpop.f32.mrb[52].mxu0  ;;  %v2248_v15 = vpop.f32.mrb[52].mxu1 }
 0x67e   : > { %2268 = vrot.lane.b32.xlu0 %v2248_v15, %s12049_s20  ;;  %v10594_v16 = vpop.f32.mrb[53].mxu1  ;;  %2152 = vrot.lane.b32.xlu1 %v2132_v14, %s12049_s20  ;;  %v10577_v17 = vpop.f32.mrb[53].mxu0 }
 0x681   : > { %v2137_v18 = vpop.f32.mrb[54].mxu0  ;;  %v2253_v19 = vpop.f32.mrb[54].mxu1 }
 0x682   : > { %2273 = vrot.lane.b32.xlu0 %v2253_v19, %s12051_s16  ;;  %v10597_v20 = vpop.f32.mrb[55].mxu1  ;;  %2157 = vrot.lane.b32.xlu1 %v2137_v18, %s12051_s16  ;;  %v10580_v22 = vpop.f32.mrb[55].mxu0 }
 0x685   : > { %v2142_v23 = vpop.f32.mrb[56].mxu0  ;;  %v2258_v24 = vpop.f32.mrb[56].mxu1 }
 0x686   : > { %2278 = vrot.lane.b32.xlu0 %v2258_v24, %s12052_s17  ;;  %v10600_v27 = vpop.f32.mrb[57].mxu1  ;;  %2162 = vrot.lane.b32.xlu1 %v2142_v23, %s12052_s17  ;;  %v10583_v28 = vpop.f32.mrb[57].mxu0 }
 0x6ec   : > { %v2264_v29 = vpop.permute.xlu0 %2263  ;;  %v2148_v30 = vpop.permute.xlu1 %2147 }
 0x6ed   : > { %v2266_v34 = vadd.f32 %v2264_v29, %v2238_v2  ;;  %v2150_v35 = vadd.f32 %v2148_v30, %v2122_v1 }
 0x6f0   : > { %v2269_v31 = vpop.permute.xlu0 %2268  ;;  %v2153_v33 = vpop.permute.xlu1 %2152 }
 0x6f1   : > { %v2271_v40 = vadd.f32 %v2269_v31, %v2266_v34  ;;  %v2155_v41 = vadd.f32 %v2153_v33, %v2150_v35 }
 0x6f4   : > { %v2274_v38 = vpop.permute.xlu0 %2273  ;;  %v2158_v39 = vpop.permute.xlu1 %2157 }
 0x6f5   : > { %v2276_v42 = vadd.f32 %v2274_v38, %v2271_v40  ;;  %v2160_v43 = vadd.f32 %v2158_v39, %v2155_v41 }
 0x6f8   : > { %v2279_v45 = vpop.permute.xlu0 %2278  ;;  %v2163_v46 = vpop.permute.xlu1 %2162 }
 0x6f9   : > { %v2281_v47 = vadd.f32 %v2279_v45, %v2276_v42  ;;  %v2165_v48 = vadd.f32 %v2163_v46, %v2160_v43  ;;  %v2808_v46 = vld [vmem:[%s12156_s25 + $0xc] sm:$0x1f] }
 0x6fb   : > { %v2282_v49 = vadd.f32 %v2281_v47, %v12288_v44  ;;  %v2166_v50 = vadd.f32 %v2165_v48, %v12288_v44  ;;  %v2924_v47 = vld [vmem:[%s12156_s25 + $0xd] sm:$0x1f]  ;;  %v12683_v48 = vld [vmem:[%s14458_s1] sm:$0xff] }
 0x6fd   : > { %v2283_v51 = vmax.f32 %v2282_v49, 0.0  ;;  %v2167_v52 = vmax.f32 %v2166_v50, 0.0  ;;  %v12700_v49 = vld [vmem:[%s14458_s1 + $0x8] sm:$0xff]  ;;  %v12721_v50 = vld [vmem:[%s14458_s1 + $0x10] sm:$0xff] }
 0x6ff   : > { %v2284_v53 = vmax.f32 %v2167_v52, %v2283_v51  ;;  %v12734_v51 = vld [vmem:[%s14458_s1 + $0x18] sm:$0xff]  ;;  %v12747_v52 = vld [vmem:[%s14458_s1 + $0x20] sm:$0xff] }
 0x701   : > { %10610 = vmatmul.mubr.msk.f32.vlgmr.msra.gmra.mrb[58].mxu0 %vm764_vm6, %v2284_v53  ;;  %10621 = vmatmul.mubr.msk.f32.vlgmr.msra.gmra.mrb[58].mxu1 %vm764_vm6, %v2284_v53 }
 0x702   : > { %10624 = vmatpush3.msk.msra.mxu0 %vm526_vm1, %v2430_v54  ;;  %10625 = vmatprep.mubr.msk.f32.mxu0 %vm12045_vm0, %v12044_v0 }
 0x703   : > { %10641 = vmatpush3.msk.msra.mxu1 %vm526_vm1, %v2546_v55  ;;  %10642 = vmatprep.mubr.msk.f32.mxu1 %vm12045_vm0, %v12044_v0 }
 0x704   : > { %11608 = vmatprep.subr.bf16.mxu0 %v12048_v25  ;;  %11615 = vmatprep.subr.bf16.mxu1 %v12048_v25 }
 0x705   : > { %10626 = vmatmul.mubr.msk.f32.vlgmr.msra.gmra.mrb[60].mxu0 %vm510_vm2, %v12161_v3  ;;  %10643 = vmatmul.mubr.msk.f32.vlgmr.msra.gmra.mrb[60].mxu1 %vm510_vm2, %v12161_v3 }
 0x706   : > { %10628 = vmatprep.mubr.msk.f32.mxu0 %vm12045_vm0, %v12044_v0  ;;  %10645 = vmatprep.mubr.msk.f32.mxu1 %vm12045_vm0, %v12044_v0 }
 0x707   : > { %11610 = vmatpush3.bf16.msra.mxu0 %v12239_v21  ;;  %11617 = vmatpush3.bf16.msra.mxu1 %v12246_v26 }
 0x708   : > { %11611 = vmatprep.subr.bf16.mxu0 %v12048_v25  ;;  %11618 = vmatprep.subr.bf16.mxu1 %v12048_v25 }
 0x709   : > { %10629 = vmatmul.mubr.msk.f32.gmra.mrb[62].mxu0 %vm510_vm2, %v12176_v6  ;;  %10646 = vmatmul.mubr.msk.f32.gmra.mrb[62].mxu1 %vm510_vm2, %v12176_v6 }
 0x70a   : > { %10631 = vmatprep.mubr.msk.f32.mxu0 %vm12045_vm0, %v12044_v0  ;;  %10648 = vmatprep.mubr.msk.f32.mxu1 %vm12045_vm0, %v12044_v0 }
 0x70b   : > { %11614 = vmatpush3.bf16.msk.msra.mxu0 %vm12269_vm5, %v12263_v32  ;;  %11621 = vmatpush3.bf16.msk.msra.mxu1 %vm12269_vm5, %v12273_v37 }
 0x70c   : > { %10679 = vmatprep.subr.mxu0 %v12044_v0  ;;  %10696 = vmatprep.subr.mxu1 %v12044_v0 }
 0x70d   : > { %10632 = vmatmul.mubr.msk.f32.gmra.mrb[64].mxu0 %vm510_vm2, %v12189_v7  ;;  %10649 = vmatmul.mubr.msk.f32.gmra.mrb[64].mxu1 %vm510_vm2, %v12189_v7 }
 0x70e   : > { %10634 = vmatprep.mubr.msk.f32.mxu0 %vm12045_vm0, %v12044_v0  ;;  %10651 = vmatprep.mubr.msk.f32.mxu1 %vm12045_vm0, %v12044_v0 }
 0x711   : > { %10635 = vmatmul.mubr.msk.f32.gmra.mrb[66].mxu0 %vm510_vm2, %v12202_v8  ;;  %10652 = vmatmul.mubr.msk.f32.gmra.mrb[66].mxu1 %vm510_vm2, %v12202_v8 }
 0x712   : > { %10637 = vmatprep.mubr.msk.f32.mxu0 %vm12045_vm0, %v12044_v0  ;;  %10654 = vmatprep.mubr.msk.f32.mxu1 %vm12045_vm0, %v12044_v0 }
 0x715   : > { %10638 = vmatmul.mubr.msk.f32.gmra.mrb[68].mxu0 %vm510_vm2, %v12215_v9  ;;  %10655 = vmatmul.mubr.msk.f32.gmra.mrb[68].mxu1 %vm510_vm2, %v12215_v9 }
 0x716   : > { %10665 = vmatprep.mubr.msk.f32.mxu0 %vm12045_vm0, %v12044_v0  ;;  %10676 = vmatprep.mubr.msk.f32.mxu1 %vm12045_vm0, %v12044_v0 }
 0x7d4   : > { %v2354_v3 = vpop.f32.mrb[58].mxu0  ;;  %v2424_v6 = vpop.f32.mrb[58].mxu1 }
 0x7d5   : > { %v2428_v7 = vmax.f32 %v2354_v3, %v2424_v6  ;;  %v10611_v8 = vpop.f32.mrb[59].mxu0  ;;  %v10622_v56 = vpop.f32.mrb[59].mxu1 }
 0x7d7   : > { %2429 = vst.msk [vmem:[#allocation2 + $0x20] sm:$0xff] %vm916_vm7, %v2428_v7 }
 0x7d8   : > { %v2500_v57 = vpop.f32.mrb[60].mxu0  ;;  %v2616_v58 = vpop.f32.mrb[60].mxu1 }
 0x7d9   : > { %v10627_v59 = vpop.f32.mrb[61].mxu0  ;;  %v10644_v60 = vpop.f32.mrb[61].mxu1 }
 0x7dc   : > { %v2505_v61 = vpop.f32.mrb[62].mxu0  ;;  %v2621_v62 = vpop.f32.mrb[62].mxu1 }
 0x7dd   : > { %2641 = vrot.lane.b32.xlu0 %v2621_v62, %s12047_s23  ;;  %v10647_v9 = vpop.f32.mrb[63].mxu1  ;;  %2525 = vrot.lane.b32.xlu1 %v2505_v61, %s12047_s23  ;;  %v10630_v63 = vpop.f32.mrb[63].mxu0 }
 0x7e0   : > { %v2510_v1 = vpop.f32.mrb[64].mxu0  ;;  %v2626_v2 = vpop.f32.mrb[64].mxu1 }
 0x7e1   : > { %2646 = vrot.lane.b32.xlu0 %v2626_v2, %s12049_s20  ;;  %v10650_v4 = vpop.f32.mrb[65].mxu1  ;;  %2530 = vrot.lane.b32.xlu1 %v2510_v1, %s12049_s20  ;;  %v10633_v5 = vpop.f32.mrb[65].mxu0 }
 0x7e4   : > { %v2515_v10 = vpop.f32.mrb[66].mxu0  ;;  %v2631_v11 = vpop.f32.mrb[66].mxu1 }
 0x7e5   : > { %2651 = vrot.lane.b32.xlu0 %v2631_v11, %s12051_s16  ;;  %v10653_v12 = vpop.f32.mrb[67].mxu1  ;;  %2535 = vrot.lane.b32.xlu1 %v2515_v10, %s12051_s16  ;;  %v10636_v13 = vpop.f32.mrb[67].mxu0 }
 0x7e8   : > { %v2520_v14 = vpop.f32.mrb[68].mxu0  ;;  %v2636_v15 = vpop.f32.mrb[68].mxu1 }
 0x7e9   : > { %2656 = vrot.lane.b32.xlu0 %v2636_v15, %s12052_s17  ;;  %v10656_v16 = vpop.f32.mrb[69].mxu1  ;;  %2540 = vrot.lane.b32.xlu1 %v2520_v14, %s12052_s17  ;;  %v10639_v17 = vpop.f32.mrb[69].mxu0 }
 0x84f   : > { %v2642_v18 = vpop.permute.xlu0 %2641  ;;  %v2526_v19 = vpop.permute.xlu1 %2525 }
 0x850   : > { %v2644_v23 = vadd.f32 %v2642_v18, %v2616_v58  ;;  %v2528_v24 = vadd.f32 %v2526_v19, %v2500_v57 }
 0x853   : > { %v2647_v20 = vpop.permute.xlu0 %2646  ;;  %v2531_v22 = vpop.permute.xlu1 %2530 }
 0x854   : > { %v2649_v29 = vadd.f32 %v2647_v20, %v2644_v23  ;;  %v2533_v30 = vadd.f32 %v2531_v22, %v2528_v24 }
 0x857   : > { %v2652_v27 = vpop.permute.xlu0 %2651  ;;  %v2536_v28 = vpop.permute.xlu1 %2535 }
 0x858   : > { %v2654_v31 = vadd.f32 %v2652_v27, %v2649_v29  ;;  %v2538_v33 = vadd.f32 %v2536_v28, %v2533_v30 }
 0x85b   : > { %v2657_v34 = vpop.permute.xlu0 %2656  ;;  %v2541_v35 = vpop.permute.xlu1 %2540 }
 0x85c   : > { %v2659_v38 = vadd.f32 %v2657_v34, %v2654_v31  ;;  %v2543_v39 = vadd.f32 %v2541_v35, %v2538_v33 }
 0x85e   : > { %v2660_v40 = vadd.f32 %v2659_v38, %v12288_v44  ;;  %v2544_v41 = vadd.f32 %v2543_v39, %v12288_v44 }
 0x860   : > { %v2661_v42 = vmax.f32 %v2660_v40, 0.0  ;;  %v2545_v43 = vmax.f32 %v2544_v41, 0.0 }
 0x862   : > { %v2662_v45 = vmax.f32 %v2545_v43, %v2661_v42  ;;  %v3186_v42 = vld [vmem:[%s12156_s25 + $0xe] sm:$0x1f] }
 0x863   : > { %v3302_v43 = vld [vmem:[%s12156_s25 + $0xf] sm:$0x1f] }
 0x864   : > { %10666 = vmatmul.mubr.msk.f32.vlgmr.msra.gmra.mrb[70].mxu0 %vm764_vm6, %v2662_v45  ;;  %10677 = vmatmul.mubr.msk.f32.vlgmr.msra.gmra.mrb[70].mxu1 %vm764_vm6, %v2662_v45 }
 0x865   : > { %10680 = vmatpush3.msk.msra.mxu0 %vm526_vm1, %v2808_v46  ;;  %10681 = vmatprep.mubr.msk.f32.mxu0 %vm12045_vm0, %v12044_v0 }
 0x866   : > { %10697 = vmatpush3.msk.msra.mxu1 %vm526_vm1, %v2924_v47  ;;  %10698 = vmatprep.mubr.msk.f32.mxu1 %vm12045_vm0, %v12044_v0 }
 0x867   : > { %11622 = vmatprep.subr.bf16.mxu0 %v12048_v25  ;;  %11629 = vmatprep.subr.bf16.mxu1 %v12048_v25 }
 0x868   : > { %10682 = vmatmul.mubr.msk.f32.vlgmr.msra.gmra.mrb[72].mxu0 %vm510_vm2, %v12683_v48  ;;  %10699 = vmatmul.mubr.msk.f32.vlgmr.msra.gmra.mrb[72].mxu1 %vm510_vm2, %v12683_v48 }
 0x869   : > { %10684 = vmatprep.mubr.msk.f32.mxu0 %vm12045_vm0, %v12044_v0  ;;  %10701 = vmatprep.mubr.msk.f32.mxu1 %vm12045_vm0, %v12044_v0 }
 0x86a   : > { %11624 = vmatpush3.bf16.msra.mxu0 %v12239_v21  ;;  %11631 = vmatpush3.bf16.msra.mxu1 %v12246_v26 }
 0x86b   : > { %11625 = vmatprep.subr.bf16.mxu0 %v12048_v25  ;;  %11632 = vmatprep.subr.bf16.mxu1 %v12048_v25 }
 0x86c   : > { %10685 = vmatmul.mubr.msk.f32.gmra.mrb[74].mxu0 %vm510_vm2, %v12700_v49  ;;  %10702 = vmatmul.mubr.msk.f32.gmra.mrb[74].mxu1 %vm510_vm2, %v12700_v49 }
 0x86d   : > { %10687 = vmatprep.mubr.msk.f32.mxu0 %vm12045_vm0, %v12044_v0  ;;  %10704 = vmatprep.mubr.msk.f32.mxu1 %vm12045_vm0, %v12044_v0 }
 0x86e   : > { %11628 = vmatpush3.bf16.msk.msra.mxu0 %vm12269_vm5, %v12263_v32  ;;  %11635 = vmatpush3.bf16.msk.msra.mxu1 %vm12269_vm5, %v12273_v37 }
 0x86f   : > { %10735 = vmatprep.subr.mxu0 %v12044_v0  ;;  %10752 = vmatprep.subr.mxu1 %v12044_v0 }
 0x870   : > { %10688 = vmatmul.mubr.msk.f32.gmra.mrb[76].mxu0 %vm510_vm2, %v12721_v50  ;;  %10705 = vmatmul.mubr.msk.f32.gmra.mrb[76].mxu1 %vm510_vm2, %v12721_v50 }
 0x871   : > { %10690 = vmatprep.mubr.msk.f32.mxu0 %vm12045_vm0, %v12044_v0  ;;  %10707 = vmatprep.mubr.msk.f32.mxu1 %vm12045_vm0, %v12044_v0 }
 0x874   : > { %10691 = vmatmul.mubr.msk.f32.gmra.mrb[78].mxu0 %vm510_vm2, %v12734_v51  ;;  %10708 = vmatmul.mubr.msk.f32.gmra.mrb[78].mxu1 %vm510_vm2, %v12734_v51 }
 0x875   : > { %10693 = vmatprep.mubr.msk.f32.mxu0 %vm12045_vm0, %v12044_v0  ;;  %10710 = vmatprep.mubr.msk.f32.mxu1 %vm12045_vm0, %v12044_v0 }
 0x878   : > { %10694 = vmatmul.mubr.msk.f32.gmra.mrb[80].mxu0 %vm510_vm2, %v12747_v52  ;;  %10711 = vmatmul.mubr.msk.f32.gmra.mrb[80].mxu1 %vm510_vm2, %v12747_v52 }
 0x879   : > { %10721 = vmatprep.mubr.msk.f32.mxu0 %vm12045_vm0, %v12044_v0  ;;  %10732 = vmatprep.mubr.msk.f32.mxu1 %vm12045_vm0, %v12044_v0 }
 0x937   : > { %v2732_v53 = vpop.f32.mrb[70].mxu0  ;;  %v2802_v54 = vpop.f32.mrb[70].mxu1 }
 0x938   : > { %v2806_v55 = vmax.f32 %v2732_v53, %v2802_v54  ;;  %v10667_v3 = vpop.f32.mrb[71].mxu0  ;;  %v10678_v6 = vpop.f32.mrb[71].mxu1 }
 0x93a   : > { %2807 = vst.msk [vmem:[#allocation2 + $0x28] sm:$0xff] %vm916_vm7, %v2806_v55 }
 0x93b   : > { %v2878_v7 = vpop.f32.mrb[72].mxu0  ;;  %v2994_v8 = vpop.f32.mrb[72].mxu1 }
 0x93c   : > { %v10683_v56 = vpop.f32.mrb[73].mxu0  ;;  %v10700_v57 = vpop.f32.mrb[73].mxu1 }
 0x93f   : > { %v2883_v58 = vpop.f32.mrb[74].mxu0  ;;  %v2999_v59 = vpop.f32.mrb[74].mxu1 }
 0x940   : > { %3019 = vrot.lane.b32.xlu0 %v2999_v59, %s12047_s23  ;;  %v10703_v60 = vpop.f32.mrb[75].mxu1  ;;  %2903 = vrot.lane.b32.xlu1 %v2883_v58, %s12047_s23  ;;  %v10686_v61 = vpop.f32.mrb[75].mxu0 }
 0x943   : > { %v2888_v62 = vpop.f32.mrb[76].mxu0  ;;  %v3004_v9 = vpop.f32.mrb[76].mxu1 }
 0x944   : > { %3024 = vrot.lane.b32.xlu0 %v3004_v9, %s12049_s20  ;;  %v10706_v63 = vpop.f32.mrb[77].mxu1  ;;  %2908 = vrot.lane.b32.xlu1 %v2888_v62, %s12049_s20  ;;  %v10689_v1 = vpop.f32.mrb[77].mxu0 }
 0x947   : > { %v2893_v2 = vpop.f32.mrb[78].mxu0  ;;  %v3009_v4 = vpop.f32.mrb[78].mxu1 }
 0x948   : > { %3029 = vrot.lane.b32.xlu0 %v3009_v4, %s12051_s16  ;;  %v10709_v5 = vpop.f32.mrb[79].mxu1  ;;  %2913 = vrot.lane.b32.xlu1 %v2893_v2, %s12051_s16  ;;  %v10692_v10 = vpop.f32.mrb[79].mxu0 }
 0x94b   : > { %v2898_v11 = vpop.f32.mrb[80].mxu0  ;;  %v3014_v12 = vpop.f32.mrb[80].mxu1 }
 0x94c   : > { %3034 = vrot.lane.b32.xlu0 %v3014_v12, %s12052_s17  ;;  %v10712_v13 = vpop.f32.mrb[81].mxu1  ;;  %2918 = vrot.lane.b32.xlu1 %v2898_v11, %s12052_s17  ;;  %v10695_v14 = vpop.f32.mrb[81].mxu0 }
 0x9b2   : > { %v3020_v15 = vpop.permute.xlu0 %3019  ;;  %v2904_v16 = vpop.permute.xlu1 %2903 }
 0x9b3   : > { %v3022_v19 = vadd.f32 %v3020_v15, %v2994_v8  ;;  %v2906_v20 = vadd.f32 %v2904_v16, %v2878_v7 }
 0x9b6   : > { %v3025_v17 = vpop.permute.xlu0 %3024  ;;  %v2909_v18 = vpop.permute.xlu1 %2908 }
 0x9b7   : > { %v3027_v24 = vadd.f32 %v3025_v17, %v3022_v19  ;;  %v2911_v27 = vadd.f32 %v2909_v18, %v2906_v20 }
 0x9ba   : > { %v3030_v22 = vpop.permute.xlu0 %3029  ;;  %v2914_v23 = vpop.permute.xlu1 %2913 }
 0x9bb   : > { %v3032_v28 = vadd.f32 %v3030_v22, %v3027_v24  ;;  %v2916_v29 = vadd.f32 %v2914_v23, %v2911_v27 }
 0x9be   : > { %v3035_v30 = vpop.permute.xlu0 %3034  ;;  %v2919_v31 = vpop.permute.xlu1 %2918 }
 0x9bf   : > { %v3037_v33 = vadd.f32 %v3035_v30, %v3032_v28  ;;  %v2921_v34 = vadd.f32 %v2919_v31, %v2916_v29 }
 0x9c1   : > { %v3038_v35 = vadd.f32 %v3037_v33, %v12288_v44  ;;  %v2922_v38 = vadd.f32 %v2921_v34, %v12288_v44 }
 0x9c3   : > { %v3039_v39 = vmax.f32 %v3038_v35, 0.0  ;;  %v2923_v40 = vmax.f32 %v2922_v38, 0.0 }
 0x9c5   : > { %v3040_v41 = vmax.f32 %v2923_v40, %v3039_v39  ;;  %v3564_v39 = vld [vmem:[%s12156_s25 + $0x10] sm:$0x1f] }
 0x9c6   : > { %v3680_v40 = vld [vmem:[%s12156_s25 + $0x11] sm:$0x1f] }
 0x9c7   : > { %10722 = vmatmul.mubr.msk.f32.vlgmr.msra.gmra.mrb[82].mxu0 %vm764_vm6, %v3040_v41  ;;  %10733 = vmatmul.mubr.msk.f32.vlgmr.msra.gmra.mrb[82].mxu1 %vm764_vm6, %v3040_v41 }
 0x9c8   : > { %10736 = vmatpush3.msk.msra.mxu0 %vm526_vm1, %v3186_v42  ;;  %10737 = vmatprep.mubr.msk.f32.mxu0 %vm12045_vm0, %v12044_v0 }
 0x9c9   : > { %10753 = vmatpush3.msk.msra.mxu1 %vm526_vm1, %v3302_v43  ;;  %10754 = vmatprep.mubr.msk.f32.mxu1 %vm12045_vm0, %v12044_v0 }
 0x9ca   : > { %11636 = vmatprep.subr.bf16.mxu0 %v12048_v25  ;;  %11643 = vmatprep.subr.bf16.mxu1 %v12048_v25 }
 0x9cb   : > { %10738 = vmatmul.mubr.msk.f32.vlgmr.msra.gmra.mrb[84].mxu0 %vm510_vm2, %v12683_v48  ;;  %10755 = vmatmul.mubr.msk.f32.vlgmr.msra.gmra.mrb[84].mxu1 %vm510_vm2, %v12683_v48 }
 0x9cc   : > { %10740 = vmatprep.mubr.msk.f32.mxu0 %vm12045_vm0, %v12044_v0  ;;  %10757 = vmatprep.mubr.msk.f32.mxu1 %vm12045_vm0, %v12044_v0 }
 0x9cd   : > { %11638 = vmatpush3.bf16.msra.mxu0 %v12239_v21  ;;  %11645 = vmatpush3.bf16.msra.mxu1 %v12246_v26 }
 0x9ce   : > { %11639 = vmatprep.subr.bf16.mxu0 %v12048_v25  ;;  %11646 = vmatprep.subr.bf16.mxu1 %v12048_v25 }
 0x9cf   : > { %10741 = vmatmul.mubr.msk.f32.gmra.mrb[86].mxu0 %vm510_vm2, %v12700_v49  ;;  %10758 = vmatmul.mubr.msk.f32.gmra.mrb[86].mxu1 %vm510_vm2, %v12700_v49 }
 0x9d0   : > { %10743 = vmatprep.mubr.msk.f32.mxu0 %vm12045_vm0, %v12044_v0  ;;  %10760 = vmatprep.mubr.msk.f32.mxu1 %vm12045_vm0, %v12044_v0 }
 0x9d1   : > { %11642 = vmatpush3.bf16.msk.msra.mxu0 %vm12269_vm5, %v12263_v32  ;;  %11649 = vmatpush3.bf16.msk.msra.mxu1 %vm12269_vm5, %v12273_v37 }
 0x9d2   : > { %10791 = vmatprep.subr.mxu0 %v12044_v0  ;;  %10808 = vmatprep.subr.mxu1 %v12044_v0 }
 0x9d3   : > { %10744 = vmatmul.mubr.msk.f32.gmra.mrb[88].mxu0 %vm510_vm2, %v12721_v50  ;;  %10761 = vmatmul.mubr.msk.f32.gmra.mrb[88].mxu1 %vm510_vm2, %v12721_v50 }
 0x9d4   : > { %10746 = vmatprep.mubr.msk.f32.mxu0 %vm12045_vm0, %v12044_v0  ;;  %10763 = vmatprep.mubr.msk.f32.mxu1 %vm12045_vm0, %v12044_v0 }
 0x9d7   : > { %10747 = vmatmul.mubr.msk.f32.gmra.mrb[90].mxu0 %vm510_vm2, %v12734_v51  ;;  %10764 = vmatmul.mubr.msk.f32.gmra.mrb[90].mxu1 %vm510_vm2, %v12734_v51 }
 0x9d8   : > { %10749 = vmatprep.mubr.msk.f32.mxu0 %vm12045_vm0, %v12044_v0  ;;  %10766 = vmatprep.mubr.msk.f32.mxu1 %vm12045_vm0, %v12044_v0 }
 0x9db   : > { %10750 = vmatmul.mubr.msk.f32.gmra.mrb[92].mxu0 %vm510_vm2, %v12747_v52  ;;  %10767 = vmatmul.mubr.msk.f32.gmra.mrb[92].mxu1 %vm510_vm2, %v12747_v52 }
 0x9dc   : > { %10777 = vmatprep.mubr.msk.f32.mxu0 %vm12045_vm0, %v12044_v0  ;;  %10788 = vmatprep.mubr.msk.f32.mxu1 %vm12045_vm0, %v12044_v0 }
 0xa9a   : > { %v3110_v45 = vpop.f32.mrb[82].mxu0  ;;  %v3180_v46 = vpop.f32.mrb[82].mxu1 }
 0xa9b   : > { %v3184_v47 = vmax.f32 %v3110_v45, %v3180_v46  ;;  %v10723_v53 = vpop.f32.mrb[83].mxu0  ;;  %v10734_v54 = vpop.f32.mrb[83].mxu1 }
 0xa9d   : > { %3185 = vst.msk [vmem:[#allocation2 + $0x30] sm:$0xff] %vm916_vm7, %v3184_v47 }
 0xa9e   : > { %v3256_v55 = vpop.f32.mrb[84].mxu0  ;;  %v3372_v3 = vpop.f32.mrb[84].mxu1 }
 0xa9f   : > { %v10739_v6 = vpop.f32.mrb[85].mxu0  ;;  %v10756_v7 = vpop.f32.mrb[85].mxu1 }
 0xaa2   : > { %v3261_v8 = vpop.f32.mrb[86].mxu0  ;;  %v3377_v56 = vpop.f32.mrb[86].mxu1 }
 0xaa3   : > { %3397 = vrot.lane.b32.xlu0 %v3377_v56, %s12047_s23  ;;  %v10759_v57 = vpop.f32.mrb[87].mxu1  ;;  %3281 = vrot.lane.b32.xlu1 %v3261_v8, %s12047_s23  ;;  %v10742_v58 = vpop.f32.mrb[87].mxu0 }
 0xaa6   : > { %v3266_v59 = vpop.f32.mrb[88].mxu0  ;;  %v3382_v60 = vpop.f32.mrb[88].mxu1 }
 0xaa7   : > { %3402 = vrot.lane.b32.xlu0 %v3382_v60, %s12049_s20  ;;  %v10762_v61 = vpop.f32.mrb[89].mxu1  ;;  %3286 = vrot.lane.b32.xlu1 %v3266_v59, %s12049_s20  ;;  %v10745_v62 = vpop.f32.mrb[89].mxu0 }
 0xaaa   : > { %v3271_v9 = vpop.f32.mrb[90].mxu0  ;;  %v3387_v63 = vpop.f32.mrb[90].mxu1 }
 0xaab   : > { %3407 = vrot.lane.b32.xlu0 %v3387_v63, %s12051_s16  ;;  %v10765_v1 = vpop.f32.mrb[91].mxu1  ;;  %3291 = vrot.lane.b32.xlu1 %v3271_v9, %s12051_s16  ;;  %v10748_v2 = vpop.f32.mrb[91].mxu0 }
 0xaae   : > { %v3276_v4 = vpop.f32.mrb[92].mxu0  ;;  %v3392_v5 = vpop.f32.mrb[92].mxu1 }
 0xaaf   : > { %3412 = vrot.lane.b32.xlu0 %v3392_v5, %s12052_s17  ;;  %v10768_v10 = vpop.f32.mrb[93].mxu1  ;;  %3296 = vrot.lane.b32.xlu1 %v3276_v4, %s12052_s17  ;;  %v10751_v11 = vpop.f32.mrb[93].mxu0 }
 0xb15   : > { %v3398_v12 = vpop.permute.xlu0 %3397  ;;  %v3282_v13 = vpop.permute.xlu1 %3281 }
 0xb16   : > { %v3400_v16 = vadd.f32 %v3398_v12, %v3372_v3  ;;  %v3284_v17 = vadd.f32 %v3282_v13, %v3256_v55 }
 0xb19   : > { %v3403_v14 = vpop.permute.xlu0 %3402  ;;  %v3287_v15 = vpop.permute.xlu1 %3286 }
 0xb1a   : > { %v3405_v20 = vadd.f32 %v3403_v14, %v3400_v16  ;;  %v3289_v22 = vadd.f32 %v3287_v15, %v3284_v17 }
 0xb1d   : > { %v3408_v18 = vpop.permute.xlu0 %3407  ;;  %v3292_v19 = vpop.permute.xlu1 %3291 }
 0xb1e   : > { %v3410_v23 = vadd.f32 %v3408_v18, %v3405_v20  ;;  %v3294_v24 = vadd.f32 %v3292_v19, %v3289_v22 }
 0xb21   : > { %v3413_v27 = vpop.permute.xlu0 %3412  ;;  %v3297_v28 = vpop.permute.xlu1 %3296 }
 0xb22   : > { %v3415_v29 = vadd.f32 %v3413_v27, %v3410_v23  ;;  %v3299_v30 = vadd.f32 %v3297_v28, %v3294_v24 }
 0xb24   : > { %v3416_v31 = vadd.f32 %v3415_v29, %v12288_v44  ;;  %v3300_v33 = vadd.f32 %v3299_v30, %v12288_v44 }
 0xb26   : > { %v3417_v34 = vmax.f32 %v3416_v31, 0.0  ;;  %v3301_v35 = vmax.f32 %v3300_v33, 0.0 }
 0xb28   : > { %v3418_v38 = vmax.f32 %v3301_v35, %v3417_v34  ;;  %v3942_v34 = vld [vmem:[%s12156_s25 + $0x12] sm:$0x1f] }
 0xb29   : > { %v4058_v35 = vld [vmem:[%s12156_s25 + $0x13] sm:$0x1f] }
 0xb2a   : > { %10778 = vmatmul.mubr.msk.f32.vlgmr.msra.gmra.mrb[94].mxu0 %vm764_vm6, %v3418_v38  ;;  %10789 = vmatmul.mubr.msk.f32.vlgmr.msra.gmra.mrb[94].mxu1 %vm764_vm6, %v3418_v38 }
 0xb2b   : > { %10792 = vmatpush3.msk.msra.mxu0 %vm526_vm1, %v3564_v39  ;;  %10793 = vmatprep.mubr.msk.f32.mxu0 %vm12045_vm0, %v12044_v0 }
 0xb2c   : > { %10809 = vmatpush3.msk.msra.mxu1 %vm526_vm1, %v3680_v40  ;;  %10810 = vmatprep.mubr.msk.f32.mxu1 %vm12045_vm0, %v12044_v0 }
 0xb2d   : > { %11650 = vmatprep.subr.bf16.mxu0 %v12048_v25  ;;  %11657 = vmatprep.subr.bf16.mxu1 %v12048_v25 }
 0xb2e   : > { %10794 = vmatmul.mubr.msk.f32.vlgmr.msra.gmra.mrb[96].mxu0 %vm510_vm2, %v12683_v48  ;;  %10811 = vmatmul.mubr.msk.f32.vlgmr.msra.gmra.mrb[96].mxu1 %vm510_vm2, %v12683_v48 }
 0xb2f   : > { %10796 = vmatprep.mubr.msk.f32.mxu0 %vm12045_vm0, %v12044_v0  ;;  %10813 = vmatprep.mubr.msk.f32.mxu1 %vm12045_vm0, %v12044_v0 }
 0xb30   : > { %11652 = vmatpush3.bf16.msra.mxu0 %v12239_v21  ;;  %11659 = vmatpush3.bf16.msra.mxu1 %v12246_v26 }
 0xb31   : > { %11653 = vmatprep.subr.bf16.mxu0 %v12048_v25  ;;  %11660 = vmatprep.subr.bf16.mxu1 %v12048_v25 }
 0xb32   : > { %10797 = vmatmul.mubr.msk.f32.gmra.mrb[98].mxu0 %vm510_vm2, %v12700_v49  ;;  %10814 = vmatmul.mubr.msk.f32.gmra.mrb[98].mxu1 %vm510_vm2, %v12700_v49 }
 0xb33   : > { %10799 = vmatprep.mubr.msk.f32.mxu0 %vm12045_vm0, %v12044_v0  ;;  %10816 = vmatprep.mubr.msk.f32.mxu1 %vm12045_vm0, %v12044_v0 }
 0xb34   : > { %11656 = vmatpush3.bf16.msk.msra.mxu0 %vm12269_vm5, %v12263_v32  ;;  %11663 = vmatpush3.bf16.msk.msra.mxu1 %vm12269_vm5, %v12273_v37 }
 0xb35   : > { %10847 = vmatprep.subr.mxu0 %v12044_v0  ;;  %10864 = vmatprep.subr.mxu1 %v12044_v0 }
 0xb36   : > { %10800 = vmatmul.mubr.msk.f32.gmra.mrb[100].mxu0 %vm510_vm2, %v12721_v50  ;;  %10817 = vmatmul.mubr.msk.f32.gmra.mrb[100].mxu1 %vm510_vm2, %v12721_v50 }
 0xb37   : > { %10802 = vmatprep.mubr.msk.f32.mxu0 %vm12045_vm0, %v12044_v0  ;;  %10819 = vmatprep.mubr.msk.f32.mxu1 %vm12045_vm0, %v12044_v0 }
 0xb3a   : > { %10803 = vmatmul.mubr.msk.f32.gmra.mrb[102].mxu0 %vm510_vm2, %v12734_v51  ;;  %10820 = vmatmul.mubr.msk.f32.gmra.mrb[102].mxu1 %vm510_vm2, %v12734_v51 }
 0xb3b   : > { %10805 = vmatprep.mubr.msk.f32.mxu0 %vm12045_vm0, %v12044_v0  ;;  %10822 = vmatprep.mubr.msk.f32.mxu1 %vm12045_vm0, %v12044_v0 }
 0xb3e   : > { %10806 = vmatmul.mubr.msk.f32.gmra.mrb[104].mxu0 %vm510_vm2, %v12747_v52  ;;  %10823 = vmatmul.mubr.msk.f32.gmra.mrb[104].mxu1 %vm510_vm2, %v12747_v52 }
 0xb3f   : > { %10833 = vmatprep.mubr.msk.f32.mxu0 %vm12045_vm0, %v12044_v0  ;;  %10844 = vmatprep.mubr.msk.f32.mxu1 %vm12045_vm0, %v12044_v0 }
 0xbfd   : > { %v3488_v41 = vpop.f32.mrb[94].mxu0  ;;  %v3558_v42 = vpop.f32.mrb[94].mxu1 }
 0xbfe   : > { %v3562_v43 = vmax.f32 %v3488_v41, %v3558_v42  ;;  %v10779_v45 = vpop.f32.mrb[95].mxu0  ;;  %v10790_v46 = vpop.f32.mrb[95].mxu1 }
 0xc00   : > { %3563 = vst.msk [vmem:[#allocation2 + $0x38] sm:$0xff] %vm916_vm7, %v3562_v43 }
 0xc01   : > { %v3634_v47 = vpop.f32.mrb[96].mxu0  ;;  %v3750_v53 = vpop.f32.mrb[96].mxu1 }
 0xc02   : > { %v10795_v54 = vpop.f32.mrb[97].mxu0  ;;  %v10812_v55 = vpop.f32.mrb[97].mxu1 }
 0xc05   : > { %v3639_v3 = vpop.f32.mrb[98].mxu0  ;;  %v3755_v6 = vpop.f32.mrb[98].mxu1 }
 0xc06   : > { %3775 = vrot.lane.b32.xlu0 %v3755_v6, %s12047_s23  ;;  %v10815_v7 = vpop.f32.mrb[99].mxu1  ;;  %3659 = vrot.lane.b32.xlu1 %v3639_v3, %s12047_s23  ;;  %v10798_v8 = vpop.f32.mrb[99].mxu0 }
 0xc09   : > { %v3644_v56 = vpop.f32.mrb[100].mxu0  ;;  %v3760_v57 = vpop.f32.mrb[100].mxu1 }
 0xc0a   : > { %3780 = vrot.lane.b32.xlu0 %v3760_v57, %s12049_s20  ;;  %v10818_v58 = vpop.f32.mrb[101].mxu1  ;;  %3664 = vrot.lane.b32.xlu1 %v3644_v56, %s12049_s20  ;;  %v10801_v59 = vpop.f32.mrb[101].mxu0 }
 0xc0d   : > { %v3649_v60 = vpop.f32.mrb[102].mxu0  ;;  %v3765_v61 = vpop.f32.mrb[102].mxu1 }
 0xc0e   : > { %3785 = vrot.lane.b32.xlu0 %v3765_v61, %s12051_s16  ;;  %v10821_v62 = vpop.f32.mrb[103].mxu1  ;;  %3669 = vrot.lane.b32.xlu1 %v3649_v60, %s12051_s16  ;;  %v10804_v9 = vpop.f32.mrb[103].mxu0 }
 0xc11   : > { %v3654_v63 = vpop.f32.mrb[104].mxu0  ;;  %v3770_v1 = vpop.f32.mrb[104].mxu1 }
 0xc12   : > { %3790 = vrot.lane.b32.xlu0 %v3770_v1, %s12052_s17  ;;  %v10824_v2 = vpop.f32.mrb[105].mxu1  ;;  %3674 = vrot.lane.b32.xlu1 %v3654_v63, %s12052_s17  ;;  %v10807_v4 = vpop.f32.mrb[105].mxu0 }
 0xc78   : > { %v3776_v5 = vpop.permute.xlu0 %3775  ;;  %v3660_v10 = vpop.permute.xlu1 %3659 }
 0xc79   : > { %v3778_v13 = vadd.f32 %v3776_v5, %v3750_v53  ;;  %v3662_v14 = vadd.f32 %v3660_v10, %v3634_v47 }
 0xc7c   : > { %v3781_v11 = vpop.permute.xlu0 %3780  ;;  %v3665_v12 = vpop.permute.xlu1 %3664 }
 0xc7d   : > { %v3783_v17 = vadd.f32 %v3781_v11, %v3778_v13  ;;  %v3667_v18 = vadd.f32 %v3665_v12, %v3662_v14 }
 0xc80   : > { %v3786_v15 = vpop.permute.xlu0 %3785  ;;  %v3670_v16 = vpop.permute.xlu1 %3669 }
 0xc81   : > { %v3788_v19 = vadd.f32 %v3786_v15, %v3783_v17  ;;  %v3672_v20 = vadd.f32 %v3670_v16, %v3667_v18 }
 0xc84   : > { %v3791_v22 = vpop.permute.xlu0 %3790  ;;  %v3675_v23 = vpop.permute.xlu1 %3674 }
 0xc85   : > { %v3793_v24 = vadd.f32 %v3791_v22, %v3788_v19  ;;  %v3677_v27 = vadd.f32 %v3675_v23, %v3672_v20 }
 0xc87   : > { %v3794_v28 = vadd.f32 %v3793_v24, %v12288_v44  ;;  %v3678_v29 = vadd.f32 %v3677_v27, %v12288_v44 }
 0xc89   : > { %v3795_v30 = vmax.f32 %v3794_v28, 0.0  ;;  %v3679_v31 = vmax.f32 %v3678_v29, 0.0 }
 0xc8b   : > { %v3796_v33 = vmax.f32 %v3679_v31, %v3795_v30  ;;  %v4320_v30 = vld [vmem:[%s12156_s25 + $0x14] sm:$0x1f] }
 0xc8c   : > { %v4436_v31 = vld [vmem:[%s12156_s25 + $0x15] sm:$0x1f] }
 0xc8d   : > { %10834 = vmatmul.mubr.msk.f32.vlgmr.msra.gmra.mrb[106].mxu0 %vm764_vm6, %v3796_v33  ;;  %10845 = vmatmul.mubr.msk.f32.vlgmr.msra.gmra.mrb[106].mxu1 %vm764_vm6, %v3796_v33 }
 0xc8e   : > { %10848 = vmatpush3.msk.msra.mxu0 %vm526_vm1, %v3942_v34  ;;  %10849 = vmatprep.mubr.msk.f32.mxu0 %vm12045_vm0, %v12044_v0 }
 0xc8f   : > { %10865 = vmatpush3.msk.msra.mxu1 %vm526_vm1, %v4058_v35  ;;  %10866 = vmatprep.mubr.msk.f32.mxu1 %vm12045_vm0, %v12044_v0 }
 0xc90   : > { %11664 = vmatprep.subr.bf16.mxu0 %v12048_v25  ;;  %11671 = vmatprep.subr.bf16.mxu1 %v12048_v25 }
 0xc91   : > { %10850 = vmatmul.mubr.msk.f32.vlgmr.msra.gmra.mrb[108].mxu0 %vm510_vm2, %v12683_v48  ;;  %10867 = vmatmul.mubr.msk.f32.vlgmr.msra.gmra.mrb[108].mxu1 %vm510_vm2, %v12683_v48 }
 0xc92   : > { %10852 = vmatprep.mubr.msk.f32.mxu0 %vm12045_vm0, %v12044_v0  ;;  %10869 = vmatprep.mubr.msk.f32.mxu1 %vm12045_vm0, %v12044_v0 }
 0xc93   : > { %11666 = vmatpush3.bf16.msra.mxu0 %v12239_v21  ;;  %11673 = vmatpush3.bf16.msra.mxu1 %v12246_v26 }
 0xc94   : > { %11667 = vmatprep.subr.bf16.mxu0 %v12048_v25  ;;  %11674 = vmatprep.subr.bf16.mxu1 %v12048_v25 }
 0xc95   : > { %10853 = vmatmul.mubr.msk.f32.gmra.mrb[110].mxu0 %vm510_vm2, %v12700_v49  ;;  %10870 = vmatmul.mubr.msk.f32.gmra.mrb[110].mxu1 %vm510_vm2, %v12700_v49 }
 0xc96   : > { %10855 = vmatprep.mubr.msk.f32.mxu0 %vm12045_vm0, %v12044_v0  ;;  %10872 = vmatprep.mubr.msk.f32.mxu1 %vm12045_vm0, %v12044_v0 }
 0xc97   : > { %11670 = vmatpush3.bf16.msk.msra.mxu0 %vm12269_vm5, %v12263_v32  ;;  %11677 = vmatpush3.bf16.msk.msra.mxu1 %vm12269_vm5, %v12273_v37 }
 0xc98   : > { %10903 = vmatprep.subr.mxu0 %v12044_v0  ;;  %10920 = vmatprep.subr.mxu1 %v12044_v0 }
 0xc99   : > { %10856 = vmatmul.mubr.msk.f32.gmra.mrb[112].mxu0 %vm510_vm2, %v12721_v50  ;;  %10873 = vmatmul.mubr.msk.f32.gmra.mrb[112].mxu1 %vm510_vm2, %v12721_v50 }
 0xc9a   : > { %10858 = vmatprep.mubr.msk.f32.mxu0 %vm12045_vm0, %v12044_v0  ;;  %10875 = vmatprep.mubr.msk.f32.mxu1 %vm12045_vm0, %v12044_v0 }
 0xc9d   : > { %10859 = vmatmul.mubr.msk.f32.gmra.mrb[114].mxu0 %vm510_vm2, %v12734_v51  ;;  %10876 = vmatmul.mubr.msk.f32.gmra.mrb[114].mxu1 %vm510_vm2, %v12734_v51 }
 0xc9e   : > { %10861 = vmatprep.mubr.msk.f32.mxu0 %vm12045_vm0, %v12044_v0  ;;  %10878 = vmatprep.mubr.msk.f32.mxu1 %vm12045_vm0, %v12044_v0 }
 0xca1   : > { %10862 = vmatmul.mubr.msk.f32.gmra.mrb[116].mxu0 %vm510_vm2, %v12747_v52  ;;  %10879 = vmatmul.mubr.msk.f32.gmra.mrb[116].mxu1 %vm510_vm2, %v12747_v52 }
 0xca2   : > { %10889 = vmatprep.mubr.msk.f32.mxu0 %vm12045_vm0, %v12044_v0  ;;  %10900 = vmatprep.mubr.msk.f32.mxu1 %vm12045_vm0, %v12044_v0 }
 0xd60   : > { %v3866_v38 = vpop.f32.mrb[106].mxu0  ;;  %v3936_v39 = vpop.f32.mrb[106].mxu1 }
 0xd61   : > { %v3940_v40 = vmax.f32 %v3866_v38, %v3936_v39  ;;  %v10835_v41 = vpop.f32.mrb[107].mxu0  ;;  %v10846_v42 = vpop.f32.mrb[107].mxu1 }
 0xd63   : > { %3941 = vst.msk [vmem:[#allocation2 + $0x40] sm:$0xff] %vm916_vm7, %v3940_v40 }
 0xd64   : > { %v4012_v43 = vpop.f32.mrb[108].mxu0  ;;  %v4128_v45 = vpop.f32.mrb[108].mxu1 }
 0xd65   : > { %v10851_v46 = vpop.f32.mrb[109].mxu0  ;;  %v10868_v47 = vpop.f32.mrb[109].mxu1 }
 0xd68   : > { %v4017_v53 = vpop.f32.mrb[110].mxu0  ;;  %v4133_v54 = vpop.f32.mrb[110].mxu1 }
 0xd69   : > { %4153 = vrot.lane.b32.xlu0 %v4133_v54, %s12047_s23  ;;  %v10871_v55 = vpop.f32.mrb[111].mxu1  ;;  %4037 = vrot.lane.b32.xlu1 %v4017_v53, %s12047_s23  ;;  %v10854_v3 = vpop.f32.mrb[111].mxu0 }
 0xd6c   : > { %v4022_v6 = vpop.f32.mrb[112].mxu0  ;;  %v4138_v7 = vpop.f32.mrb[112].mxu1 }
 0xd6d   : > { %4158 = vrot.lane.b32.xlu0 %v4138_v7, %s12049_s20  ;;  %v10874_v8 = vpop.f32.mrb[113].mxu1  ;;  %4042 = vrot.lane.b32.xlu1 %v4022_v6, %s12049_s20  ;;  %v10857_v56 = vpop.f32.mrb[113].mxu0 }
 0xd70   : > { %v4027_v57 = vpop.f32.mrb[114].mxu0  ;;  %v4143_v58 = vpop.f32.mrb[114].mxu1 }
 0xd71   : > { %4163 = vrot.lane.b32.xlu0 %v4143_v58, %s12051_s16  ;;  %v10877_v59 = vpop.f32.mrb[115].mxu1  ;;  %4047 = vrot.lane.b32.xlu1 %v4027_v57, %s12051_s16  ;;  %v10860_v60 = vpop.f32.mrb[115].mxu0 }
 0xd74   : > { %v4032_v61 = vpop.f32.mrb[116].mxu0  ;;  %v4148_v62 = vpop.f32.mrb[116].mxu1 }
 0xd75   : > { %4168 = vrot.lane.b32.xlu0 %v4148_v62, %s12052_s17  ;;  %v10880_v9 = vpop.f32.mrb[117].mxu1  ;;  %4052 = vrot.lane.b32.xlu1 %v4032_v61, %s12052_s17  ;;  %v10863_v63 = vpop.f32.mrb[117].mxu0 }
 0xddb   : > { %v4154_v1 = vpop.permute.xlu0 %4153  ;;  %v4038_v2 = vpop.permute.xlu1 %4037 }
 0xddc   : > { %v4156_v10 = vadd.f32 %v4154_v1, %v4128_v45  ;;  %v4040_v11 = vadd.f32 %v4038_v2, %v4012_v43 }
 0xddf   : > { %v4159_v4 = vpop.permute.xlu0 %4158  ;;  %v4043_v5 = vpop.permute.xlu1 %4042 }
 0xde0   : > { %v4161_v14 = vadd.f32 %v4159_v4, %v4156_v10  ;;  %v4045_v15 = vadd.f32 %v4043_v5, %v4040_v11 }
 0xde3   : > { %v4164_v12 = vpop.permute.xlu0 %4163  ;;  %v4048_v13 = vpop.permute.xlu1 %4047 }
 0xde4   : > { %v4166_v16 = vadd.f32 %v4164_v12, %v4161_v14  ;;  %v4050_v17 = vadd.f32 %v4048_v13, %v4045_v15 }
 0xde7   : > { %v4169_v18 = vpop.permute.xlu0 %4168  ;;  %v4053_v19 = vpop.permute.xlu1 %4052 }
 0xde8   : > { %v4171_v20 = vadd.f32 %v4169_v18, %v4166_v16  ;;  %v4055_v22 = vadd.f32 %v4053_v19, %v4050_v17 }
 0xdea   : > { %v4172_v23 = vadd.f32 %v4171_v20, %v12288_v44  ;;  %v4056_v24 = vadd.f32 %v4055_v22, %v12288_v44 }
 0xdec   : > { %v4173_v27 = vmax.f32 %v4172_v23, 0.0  ;;  %v4057_v28 = vmax.f32 %v4056_v24, 0.0 }
 0xdee   : > { %v4174_v29 = vmax.f32 %v4057_v28, %v4173_v27  ;;  %v4698_v27 = vld [vmem:[%s12156_s25 + $0x16] sm:$0x1f] }
 0xdef   : > { %v4814_v28 = vld [vmem:[%s12156_s25 + $0x17] sm:$0x1f] }
 0xdf0   : > { %10890 = vmatmul.mubr.msk.f32.vlgmr.msra.gmra.mrb[118].mxu0 %vm764_vm6, %v4174_v29  ;;  %10901 = vmatmul.mubr.msk.f32.vlgmr.msra.gmra.mrb[118].mxu1 %vm764_vm6, %v4174_v29 }
 0xdf1   : > { %10904 = vmatpush3.msk.msra.mxu0 %vm526_vm1, %v4320_v30  ;;  %10905 = vmatprep.mubr.msk.f32.mxu0 %vm12045_vm0, %v12044_v0 }
 0xdf2   : > { %10921 = vmatpush3.msk.msra.mxu1 %vm526_vm1, %v4436_v31  ;;  %10922 = vmatprep.mubr.msk.f32.mxu1 %vm12045_vm0, %v12044_v0 }
 0xdf3   : > { %11678 = vmatprep.subr.bf16.mxu0 %v12048_v25  ;;  %11685 = vmatprep.subr.bf16.mxu1 %v12048_v25 }
 0xdf4   : > { %10906 = vmatmul.mubr.msk.f32.vlgmr.msra.gmra.mrb[120].mxu0 %vm510_vm2, %v12683_v48  ;;  %10923 = vmatmul.mubr.msk.f32.vlgmr.msra.gmra.mrb[120].mxu1 %vm510_vm2, %v12683_v48 }
 0xdf5   : > { %10908 = vmatprep.mubr.msk.f32.mxu0 %vm12045_vm0, %v12044_v0  ;;  %10925 = vmatprep.mubr.msk.f32.mxu1 %vm12045_vm0, %v12044_v0 }
 0xdf6   : > { %11680 = vmatpush3.bf16.msra.mxu0 %v12239_v21  ;;  %11687 = vmatpush3.bf16.msra.mxu1 %v12246_v26 }
 0xdf7   : > { %11681 = vmatprep.subr.bf16.mxu0 %v12048_v25  ;;  %11688 = vmatprep.subr.bf16.mxu1 %v12048_v25 }
 0xdf8   : > { %10909 = vmatmul.mubr.msk.f32.gmra.mrb[122].mxu0 %vm510_vm2, %v12700_v49  ;;  %10926 = vmatmul.mubr.msk.f32.gmra.mrb[122].mxu1 %vm510_vm2, %v12700_v49 }
 0xdf9   : > { %10911 = vmatprep.mubr.msk.f32.mxu0 %vm12045_vm0, %v12044_v0  ;;  %10928 = vmatprep.mubr.msk.f32.mxu1 %vm12045_vm0, %v12044_v0 }
 0xdfa   : > { %11684 = vmatpush3.bf16.msk.msra.mxu0 %vm12269_vm5, %v12263_v32  ;;  %11691 = vmatpush3.bf16.msk.msra.mxu1 %vm12269_vm5, %v12273_v37 }
 0xdfb   : > { %10959 = vmatprep.subr.mxu0 %v12044_v0  ;;  %10976 = vmatprep.subr.mxu1 %v12044_v0 }
 0xdfc   : > { %10912 = vmatmul.mubr.msk.f32.gmra.mrb[124].mxu0 %vm510_vm2, %v12721_v50  ;;  %10929 = vmatmul.mubr.msk.f32.gmra.mrb[124].mxu1 %vm510_vm2, %v12721_v50 }
 0xdfd   : > { %10914 = vmatprep.mubr.msk.f32.mxu0 %vm12045_vm0, %v12044_v0  ;;  %10931 = vmatprep.mubr.msk.f32.mxu1 %vm12045_vm0, %v12044_v0 }
 0xe00   : > { %10915 = vmatmul.mubr.msk.f32.gmra.mrb[126].mxu0 %vm510_vm2, %v12734_v51  ;;  %10932 = vmatmul.mubr.msk.f32.gmra.mrb[126].mxu1 %vm510_vm2, %v12734_v51 }
 0xe01   : > { %10917 = vmatprep.mubr.msk.f32.mxu0 %vm12045_vm0, %v12044_v0  ;;  %10934 = vmatprep.mubr.msk.f32.mxu1 %vm12045_vm0, %v12044_v0 }
 0xe04   : > { %10918 = vmatmul.mubr.msk.f32.gmra.mrb[128].mxu0 %vm510_vm2, %v12747_v52  ;;  %10935 = vmatmul.mubr.msk.f32.gmra.mrb[128].mxu1 %vm510_vm2, %v12747_v52 }
 0xe05   : > { %10945 = vmatprep.mubr.msk.f32.mxu0 %vm12045_vm0, %v12044_v0  ;;  %10956 = vmatprep.mubr.msk.f32.mxu1 %vm12045_vm0, %v12044_v0 }
 0xec3   : > { %v4244_v33 = vpop.f32.mrb[118].mxu0  ;;  %v4314_v34 = vpop.f32.mrb[118].mxu1 }
 0xec4   : > { %v4318_v35 = vmax.f32 %v4244_v33, %v4314_v34  ;;  %v10891_v38 = vpop.f32.mrb[119].mxu0  ;;  %v10902_v39 = vpop.f32.mrb[119].mxu1 }
 0xec6   : > { %4319 = vst.msk [vmem:[#allocation2 + $0x48] sm:$0xff] %vm916_vm7, %v4318_v35 }
 0xec7   : > { %v4390_v40 = vpop.f32.mrb[120].mxu0  ;;  %v4506_v41 = vpop.f32.mrb[120].mxu1 }
 0xec8   : > { %v10907_v42 = vpop.f32.mrb[121].mxu0  ;;  %v10924_v43 = vpop.f32.mrb[121].mxu1 }
 0xecb   : > { %v4395_v45 = vpop.f32.mrb[122].mxu0  ;;  %v4511_v46 = vpop.f32.mrb[122].mxu1 }
 0xecc   : > { %4531 = vrot.lane.b32.xlu0 %v4511_v46, %s12047_s23  ;;  %v10927_v47 = vpop.f32.mrb[123].mxu1  ;;  %4415 = vrot.lane.b32.xlu1 %v4395_v45, %s12047_s23  ;;  %v10910_v53 = vpop.f32.mrb[123].mxu0 }
 0xecf   : > { %v4400_v54 = vpop.f32.mrb[124].mxu0  ;;  %v4516_v55 = vpop.f32.mrb[124].mxu1 }
 0xed0   : > { %4536 = vrot.lane.b32.xlu0 %v4516_v55, %s12049_s20  ;;  %v10930_v3 = vpop.f32.mrb[125].mxu1  ;;  %4420 = vrot.lane.b32.xlu1 %v4400_v54, %s12049_s20  ;;  %v10913_v6 = vpop.f32.mrb[125].mxu0 }
 0xed3   : > { %v4405_v7 = vpop.f32.mrb[126].mxu0  ;;  %v4521_v8 = vpop.f32.mrb[126].mxu1 }
 0xed4   : > { %4541 = vrot.lane.b32.xlu0 %v4521_v8, %s12051_s16  ;;  %v10933_v56 = vpop.f32.mrb[127].mxu1  ;;  %4425 = vrot.lane.b32.xlu1 %v4405_v7, %s12051_s16  ;;  %v10916_v57 = vpop.f32.mrb[127].mxu0 }
 0xed7   : > { %v4410_v58 = vpop.f32.mrb[128].mxu0  ;;  %v4526_v59 = vpop.f32.mrb[128].mxu1 }
 0xed8   : > { %4546 = vrot.lane.b32.xlu0 %v4526_v59, %s12052_s17  ;;  %v10936_v60 = vpop.f32.mrb[129].mxu1  ;;  %4430 = vrot.lane.b32.xlu1 %v4410_v58, %s12052_s17  ;;  %v10919_v61 = vpop.f32.mrb[129].mxu0 }
 0xf3e   : > { %v4532_v62 = vpop.permute.xlu0 %4531  ;;  %v4416_v9 = vpop.permute.xlu1 %4415 }
 0xf3f   : > { %v4534_v2 = vadd.f32 %v4532_v62, %v4506_v41  ;;  %v4418_v4 = vadd.f32 %v4416_v9, %v4390_v40 }
 0xf42   : > { %v4537_v63 = vpop.permute.xlu0 %4536  ;;  %v4421_v1 = vpop.permute.xlu1 %4420 }
 0xf43   : > { %v4539_v11 = vadd.f32 %v4537_v63, %v4534_v2  ;;  %v4423_v12 = vadd.f32 %v4421_v1, %v4418_v4 }
 0xf46   : > { %v4542_v5 = vpop.permute.xlu0 %4541  ;;  %v4426_v10 = vpop.permute.xlu1 %4425 }
 0xf47   : > { %v4544_v13 = vadd.f32 %v4542_v5, %v4539_v11  ;;  %v4428_v14 = vadd.f32 %v4426_v10, %v4423_v12 }
 0xf4a   : > { %v4547_v15 = vpop.permute.xlu0 %4546  ;;  %v4431_v16 = vpop.permute.xlu1 %4430 }
 0xf4b   : > { %v4549_v17 = vadd.f32 %v4547_v15, %v4544_v13  ;;  %v4433_v18 = vadd.f32 %v4431_v16, %v4428_v14  ;;  %v5076_v16 = vld [vmem:[%s12156_s25 + $0x18] sm:$0x1f] }
 0xf4d   : > { %v4550_v19 = vadd.f32 %v4549_v17, %v12288_v44  ;;  %v4434_v20 = vadd.f32 %v4433_v18, %v12288_v44  ;;  %v5192_v17 = vld [vmem:[%s12156_s25 + $0x19] sm:$0x1f]  ;;  %v13158_v18 = vld [vmem:[%s14458_s1] sm:$0xff] }
 0xf4f   : > { %v4551_v22 = vmax.f32 %v4550_v19, 0.0  ;;  %v4435_v23 = vmax.f32 %v4434_v20, 0.0  ;;  %v13175_v19 = vld [vmem:[%s14458_s1 + $0x8] sm:$0xff]  ;;  %v13196_v20 = vld [vmem:[%s14458_s1 + $0x10] sm:$0xff] }
 0xf51   : > { %v4552_v24 = vmax.f32 %v4435_v23, %v4551_v22  ;;  %v13209_v22 = vld [vmem:[%s14458_s1 + $0x18] sm:$0xff]  ;;  %v13222_v23 = vld [vmem:[%s14458_s1 + $0x20] sm:$0xff] }
 0xf53   : > { %10946 = vmatmul.mubr.msk.f32.vlgmr.msra.gmra.mrb[130].mxu0 %vm764_vm6, %v4552_v24  ;;  %10957 = vmatmul.mubr.msk.f32.vlgmr.msra.gmra.mrb[130].mxu1 %vm764_vm6, %v4552_v24 }
 0xf54   : > { %10960 = vmatpush3.msk.msra.mxu0 %vm526_vm1, %v4698_v27  ;;  %10961 = vmatprep.mubr.msk.f32.mxu0 %vm12045_vm0, %v12044_v0 }
 0xf55   : > { %10977 = vmatpush3.msk.msra.mxu1 %vm526_vm1, %v4814_v28  ;;  %10978 = vmatprep.mubr.msk.f32.mxu1 %vm12045_vm0, %v12044_v0 }
 0xf56   : > { %11692 = vmatprep.subr.bf16.mxu0 %v12048_v25  ;;  %11699 = vmatprep.subr.bf16.mxu1 %v12048_v25 }
 0xf57   : > { %10962 = vmatmul.mubr.msk.f32.vlgmr.msra.gmra.mrb[132].mxu0 %vm510_vm2, %v12683_v48  ;;  %10979 = vmatmul.mubr.msk.f32.vlgmr.msra.gmra.mrb[132].mxu1 %vm510_vm2, %v12683_v48 }
 0xf58   : > { %10964 = vmatprep.mubr.msk.f32.mxu0 %vm12045_vm0, %v12044_v0  ;;  %10981 = vmatprep.mubr.msk.f32.mxu1 %vm12045_vm0, %v12044_v0 }
 0xf59   : > { %11694 = vmatpush3.bf16.msra.mxu0 %v12239_v21  ;;  %11701 = vmatpush3.bf16.msra.mxu1 %v12246_v26 }
 0xf5a   : > { %11695 = vmatprep.subr.bf16.mxu0 %v12048_v25  ;;  %11702 = vmatprep.subr.bf16.mxu1 %v12048_v25 }
 0xf5b   : > { %10965 = vmatmul.mubr.msk.f32.gmra.mrb[134].mxu0 %vm510_vm2, %v12700_v49  ;;  %10982 = vmatmul.mubr.msk.f32.gmra.mrb[134].mxu1 %vm510_vm2, %v12700_v49 }
 0xf5c   : > { %10967 = vmatprep.mubr.msk.f32.mxu0 %vm12045_vm0, %v12044_v0  ;;  %10984 = vmatprep.mubr.msk.f32.mxu1 %vm12045_vm0, %v12044_v0 }
 0xf5d   : > { %11698 = vmatpush3.bf16.msk.msra.mxu0 %vm12269_vm5, %v12263_v32  ;;  %11705 = vmatpush3.bf16.msk.msra.mxu1 %vm12269_vm5, %v12273_v37 }
 0xf5e   : > { %11015 = vmatprep.subr.mxu0 %v12044_v0  ;;  %11032 = vmatprep.subr.mxu1 %v12044_v0 }
 0xf5f   : > { %10968 = vmatmul.mubr.msk.f32.gmra.mrb[136].mxu0 %vm510_vm2, %v12721_v50  ;;  %10985 = vmatmul.mubr.msk.f32.gmra.mrb[136].mxu1 %vm510_vm2, %v12721_v50 }
 0xf60   : > { %10970 = vmatprep.mubr.msk.f32.mxu0 %vm12045_vm0, %v12044_v0  ;;  %10987 = vmatprep.mubr.msk.f32.mxu1 %vm12045_vm0, %v12044_v0 }
 0xf63   : > { %10971 = vmatmul.mubr.msk.f32.gmra.mrb[138].mxu0 %vm510_vm2, %v12734_v51  ;;  %10988 = vmatmul.mubr.msk.f32.gmra.mrb[138].mxu1 %vm510_vm2, %v12734_v51 }
 0xf64   : > { %10973 = vmatprep.mubr.msk.f32.mxu0 %vm12045_vm0, %v12044_v0  ;;  %10990 = vmatprep.mubr.msk.f32.mxu1 %vm12045_vm0, %v12044_v0 }
 0xf67   : > { %10974 = vmatmul.mubr.msk.f32.gmra.mrb[140].mxu0 %vm510_vm2, %v12747_v52  ;;  %10991 = vmatmul.mubr.msk.f32.gmra.mrb[140].mxu1 %vm510_vm2, %v12747_v52 }
 0xf68   : > { %11001 = vmatprep.mubr.msk.f32.mxu0 %vm12045_vm0, %v12044_v0  ;;  %11012 = vmatprep.mubr.msk.f32.mxu1 %vm12045_vm0, %v12044_v0 }
0x1026   : > { %v4622_v48 = vpop.f32.mrb[130].mxu0  ;;  %v4692_v49 = vpop.f32.mrb[130].mxu1 }
0x1027   : > { %v4696_v50 = vmax.f32 %v4622_v48, %v4692_v49  ;;  %v10947_v51 = vpop.f32.mrb[131].mxu0  ;;  %v10958_v29 = vpop.f32.mrb[131].mxu1 }
0x1029   : > { %4697 = vst.msk [vmem:[#allocation2 + $0x50] sm:$0xff] %vm916_vm7, %v4696_v50 }
0x102a   : > { %v4768_v30 = vpop.f32.mrb[132].mxu0  ;;  %v4884_v31 = vpop.f32.mrb[132].mxu1 }
0x102b   : > { %v10963_v33 = vpop.f32.mrb[133].mxu0  ;;  %v10980_v34 = vpop.f32.mrb[133].mxu1 }
0x102e   : > { %v4773_v35 = vpop.f32.mrb[134].mxu0  ;;  %v4889_v38 = vpop.f32.mrb[134].mxu1 }
0x102f   : > { %4909 = vrot.lane.b32.xlu0 %v4889_v38, %s12047_s23  ;;  %v10983_v52 = vpop.f32.mrb[135].mxu1  ;;  %4793 = vrot.lane.b32.xlu1 %v4773_v35, %s12047_s23  ;;  %v10966_v39 = vpop.f32.mrb[135].mxu0 }
0x1032   : > { %v4778_v40 = vpop.f32.mrb[136].mxu0  ;;  %v4894_v41 = vpop.f32.mrb[136].mxu1 }
0x1033   : > { %4914 = vrot.lane.b32.xlu0 %v4894_v41, %s12049_s20  ;;  %v10986_v42 = vpop.f32.mrb[137].mxu1  ;;  %4798 = vrot.lane.b32.xlu1 %v4778_v40, %s12049_s20  ;;  %v10969_v43 = vpop.f32.mrb[137].mxu0 }
0x1036   : > { %v4783_v45 = vpop.f32.mrb[138].mxu0  ;;  %v4899_v46 = vpop.f32.mrb[138].mxu1 }
0x1037   : > { %4919 = vrot.lane.b32.xlu0 %v4899_v46, %s12051_s16  ;;  %v10989_v47 = vpop.f32.mrb[139].mxu1  ;;  %4803 = vrot.lane.b32.xlu1 %v4783_v45, %s12051_s16  ;;  %v10972_v53 = vpop.f32.mrb[139].mxu0 }
0x103a   : > { %v4788_v54 = vpop.f32.mrb[140].mxu0  ;;  %v4904_v55 = vpop.f32.mrb[140].mxu1 }
0x103b   : > { %4924 = vrot.lane.b32.xlu0 %v4904_v55, %s12052_s17  ;;  %v10992_v3 = vpop.f32.mrb[141].mxu1  ;;  %4808 = vrot.lane.b32.xlu1 %v4788_v54, %s12052_s17  ;;  %v10975_v6 = vpop.f32.mrb[141].mxu0 }
0x10a1   : > { %v4910_v7 = vpop.permute.xlu0 %4909  ;;  %v4794_v8 = vpop.permute.xlu1 %4793 }
0x10a2   : > { %v4912_v58 = vadd.f32 %v4910_v7, %v4884_v31  ;;  %v4796_v59 = vadd.f32 %v4794_v8, %v4768_v30 }
0x10a5   : > { %v4915_v56 = vpop.permute.xlu0 %4914  ;;  %v4799_v57 = vpop.permute.xlu1 %4798 }
0x10a6   : > { %v4917_v62 = vadd.f32 %v4915_v56, %v4912_v58  ;;  %v4801_v9 = vadd.f32 %v4799_v57, %v4796_v59 }
0x10a9   : > { %v4920_v60 = vpop.permute.xlu0 %4919  ;;  %v4804_v61 = vpop.permute.xlu1 %4803 }
0x10aa   : > { %v4922_v63 = vadd.f32 %v4920_v60, %v4917_v62  ;;  %v4806_v1 = vadd.f32 %v4804_v61, %v4801_v9 }
0x10ad   : > { %v4925_v2 = vpop.permute.xlu0 %4924  ;;  %v4809_v4 = vpop.permute.xlu1 %4808 }
0x10ae   : > { %v4927_v5 = vadd.f32 %v4925_v2, %v4922_v63  ;;  %v4811_v10 = vadd.f32 %v4809_v4, %v4806_v1 }
0x10b0   : > { %v4928_v11 = vadd.f32 %v4927_v5, %v12288_v44  ;;  %v4812_v12 = vadd.f32 %v4811_v10, %v12288_v44 }
0x10b2   : > { %v4929_v13 = vmax.f32 %v4928_v11, 0.0  ;;  %v4813_v14 = vmax.f32 %v4812_v12, 0.0 }
0x10b4   : > { %v4930_v15 = vmax.f32 %v4813_v14, %v4929_v13  ;;  %v5454_v13 = vld [vmem:[%s12156_s25 + $0x1a] sm:$0x1f] }
0x10b5   : > { %v5570_v14 = vld [vmem:[%s12156_s25 + $0x1b] sm:$0x1f]  ;;  %s494_s25 = scalar_lea.vmem %s14472_s15, %s9714_s30 }
0x10b6   : > { %11002 = vmatmul.mubr.msk.f32.vlgmr.msra.gmra.mrb[142].mxu0 %vm764_vm6, %v4930_v15  ;;  %11013 = vmatmul.mubr.msk.f32.vlgmr.msra.gmra.mrb[142].mxu1 %vm764_vm6, %v4930_v15  ;;  %v5849_v15 = vld [vmem:[#allocation2 + $0x8] sm:$0xff] }
0x10b7   : > { %11016 = vmatpush3.msk.msra.mxu0 %vm526_vm1, %v5076_v16  ;;  %11017 = vmatprep.mubr.msk.f32.mxu0 %vm12045_vm0, %v12044_v0  ;;  %v13261_v16 = vld [vmem:[#allocation2 + $0x10] sm:$0xff] }
0x10b8   : > { %11033 = vmatpush3.msk.msra.mxu1 %vm526_vm1, %v5192_v17  ;;  %11034 = vmatprep.mubr.msk.f32.mxu1 %vm12045_vm0, %v12044_v0  ;;  %v5848_v17 = vld [vmem:[#allocation2] sm:$0xff] }
0x10b9   : > { %11706 = vmatprep.subr.bf16.mxu0 %v12048_v25  ;;  %11713 = vmatprep.subr.bf16.mxu1 %v12048_v25 }
0x10ba   : > { %11018 = vmatmul.mubr.msk.f32.vlgmr.msra.gmra.mrb[144].mxu0 %vm510_vm2, %v13158_v18  ;;  %11035 = vmatmul.mubr.msk.f32.vlgmr.msra.gmra.mrb[144].mxu1 %vm510_vm2, %v13158_v18 }
0x10bb   : > { %11020 = vmatprep.mubr.msk.f32.mxu0 %vm12045_vm0, %v12044_v0  ;;  %11037 = vmatprep.mubr.msk.f32.mxu1 %vm12045_vm0, %v12044_v0 }
0x10bc   : > { %11708 = vmatpush3.bf16.msra.mxu0 %v12239_v21  ;;  %11715 = vmatpush3.bf16.msra.mxu1 %v12246_v26 }
0x10bd   : > { %11709 = vmatprep.subr.bf16.mxu0 %v12048_v25  ;;  %11716 = vmatprep.subr.bf16.mxu1 %v12048_v25 }
0x10be   : > { %11021 = vmatmul.mubr.msk.f32.gmra.mrb[146].mxu0 %vm510_vm2, %v13175_v19  ;;  %11038 = vmatmul.mubr.msk.f32.gmra.mrb[146].mxu1 %vm510_vm2, %v13175_v19 }
0x10bf   : > { %11023 = vmatprep.mubr.msk.f32.mxu0 %vm12045_vm0, %v12044_v0  ;;  %11040 = vmatprep.mubr.msk.f32.mxu1 %vm12045_vm0, %v12044_v0 }
0x10c0   : > { %11712 = vmatpush3.bf16.msk.msra.mxu0 %vm12269_vm5, %v12263_v32  ;;  %11719 = vmatpush3.bf16.msk.msra.mxu1 %vm12269_vm5, %v12273_v37 }
0x10c1   : > { %11071 = vmatprep.subr.mxu0 %v12044_v0  ;;  %11088 = vmatprep.subr.mxu1 %v12044_v0 }
0x10c2   : > { %11024 = vmatmul.mubr.msk.f32.gmra.mrb[148].mxu0 %vm510_vm2, %v13196_v20  ;;  %11041 = vmatmul.mubr.msk.f32.gmra.mrb[148].mxu1 %vm510_vm2, %v13196_v20 }
0x10c3   : > { %11026 = vmatprep.mubr.msk.f32.mxu0 %vm12045_vm0, %v12044_v0  ;;  %11043 = vmatprep.mubr.msk.f32.mxu1 %vm12045_vm0, %v12044_v0 }
0x10c6   : > { %11027 = vmatmul.mubr.msk.f32.gmra.mrb[150].mxu0 %vm510_vm2, %v13209_v22  ;;  %11044 = vmatmul.mubr.msk.f32.gmra.mrb[150].mxu1 %vm510_vm2, %v13209_v22 }
0x10c7   : > { %11029 = vmatprep.mubr.msk.f32.mxu0 %vm12045_vm0, %v12044_v0  ;;  %11046 = vmatprep.mubr.msk.f32.mxu1 %vm12045_vm0, %v12044_v0 }
0x10ca   : > { %11030 = vmatmul.mubr.msk.f32.gmra.mrb[152].mxu0 %vm510_vm2, %v13222_v23  ;;  %11047 = vmatmul.mubr.msk.f32.gmra.mrb[152].mxu1 %vm510_vm2, %v13222_v23 }
0x10cb   : > { %11057 = vmatprep.mubr.msk.f32.mxu0 %vm12045_vm0, %v12044_v0  ;;  %11068 = vmatprep.mubr.msk.f32.mxu1 %vm12045_vm0, %v12044_v0 }
0x1189   : > { %v5000_v24 = vpop.f32.mrb[142].mxu0  ;;  %v5070_v27 = vpop.f32.mrb[142].mxu1 }
0x118a   : > { %v5074_v28 = vmax.f32 %v5000_v24, %v5070_v27  ;;  %v11003_v48 = vpop.f32.mrb[143].mxu0  ;;  %v11014_v49 = vpop.f32.mrb[143].mxu1 }
0x118c   : > { %5075 = vst.msk [vmem:[#allocation2 + $0x58] sm:$0xff] %vm916_vm7, %v5074_v28 }
0x118d   : > { %v5146_v50 = vpop.f32.mrb[144].mxu0  ;;  %v5262_v51 = vpop.f32.mrb[144].mxu1 }
0x118e   : > { %v11019_v29 = vpop.f32.mrb[145].mxu0  ;;  %v11036_v30 = vpop.f32.mrb[145].mxu1 }
0x1191   : > { %v5151_v31 = vpop.f32.mrb[146].mxu0  ;;  %v5267_v33 = vpop.f32.mrb[146].mxu1 }
0x1192   : > { %5287 = vrot.lane.b32.xlu0 %v5267_v33, %s12047_s23  ;;  %v11039_v34 = vpop.f32.mrb[147].mxu1  ;;  %5171 = vrot.lane.b32.xlu1 %v5151_v31, %s12047_s23  ;;  %v11022_v35 = vpop.f32.mrb[147].mxu0 }
0x1195   : > { %v5156_v38 = vpop.f32.mrb[148].mxu0  ;;  %v5272_v52 = vpop.f32.mrb[148].mxu1 }
0x1196   : > { %5292 = vrot.lane.b32.xlu0 %v5272_v52, %s12049_s20  ;;  %v11042_v39 = vpop.f32.mrb[149].mxu1  ;;  %5176 = vrot.lane.b32.xlu1 %v5156_v38, %s12049_s20  ;;  %v11025_v40 = vpop.f32.mrb[149].mxu0 }
0x1197   : > { %v5842_v40 = vld [vmem:[%s14463_s6] sm:$0xff] }
0x1199   : > { %v5161_v41 = vpop.f32.mrb[150].mxu0  ;;  %v5277_v42 = vpop.f32.mrb[150].mxu1 }
0x119a   : > { %5297 = vrot.lane.b32.xlu0 %v5277_v42, %s12051_s16  ;;  %v11045_v43 = vpop.f32.mrb[151].mxu1  ;;  %5181 = vrot.lane.b32.xlu1 %v5161_v41, %s12051_s16  ;;  %v11028_v45 = vpop.f32.mrb[151].mxu0  ;;  %v5843_v41 = vld [vmem:[%s14463_s6 + $0x8] sm:$0xff] }
0x119d   : > { %v5166_v46 = vpop.f32.mrb[152].mxu0  ;;  %v5282_v47 = vpop.f32.mrb[152].mxu1 }
0x119e   : > { %5302 = vrot.lane.b32.xlu0 %v5282_v47, %s12052_s17  ;;  %v11048_v53 = vpop.f32.mrb[153].mxu1  ;;  %5186 = vrot.lane.b32.xlu1 %v5166_v46, %s12052_s17  ;;  %v11031_v54 = vpop.f32.mrb[153].mxu0 }
0x1204   : > { %v5288_v55 = vpop.permute.xlu0 %5287  ;;  %v5172_v3 = vpop.permute.xlu1 %5171 }
0x1205   : > { %v5290_v8 = vadd.f32 %v5288_v55, %v5262_v51  ;;  %v5174_v56 = vadd.f32 %v5172_v3, %v5146_v50 }
0x1208   : > { %v5293_v6 = vpop.permute.xlu0 %5292  ;;  %v5177_v7 = vpop.permute.xlu1 %5176 }
0x1209   : > { %v5295_v59 = vadd.f32 %v5293_v6, %v5290_v8  ;;  %v5179_v60 = vadd.f32 %v5177_v7, %v5174_v56 }
0x120c   : > { %v5298_v57 = vpop.permute.xlu0 %5297  ;;  %v5182_v58 = vpop.permute.xlu1 %5181 }
0x120d   : > { %v5300_v61 = vadd.f32 %v5298_v57, %v5295_v59  ;;  %v5184_v62 = vadd.f32 %v5182_v58, %v5179_v60 }
0x1210   : > { %v5303_v9 = vpop.permute.xlu0 %5302  ;;  %v5187_v63 = vpop.permute.xlu1 %5186 }
0x1211   : > { %v5305_v1 = vadd.f32 %v5303_v9, %v5300_v61  ;;  %v5189_v2 = vadd.f32 %v5187_v63, %v5184_v62  ;;  %v5851_v63 = vld [vmem:[#allocation2 + $0x18] sm:$0xff] }
0x1213   : > { %v5306_v4 = vadd.f32 %v5305_v1, %v12288_v44  ;;  %v5190_v5 = vadd.f32 %v5189_v2, %v12288_v44  ;;  %v13331_v1 = vld [vmem:[#allocation2 + $0x20] sm:$0xff] }
0x1215   : > { %v5307_v10 = vmax.f32 %v5306_v4, 0.0  ;;  %v5191_v11 = vmax.f32 %v5190_v5, 0.0  ;;  %v13336_v4 = vpack.c.bf16 %v5851_v63, %v13261_v16  ;;  %v13339_v5 = vpack.c.bf16 %v13331_v1, %v5851_v63 }
0x1217   : > { %v5308_v12 = vmax.f32 %v5191_v11, %v5307_v10  ;;  %v5844_v10 = vld [vmem:[%s14464_s7] sm:$0xff]  ;;  %v5845_v11 = vld [vmem:[%s14464_s7 + $0x8] sm:$0x3] }
0x1219   : > { %11058 = vmatmul.mubr.msk.f32.vlgmr.msra.gmra.mrb[154].mxu0 %vm764_vm6, %v5308_v12  ;;  %11069 = vmatmul.mubr.msk.f32.vlgmr.msra.gmra.mrb[154].mxu1 %vm764_vm6, %v5308_v12  ;;  %v5846_v12 = vld [vmem:[%s14465_s8] sm:$0xff] }
0x121a   : > { %11072 = vmatpush3.msk.msra.mxu0 %vm526_vm1, %v5454_v13  ;;  %11089 = vmatpush3.msk.msra.mxu1 %vm526_vm1, %v5570_v14  ;;  %v5847_v13 = vld [vmem:[%s14465_s8 + $0x8] sm:$0x3] }
0x121b   : > { %11073 = vmatprep.mubr.msk.f32.mxu0 %vm12045_vm0, %v12044_v0  ;;  %11090 = vmatprep.mubr.msk.f32.mxu1 %vm12045_vm0, %v12044_v0  ;;  %v13368_v14 = vld [vmem:[#allocation2 + $0x28] sm:$0xff] }
0x121c   : > { %11720 = vmatprep.subr.bf16.mxu0 %v12048_v25  ;;  %11727 = vmatprep.subr.bf16.mxu1 %v12048_v25 }
0x121d   : > { %11074 = vmatmul.mubr.msk.f32.vlgmr.msra.gmra.mrb[156].mxu0 %vm510_vm2, %v13158_v18  ;;  %11091 = vmatmul.mubr.msk.f32.vlgmr.msra.gmra.mrb[156].mxu1 %vm510_vm2, %v13158_v18 }
0x121e   : > { %11722 = vmatpush3.bf16.msra.mxu0 %v12239_v21  ;;  %11729 = vmatpush3.bf16.msra.mxu1 %v12246_v26  ;;  %v13273_v21 = vpack.c.bf16 %v5849_v15, %v5848_v17  ;;  %v13276_v26 = vpack.c.bf16 %v13261_v16, %v5849_v15  ;;  %v13375_v15 = vld [vmem:[%s14462_s5 + $0x8] sm:$0xff]  ;;  %v13377_v16 = vpack.c.bf16 %v5845_v11, %v5844_v10 }
0x121f   : > { %11076 = vmatprep.mubr.msk.f32.mxu0 %vm12045_vm0, %v12044_v0  ;;  %11093 = vmatprep.mubr.msk.f32.mxu1 %vm12045_vm0, %v12044_v0  ;;  %v13379_v17 = vpack.c.bf16 %v5847_v13, %v5846_v12 }
0x1220   : > { %11723 = vmatprep.subr.bf16.mxu0 %v12048_v25  ;;  %11730 = vmatprep.subr.bf16.mxu1 %v12048_v25 }
0x1221   : > { %11077 = vmatmul.mubr.msk.f32.gmra.mrb[158].mxu0 %vm510_vm2, %v13175_v19  ;;  %11094 = vmatmul.mubr.msk.f32.gmra.mrb[158].mxu1 %vm510_vm2, %v13175_v19 }
0x1222   : > { %11726 = vmatpush3.bf16.msk.msra.mxu0 %vm12269_vm5, %v12263_v32  ;;  %11733 = vmatpush3.bf16.msk.msra.mxu1 %vm12269_vm5, %v12273_v37 }
0x1223   : > { %11735 = vmatprep.subr.bf16.mxu0 %v13273_v21  ;;  %11743 = vmatprep.subr.bf16.mxu1 %v13276_v26 }
0x1224   : > { %11079 = vmatprep.mubr.msk.f32.mxu0 %vm12045_vm0, %v12044_v0  ;;  %11096 = vmatprep.mubr.msk.f32.mxu1 %vm12045_vm0, %v12044_v0 }
0x1225   : > { %11080 = vmatmul.mubr.msk.f32.gmra.mrb[160].mxu0 %vm510_vm2, %v13196_v20  ;;  %11097 = vmatmul.mubr.msk.f32.gmra.mrb[160].mxu1 %vm510_vm2, %v13196_v20 }
0x1226   : > { %11082 = vmatprep.mubr.msk.f32.mxu0 %vm12045_vm0, %v12044_v0  ;;  %11099 = vmatprep.mubr.msk.f32.mxu1 %vm12045_vm0, %v12044_v0 }
0x1229   : > { %11083 = vmatmul.mubr.msk.f32.gmra.mrb[162].mxu0 %vm510_vm2, %v13209_v22  ;;  %11100 = vmatmul.mubr.msk.f32.gmra.mrb[162].mxu1 %vm510_vm2, %v13209_v22 }
0x122a   : > { %11085 = vmatprep.mubr.msk.f32.mxu0 %vm12045_vm0, %v12044_v0  ;;  %11102 = vmatprep.mubr.msk.f32.mxu1 %vm12045_vm0, %v12044_v0 }
0x122d   : > { %11086 = vmatmul.mubr.msk.f32.gmra.mrb[164].mxu0 %vm510_vm2, %v13222_v23  ;;  %11103 = vmatmul.mubr.msk.f32.gmra.mrb[164].mxu1 %vm510_vm2, %v13222_v23 }
0x122e   : > { %11113 = vmatprep.mubr.msk.f32.mxu0 %vm12045_vm0, %v12044_v0  ;;  %11124 = vmatprep.mubr.msk.f32.mxu1 %vm12045_vm0, %v12044_v0 }
0x12ec   : > { %v5378_v32 = vpop.f32.mrb[154].mxu0  ;;  %v5448_v36 = vpop.f32.mrb[154].mxu1 }
0x12ed   : > { %v5452_v37 = vmax.f32 %v5378_v32, %v5448_v36  ;;  %v11059_v18 = vpop.f32.mrb[155].mxu0  ;;  %v11070_v19 = vpop.f32.mrb[155].mxu1  ;;  %v13412_v32 = vld [vmem:[%s14462_s5 + $0x18] sm:$0xff]  ;;  %v13419_v36 = vld [vmem:[%s14462_s5 + $0x20] sm:$0xff] }
0x12ee   : > { %v13441_v18 = vld [vmem:[%s14462_s5 + $0x30] sm:$0xff]  ;;  %v13452_v19 = vld [vmem:[%s14462_s5 + $0x38] sm:$0xff] }
0x12ef   : > { %5453 = vst.msk [vmem:[#allocation2 + $0x60] sm:$0xff] %vm916_vm7, %v5452_v37  ;;  %v13434_v37 = vld [vmem:[%s14462_s5 + $0x28] sm:$0xff] }
0x12f0   : > { %v5524_v20 = vpop.f32.mrb[156].mxu0  ;;  %v5640_v22 = vpop.f32.mrb[156].mxu1 }
0x12f1   : > { %v11075_v24 = vpop.f32.mrb[157].mxu0  ;;  %v11092_v27 = vpop.f32.mrb[157].mxu1 }
0x12f4   : > { %v5529_v28 = vpop.f32.mrb[158].mxu0  ;;  %v5645_v48 = vpop.f32.mrb[158].mxu1 }
0x12f5   : > { %5665 = vrot.lane.b32.xlu0 %v5645_v48, %s12047_s23  ;;  %v11095_v23 = vpop.f32.mrb[159].mxu1  ;;  %5549 = vrot.lane.b32.xlu1 %v5529_v28, %s12047_s23  ;;  %v11078_v49 = vpop.f32.mrb[159].mxu0 }
0x12f8   : > { %v5534_v0 = vpop.f32.mrb[160].mxu0  ;;  %v5650_v50 = vpop.f32.mrb[160].mxu1 }
0x12f9   : > { %5670 = vrot.lane.b32.xlu0 %v5650_v50, %s12049_s20  ;;  %v11098_v51 = vpop.f32.mrb[161].mxu1  ;;  %5554 = vrot.lane.b32.xlu1 %v5534_v0, %s12049_s20  ;;  %v11081_v29 = vpop.f32.mrb[161].mxu0 }
0x12fc   : > { %v5539_v30 = vpop.f32.mrb[162].mxu0  ;;  %v5655_v31 = vpop.f32.mrb[162].mxu1 }
0x12fd   : > { %5675 = vrot.lane.b32.xlu0 %v5655_v31, %s12051_s16  ;;  %v11101_v33 = vpop.f32.mrb[163].mxu1  ;;  %5559 = vrot.lane.b32.xlu1 %v5539_v30, %s12051_s16  ;;  %v11084_v34 = vpop.f32.mrb[163].mxu0 }
0x1300   : > { %v5544_v35 = vpop.f32.mrb[164].mxu0  ;;  %v5660_v38 = vpop.f32.mrb[164].mxu1 }
0x1301   : > { %5680 = vrot.lane.b32.xlu0 %v5660_v38, %s12052_s17  ;;  %v11104_v52 = vpop.f32.mrb[165].mxu1  ;;  %5564 = vrot.lane.b32.xlu1 %v5544_v35, %s12052_s17  ;;  %v11087_v39 = vpop.f32.mrb[165].mxu0 }
0x1305   : > { %6041 = vperm.xlu0 %12015, %v5842_v40  }
0x1309   : > { %6046 = vperm.xlu0 %12015, %v5843_v41  }
0x1367   : > { %v5666_v42 = vpop.permute.xlu0 %5665  ;;  %v5550_v43 = vpop.permute.xlu1 %5549 }
0x1368   : > { %v5668_v47 = vadd.f32 %v5666_v42, %v5640_v22  ;;  %v5552_v53 = vadd.f32 %v5550_v43, %v5524_v20  ;;  %v13459_v20 = vld [vmem:[%s14462_s5 + $0x40] sm:$0xff]  ;;  %v13470_v22 = vld [vmem:[%s14462_s5 + $0x48] sm:$0xff] }
0x136b   : > { %v5671_v45 = vpop.permute.xlu0 %5670  ;;  %v5555_v46 = vpop.permute.xlu1 %5554 }
0x136c   : > { %v5673_v3 = vadd.f32 %v5671_v45, %v5668_v47  ;;  %v5557_v6 = vadd.f32 %v5555_v46, %v5552_v53 }
0x136f   : > { %v5676_v54 = vpop.permute.xlu0 %5675  ;;  %v5560_v55 = vpop.permute.xlu1 %5559 }
0x1370   : > { %v5678_v7 = vadd.f32 %v5676_v54, %v5673_v3  ;;  %v5562_v8 = vadd.f32 %v5560_v55, %v5557_v6 }
0x1373   : > { %v5681_v56 = vpop.permute.xlu0 %5680  ;;  %v5565_v57 = vpop.permute.xlu1 %5564 }
0x1374   : > { %v5683_v58 = vadd.f32 %v5681_v56, %v5678_v7  ;;  %v5567_v59 = vadd.f32 %v5565_v57, %v5562_v8 }
0x1376   : > { %v5684_v60 = vadd.f32 %v5683_v58, %v12288_v44  ;;  %v5568_v61 = vadd.f32 %v5567_v59, %v12288_v44  ;;  %v13344_v44 = vld [vmem:[%s14462_s5] sm:$0xff] }
0x1378   : > { %v5685_v62 = vmax.f32 %v5684_v60, 0.0  ;;  %v5569_v9 = vmax.f32 %v5568_v61, 0.0 }
0x137a   : > { %v5686_v2 = vmax.f32 %v5569_v9, %v5685_v62 }
0x137c   : > { %11114 = vmatmul.mubr.msk.f32.vlgmr.msra.gmra.mrb[166].mxu0 %vm764_vm6, %v5686_v2  ;;  %11125 = vmatmul.mubr.msk.f32.vlgmr.msra.gmra.mrb[166].mxu1 %vm764_vm6, %v5686_v2 }
0x137d   : > { %11737 = vmatpush3.bf16.msra.mxu0 %v13273_v21  ;;  %11745 = vmatpush3.bf16.msra.mxu1 %v13276_v26  ;;  %v13401_v26 = vld [vmem:[%s14462_s5 + $0x10] sm:$0xff] }
0x137e   : > { %11739 = vmatprep.subr.bf16.mxu0 %v13336_v4  ;;  %11747 = vmatprep.subr.bf16.mxu1 %v13339_v5 }
0x137f   : > { %11137 = vmatprep.mubr.msk.f32.mxu0 %vm5853_vm8, %v13344_v44  ;;  %11162 = vmatprep.mubr.msk.f32.mxu1 %vm5853_vm8, %v13344_v44 }
0x1381   : > { %11741 = vmatpush3.bf16.msra.mxu0 %v13336_v4  ;;  %11749 = vmatpush3.bf16.msra.mxu1 %v13339_v5 }
0x1382   : > { %11135 = vmatprep.subr.mxu0 %v13331_v1  ;;  %11160 = vmatprep.subr.mxu1 %v13368_v14 }
0x1384   : > { %v13495_v53 = vpop.permute.xlu0 %6041 }
0x1385   : > { %11136 = vmatpush3.msra.mxu0 %v13331_v1  ;;  %11161 = vmatpush3.msra.mxu1 %v13368_v14 }
0x1386   : > { %11138 = vmatmul.mubr.msk.f32.vlgmr.msra.gmra.mrb[168].mxu0 %vm5853_vm8, %v13375_v15  ;;  %11163 = vmatmul.mubr.msk.f32.vlgmr.msra.gmra.mrb[168].mxu1 %vm5853_vm8, %v13375_v15 }
0x1387   : > { %11752 = vmatprep.subr.msk.bf16.mxu0 %vm13382_vm10, %v13377_v16  ;;  %11758 = vmatprep.subr.msk.bf16.mxu1 %vm13382_vm10, %v13379_v17 }
0x1388   : > { %11755 = vmatpush3.bf16.msk.msra.mxu0 %vm13382_vm10, %v13377_v16  ;;  %11761 = vmatpush3.bf16.msk.msra.mxu1 %vm13382_vm10, %v13379_v17  ;;  %v13497_v54 = vpop.permute.xlu0 %6046 }
0x1389   : > { %11763 = vmatprep.subr.bf16.mxu0 %v13336_v4  ;;  %11771 = vmatprep.subr.bf16.mxu1 %v13339_v5 }
0x138a   : > { %11140 = vmatprep.mubr.msk.f32.mxu0 %vm5853_vm8, %v13401_v26  ;;  %11165 = vmatprep.mubr.msk.f32.mxu1 %vm5853_vm8, %v13401_v26 }
0x138b   : > { %11141 = vmatmul.mubr.msk.f32.gmra.mrb[170].mxu0 %vm5853_vm8, %v13412_v32  ;;  %11166 = vmatmul.mubr.msk.f32.gmra.mrb[170].mxu1 %vm5853_vm8, %v13412_v32 }
0x138c   : > { %11143 = vmatprep.mubr.msk.f32.mxu0 %vm5853_vm8, %v13419_v36  ;;  %11168 = vmatprep.mubr.msk.f32.mxu1 %vm5853_vm8, %v13419_v36 }
0x138f   : > { %11144 = vmatmul.mubr.msk.f32.gmra.mrb[172].mxu0 %vm5853_vm8, %v13434_v37  ;;  %11169 = vmatmul.mubr.msk.f32.gmra.mrb[172].mxu1 %vm5853_vm8, %v13434_v37 }
0x1390   : > { %11146 = vmatprep.mubr.msk.f32.mxu0 %vm5853_vm8, %v13441_v18  ;;  %11171 = vmatprep.mubr.msk.f32.mxu1 %vm5853_vm8, %v13441_v18 }
0x1393   : > { %11147 = vmatmul.mubr.msk.f32.gmra.mrb[174].mxu0 %vm5853_vm8, %v13452_v19  ;;  %11172 = vmatmul.mubr.msk.f32.gmra.mrb[174].mxu1 %vm5853_vm8, %v13452_v19 }
0x1394   : > { %11149 = vmatprep.mubr.msk.f32.mxu0 %vm5853_vm8, %v13459_v20  ;;  %11174 = vmatprep.mubr.msk.f32.mxu1 %vm5853_vm8, %v13459_v20 }
0x1397   : > { %11150 = vmatmul.mubr.msk.f32.gmra.mrb[176].mxu0 %vm5853_vm8, %v13470_v22  ;;  %11175 = vmatmul.mubr.msk.f32.gmra.mrb[176].mxu1 %vm5853_vm8, %v13470_v22 }
0x144f   : > { %v5756_v24 = vpop.f32.mrb[166].mxu0  ;;  %v5826_v27 = vpop.f32.mrb[166].mxu1 }
0x1450   : > { %v5830_v28 = vmax.f32 %v5756_v24, %v5826_v27  ;;  %v11115_v48 = vpop.f32.mrb[167].mxu0  ;;  %v11126_v23 = vpop.f32.mrb[167].mxu1 }
0x1452   : > { %5831 = vst.msk [vmem:[#allocation2 + $0x68] sm:$0xff] %vm916_vm7, %v5830_v28 }
0x1459   : > { %v11139_v49 = vpop.f32.mrb[168].mxu0  ;;  %v11164_v0 = vpop.f32.mrb[168].mxu1 }
0x145a   : > { %v5950_v50 = vpop.f32.mrb[169].mxu0  ;;  %v6124_v51 = vpop.f32.mrb[169].mxu1 }
0x145e   : > { %v11142_v29 = vpop.f32.mrb[170].mxu0  ;;  %v11167_v30 = vpop.f32.mrb[170].mxu1 }
0x145f   : > { %v6134_v31 = vpop.f32.mrb[171].mxu1  ;;  %6003 = vrot.lane.b32.xlu1 %v11142_v29, %s12047_s23  ;;  %v5960_v33 = vpop.f32.mrb[171].mxu0 }
0x1460   : > { %6175 = vrot.lane.b32.xlu0 %v6134_v31, %s12047_s23 }
0x1462   : > { %v11145_v34 = vpop.f32.mrb[172].mxu0  ;;  %v11170_v35 = vpop.f32.mrb[172].mxu1 }
0x1463   : > { %6177 = vrot.lane.b32.xlu1 %v11167_v30, %s12047_s23  ;;  %v5970_v38 = vpop.f32.mrb[173].mxu0  ;;  %v6144_v52 = vpop.f32.mrb[173].mxu1 }
0x1464   : > { %6013 = vrot.lane.b32.xlu0 %v11145_v34, %s12049_s20 }
0x1466   : > { %v11148_v39 = vpop.f32.mrb[174].mxu0  ;;  %v11173_v40 = vpop.f32.mrb[174].mxu1 }
0x1467   : > { %6001 = vrot.lane.b32.xlu1 %v5960_v33, %s12047_s23  ;;  %v5980_v41 = vpop.f32.mrb[175].mxu0  ;;  %v6154_v42 = vpop.f32.mrb[175].mxu1 }
0x1468   : > { %6023 = vrot.lane.b32.xlu0 %v11148_v39, %s12051_s16 }
0x146a   : > { %v11151_v43 = vpop.f32.mrb[176].mxu0  ;;  %v11176_v45 = vpop.f32.mrb[176].mxu1 }
0x146b   : > { %6187 = vrot.lane.b32.xlu1 %v11170_v35, %s12049_s20  ;;  %v5990_v46 = vpop.f32.mrb[177].mxu0  ;;  %v6164_v47 = vpop.f32.mrb[177].mxu1 }
0x146c   : > { %6021 = vrot.lane.b32.xlu0 %v5980_v41, %s12051_s16 }
0x146f   : > { %6011 = vrot.lane.b32.xlu1 %v5970_v38, %s12049_s20 }
0x1470   : > { %6031 = vrot.lane.b32.xlu0 %v5990_v46, %s12052_s17 }
0x1473   : > { %6185 = vrot.lane.b32.xlu1 %v6144_v52, %s12049_s20 }
0x1474   : > { %6033 = vrot.lane.b32.xlu0 %v11151_v43, %s12052_s17 }
0x1477   : > { %6197 = vrot.lane.b32.xlu1 %v11173_v40, %s12051_s16 }
0x147b   : > { %6195 = vrot.lane.b32.xlu1 %v6154_v42, %s12051_s16 }
0x147f   : > { %6205 = vrot.lane.b32.xlu1 %v6164_v47, %s12052_s17  ;;  %v13511_v47 = vpack.c.bf16 %v13368_v14, %v13331_v1  ;;  %v13527_v1 = vld [vmem:[#allocation2 + $0x38] sm:$0xff] }
0x1483   : > { %6207 = vrot.lane.b32.xlu1 %v11176_v45, %s12052_s17  ;;  %v13505_v45 = vld [vmem:[#allocation2 + $0x30] sm:$0xff] }
0x14d1   : > { %v6004_v55 = vpop.permute.xlu1 %6003 }
0x14d2   : > { %v6176_v3 = vpop.permute.xlu0 %6175  ;;  %v6008_v10 = vadd.f32 %v11139_v49, %v6004_v55  ;;  %v13515_v55 = vpack.c.bf16 %v13505_v45, %v13368_v14 }
0x14d3   : > { %v6181_v11 = vadd.f32 %v6176_v3, %v6124_v51 }
0x14d5   : > { %v6178_v6 = vpop.permute.xlu1 %6177 }
0x14d6   : > { %v6014_v7 = vpop.permute.xlu0 %6013  ;;  %v6182_v48 = vadd.f32 %v11164_v0, %v6178_v6 }
0x14d7   : > { %v6018_v13 = vadd.f32 %v6014_v7, %v6008_v10 }
0x14d9   : > { %v6002_v8 = vpop.permute.xlu1 %6001 }
0x14da   : > { %v6024_v56 = vpop.permute.xlu0 %6023  ;;  %v6007_v60 = vadd.f32 %v6002_v8, %v5950_v50 }
0x14db   : > { %v6028_v23 = vadd.f32 %v6024_v56, %v6018_v13 }
0x14dd   : > { %v6188_v57 = vpop.permute.xlu1 %6187 }
0x14de   : > { %v6022_v59 = vpop.permute.xlu0 %6021  ;;  %v6192_v31 = vadd.f32 %v6188_v57, %v6182_v48 }
0x14e1   : > { %v6012_v58 = vpop.permute.xlu1 %6011 }
0x14e2   : > { %v6017_v62 = vadd.f32 %v6012_v58, %v6007_v60  ;;  %v6032_v9 = vpop.permute.xlu0 %6031 }
0x14e4   : > { %v6027_v2 = vadd.f32 %v6022_v59, %v6017_v62 }
0x14e5   : > { %v6186_v61 = vpop.permute.xlu1 %6185 }
0x14e6   : > { %v6037_v24 = vadd.f32 %v6032_v9, %v6027_v2  ;;  %v6191_v27 = vadd.f32 %v6186_v61, %v6181_v11  ;;  %v6034_v28 = vpop.permute.xlu0 %6033 }
0x14e7   : > { %v6038_v50 = vadd.f32 %v6034_v28, %v6028_v23 }
0x14e8   : > { %v6049_v33 = vadd.f32 %v13495_v53, %v6037_v24 }
0x14e9   : > { %v6198_v63 = vpop.permute.xlu1 %6197  ;;  %v6050_v51 = vadd.f32 %v13497_v54, %v6038_v50 }
0x14ea   : > { %v6202_v35 = vadd.f32 %v6198_v63, %v6192_v31  ;;  %v6051_v49 = vmax.f32 %v6049_v33, 0.0 }
0x14eb   : > { %v6052_v42 = vmax.f32 %v6050_v51, 0.0 }
0x14ed   : > { %v6196_v12 = vpop.permute.xlu1 %6195 }
0x14ee   : > { %v6201_v29 = vadd.f32 %v6196_v12, %v6191_v27 }
0x14f1   : > { %v6206_v30 = vpop.permute.xlu1 %6205 }
0x14f2   : > { %v6211_v34 = vadd.f32 %v6206_v30, %v6201_v29 }
0x14f4   : > { %v6213_v38 = vadd.f32 %v6211_v34, %v13495_v53 }
0x14f5   : > { %v6208_v52 = vpop.permute.xlu1 %6207 }
0x14f6   : > { %v6215_v39 = vmax.f32 %v6213_v38, 0.0  ;;  %v6212_v40 = vadd.f32 %v6208_v52, %v6202_v35 }
0x14f8   : > { %v6217_v41 = vmax.f32 %v6051_v49, %v6215_v39  ;;  %v6214_v0 = vadd.f32 %v6212_v40, %v13497_v54 }
0x14fa   : > { %v6216_v43 = vmax.f32 %v6214_v0, 0.0  ;;  %11181 = vmatprep.mubr.msk.f32.mxu0 %vm6219_vm11, %v6217_v41  ;;  %11188 = vmatprep.mubr.msk.f32.mxu1 %vm6219_vm11, %v6217_v41 }
0x14fc   : > { %v6218_v46 = vmax.f32 %v6052_v42, %v6216_v43 }
0x14fe   : > { %11182 = vmatmul.mubr.msk.f32.vlgmr.msra.gmra.mrb[178].mxu0 %vm6219_vm11, %v6218_v46  ;;  %11189 = vmatmul.mubr.msk.f32.vlgmr.msra.gmra.mrb[178].mxu1 %vm6219_vm11, %v6218_v46 }
0x14ff   : > { %11765 = vmatpush3.bf16.msra.mxu0 %v13336_v4  ;;  %11773 = vmatpush3.bf16.msra.mxu1 %v13339_v5 }
0x1500   : > { %11767 = vmatprep.subr.bf16.mxu0 %v13511_v47  ;;  %11775 = vmatprep.subr.bf16.mxu1 %v13515_v55 }
0x1501   : > { %11201 = vmatprep.mubr.msk.f32.mxu0 %vm5853_vm8, %v13344_v44  ;;  %11226 = vmatprep.mubr.msk.f32.mxu1 %vm5853_vm8, %v13344_v44 }
0x1503   : > { %11769 = vmatpush3.bf16.msra.mxu0 %v13511_v47  ;;  %11777 = vmatpush3.bf16.msra.mxu1 %v13515_v55 }
0x1504   : > { %11199 = vmatprep.subr.mxu0 %v13505_v45  ;;  %11224 = vmatprep.subr.mxu1 %v13527_v1 }
0x1507   : > { %11200 = vmatpush3.msra.mxu0 %v13505_v45  ;;  %11225 = vmatpush3.msra.mxu1 %v13527_v1 }
0x1508   : > { %11202 = vmatmul.mubr.msk.f32.vlgmr.msra.gmra.mrb[180].mxu0 %vm5853_vm8, %v13375_v15  ;;  %11227 = vmatmul.mubr.msk.f32.vlgmr.msra.gmra.mrb[180].mxu1 %vm5853_vm8, %v13375_v15 }
0x1509   : > { %11780 = vmatprep.subr.msk.bf16.mxu0 %vm13382_vm10, %v13377_v16  ;;  %11786 = vmatprep.subr.msk.bf16.mxu1 %vm13382_vm10, %v13379_v17 }
0x150a   : > { %11783 = vmatpush3.bf16.msk.msra.mxu0 %vm13382_vm10, %v13377_v16  ;;  %11789 = vmatpush3.bf16.msk.msra.mxu1 %vm13382_vm10, %v13379_v17 }
0x150b   : > { %11791 = vmatprep.subr.bf16.mxu0 %v13511_v47  ;;  %11799 = vmatprep.subr.bf16.mxu1 %v13515_v55 }
0x150c   : > { %11204 = vmatprep.mubr.msk.f32.mxu0 %vm5853_vm8, %v13401_v26  ;;  %11229 = vmatprep.mubr.msk.f32.mxu1 %vm5853_vm8, %v13401_v26 }
0x150d   : > { %11205 = vmatmul.mubr.msk.f32.gmra.mrb[182].mxu0 %vm5853_vm8, %v13412_v32  ;;  %11230 = vmatmul.mubr.msk.f32.gmra.mrb[182].mxu1 %vm5853_vm8, %v13412_v32 }
0x150e   : > { %11207 = vmatprep.mubr.msk.f32.mxu0 %vm5853_vm8, %v13419_v36  ;;  %11232 = vmatprep.mubr.msk.f32.mxu1 %vm5853_vm8, %v13419_v36 }
0x1511   : > { %11208 = vmatmul.mubr.msk.f32.gmra.mrb[184].mxu0 %vm5853_vm8, %v13434_v37  ;;  %11233 = vmatmul.mubr.msk.f32.gmra.mrb[184].mxu1 %vm5853_vm8, %v13434_v37 }
0x1512   : > { %11210 = vmatprep.mubr.msk.f32.mxu0 %vm5853_vm8, %v13441_v18  ;;  %11235 = vmatprep.mubr.msk.f32.mxu1 %vm5853_vm8, %v13441_v18 }
0x1515   : > { %11211 = vmatmul.mubr.msk.f32.gmra.mrb[186].mxu0 %vm5853_vm8, %v13452_v19  ;;  %11236 = vmatmul.mubr.msk.f32.gmra.mrb[186].mxu1 %vm5853_vm8, %v13452_v19 }
0x1516   : > { %11213 = vmatprep.mubr.msk.f32.mxu0 %vm5853_vm8, %v13459_v20  ;;  %11238 = vmatprep.mubr.msk.f32.mxu1 %vm5853_vm8, %v13459_v20 }
0x1519   : > { %11214 = vmatmul.mubr.msk.f32.gmra.mrb[188].mxu0 %vm5853_vm8, %v13470_v22  ;;  %11239 = vmatmul.mubr.msk.f32.gmra.mrb[188].mxu1 %vm5853_vm8, %v13470_v22 }
0x15d1   : > { %v11183_v4 = vpop.f32.mrb[178].mxu0  ;;  %v11190_v5 = vpop.f32.mrb[178].mxu1 }
0x15d2   : > { %v13583_v14 = vmax.f32 %v11183_v4, %v11190_v5  ;;  %v6296_v3 = vpop.f32.mrb[179].mxu0  ;;  %v6374_v6 = vpop.f32.mrb[179].mxu1 }
0x15d3   : > { %v13585_v7 = vmax.f32 %v6296_v3, %v6374_v6 }
0x15d4   : > { %6387 = vst.msk [vmem:[#allocation3 + $0x8] sm:$0xff] %vm6385_vm12, %v13583_v14 }
0x15d5   : > { %6386 = vst.msk [vmem:[#allocation3] sm:$0xff] %vm6385_vm12, %v13585_v7 }
0x15db   : > { %v11203_v8 = vpop.f32.mrb[180].mxu0  ;;  %v11228_v56 = vpop.f32.mrb[180].mxu1 }
0x15dc   : > { %v6493_v57 = vpop.f32.mrb[181].mxu0  ;;  %v6657_v58 = vpop.f32.mrb[181].mxu1 }
0x15e0   : > { %v11206_v59 = vpop.f32.mrb[182].mxu0  ;;  %v11231_v60 = vpop.f32.mrb[182].mxu1 }
0x15e1   : > { %6710 = vrot.lane.b32.xlu1 %v11231_v60, %s12047_s23  ;;  %v6667_v61 = vpop.f32.mrb[183].mxu1  ;;  %6546 = vrot.lane.b32.xlu0 %v11206_v59, %s12047_s23  ;;  %v6503_v62 = vpop.f32.mrb[183].mxu0 }
0x15e4   : > { %v11209_v9 = vpop.f32.mrb[184].mxu0  ;;  %v11234_v63 = vpop.f32.mrb[184].mxu1 }
0x15e5   : > { %6708 = vrot.lane.b32.xlu1 %v6667_v61, %s12047_s23  ;;  %6544 = vrot.lane.b32.xlu0 %v6503_v62, %s12047_s23  ;;  %v6513_v2 = vpop.f32.mrb[185].mxu0  ;;  %v6677_v10 = vpop.f32.mrb[185].mxu1 }
0x15e8   : > { %v11212_v11 = vpop.f32.mrb[186].mxu0  ;;  %v11237_v12 = vpop.f32.mrb[186].mxu1 }
0x15e9   : > { %6720 = vrot.lane.b32.xlu1 %v11234_v63, %s12049_s20  ;;  %6556 = vrot.lane.b32.xlu0 %v11209_v9, %s12049_s20  ;;  %v6523_v13 = vpop.f32.mrb[187].mxu0  ;;  %v6687_v24 = vpop.f32.mrb[187].mxu1 }
0x15ec   : > { %v11215_v27 = vpop.f32.mrb[188].mxu0  ;;  %v11240_v28 = vpop.f32.mrb[188].mxu1 }
0x15ed   : > { %6718 = vrot.lane.b32.xlu1 %v6677_v10, %s12049_s20  ;;  %6554 = vrot.lane.b32.xlu0 %v6513_v2, %s12049_s20  ;;  %v6533_v48 = vpop.f32.mrb[189].mxu0  ;;  %v6697_v23 = vpop.f32.mrb[189].mxu1 }
0x15f1   : > { %6730 = vrot.lane.b32.xlu1 %v11237_v12, %s12051_s16  ;;  %6566 = vrot.lane.b32.xlu0 %v11212_v11, %s12051_s16 }
0x15f5   : > { %6728 = vrot.lane.b32.xlu1 %v6687_v24, %s12051_s16  ;;  %6564 = vrot.lane.b32.xlu0 %v6523_v13, %s12051_s16 }
0x15f9   : > { %6738 = vrot.lane.b32.xlu1 %v6697_v23, %s12052_s17  ;;  %6574 = vrot.lane.b32.xlu0 %v6533_v48, %s12052_s17  ;;  %v13613_v23 = vld [vmem:[#allocation2 + $0x40] sm:$0xff] }
0x15fd   : > { %6740 = vrot.lane.b32.xlu1 %v11240_v28, %s12052_s17  ;;  %6576 = vrot.lane.b32.xlu0 %v11215_v27, %s12052_s17 }
0x1653   : > { %v6711_v29 = vpop.permute.xlu1 %6710  ;;  %v6547_v30 = vpop.permute.xlu0 %6546 }
0x1654   : > { %v6715_v43 = vadd.f32 %v11228_v56, %v6711_v29  ;;  %v6551_v46 = vadd.f32 %v11203_v8, %v6547_v30  ;;  %v13619_v30 = vpack.c.bf16 %v13527_v1, %v13505_v45  ;;  %v13635_v45 = vld [vmem:[#allocation2 + $0x48] sm:$0xff] }
0x1657   : > { %v6709_v31 = vpop.permute.xlu1 %6708  ;;  %v6545_v33 = vpop.permute.xlu0 %6544 }
0x1658   : > { %v6714_v51 = vadd.f32 %v6709_v31, %v6657_v58  ;;  %v6550_v39 = vadd.f32 %v6545_v33, %v6493_v57  ;;  %v13623_v31 = vpack.c.bf16 %v13613_v23, %v13527_v1 }
0x165b   : > { %v6721_v50 = vpop.permute.xlu1 %6720  ;;  %v6557_v34 = vpop.permute.xlu0 %6556 }
0x165c   : > { %v6725_v59 = vadd.f32 %v6721_v50, %v6715_v43  ;;  %v6561_v60 = vadd.f32 %v6557_v34, %v6551_v46 }
0x165f   : > { %v6719_v35 = vpop.permute.xlu1 %6718  ;;  %v6555_v38 = vpop.permute.xlu0 %6554 }
0x1660   : > { %v6724_v0 = vadd.f32 %v6719_v35, %v6714_v51  ;;  %v6560_v42 = vadd.f32 %v6555_v38, %v6550_v39 }
0x1663   : > { %v6731_v52 = vpop.permute.xlu1 %6730  ;;  %v6567_v49 = vpop.permute.xlu0 %6566 }
0x1664   : > { %v6735_v9 = vadd.f32 %v6731_v52, %v6725_v59  ;;  %v6571_v63 = vadd.f32 %v6567_v49, %v6561_v60 }
0x1667   : > { %v6729_v40 = vpop.permute.xlu1 %6728  ;;  %v6565_v41 = vpop.permute.xlu0 %6564 }
0x1668   : > { %v6734_v4 = vadd.f32 %v6729_v40, %v6724_v0  ;;  %v6570_v5 = vadd.f32 %v6565_v41, %v6560_v42 }
0x166b   : > { %v6739_v3 = vpop.permute.xlu1 %6738  ;;  %v6575_v6 = vpop.permute.xlu0 %6574 }
0x166c   : > { %v6744_v61 = vadd.f32 %v6739_v3, %v6734_v4  ;;  %v6580_v62 = vadd.f32 %v6575_v6, %v6570_v5 }
0x166e   : > { %v6746_v2 = vadd.f32 %v6744_v61, %v13495_v53  ;;  %v6582_v57 = vadd.f32 %v6580_v62, %v13495_v53 }
0x166f   : > { %v6741_v58 = vpop.permute.xlu1 %6740  ;;  %v6577_v10 = vpop.permute.xlu0 %6576 }
0x1670   : > { %v6748_v11 = vmax.f32 %v6746_v2, 0.0  ;;  %v6584_v12 = vmax.f32 %v6582_v57, 0.0  ;;  %v6745_v56 = vadd.f32 %v6741_v58, %v6735_v9  ;;  %v6581_v8 = vadd.f32 %v6577_v10, %v6571_v63 }
0x1672   : > { %v6750_v13 = vmax.f32 %v6584_v12, %v6748_v11  ;;  %v6747_v24 = vadd.f32 %v6745_v56, %v13497_v54  ;;  %v6583_v27 = vadd.f32 %v6581_v8, %v13497_v54 }
0x1674   : > { %v6749_v28 = vmax.f32 %v6747_v24, 0.0  ;;  %v6585_v48 = vmax.f32 %v6583_v27, 0.0  ;;  %11245 = vmatprep.mubr.msk.f32.mxu0 %vm6219_vm11, %v6750_v13  ;;  %11252 = vmatprep.mubr.msk.f32.mxu1 %vm6219_vm11, %v6750_v13 }
0x1676   : > { %v6751_v29 = vmax.f32 %v6585_v48, %v6749_v28 }
0x1678   : > { %11246 = vmatmul.mubr.msk.f32.vlgmr.msra.gmra.mrb[190].mxu0 %vm6219_vm11, %v6751_v29  ;;  %11253 = vmatmul.mubr.msk.f32.vlgmr.msra.gmra.mrb[190].mxu1 %vm6219_vm11, %v6751_v29 }
0x1679   : > { %11793 = vmatpush3.bf16.msra.mxu0 %v13511_v47  ;;  %11801 = vmatpush3.bf16.msra.mxu1 %v13515_v55 }
0x167a   : > { %11795 = vmatprep.subr.bf16.mxu0 %v13619_v30  ;;  %11803 = vmatprep.subr.bf16.mxu1 %v13623_v31 }
0x167b   : > { %11265 = vmatprep.mubr.msk.f32.mxu0 %vm5853_vm8, %v13344_v44  ;;  %11290 = vmatprep.mubr.msk.f32.mxu1 %vm5853_vm8, %v13344_v44 }
0x167d   : > { %11797 = vmatpush3.bf16.msra.mxu0 %v13619_v30  ;;  %11805 = vmatpush3.bf16.msra.mxu1 %v13623_v31 }
0x167e   : > { %11263 = vmatprep.subr.mxu0 %v13613_v23  ;;  %11288 = vmatprep.subr.mxu1 %v13635_v45 }
0x1681   : > { %11264 = vmatpush3.msra.mxu0 %v13613_v23  ;;  %11289 = vmatpush3.msra.mxu1 %v13635_v45 }
0x1682   : > { %11266 = vmatmul.mubr.msk.f32.vlgmr.msra.gmra.mrb[192].mxu0 %vm5853_vm8, %v13375_v15  ;;  %11291 = vmatmul.mubr.msk.f32.vlgmr.msra.gmra.mrb[192].mxu1 %vm5853_vm8, %v13375_v15 }
0x1683   : > { %11808 = vmatprep.subr.msk.bf16.mxu0 %vm13382_vm10, %v13377_v16  ;;  %11814 = vmatprep.subr.msk.bf16.mxu1 %vm13382_vm10, %v13379_v17 }
0x1684   : > { %11811 = vmatpush3.bf16.msk.msra.mxu0 %vm13382_vm10, %v13377_v16  ;;  %11817 = vmatpush3.bf16.msk.msra.mxu1 %vm13382_vm10, %v13379_v17 }
0x1685   : > { %11819 = vmatprep.subr.bf16.mxu0 %v13619_v30  ;;  %11827 = vmatprep.subr.bf16.mxu1 %v13623_v31 }
0x1686   : > { %11268 = vmatprep.mubr.msk.f32.mxu0 %vm5853_vm8, %v13401_v26  ;;  %11293 = vmatprep.mubr.msk.f32.mxu1 %vm5853_vm8, %v13401_v26 }
0x1687   : > { %11269 = vmatmul.mubr.msk.f32.gmra.mrb[194].mxu0 %vm5853_vm8, %v13412_v32  ;;  %11294 = vmatmul.mubr.msk.f32.gmra.mrb[194].mxu1 %vm5853_vm8, %v13412_v32 }
0x1688   : > { %11271 = vmatprep.mubr.msk.f32.mxu0 %vm5853_vm8, %v13419_v36  ;;  %11296 = vmatprep.mubr.msk.f32.mxu1 %vm5853_vm8, %v13419_v36 }
0x168b   : > { %11272 = vmatmul.mubr.msk.f32.gmra.mrb[196].mxu0 %vm5853_vm8, %v13434_v37  ;;  %11297 = vmatmul.mubr.msk.f32.gmra.mrb[196].mxu1 %vm5853_vm8, %v13434_v37 }
0x168c   : > { %11274 = vmatprep.mubr.msk.f32.mxu0 %vm5853_vm8, %v13441_v18  ;;  %11299 = vmatprep.mubr.msk.f32.mxu1 %vm5853_vm8, %v13441_v18 }
0x168f   : > { %11275 = vmatmul.mubr.msk.f32.gmra.mrb[198].mxu0 %vm5853_vm8, %v13452_v19  ;;  %11300 = vmatmul.mubr.msk.f32.gmra.mrb[198].mxu1 %vm5853_vm8, %v13452_v19 }
0x1690   : > { %11277 = vmatprep.mubr.msk.f32.mxu0 %vm5853_vm8, %v13459_v20  ;;  %11302 = vmatprep.mubr.msk.f32.mxu1 %vm5853_vm8, %v13459_v20 }
0x1693   : > { %11278 = vmatmul.mubr.msk.f32.gmra.mrb[200].mxu0 %vm5853_vm8, %v13470_v22  ;;  %11303 = vmatmul.mubr.msk.f32.gmra.mrb[200].mxu1 %vm5853_vm8, %v13470_v22 }
0x174b   : > { %v11247_v47 = vpop.f32.mrb[190].mxu0  ;;  %v11254_v55 = vpop.f32.mrb[190].mxu1 }
0x174c   : > { %v13691_v1 = vmax.f32 %v11247_v47, %v11254_v55  ;;  %v6824_v33 = vpop.f32.mrb[191].mxu0  ;;  %v6899_v50 = vpop.f32.mrb[191].mxu1 }
0x174d   : > { %v13693_v34 = vmax.f32 %v6824_v33, %v6899_v50 }
0x174e   : > { %6911 = vst.msk [vmem:[#allocation3 + $0x58] sm:$0xff] %vm6385_vm12, %v13691_v1 }
0x174f   : > { %6910 = vst.msk [vmem:[#allocation3 + $0x50] sm:$0xff] %vm6385_vm12, %v13693_v34 }
0x1755   : > { %v11267_v35 = vpop.f32.mrb[192].mxu0  ;;  %v11292_v38 = vpop.f32.mrb[192].mxu1 }
0x1756   : > { %v7017_v52 = vpop.f32.mrb[193].mxu0  ;;  %v7181_v49 = vpop.f32.mrb[193].mxu1 }
0x175a   : > { %v11270_v51 = vpop.f32.mrb[194].mxu0  ;;  %v11295_v39 = vpop.f32.mrb[194].mxu1 }
0x175b   : > { %7234 = vrot.lane.b32.xlu1 %v11295_v39, %s12047_s23  ;;  %v7191_v40 = vpop.f32.mrb[195].mxu1  ;;  %7070 = vrot.lane.b32.xlu0 %v11270_v51, %s12047_s23  ;;  %v7027_v41 = vpop.f32.mrb[195].mxu0 }
0x175e   : > { %v11273_v0 = vpop.f32.mrb[196].mxu0  ;;  %v11298_v42 = vpop.f32.mrb[196].mxu1 }
0x175f   : > { %7232 = vrot.lane.b32.xlu1 %v7191_v40, %s12047_s23  ;;  %7068 = vrot.lane.b32.xlu0 %v7027_v41, %s12047_s23  ;;  %v7037_v43 = vpop.f32.mrb[197].mxu0  ;;  %v7201_v46 = vpop.f32.mrb[197].mxu1 }
0x1762   : > { %v11276_v4 = vpop.f32.mrb[198].mxu0  ;;  %v11301_v5 = vpop.f32.mrb[198].mxu1 }
0x1763   : > { %7244 = vrot.lane.b32.xlu1 %v11298_v42, %s12049_s20  ;;  %7080 = vrot.lane.b32.xlu0 %v11273_v0, %s12049_s20  ;;  %v7047_v3 = vpop.f32.mrb[199].mxu0  ;;  %v7211_v6 = vpop.f32.mrb[199].mxu1 }
0x1766   : > { %v11279_v59 = vpop.f32.mrb[200].mxu0  ;;  %v11304_v60 = vpop.f32.mrb[200].mxu1 }
0x1767   : > { %7242 = vrot.lane.b32.xlu1 %v7201_v46, %s12049_s20  ;;  %7078 = vrot.lane.b32.xlu0 %v7037_v43, %s12049_s20  ;;  %v7057_v61 = vpop.f32.mrb[201].mxu0  ;;  %v7221_v62 = vpop.f32.mrb[201].mxu1 }
0x176b   : > { %7254 = vrot.lane.b32.xlu1 %v11301_v5, %s12051_s16  ;;  %7090 = vrot.lane.b32.xlu0 %v11276_v4, %s12051_s16 }
0x176f   : > { %7252 = vrot.lane.b32.xlu1 %v7211_v6, %s12051_s16  ;;  %7088 = vrot.lane.b32.xlu0 %v7047_v3, %s12051_s16 }
0x1773   : > { %7262 = vrot.lane.b32.xlu1 %v7221_v62, %s12052_s17  ;;  %7098 = vrot.lane.b32.xlu0 %v7057_v61, %s12052_s17 }
0x1777   : > { %7264 = vrot.lane.b32.xlu1 %v11304_v60, %s12052_s17  ;;  %7100 = vrot.lane.b32.xlu0 %v11279_v59, %s12052_s17 }
0x17cd   : > { %v7235_v9 = vpop.permute.xlu1 %7234  ;;  %v7071_v63 = vpop.permute.xlu0 %7070 }
0x17ce   : > { %v7239_v47 = vadd.f32 %v11292_v38, %v7235_v9  ;;  %v7075_v55 = vadd.f32 %v11267_v35, %v7071_v63  ;;  %v13721_v63 = vld [vmem:[#allocation2 + $0x50] sm:$0xff] }
0x17d1   : > { %v7233_v2 = vpop.permute.xlu1 %7232  ;;  %v7069_v57 = vpop.permute.xlu0 %7068 }
0x17d2   : > { %v7238_v13 = vadd.f32 %v7233_v2, %v7181_v49  ;;  %v7074_v24 = vadd.f32 %v7069_v57, %v7017_v52  ;;  %v13727_v57 = vpack.c.bf16 %v13635_v45, %v13613_v23  ;;  %v13743_v23 = vld [vmem:[#allocation2 + $0x58] sm:$0xff] }
0x17d5   : > { %v7245_v58 = vpop.permute.xlu1 %7244  ;;  %v7081_v10 = vpop.permute.xlu0 %7080 }
0x17d6   : > { %v7249_v40 = vadd.f32 %v7245_v58, %v7239_v47  ;;  %v7085_v41 = vadd.f32 %v7081_v10, %v7075_v55  ;;  %v13731_v58 = vpack.c.bf16 %v13721_v63, %v13635_v45 }
0x17d9   : > { %v7243_v11 = vpop.permute.xlu1 %7242  ;;  %v7079_v12 = vpop.permute.xlu0 %7078 }
0x17da   : > { %v7248_v48 = vadd.f32 %v7243_v11, %v7238_v13  ;;  %v7084_v29 = vadd.f32 %v7079_v12, %v7074_v24 }
0x17dd   : > { %v7255_v56 = vpop.permute.xlu1 %7254  ;;  %v7091_v8 = vpop.permute.xlu0 %7090 }
0x17de   : > { %v7259_v43 = vadd.f32 %v7255_v56, %v7249_v40  ;;  %v7095_v46 = vadd.f32 %v7091_v8, %v7085_v41 }
0x17e1   : > { %v7253_v27 = vpop.permute.xlu1 %7252  ;;  %v7089_v28 = vpop.permute.xlu0 %7088 }
0x17e2   : > { %v7258_v33 = vadd.f32 %v7253_v27, %v7248_v48  ;;  %v7094_v50 = vadd.f32 %v7089_v28, %v7084_v29 }
0x17e5   : > { %v7263_v51 = vpop.permute.xlu1 %7262  ;;  %v7099_v39 = vpop.permute.xlu0 %7098 }
0x17e6   : > { %v7268_v0 = vadd.f32 %v7263_v51, %v7258_v33  ;;  %v7104_v42 = vadd.f32 %v7099_v39, %v7094_v50 }
0x17e8   : > { %v7270_v4 = vadd.f32 %v7268_v0, %v13495_v53  ;;  %v7106_v52 = vadd.f32 %v7104_v42, %v13495_v53 }
0x17e9   : > { %v7265_v49 = vpop.permute.xlu1 %7264  ;;  %v7101_v5 = vpop.permute.xlu0 %7100 }
0x17ea   : > { %v7272_v3 = vmax.f32 %v7270_v4, 0.0  ;;  %v7108_v6 = vmax.f32 %v7106_v52, 0.0  ;;  %v7269_v38 = vadd.f32 %v7265_v49, %v7259_v43  ;;  %v7105_v35 = vadd.f32 %v7101_v5, %v7095_v46 }
0x17ec   : > { %v7274_v59 = vmax.f32 %v7108_v6, %v7272_v3  ;;  %v7271_v60 = vadd.f32 %v7269_v38, %v13497_v54  ;;  %v7107_v61 = vadd.f32 %v7105_v35, %v13497_v54 }
0x17ee   : > { %v7273_v62 = vmax.f32 %v7271_v60, 0.0  ;;  %v7109_v9 = vmax.f32 %v7107_v61, 0.0  ;;  %11309 = vmatprep.mubr.msk.f32.mxu0 %vm6219_vm11, %v7274_v59  ;;  %11316 = vmatprep.mubr.msk.f32.mxu1 %vm6219_vm11, %v7274_v59 }
0x17f0   : > { %v7275_v2 = vmax.f32 %v7109_v9, %v7273_v62 }
0x17f2   : > { %11310 = vmatmul.mubr.msk.f32.vlgmr.msra.gmra.mrb[202].mxu0 %vm6219_vm11, %v7275_v2  ;;  %11317 = vmatmul.mubr.msk.f32.vlgmr.msra.gmra.mrb[202].mxu1 %vm6219_vm11, %v7275_v2 }
0x17f3   : > { %11821 = vmatpush3.bf16.msra.mxu0 %v13619_v30  ;;  %11829 = vmatpush3.bf16.msra.mxu1 %v13623_v31 }
0x17f4   : > { %11823 = vmatprep.subr.bf16.mxu0 %v13727_v57  ;;  %11831 = vmatprep.subr.bf16.mxu1 %v13731_v58 }
0x17f5   : > { %11329 = vmatprep.mubr.msk.f32.mxu0 %vm5853_vm8, %v13344_v44  ;;  %11354 = vmatprep.mubr.msk.f32.mxu1 %vm5853_vm8, %v13344_v44 }
0x17f7   : > { %11825 = vmatpush3.bf16.msra.mxu0 %v13727_v57  ;;  %11833 = vmatpush3.bf16.msra.mxu1 %v13731_v58 }
0x17f8   : > { %11327 = vmatprep.subr.mxu0 %v13721_v63  ;;  %11352 = vmatprep.subr.mxu1 %v13743_v23 }
0x17fb   : > { %11328 = vmatpush3.msra.mxu0 %v13721_v63  ;;  %11353 = vmatpush3.msra.mxu1 %v13743_v23 }
0x17fc   : > { %11330 = vmatmul.mubr.msk.f32.vlgmr.msra.gmra.mrb[204].mxu0 %vm5853_vm8, %v13375_v15  ;;  %11355 = vmatmul.mubr.msk.f32.vlgmr.msra.gmra.mrb[204].mxu1 %vm5853_vm8, %v13375_v15 }
0x17fd   : > { %11836 = vmatprep.subr.msk.bf16.mxu0 %vm13382_vm10, %v13377_v16  ;;  %11842 = vmatprep.subr.msk.bf16.mxu1 %vm13382_vm10, %v13379_v17 }
0x17fe   : > { %11839 = vmatpush3.bf16.msk.msra.mxu0 %vm13382_vm10, %v13377_v16  ;;  %11845 = vmatpush3.bf16.msk.msra.mxu1 %vm13382_vm10, %v13379_v17 }
0x17ff   : > { %11847 = vmatprep.subr.bf16.mxu0 %v13727_v57  ;;  %11855 = vmatprep.subr.bf16.mxu1 %v13731_v58 }
0x1800   : > { %11332 = vmatprep.mubr.msk.f32.mxu0 %vm5853_vm8, %v13401_v26  ;;  %11357 = vmatprep.mubr.msk.f32.mxu1 %vm5853_vm8, %v13401_v26 }
0x1801   : > { %11333 = vmatmul.mubr.msk.f32.gmra.mrb[206].mxu0 %vm5853_vm8, %v13412_v32  ;;  %11358 = vmatmul.mubr.msk.f32.gmra.mrb[206].mxu1 %vm5853_vm8, %v13412_v32 }
0x1802   : > { %11335 = vmatprep.mubr.msk.f32.mxu0 %vm5853_vm8, %v13419_v36  ;;  %11360 = vmatprep.mubr.msk.f32.mxu1 %vm5853_vm8, %v13419_v36 }
0x1805   : > { %11336 = vmatmul.mubr.msk.f32.gmra.mrb[208].mxu0 %vm5853_vm8, %v13434_v37  ;;  %11361 = vmatmul.mubr.msk.f32.gmra.mrb[208].mxu1 %vm5853_vm8, %v13434_v37 }
0x1806   : > { %11338 = vmatprep.mubr.msk.f32.mxu0 %vm5853_vm8, %v13441_v18  ;;  %11363 = vmatprep.mubr.msk.f32.mxu1 %vm5853_vm8, %v13441_v18 }
0x1809   : > { %11339 = vmatmul.mubr.msk.f32.gmra.mrb[210].mxu0 %vm5853_vm8, %v13452_v19  ;;  %11364 = vmatmul.mubr.msk.f32.gmra.mrb[210].mxu1 %vm5853_vm8, %v13452_v19 }
0x180a   : > { %11341 = vmatprep.mubr.msk.f32.mxu0 %vm5853_vm8, %v13459_v20  ;;  %11366 = vmatprep.mubr.msk.f32.mxu1 %vm5853_vm8, %v13459_v20 }
0x180d   : > { %11342 = vmatmul.mubr.msk.f32.gmra.mrb[212].mxu0 %vm5853_vm8, %v13470_v22  ;;  %11367 = vmatmul.mubr.msk.f32.gmra.mrb[212].mxu1 %vm5853_vm8, %v13470_v22 }
0x18c5   : > { %v11311_v44 = vpop.f32.mrb[202].mxu0  ;;  %v11318_v15 = vpop.f32.mrb[202].mxu1 }
0x18c6   : > { %v13799_v26 = vmax.f32 %v11311_v44, %v11318_v15  ;;  %v7348_v32 = vpop.f32.mrb[203].mxu0  ;;  %v7423_v36 = vpop.f32.mrb[203].mxu1 }
0x18c7   : > { %v13801_v37 = vmax.f32 %v7348_v32, %v7423_v36 }
0x18c8   : > { %7435 = vst.msk [vmem:[#allocation3 + $0xa8] sm:$0xff] %vm6385_vm12, %v13799_v26 }
0x18c9   : > { %7434 = vst.msk [vmem:[#allocation3 + $0xa0] sm:$0xff] %vm6385_vm12, %v13801_v37 }
0x18cf   : > { %v11331_v18 = vpop.f32.mrb[204].mxu0  ;;  %v11356_v19 = vpop.f32.mrb[204].mxu1 }
0x18d0   : > { %v7541_v20 = vpop.f32.mrb[205].mxu0  ;;  %v7705_v30 = vpop.f32.mrb[205].mxu1 }
0x18d4   : > { %v11334_v31 = vpop.f32.mrb[206].mxu0  ;;  %v11359_v22 = vpop.f32.mrb[206].mxu1 }
0x18d5   : > { %7758 = vrot.lane.b32.xlu1 %v11359_v22, %s12047_s23  ;;  %v7715_v45 = vpop.f32.mrb[207].mxu1  ;;  %7594 = vrot.lane.b32.xlu0 %v11334_v31, %s12047_s23  ;;  %v7551_v10 = vpop.f32.mrb[207].mxu0 }
0x18d8   : > { %v11337_v11 = vpop.f32.mrb[208].mxu0  ;;  %v11362_v12 = vpop.f32.mrb[208].mxu1 }
0x18d9   : > { %7756 = vrot.lane.b32.xlu1 %v7715_v45, %s12047_s23  ;;  %7592 = vrot.lane.b32.xlu0 %v7551_v10, %s12047_s23  ;;  %v7561_v56 = vpop.f32.mrb[209].mxu0  ;;  %v7725_v8 = vpop.f32.mrb[209].mxu1 }
0x18dc   : > { %v11340_v13 = vpop.f32.mrb[210].mxu0  ;;  %v11365_v24 = vpop.f32.mrb[210].mxu1 }
0x18dd   : > { %7768 = vrot.lane.b32.xlu1 %v11362_v12, %s12049_s20  ;;  %7604 = vrot.lane.b32.xlu0 %v11337_v11, %s12049_s20  ;;  %v7571_v27 = vpop.f32.mrb[211].mxu0  ;;  %v7735_v28 = vpop.f32.mrb[211].mxu1 }
0x18e0   : > { %v11343_v48 = vpop.f32.mrb[212].mxu0  ;;  %v11368_v29 = vpop.f32.mrb[212].mxu1 }
0x18e1   : > { %7766 = vrot.lane.b32.xlu1 %v7725_v8, %s12049_s20  ;;  %7602 = vrot.lane.b32.xlu0 %v7561_v56, %s12049_s20  ;;  %v7581_v47 = vpop.f32.mrb[213].mxu0  ;;  %v7745_v55 = vpop.f32.mrb[213].mxu1 }
0x18e5   : > { %7778 = vrot.lane.b32.xlu1 %v11365_v24, %s12051_s16  ;;  %7614 = vrot.lane.b32.xlu0 %v11340_v13, %s12051_s16  ;;  %v8161_v24 = vld [vmem:[#allocation2 + $0x60] sm:$0xff] }
0x18e9   : > { %7776 = vrot.lane.b32.xlu1 %v7735_v28, %s12051_s16  ;;  %7612 = vrot.lane.b32.xlu0 %v7571_v27, %s12051_s16  ;;  %v11850_v28 = vpack.c.bf16 %v13743_v23, %v13721_v63  ;;  %v12027_v63 = vld [vmem:[%s14462_s5 + $0x8] sm:$0xff] }
0x18ed   : > { %7786 = vrot.lane.b32.xlu1 %v7745_v55, %s12052_s17  ;;  %7622 = vrot.lane.b32.xlu0 %v7581_v47, %s12052_s17  ;;  %v8162_v47 = vld [vmem:[#allocation2 + $0x68] sm:$0xff]  ;;  %v12032_v55 = vld [vmem:[%s14462_s5 + $0x30] sm:$0xff] }
0x18f1   : > { %7788 = vrot.lane.b32.xlu1 %v11368_v29, %s12052_s17  ;;  %7624 = vrot.lane.b32.xlu0 %v11343_v48, %s12052_s17  ;;  %v11858_v48 = vpack.c.bf16 %v8161_v24, %v13743_v23  ;;  %v12026_v29 = vld [vmem:[%s14462_s5] sm:$0xff] }
0x18f2   : > { %v12030_v23 = vld [vmem:[%s14462_s5 + $0x20] sm:$0xff] }
0x1947   : > { %v7759_v33 = vpop.permute.xlu1 %7758  ;;  %v7595_v50 = vpop.permute.xlu0 %7594 }
0x1948   : > { %v7763_v38 = vadd.f32 %v11356_v19, %v7759_v33  ;;  %v7599_v35 = vadd.f32 %v11331_v18, %v7595_v50  ;;  %v12033_v33 = vld [vmem:[%s14462_s5 + $0x38] sm:$0xff]  ;;  %v12034_v50 = vld [vmem:[%s14462_s5 + $0x40] sm:$0xff] }
0x194b   : > { %v7757_v51 = vpop.permute.xlu1 %7756  ;;  %v7593_v39 = vpop.permute.xlu0 %7592 }
0x194c   : > { %v7762_v4 = vadd.f32 %v7757_v51, %v7705_v30  ;;  %v7598_v52 = vadd.f32 %v7593_v39, %v7541_v20  ;;  %v12035_v51 = vld [vmem:[%s14462_s5 + $0x48] sm:$0xff] }
0x194f   : > { %v7769_v40 = vpop.permute.xlu1 %7768  ;;  %v7605_v41 = vpop.permute.xlu0 %7604 }
0x1950   : > { %v7773_v9 = vadd.f32 %v7769_v40, %v7763_v38  ;;  %v7609_v2 = vadd.f32 %v7605_v41, %v7599_v35 }
0x1953   : > { %v7767_v0 = vpop.permute.xlu1 %7766  ;;  %v7603_v42 = vpop.permute.xlu0 %7602 }
0x1954   : > { %v7772_v3 = vadd.f32 %v7767_v0, %v7762_v4  ;;  %v7608_v6 = vadd.f32 %v7603_v42, %v7598_v52 }
0x1957   : > { %v7779_v43 = vpop.permute.xlu1 %7778  ;;  %v7615_v46 = vpop.permute.xlu0 %7614 }
0x1958   : > { %v7783_v32 = vadd.f32 %v7779_v43, %v7773_v9  ;;  %v7619_v36 = vadd.f32 %v7615_v46, %v7609_v2 }
0x195b   : > { %v7777_v49 = vpop.permute.xlu1 %7776  ;;  %v7613_v5 = vpop.permute.xlu0 %7612 }
0x195c   : > { %v7782_v59 = vadd.f32 %v7777_v49, %v7772_v3  ;;  %v7618_v60 = vadd.f32 %v7613_v5, %v7608_v6 }
0x195f   : > { %v7787_v61 = vpop.permute.xlu1 %7786  ;;  %v7623_v62 = vpop.permute.xlu0 %7622 }
0x1960   : > { %v7792_v44 = vadd.f32 %v7787_v61, %v7782_v59  ;;  %v7628_v15 = vadd.f32 %v7623_v62, %v7618_v60 }
0x1962   : > { %v7794_v31 = vadd.f32 %v7792_v44, %v13495_v53  ;;  %v7630_v20 = vadd.f32 %v7628_v15, %v13495_v53 }
0x1963   : > { %v7789_v30 = vpop.permute.xlu1 %7788  ;;  %v7625_v22 = vpop.permute.xlu0 %7624 }
0x1964   : > { %v7796_v45 = vmax.f32 %v7794_v31, 0.0  ;;  %v7632_v10 = vmax.f32 %v7630_v20, 0.0  ;;  %v7793_v19 = vadd.f32 %v7789_v30, %v7783_v32  ;;  %v7629_v18 = vadd.f32 %v7625_v22, %v7619_v36 }
0x1966   : > { %v7798_v11 = vmax.f32 %v7632_v10, %v7796_v45  ;;  %v7795_v12 = vadd.f32 %v7793_v19, %v13497_v54  ;;  %v7631_v56 = vadd.f32 %v7629_v18, %v13497_v54 }
0x1968   : > { %v7797_v8 = vmax.f32 %v7795_v12, 0.0  ;;  %v7633_v13 = vmax.f32 %v7631_v56, 0.0  ;;  %11373 = vmatprep.mubr.msk.f32.mxu0 %vm6219_vm11, %v7798_v11  ;;  %11380 = vmatprep.mubr.msk.f32.mxu1 %vm6219_vm11, %v7798_v11 }
0x196a   : > { %v7799_v27 = vmax.f32 %v7633_v13, %v7797_v8 }
0x196c   : > { %11374 = vmatmul.mubr.msk.f32.vlgmr.msra.gmra.mrb[214].mxu0 %vm6219_vm11, %v7799_v27  ;;  %11381 = vmatmul.mubr.msk.f32.vlgmr.msra.gmra.mrb[214].mxu1 %vm6219_vm11, %v7799_v27 }
0x196d   : > { %11849 = vmatpush3.bf16.msra.mxu0 %v13727_v57  ;;  %11857 = vmatpush3.bf16.msra.mxu1 %v13731_v58  ;;  %v12028_v57 = vld [vmem:[%s14462_s5 + $0x10] sm:$0xff]  ;;  %v12029_v58 = vld [vmem:[%s14462_s5 + $0x18] sm:$0xff] }
0x196e   : > { %11851 = vmatprep.subr.bf16.mxu0 %v11850_v28  ;;  %11859 = vmatprep.subr.bf16.mxu1 %v11858_v48 }
0x196f   : > { %11393 = vmatprep.mubr.msk.f32.mxu0 %vm5853_vm8, %v12026_v29  ;;  %11418 = vmatprep.mubr.msk.f32.mxu1 %vm5853_vm8, %v12026_v29 }
0x1971   : > { %11853 = vmatpush3.bf16.msra.mxu0 %v11850_v28  ;;  %11861 = vmatpush3.bf16.msra.mxu1 %v11858_v48 }
0x1972   : > { %11391 = vmatprep.subr.mxu0 %v8161_v24  ;;  %11416 = vmatprep.subr.mxu1 %v8162_v47 }
0x1975   : > { %11392 = vmatpush3.msra.mxu0 %v8161_v24  ;;  %11417 = vmatpush3.msra.mxu1 %v8162_v47 }
0x1976   : > { %11394 = vmatmul.mubr.msk.f32.vlgmr.msra.gmra.mrb[216].mxu0 %vm5853_vm8, %v12027_v63  ;;  %11419 = vmatmul.mubr.msk.f32.vlgmr.msra.gmra.mrb[216].mxu1 %vm5853_vm8, %v12027_v63 }
0x1977   : > { %11396 = vmatprep.mubr.msk.f32.mxu0 %vm5853_vm8, %v12028_v57  ;;  %11421 = vmatprep.mubr.msk.f32.mxu1 %vm5853_vm8, %v12028_v57 }
0x1978   : > { %11864 = vmatprep.subr.msk.bf16.mxu1 %vm13382_vm10, %v13377_v16 }
0x1979   : > { %11867 = vmatpush3.bf16.msk.msra.mxu1 %vm13382_vm10, %v13377_v16  ;;  %v12031_v16 = vld [vmem:[%s14462_s5 + $0x28] sm:$0xff] }
0x197a   : > { %11397 = vmatmul.mubr.msk.f32.gmra.mrb[218].mxu0 %vm5853_vm8, %v12029_v58  ;;  %11422 = vmatmul.mubr.msk.f32.gmra.mrb[218].mxu1 %vm5853_vm8, %v12029_v58 }
0x197b   : > { %11399 = vmatprep.mubr.msk.f32.mxu0 %vm5853_vm8, %v12030_v23  ;;  %11424 = vmatprep.mubr.msk.f32.mxu1 %vm5853_vm8, %v12030_v23 }
0x197c   : > { %11870 = vmatprep.subr.msk.bf16.mxu1 %vm13382_vm10, %v13379_v17 }
0x197e   : > { %11400 = vmatmul.mubr.msk.f32.gmra.mrb[220].mxu0 %vm5853_vm8, %v12031_v16  ;;  %11425 = vmatmul.mubr.msk.f32.gmra.mrb[220].mxu1 %vm5853_vm8, %v12031_v16 }
0x197f   : > { %11402 = vmatprep.mubr.msk.f32.mxu0 %vm5853_vm8, %v12032_v55  ;;  %11427 = vmatprep.mubr.msk.f32.mxu1 %vm5853_vm8, %v12032_v55 }
0x1982   : > { %11403 = vmatmul.mubr.msk.f32.gmra.mrb[222].mxu0 %vm5853_vm8, %v12033_v33  ;;  %11428 = vmatmul.mubr.msk.f32.gmra.mrb[222].mxu1 %vm5853_vm8, %v12033_v33 }
0x1983   : > { %11405 = vmatprep.mubr.msk.f32.mxu0 %vm5853_vm8, %v12034_v50  ;;  %11430 = vmatprep.mubr.msk.f32.mxu1 %vm5853_vm8, %v12034_v50 }
0x1986   : > { %11406 = vmatmul.mubr.msk.f32.gmra.mrb[224].mxu0 %vm5853_vm8, %v12035_v51  ;;  %11431 = vmatmul.mubr.msk.f32.gmra.mrb[224].mxu1 %vm5853_vm8, %v12035_v51 }
0x1a3f   : > { %v11375_v39 = vpop.f32.mrb[214].mxu0  ;;  %v11382_v40 = vpop.f32.mrb[214].mxu1 }
0x1a40   : > { %v7957_v41 = vmax.f32 %v11375_v39, %v11382_v40  ;;  %v7872_v0 = vpop.f32.mrb[215].mxu0  ;;  %v7947_v42 = vpop.f32.mrb[215].mxu1 }
0x1a41   : > { %v7956_v43 = vmax.f32 %v7872_v0, %v7947_v42 }
0x1a42   : > { %7959 = vst.msk [vmem:[#allocation3 + $0xf8] sm:$0xff] %vm6385_vm12, %v7957_v41 }
0x1a43   : > { %7958 = vst.msk [vmem:[#allocation3 + $0xf0] sm:$0xff] %vm6385_vm12, %v7956_v43 }
0x1a49   : > { %v13897_v46 = vpop.f32.mrb[216].mxu0  ;;  %v13899_v4 = vpop.f32.mrb[216].mxu1 }
0x1a4a   : > { %v13901_v52 = vpop.f32.mrb[217].mxu0  ;;  %v13903_v49 = vpop.f32.mrb[217].mxu1 }
0x1a4d   : > { %v11398_v5 = vpop.f32.mrb[218].mxu0  ;;  %v11423_v3 = vpop.f32.mrb[218].mxu1 }
0x1a4e   : > { %8282 = vrot.lane.b32.xlu1 %v11423_v3, %s12047_s23  ;;  %v8239_v6 = vpop.f32.mrb[219].mxu1  ;;  %8118 = vrot.lane.b32.xlu0 %v11398_v5, %s12047_s23  ;;  %v8075_v38 = vpop.f32.mrb[219].mxu0 }
0x1a51   : > { %v11401_v35 = vpop.f32.mrb[220].mxu0  ;;  %v11426_v59 = vpop.f32.mrb[220].mxu1 }
0x1a52   : > { %8280 = vrot.lane.b32.xlu1 %v8239_v6, %s12047_s23  ;;  %8116 = vrot.lane.b32.xlu0 %v8075_v38, %s12047_s23  ;;  %v8085_v60 = vpop.f32.mrb[221].mxu0  ;;  %v8249_v61 = vpop.f32.mrb[221].mxu1  ;;  %v8519_v6 = vld [vmem:[#allocation3 + $0x8] sm:$0xff] }
0x1a55   : > { %v11404_v62 = vpop.f32.mrb[222].mxu0  ;;  %v11429_v9 = vpop.f32.mrb[222].mxu1 }
0x1a56   : > { %8292 = vrot.lane.b32.xlu1 %v11426_v59, %s12049_s20  ;;  %8128 = vrot.lane.b32.xlu0 %v11401_v35, %s12049_s20  ;;  %v8095_v2 = vpop.f32.mrb[223].mxu0  ;;  %v8259_v44 = vpop.f32.mrb[223].mxu1 }
0x1a59   : > { %v11407_v15 = vpop.f32.mrb[224].mxu0  ;;  %v11432_v32 = vpop.f32.mrb[224].mxu1 }
0x1a5a   : > { %8290 = vrot.lane.b32.xlu1 %v8249_v61, %s12049_s20  ;;  %8126 = vrot.lane.b32.xlu0 %v8085_v60, %s12049_s20  ;;  %v8105_v36 = vpop.f32.mrb[225].mxu0  ;;  %v8269_v31 = vpop.f32.mrb[225].mxu1 }
0x1a5e   : > { %8302 = vrot.lane.b32.xlu1 %v11429_v9, %s12051_s16  ;;  %8138 = vrot.lane.b32.xlu0 %v11404_v62, %s12051_s16 }
0x1a62   : > { %8300 = vrot.lane.b32.xlu1 %v8259_v44, %s12051_s16  ;;  %8136 = vrot.lane.b32.xlu0 %v8095_v2, %s12051_s16 }
0x1a66   : > { %8310 = vrot.lane.b32.xlu1 %v8269_v31, %s12052_s17  ;;  %8146 = vrot.lane.b32.xlu0 %v8105_v36, %s12052_s17 }
0x1a6a   : > { %8312 = vrot.lane.b32.xlu1 %v11432_v32, %s12052_s17  ;;  %8148 = vrot.lane.b32.xlu0 %v11407_v15, %s12052_s17 }
0x1a6e   : > { %6932 = vrot.lane.b32.xlu1 %v13691_v1, %s12051_s16  ;;  %6930 = vrot.lane.b32.xlu0 %v13693_v34, %s12051_s16 }
0x1a72   : > { %7964 = vrot.lane.b32.xlu1 %v7957_v41, %s12047_s23  ;;  %7962 = vrot.lane.b32.xlu0 %v7956_v43, %s12047_s23 }
0x1a76   : > { %6940 = vrot.lane.b32.xlu1 %v13691_v1, %s12052_s17  ;;  %6938 = vrot.lane.b32.xlu0 %v13693_v34, %s12052_s17 }
0x1a7a   : > { %6392 = vrot.lane.b32.xlu1 %v13583_v14, %s12047_s23  ;;  %6390 = vrot.lane.b32.xlu0 %v13585_v7, %s12047_s23 }
0x1a7e   : > { %7972 = vrot.lane.b32.xlu1 %v7957_v41, %s12049_s20  ;;  %7970 = vrot.lane.b32.xlu0 %v7956_v43, %s12049_s20 }
0x1a82   : > { %6400 = vrot.lane.b32.xlu1 %v13583_v14, %s12049_s20  ;;  %6398 = vrot.lane.b32.xlu0 %v13585_v7, %s12049_s20 }
0x1a86   : > { %7980 = vrot.lane.b32.xlu1 %v7957_v41, %s12051_s16  ;;  %7978 = vrot.lane.b32.xlu0 %v7956_v43, %s12051_s16 }
0x1a8a   : > { %7440 = vrot.lane.b32.xlu1 %v13799_v26, %s12047_s23  ;;  %7438 = vrot.lane.b32.xlu0 %v13801_v37, %s12047_s23 }
0x1a8e   : > { %6408 = vrot.lane.b32.xlu1 %v13583_v14, %s12051_s16  ;;  %6406 = vrot.lane.b32.xlu0 %v13585_v7, %s12051_s16 }
0x1a92   : > { %7988 = vrot.lane.b32.xlu1 %v7957_v41, %s12052_s17  ;;  %7986 = vrot.lane.b32.xlu0 %v7956_v43, %s12052_s17 }
0x1a96   : > { %7448 = vrot.lane.b32.xlu1 %v13799_v26, %s12049_s20  ;;  %7446 = vrot.lane.b32.xlu0 %v13801_v37, %s12049_s20 }
0x1a9a   : > { %6416 = vrot.lane.b32.xlu1 %v13583_v14, %s12052_s17  ;;  %6414 = vrot.lane.b32.xlu0 %v13585_v7, %s12052_s17 }
0x1a9e   : > { %7456 = vrot.lane.b32.xlu1 %v13799_v26, %s12051_s16  ;;  %7454 = vrot.lane.b32.xlu0 %v13801_v37, %s12051_s16 }
0x1aa2   : > { %7464 = vrot.lane.b32.xlu1 %v13799_v26, %s12052_s17  ;;  %7462 = vrot.lane.b32.xlu0 %v13801_v37, %s12052_s17 }
0x1aa6   : > { %6916 = vrot.lane.b32.xlu1 %v13691_v1, %s12047_s23  ;;  %6914 = vrot.lane.b32.xlu0 %v13693_v34, %s12047_s23 }
0x1aaa   : > { %6924 = vrot.lane.b32.xlu1 %v13691_v1, %s12049_s20  ;;  %6922 = vrot.lane.b32.xlu0 %v13693_v34, %s12049_s20 }
0x1ac0   : > { %v8283_v14 = vpop.permute.xlu1 %8282  ;;  %v8119_v7 = vpop.permute.xlu0 %8118 }
0x1ac1   : > { %v8287_v34 = vadd.f32 %v13899_v4, %v8283_v14  ;;  %v8123_v13 = vadd.f32 %v13897_v46, %v8119_v7  ;;  %v8538_v7 = vld [vmem:[#allocation3 + $0xa0] sm:$0xff] }
0x1ac4   : > { %v8281_v20 = vpop.permute.xlu1 %8280  ;;  %v8117_v30 = vpop.permute.xlu0 %8116 }
0x1ac5   : > { %v8286_v18 = vadd.f32 %v8281_v20, %v13903_v49  ;;  %v8122_v11 = vadd.f32 %v8117_v30, %v13901_v52  ;;  %v8539_v20 = vld [vmem:[#allocation3 + $0xa8] sm:$0xff] }
0x1ac8   : > { %v8293_v26 = vpop.permute.xlu1 %8292  ;;  %v8129_v22 = vpop.permute.xlu0 %8128 }
0x1ac9   : > { %v8297_v29 = vadd.f32 %v8293_v26, %v8287_v34  ;;  %v8133_v47 = vadd.f32 %v8129_v22, %v8123_v13 }
0x1acc   : > { %v8291_v45 = vpop.permute.xlu1 %8290  ;;  %v8127_v37 = vpop.permute.xlu0 %8126 }
0x1acd   : > { %v8296_v1 = vadd.f32 %v8291_v45, %v8286_v18  ;;  %v8132_v8 = vadd.f32 %v8127_v37, %v8122_v11 }
0x1ad0   : > { %v8303_v10 = vpop.permute.xlu1 %8302  ;;  %v8139_v19 = vpop.permute.xlu0 %8138 }
0x1ad1   : > { %v8307_v58 = vadd.f32 %v8303_v10, %v8297_v29  ;;  %v8143_v23 = vadd.f32 %v8139_v19, %v8133_v47  ;;  %v11882_v10 = vpack.c.bf16 %v8539_v20, %v8538_v7 }
0x1ad4   : > { %v8301_v12 = vpop.permute.xlu1 %8300  ;;  %v8137_v56 = vpop.permute.xlu0 %8136 }
0x1ad5   : > { %v8306_v24 = vadd.f32 %v8301_v12, %v8296_v1  ;;  %v8142_v27 = vadd.f32 %v8137_v56, %v8132_v8 }
0x1ad8   : > { %v8311_v28 = vpop.permute.xlu1 %8310  ;;  %v8147_v48 = vpop.permute.xlu0 %8146 }
0x1ad9   : > { %v8316_v63 = vadd.f32 %v8311_v28, %v8306_v24  ;;  %v8152_v57 = vadd.f32 %v8147_v48, %v8142_v27 }
0x1adb   : > { %v8318_v16 = vadd.f32 %v8316_v63, %v13495_v53  ;;  %v8154_v55 = vadd.f32 %v8152_v57, %v13495_v53 }
0x1adc   : > { %v8313_v33 = vpop.permute.xlu1 %8312  ;;  %v8149_v50 = vpop.permute.xlu0 %8148 }
0x1add   : > { %v8320_v51 = vmax.f32 %v8318_v16, 0.0  ;;  %v8156_v39 = vmax.f32 %v8154_v55, 0.0  ;;  %v8317_v40 = vadd.f32 %v8313_v33, %v8307_v58  ;;  %v8153_v41 = vadd.f32 %v8149_v50, %v8143_v23 }
0x1adf   : > { %v8322_v0 = vmax.f32 %v8156_v39, %v8320_v51  ;;  %v8319_v42 = vadd.f32 %v8317_v40, %v13497_v54  ;;  %v8155_v43 = vadd.f32 %v8153_v41, %v13497_v54  ;;  %v8518_v54 = vld [vmem:[#allocation3] sm:$0xff] }
0x1ae0   : > { %v6933_v46 = vpop.permute.xlu1 %6932  ;;  %v6931_v4 = vpop.permute.xlu0 %6930  ;;  %v11876_v62 = vpack.c.bf16 %v8519_v6, %v8518_v54 }
0x1ae1   : > { %v8321_v52 = vmax.f32 %v8319_v42, 0.0  ;;  %v8157_v49 = vmax.f32 %v8155_v43, 0.0  ;;  %6937 = vst.msk [vmem:[#allocation3 + $0x88] sm:$0xff] %vm6385_vm12, %v6933_v46  ;;  %6936 = vst.msk [vmem:[#allocation3 + $0x80] sm:$0xff] %vm6385_vm12, %v6931_v4  ;;  %11437 = vmatprep.mubr.msk.f32.mxu1 %vm6219_vm11, %v8322_v0 }
0x1ae3   : > { %v8323_v53 = vmax.f32 %v8157_v49, %v8321_v52 }
0x1ae4   : > { %v7965_v5 = vpop.permute.xlu1 %7964  ;;  %v7963_v3 = vpop.permute.xlu0 %7962 }
0x1ae5   : > { %7969 = vst.msk [vmem:[#allocation3 + $0x108] sm:$0xff] %vm6385_vm12, %v7965_v5  ;;  %7968 = vst.msk [vmem:[#allocation3 + $0x100] sm:$0xff] %vm6385_vm12, %v7963_v3  ;;  %11438 = vmatmul.mubr.msk.f32.vlgmr.msra.gmra.mrb[226].mxu1 %vm6219_vm11, %v8323_v53 }
0x1ae6   : > { %11873 = vmatpush3.bf16.msk.msra.mxu1 %vm13382_vm10, %v13379_v17  ;;  %11444 = vmatprep.mubr.msk.f32.mxu1 %vm6219_vm11, %v8322_v0 }
0x1ae7   : > { %11906 = vmatprep.subr.bf16.mxu1 %v12048_v25 }
0x1ae8   : > { %v6941_v38 = vpop.permute.xlu1 %6940  ;;  %v6939_v35 = vpop.permute.xlu0 %6938  ;;  %v8534_v59 = vld [vmem:[#allocation3 + $0x80] sm:$0xff]  ;;  %v8535_v60 = vld [vmem:[#allocation3 + $0x88] sm:$0xff] }
0x1ae9   : > { %6945 = vst.msk [vmem:[#allocation3 + $0x98] sm:$0xff] %vm6385_vm12, %v6941_v38  ;;  %6944 = vst.msk [vmem:[#allocation3 + $0x90] sm:$0xff] %vm6385_vm12, %v6939_v35  ;;  %11445 = vmatmul.mubr.msk.f32.vlgmr.msra.gmra.mrb[228].mxu1 %vm6219_vm11, %v8323_v53  ;;  %v11874_v61 = vpack.c.bf16 %v8535_v60, %v8534_v59  ;;  %v8528_v35 = vld [vmem:[#allocation3 + $0x50] sm:$0xff]  ;;  %v8529_v59 = vld [vmem:[#allocation3 + $0x58] sm:$0xff] }
0x1aeb   : > { %11875 = vmatprep.subr.bf16.mxu0 %v11874_v61 }
0x1aec   : > { %v6393_v17 = vpop.permute.xlu1 %6392  ;;  %v6391_v21 = vpop.permute.xlu0 %6390  ;;  %11877 = vmatpush3.bf16.msra.mxu0 %v11876_v62  ;;  %v8550_v9 = vld [vmem:[#allocation3 + $0x100] sm:$0xff]  ;;  %v8551_v2 = vld [vmem:[#allocation3 + $0x108] sm:$0xff] }
0x1aed   : > { %6397 = vst.msk [vmem:[#allocation3 + $0x18] sm:$0xff] %vm6385_vm12, %v6393_v17  ;;  %6396 = vst.msk [vmem:[#allocation3 + $0x10] sm:$0xff] %vm6385_vm12, %v6391_v21  ;;  %v11907_v44 = vpack.c.bf16 %v8551_v2, %v8550_v9  ;;  %v11896_v9 = vpack.c.bf16 %v8529_v59, %v8528_v35  ;;  %v8628_v35 = vld [vmem:[%s14466_s9 + $0x1e0] sm:$0xff] }
0x1aef   : > { %11908 = vmatpush1.bf16.msra.mxu1 %v11907_v44 }
0x1af0   : > { %v7973_v15 = vpop.permute.xlu1 %7972  ;;  %v7971_v32 = vpop.permute.xlu0 %7970  ;;  %v8536_v36 = vld [vmem:[#allocation3 + $0x90] sm:$0xff]  ;;  %v8537_v31 = vld [vmem:[#allocation3 + $0x98] sm:$0xff]  ;;  %11909 = vmatprep.subr.bf16.mxu1 %v12048_v25 }
0x1af1   : > { %7977 = vst.msk [vmem:[#allocation3 + $0x118] sm:$0xff] %vm6385_vm12, %v7973_v15  ;;  %7976 = vst.msk [vmem:[#allocation3 + $0x110] sm:$0xff] %vm6385_vm12, %v7971_v32  ;;  %v11878_v14 = vpack.c.bf16 %v8537_v31, %v8536_v36  ;;  %v8548_v31 = vld [vmem:[#allocation3 + $0xf0] sm:$0xff] }
0x1af3   : > { %11879 = vmatprep.subr.bf16.mxu0 %v11878_v14  ;;  %v8549_v14 = vld [vmem:[#allocation3 + $0xf8] sm:$0xff] }
0x1af4   : > { %v6401_v30 = vpop.permute.xlu1 %6400  ;;  %v6399_v26 = vpop.permute.xlu0 %6398  ;;  %v8520_v22 = vld [vmem:[#allocation3 + $0x10] sm:$0xff]  ;;  %v8521_v45 = vld [vmem:[#allocation3 + $0x18] sm:$0xff] }
0x1af5   : > { %6405 = vst.msk [vmem:[#allocation3 + $0x28] sm:$0xff] %vm6385_vm12, %v6401_v30  ;;  %6404 = vst.msk [vmem:[#allocation3 + $0x20] sm:$0xff] %vm6385_vm12, %v6399_v26  ;;  %v11880_v37 = vpack.c.bf16 %v8521_v45, %v8520_v22  ;;  %v11902_v26 = vpack.c.bf16 %v8549_v14, %v8548_v31 }
0x1af7   : > { %11881 = vmatpush3.bf16.msra.mxu0 %v11880_v37 }
0x1af8   : > { %v7981_v19 = vpop.permute.xlu1 %7980  ;;  %v7979_v18 = vpop.permute.xlu0 %7978  ;;  %11883 = vmatprep.subr.bf16.mxu0 %v11882_v10  ;;  %v8552_v11 = vld [vmem:[#allocation3 + $0x110] sm:$0xff]  ;;  %v8553_v12 = vld [vmem:[#allocation3 + $0x118] sm:$0xff] }
0x1af9   : > { %7985 = vst.msk [vmem:[#allocation3 + $0x128] sm:$0xff] %vm6385_vm12, %v7981_v19  ;;  %7984 = vst.msk [vmem:[#allocation3 + $0x120] sm:$0xff] %vm6385_vm12, %v7979_v18  ;;  %v11910_v56 = vpack.c.bf16 %v8553_v12, %v8552_v11 }
0x1afb   : > { %11911 = vmatpush1.bf16.msra.mxu1 %v11910_v56 }
0x1afc   : > { %v7441_v1 = vpop.permute.xlu1 %7440  ;;  %v7439_v8 = vpop.permute.xlu0 %7438  ;;  %v8522_v34 = vld [vmem:[#allocation3 + $0x20] sm:$0xff]  ;;  %v8523_v13 = vld [vmem:[#allocation3 + $0x28] sm:$0xff]  ;;  %11912 = vmatprep.subr.bf16.mxu1 %v12048_v25 }
0x1afd   : > { %7445 = vst.msk [vmem:[#allocation3 + $0xb8] sm:$0xff] %vm6385_vm12, %v7441_v1  ;;  %7444 = vst.msk [vmem:[#allocation3 + $0xb0] sm:$0xff] %vm6385_vm12, %v7439_v8  ;;  %v11884_v24 = vpack.c.bf16 %v8523_v13, %v8522_v34  ;;  %v8569_v1 = vld [vmem:[%s14466_s9 + $0x8] sm:$0xff]  ;;  %v8568_v8 = vld [vmem:[%s14466_s9] sm:$0xff] }
0x1afe   : > { %8761 = vmatprep.mubr.f32.mxu0 %v8569_v1  ;;  %v8573_v13 = vld [vmem:[%s14466_s9 + $0x28] sm:$0xff]  ;;  %v8586_v1 = vld [vmem:[%s14466_s9 + $0x90] sm:$0xff] }
0x1aff   : > { %11885 = vmatpush3.bf16.msra.mxu0 %v11884_v24 }
0x1b00   : > { %v6409_v27 = vpop.permute.xlu1 %6408  ;;  %v6407_v28 = vpop.permute.xlu0 %6406  ;;  %v8554_v48 = vld [vmem:[#allocation3 + $0x120] sm:$0xff]  ;;  %v8555_v29 = vld [vmem:[#allocation3 + $0x128] sm:$0xff] }
0x1b01   : > { %6413 = vst.msk [vmem:[#allocation3 + $0x38] sm:$0xff] %vm6385_vm12, %v6409_v27  ;;  %6412 = vst.msk [vmem:[#allocation3 + $0x30] sm:$0xff] %vm6385_vm12, %v6407_v28  ;;  %v11913_v47 = vpack.c.bf16 %v8555_v29, %v8554_v48  ;;  %v8572_v28 = vld [vmem:[%s14466_s9 + $0x20] sm:$0xff]  ;;  %v8571_v48 = vld [vmem:[%s14466_s9 + $0x18] sm:$0xff] }
0x1b02   : > { %9695 = vmatprep.mubr.msk.f32.mxu1 %vm8648_vm13, %v8571_v48  ;;  %v8577_v29 = vld [vmem:[%s14466_s9 + $0x48] sm:$0xff]  ;;  %v8603_v48 = vld [vmem:[%s14466_s9 + $0x118] sm:$0xff] }
0x1b03   : > { %11914 = vmatpush1.bf16.msra.mxu1 %v11913_v47  ;;  %v8576_v47 = vld [vmem:[%s14466_s9 + $0x40] sm:$0xff] }
0x1b04   : > { %v7989_v63 = vpop.permute.xlu1 %7988  ;;  %v7987_v57 = vpop.permute.xlu0 %7986  ;;  %v8540_v58 = vld [vmem:[#allocation3 + $0xb0] sm:$0xff]  ;;  %v8541_v23 = vld [vmem:[#allocation3 + $0xb8] sm:$0xff]  ;;  %11915 = vmatprep.subr.bf16.mxu1 %v12048_v25 }
0x1b05   : > { %7993 = vst.msk [vmem:[#allocation3 + $0x138] sm:$0xff] %vm6385_vm12, %v7989_v63  ;;  %7992 = vst.msk [vmem:[#allocation3 + $0x130] sm:$0xff] %vm6385_vm12, %v7987_v57  ;;  %v11886_v16 = vpack.c.bf16 %v8541_v23, %v8540_v58  ;;  %v8581_v63 = vld [vmem:[%s14466_s9 + $0x68] sm:$0xff]  ;;  %v8580_v57 = vld [vmem:[%s14466_s9 + $0x60] sm:$0xff] }
0x1b06   : > { %v8585_v58 = vld [vmem:[%s14466_s9 + $0x88] sm:$0xff]  ;;  %v8584_v23 = vld [vmem:[%s14466_s9 + $0x80] sm:$0xff] }
0x1b07   : > { %11887 = vmatprep.subr.bf16.mxu0 %v11886_v16  ;;  %v8589_v16 = vld [vmem:[%s14466_s9 + $0xa8] sm:$0xff] }
0x1b08   : > { %v7449_v55 = vpop.permute.xlu1 %7448  ;;  %v7447_v33 = vpop.permute.xlu0 %7446  ;;  %v8524_v50 = vld [vmem:[#allocation3 + $0x30] sm:$0xff]  ;;  %v8525_v51 = vld [vmem:[#allocation3 + $0x38] sm:$0xff] }
0x1b09   : > { %7453 = vst.msk [vmem:[#allocation3 + $0xc8] sm:$0xff] %vm6385_vm12, %v7449_v55  ;;  %7452 = vst.msk [vmem:[#allocation3 + $0xc0] sm:$0xff] %vm6385_vm12, %v7447_v33  ;;  %v11888_v39 = vpack.c.bf16 %v8525_v51, %v8524_v50  ;;  %v8588_v55 = vld [vmem:[%s14466_s9 + $0xa0] sm:$0xff]  ;;  %v8593_v33 = vld [vmem:[%s14466_s9 + $0xc8] sm:$0xff] }
0x1b0a   : > { %v8592_v50 = vld [vmem:[%s14466_s9 + $0xc0] sm:$0xff]  ;;  %v8597_v51 = vld [vmem:[%s14466_s9 + $0xe8] sm:$0xff] }
0x1b0b   : > { %11889 = vmatpush3.bf16.msra.mxu0 %v11888_v39  ;;  %v8596_v39 = vld [vmem:[%s14466_s9 + $0xe0] sm:$0xff] }
0x1b0c   : > { %v6417_v40 = vpop.permute.xlu1 %6416  ;;  %v6415_v41 = vpop.permute.xlu0 %6414  ;;  %v8556_v0 = vld [vmem:[#allocation3 + $0x130] sm:$0xff]  ;;  %v8557_v42 = vld [vmem:[#allocation3 + $0x138] sm:$0xff] }
0x1b0d   : > { %6421 = vst.msk [vmem:[#allocation3 + $0x48] sm:$0xff] %vm6385_vm12, %v6417_v40  ;;  %6420 = vst.msk [vmem:[#allocation3 + $0x40] sm:$0xff] %vm6385_vm12, %v6415_v41  ;;  %v11916_v43 = vpack.c.bf16 %v8557_v42, %v8556_v0  ;;  %v8601_v40 = vld [vmem:[%s14466_s9 + $0x108] sm:$0xff]  ;;  %v8600_v41 = vld [vmem:[%s14466_s9 + $0x100] sm:$0xff] }
0x1b0e   : > { %v8605_v0 = vld [vmem:[%s14466_s9 + $0x128] sm:$0xff]  ;;  %v8604_v42 = vld [vmem:[%s14466_s9 + $0x120] sm:$0xff] }
0x1b0f   : > { %11917 = vmatpush1.bf16.msra.mxu1 %v11916_v43  ;;  %v8609_v43 = vld [vmem:[%s14466_s9 + $0x148] sm:$0xff] }
0x1b10   : > { %v7457_v46 = vpop.permute.xlu1 %7456  ;;  %v7455_v4 = vpop.permute.xlu0 %7454  ;;  %v8542_v52 = vld [vmem:[#allocation3 + $0xc0] sm:$0xff]  ;;  %v8543_v49 = vld [vmem:[#allocation3 + $0xc8] sm:$0xff]  ;;  %11918 = vmatprep.subr.bf16.mxu1 %v12048_v25 }
0x1b11   : > { %7461 = vst.msk [vmem:[#allocation3 + $0xd8] sm:$0xff] %vm6385_vm12, %v7457_v46  ;;  %7460 = vst.msk [vmem:[#allocation3 + $0xd0] sm:$0xff] %vm6385_vm12, %v7455_v4  ;;  %v11890_v53 = vpack.c.bf16 %v8543_v49, %v8542_v52  ;;  %v8608_v46 = vld [vmem:[%s14466_s9 + $0x140] sm:$0xff]  ;;  %v8613_v4 = vld [vmem:[%s14466_s9 + $0x168] sm:$0xff] }
0x1b12   : > { %v8612_v52 = vld [vmem:[%s14466_s9 + $0x160] sm:$0xff]  ;;  %v8617_v49 = vld [vmem:[%s14466_s9 + $0x188] sm:$0xff] }
0x1b13   : > { %11891 = vmatprep.subr.bf16.mxu0 %v11890_v53  ;;  %v8616_v53 = vld [vmem:[%s14466_s9 + $0x180] sm:$0xff] }
0x1b14   : > { %v7465_v5 = vpop.permute.xlu1 %7464  ;;  %v7463_v3 = vpop.permute.xlu0 %7462  ;;  %v8526_v54 = vld [vmem:[#allocation3 + $0x40] sm:$0xff]  ;;  %v8527_v6 = vld [vmem:[#allocation3 + $0x48] sm:$0xff] }
0x1b15   : > { %7469 = vst.msk [vmem:[#allocation3 + $0xe8] sm:$0xff] %vm6385_vm12, %v7465_v5  ;;  %7468 = vst.msk [vmem:[#allocation3 + $0xe0] sm:$0xff] %vm6385_vm12, %v7463_v3  ;;  %v11892_v38 = vpack.c.bf16 %v8527_v6, %v8526_v54  ;;  %v8621_v5 = vld [vmem:[%s14466_s9 + $0x1a8] sm:$0xff]  ;;  %v8620_v3 = vld [vmem:[%s14466_s9 + $0x1a0] sm:$0xff] }
0x1b16   : > { %v8625_v54 = vld [vmem:[%s14466_s9 + $0x1c8] sm:$0xff]  ;;  %v8624_v6 = vld [vmem:[%s14466_s9 + $0x1c0] sm:$0xff] }
0x1b17   : > { %11893 = vmatpush3.bf16.msra.mxu0 %v11892_v38  ;;  %v8629_v38 = vld [vmem:[%s14466_s9 + $0x1e8] sm:$0xff] }
0x1b18   : > { %v6917_v60 = vpop.permute.xlu1 %6916  ;;  %v6915_v61 = vpop.permute.xlu0 %6914  ;;  %v8544_v62 = vld [vmem:[#allocation3 + $0xd0] sm:$0xff]  ;;  %v8545_v17 = vld [vmem:[#allocation3 + $0xd8] sm:$0xff] }
0x1b19   : > { %6921 = vst.msk [vmem:[#allocation3 + $0x68] sm:$0xff] %vm6385_vm12, %v6917_v60  ;;  %6920 = vst.msk [vmem:[#allocation3 + $0x60] sm:$0xff] %vm6385_vm12, %v6915_v61  ;;  %v11894_v21 = vpack.c.bf16 %v8545_v17, %v8544_v62 }
0x1b1b   : > { %11895 = vmatprep.subr.bf16.mxu0 %v11894_v21 }
0x1b1c   : > { %v6925_v2 = vpop.permute.xlu1 %6924  ;;  %v6923_v44 = vpop.permute.xlu0 %6922  ;;  %11897 = vmatpush3.bf16.msra.mxu0 %v11896_v9  ;;  %v8546_v15 = vld [vmem:[#allocation3 + $0xe0] sm:$0xff]  ;;  %v8547_v32 = vld [vmem:[#allocation3 + $0xe8] sm:$0xff] }
0x1b1d   : > { %6929 = vst.msk [vmem:[#allocation3 + $0x78] sm:$0xff] %vm6385_vm12, %v6925_v2  ;;  %6928 = vst.msk [vmem:[#allocation3 + $0x70] sm:$0xff] %vm6385_vm12, %v6923_v44  ;;  %v11898_v36 = vpack.c.bf16 %v8547_v32, %v8546_v15 }
0x1b1f   : > { %11899 = vmatprep.subr.bf16.mxu0 %v11898_v36 }
0x1b20   : > { %v8530_v7 = vld [vmem:[#allocation3 + $0x60] sm:$0xff]  ;;  %v8531_v20 = vld [vmem:[#allocation3 + $0x68] sm:$0xff] }
0x1b21   : > { %v11900_v30 = vpack.c.bf16 %v8531_v20, %v8530_v7 }
0x1b23   : > { %11901 = vmatpush3.bf16.msra.mxu0 %v11900_v30 }
0x1b24   : > { %11903 = vmatprep.subr.bf16.mxu0 %v11902_v26  ;;  %v8532_v22 = vld [vmem:[#allocation3 + $0x70] sm:$0xff]  ;;  %v8533_v45 = vld [vmem:[#allocation3 + $0x78] sm:$0xff] }
0x1b25   : > { %v11904_v37 = vpack.c.bf16 %v8533_v45, %v8532_v22 }
0x1b27   : > { %11905 = vmatpush3.bf16.msra.mxu0 %v11904_v37  ;;  %v8570_v37 = vld [vmem:[%s14466_s9 + $0x10] sm:$0xff] }
0x1b2a   : > { %8762 = vmatmul.mubr.f32.vlgmr.msra.gmra.mrb[226].mxu0 %v8568_v8  ;;  %v8591_v8 = vld [vmem:[%s14466_s9 + $0xb8] sm:$0xff] }
0x1b2b   : > { %8766 = vmatprep.mubr.f32.mxu0 %v8573_v13  ;;  %v8595_v13 = vld [vmem:[%s14466_s9 + $0xd8] sm:$0xff] }
0x1b2e   : > { %8767 = vmatmul.mubr.f32.gmra.mrb[228].mxu0 %v8572_v28  ;;  %v8598_v28 = vld [vmem:[%s14466_s9 + $0xf0] sm:$0xff] }
0x1b2f   : > { %8771 = vmatprep.mubr.f32.mxu0 %v8577_v29  ;;  %v8602_v29 = vld [vmem:[%s14466_s9 + $0x110] sm:$0xff] }
0x1b32   : > { %8772 = vmatmul.mubr.f32.gmra.mrb[230].mxu0 %v8576_v47  ;;  %v8607_v47 = vld [vmem:[%s14466_s9 + $0x138] sm:$0xff] }
0x1b33   : > { %8776 = vmatprep.mubr.f32.mxu0 %v8581_v63  ;;  %v8606_v63 = vld [vmem:[%s14466_s9 + $0x130] sm:$0xff] }
0x1b36   : > { %8777 = vmatmul.mubr.f32.gmra.mrb[232].mxu0 %v8580_v57  ;;  %v8611_v57 = vld [vmem:[%s14466_s9 + $0x158] sm:$0xff] }
0x1b37   : > { %8781 = vmatprep.mubr.f32.mxu0 %v8585_v58  ;;  %v8610_v58 = vld [vmem:[%s14466_s9 + $0x150] sm:$0xff] }
0x1b3a   : > { %8782 = vmatmul.mubr.f32.gmra.mrb[234].mxu0 %v8584_v23  ;;  %v8615_v23 = vld [vmem:[%s14466_s9 + $0x178] sm:$0xff] }
0x1b3b   : > { %8786 = vmatprep.mubr.f32.mxu0 %v8589_v16  ;;  %v8614_v16 = vld [vmem:[%s14466_s9 + $0x170] sm:$0xff] }
0x1b3e   : > { %8787 = vmatmul.mubr.f32.gmra.mrb[236].mxu0 %v8588_v55  ;;  %v8619_v55 = vld [vmem:[%s14466_s9 + $0x198] sm:$0xff] }
0x1b3f   : > { %8791 = vmatprep.mubr.f32.mxu0 %v8593_v33  ;;  %v8618_v33 = vld [vmem:[%s14466_s9 + $0x190] sm:$0xff] }
0x1b42   : > { %8792 = vmatmul.mubr.f32.gmra.mrb[238].mxu0 %v8592_v50  ;;  %v8623_v50 = vld [vmem:[%s14466_s9 + $0x1b8] sm:$0xff] }
0x1b43   : > { %8796 = vmatprep.mubr.f32.mxu0 %v8597_v51  ;;  %v8622_v51 = vld [vmem:[%s14466_s9 + $0x1b0] sm:$0xff] }
0x1b46   : > { %8797 = vmatmul.mubr.f32.gmra.mrb[240].mxu0 %v8596_v39  ;;  %v8627_v39 = vld [vmem:[%s14466_s9 + $0x1d8] sm:$0xff] }
0x1b47   : > { %8801 = vmatprep.mubr.f32.mxu0 %v8601_v40  ;;  %v8626_v40 = vld [vmem:[%s14466_s9 + $0x1d0] sm:$0xff] }
0x1b4a   : > { %8802 = vmatmul.mubr.f32.gmra.mrb[242].mxu0 %v8600_v41  ;;  %v8631_v41 = vld [vmem:[%s14466_s9 + $0x1f8] sm:$0xff] }
0x1b4b   : > { %8806 = vmatprep.mubr.f32.mxu0 %v8605_v0  ;;  %v8630_v0 = vld [vmem:[%s14466_s9 + $0x1f0] sm:$0xff] }
0x1b4e   : > { %8807 = vmatmul.mubr.f32.gmra.mrb[244].mxu0 %v8604_v42 }
0x1b4f   : > { %8811 = vmatprep.mubr.f32.mxu0 %v8609_v43 }
0x1b52   : > { %8812 = vmatmul.mubr.f32.gmra.mrb[246].mxu0 %v8608_v46 }
0x1b53   : > { %8816 = vmatprep.mubr.f32.mxu0 %v8613_v4 }
0x1b56   : > { %8817 = vmatmul.mubr.f32.gmra.mrb[248].mxu0 %v8612_v52 }
0x1b57   : > { %8821 = vmatprep.mubr.f32.mxu0 %v8617_v49 }
0x1b5a   : > { %8822 = vmatmul.mubr.f32.gmra.mrb[250].mxu0 %v8616_v53 }
0x1b5b   : > { %8826 = vmatprep.mubr.f32.mxu0 %v8621_v5 }
0x1b5e   : > { %8827 = vmatmul.mubr.f32.gmra.mrb[252].mxu0 %v8620_v3 }
0x1b5f   : > { %8831 = vmatprep.mubr.f32.mxu0 %v8625_v54 }
0x1b62   : > { %8832 = vmatmul.mubr.f32.gmra.mrb[254].mxu0 %v8624_v6 }
0x1b63   : > { %8836 = vmatprep.mubr.f32.mxu0 %v8629_v38 }
0x1b66   : > { %8837 = vmatmul.mubr.f32.gmra.mrb[0].mxu0 %v8628_v35 }
0x1bb8   : > { %v11439_v10 = vpop.f32.mrb[226].mxu1 }
0x1bb9   : > { %v8396_v19 = vpop.f32.mrb[227].mxu1 }
0x1bbc   : > { %v11446_v18 = vpop.f32.mrb[228].mxu1 }
0x1bbd   : > { %v8481_v11 = vmax.f32 %v11439_v10, %v11446_v18  ;;  %v8471_v12 = vpop.f32.mrb[229].mxu1  ;;  %v8575_v10 = vld [vmem:[%s14466_s9 + $0x38] sm:$0xff]  ;;  %v8578_v18 = vld [vmem:[%s14466_s9 + $0x50] sm:$0xff] }
0x1bbe   : > { %v8480_v56 = vmax.f32 %v8396_v19, %v8471_v12  ;;  %v8574_v19 = vld [vmem:[%s14466_s9 + $0x30] sm:$0xff] }
0x1bbf   : > { %8483 = vst.msk [vmem:[#allocation3 + $0x148] sm:$0xff] %vm6385_vm12, %v8481_v11  ;;  %8488 = vrot.lane.b32.xlu1 %v8481_v11, %s12047_s23  ;;  %v8582_v12 = vld [vmem:[%s14466_s9 + $0x70] sm:$0xff] }
0x1bc0   : > { %8482 = vst.msk [vmem:[#allocation3 + $0x140] sm:$0xff] %vm6385_vm12, %v8480_v56  ;;  %8486 = vrot.lane.b32.xlu0 %v8480_v56, %s12047_s23 }
0x1bc3   : > { %8496 = vrot.lane.b32.xlu1 %v8481_v11, %s12049_s20 }
0x1bc4   : > { %8494 = vrot.lane.b32.xlu0 %v8480_v56, %s12049_s20 }
0x1bc6   : > { %v8559_v34 = vld [vmem:[#allocation3 + $0x148] sm:$0xff] }
0x1bc7   : > { %8504 = vrot.lane.b32.xlu1 %v8481_v11, %s12051_s16  ;;  %v8558_v24 = vld [vmem:[#allocation3 + $0x140] sm:$0xff] }
0x1bc8   : > { %8502 = vrot.lane.b32.xlu0 %v8480_v56, %s12051_s16  ;;  %v11919_v27 = vpack.c.bf16 %v8559_v34, %v8558_v24  ;;  %v8590_v34 = vld [vmem:[%s14466_s9 + $0xb0] sm:$0xff] }
0x1bc9   : > { %v8594_v24 = vld [vmem:[%s14466_s9 + $0xd0] sm:$0xff] }
0x1bca   : > { %11920 = vmatpush1.bf16.msra.mxu1 %v11919_v27  ;;  %v8599_v27 = vld [vmem:[%s14466_s9 + $0xf8] sm:$0xff] }
0x1bcb   : > { %8512 = vrot.lane.b32.xlu1 %v8481_v11, %s12052_s17  ;;  %11921 = vmatprep.subr.bf16.mxu1 %v12048_v25  ;;  %v8583_v11 = vld [vmem:[%s14466_s9 + $0x78] sm:$0xff] }
0x1bcc   : > { %8510 = vrot.lane.b32.xlu0 %v8480_v56, %s12052_s17  ;;  %v8587_v56 = vld [vmem:[%s14466_s9 + $0x98] sm:$0xff] }
0x1bfd   : > { %v10245_v42 = vpop.f32.mrb[226].mxu0 }
0x1bfe   : > { %v10246_v43 = vpop.f32.mrb[227].mxu0 }
0x1bff   : > { %v10247_v46 = vadd.f32 %v10246_v43, %v10245_v42 }
0x1c01   : > { %v10248_v4 = vpop.f32.mrb[228].mxu0 }
0x1c02   : > { %v10249_v52 = vpop.f32.mrb[229].mxu0 }
0x1c03   : > { %v10250_v49 = vadd.f32 %v10249_v52, %v10248_v4 }
0x1c05   : > { %v10251_v53 = vpop.f32.mrb[230].mxu0 }
0x1c06   : > { %v10252_v5 = vpop.f32.mrb[231].mxu0 }
0x1c07   : > { %v10253_v3 = vadd.f32 %v10252_v5, %v10251_v53 }
0x1c09   : > { %v10254_v54 = vpop.f32.mrb[232].mxu0 }
0x1c0a   : > { %v10255_v6 = vpop.f32.mrb[233].mxu0 }
0x1c0b   : > { %v10256_v38 = vadd.f32 %v10255_v6, %v10254_v54  ;;  %v8637_v6 = vld [vmem:[%s14467_s10 + $0x28] sm:$0xff] }
0x1c0d   : > { %v10257_v35 = vpop.f32.mrb[234].mxu0 }
0x1c31   : > { %v8489_v59 = vpop.permute.xlu1 %8488 }
0x1c32   : > { %8493 = vst.msk [vmem:[#allocation3 + $0x158] sm:$0xff] %vm6385_vm12, %v8489_v59  ;;  %v8487_v60 = vpop.permute.xlu0 %8486  ;;  %v10258_v59 = vpop.f32.mrb[235].mxu0 }
0x1c33   : > { %8492 = vst.msk [vmem:[#allocation3 + $0x150] sm:$0xff] %vm6385_vm12, %v8487_v60  ;;  %v10259_v60 = vadd.f32 %v10258_v59, %v10257_v35 }
0x1c35   : > { %v8497_v61 = vpop.permute.xlu1 %8496 }
0x1c36   : > { %8501 = vst.msk [vmem:[#allocation3 + $0x168] sm:$0xff] %vm6385_vm12, %v8497_v61  ;;  %v8495_v62 = vpop.permute.xlu0 %8494  ;;  %v10260_v61 = vpop.f32.mrb[236].mxu0 }
0x1c37   : > { %8500 = vst.msk [vmem:[#allocation3 + $0x160] sm:$0xff] %vm6385_vm12, %v8495_v62  ;;  %v10261_v62 = vpop.f32.mrb[237].mxu0 }
0x1c39   : > { %v8505_v17 = vpop.permute.xlu1 %8504  ;;  %v8561_v21 = vld [vmem:[#allocation3 + $0x158] sm:$0xff] }
0x1c3a   : > { %8509 = vst.msk [vmem:[#allocation3 + $0x178] sm:$0xff] %vm6385_vm12, %v8505_v17  ;;  %v8503_v9 = vpop.permute.xlu0 %8502  ;;  %v8560_v2 = vld [vmem:[#allocation3 + $0x150] sm:$0xff]  ;;  %v14259_v17 = vadd.f32 %v10261_v62, %v10260_v61 }
0x1c3b   : > { %8508 = vst.msk [vmem:[#allocation3 + $0x170] sm:$0xff] %vm6385_vm12, %v8503_v9  ;;  %v11922_v44 = vpack.c.bf16 %v8561_v21, %v8560_v2  ;;  %v10263_v21 = vpop.f32.mrb[238].mxu0 }
0x1c3c   : > { %v10264_v9 = vpop.f32.mrb[239].mxu0 }
0x1c3d   : > { %v8513_v15 = vpop.permute.xlu1 %8512  ;;  %11923 = vmatpush1.bf16.msra.mxu1 %v11922_v44  ;;  %v8563_v32 = vld [vmem:[#allocation3 + $0x168] sm:$0xff]  ;;  %v14261_v2 = vadd.f32 %v10264_v9, %v10263_v21  ;;  %v10266_v44 = vpop.f32.mrb[240].mxu0  ;;  %v8789_v9 = vadd.f32 %v14259_v17, %v8637_v6  ;;  %v8646_v6 = vld [vmem:[%s14467_s10 + $0x70] sm:$0xff] }
0x1c3e   : > { %8517 = vst.msk [vmem:[#allocation3 + $0x188] sm:$0xff] %vm6385_vm12, %v8513_v15  ;;  %v8511_v36 = vpop.permute.xlu0 %8510  ;;  %11924 = vmatprep.subr.bf16.mxu1 %v12048_v25  ;;  %v8562_v31 = vld [vmem:[#allocation3 + $0x160] sm:$0xff]  ;;  %v10267_v15 = vpop.f32.mrb[241].mxu0 }
0x1c3f   : > { %8516 = vst.msk [vmem:[#allocation3 + $0x180] sm:$0xff] %vm6385_vm12, %v8511_v36  ;;  %v11925_v14 = vpack.c.bf16 %v8563_v32, %v8562_v31  ;;  %v14263_v32 = vadd.f32 %v10267_v15, %v10266_v44  ;;  %v10269_v36 = vpop.f32.mrb[242].mxu0  ;;  %v8638_v44 = vld [vmem:[%s14467_s10 + $0x30] sm:$0xff] }
0x1c40   : > { %v10270_v31 = vpop.f32.mrb[243].mxu0 }
0x1c41   : > { %11926 = vmatpush1.bf16.msra.mxu1 %v11925_v14  ;;  %v8565_v7 = vld [vmem:[#allocation3 + $0x178] sm:$0xff]  ;;  %v14265_v14 = vadd.f32 %v10270_v31, %v10269_v36  ;;  %v8794_v31 = vadd.f32 %v14261_v2, %v8638_v44 }
0x1c42   : > { %11927 = vmatprep.subr.bf16.mxu1 %v12048_v25  ;;  %v8564_v20 = vld [vmem:[#allocation3 + $0x170] sm:$0xff] }
0x1c43   : > { %v11928_v30 = vpack.c.bf16 %v8565_v7, %v8564_v20  ;;  %v10272_v7 = vpop.f32.mrb[244].mxu0 }
0x1c44   : > { %v10273_v20 = vpop.f32.mrb[245].mxu0 }
0x1c45   : > { %11929 = vmatpush1.bf16.msra.mxu1 %v11928_v30  ;;  %v8567_v26 = vld [vmem:[#allocation3 + $0x188] sm:$0xff]  ;;  %v14267_v30 = vadd.f32 %v10273_v20, %v10272_v7 }
0x1c46   : > { %11930 = vmatprep.subr.bf16.mxu1 %v12048_v25  ;;  %v8566_v22 = vld [vmem:[#allocation3 + $0x180] sm:$0xff]  ;;  %v8579_v25 = vld [vmem:[%s14466_s9 + $0x58] sm:$0xff] }
0x1c47   : > { %v11931_v45 = vpack.c.bf16 %v8567_v26, %v8566_v22  ;;  %v10275_v26 = vpop.f32.mrb[246].mxu0  ;;  %v8639_v7 = vld [vmem:[%s14467_s10 + $0x38] sm:$0xff] }
0x1c48   : > { %v10276_v22 = vpop.f32.mrb[247].mxu0 }
0x1c49   : > { %11932 = vmatpush1.bf16.msra.mxu1 %v11931_v45  ;;  %v14269_v45 = vadd.f32 %v10276_v22, %v10275_v26 }
0x1c4c   : > { %8907 = vmatmul.mubr.f32.vlgmr.msra.gmra.mrb[230].mxu1 %v8570_v37  ;;  %v10278_v37 = vpop.f32.mrb[248].mxu0 }
0x1c4d   : > { %9696 = vmatprep.mubr.msk.f32.mxu1 %vm8648_vm13, %v8575_v10  ;;  %v10279_v10 = vpop.f32.mrb[249].mxu0 }
0x1c50   : > { %8912 = vmatmul.mubr.f32.gmra.mrb[232].mxu1 %v8574_v19  ;;  %v14271_v19 = vadd.f32 %v10279_v10, %v10278_v37 }
0x1c51   : > { %9697 = vmatprep.mubr.msk.f32.mxu1 %vm8648_vm13, %v8579_v25  ;;  %v10281_v25 = vpop.f32.mrb[250].mxu0 }
0x1c54   : > { %8917 = vmatmul.mubr.f32.gmra.mrb[234].mxu1 %v8578_v18  ;;  %v10282_v18 = vpop.f32.mrb[251].mxu0 }
0x1c55   : > { %9698 = vmatprep.mubr.msk.f32.mxu1 %vm8648_vm13, %v8583_v11  ;;  %v14273_v11 = vadd.f32 %v10282_v18, %v10281_v25  ;;  %v8799_v25 = vadd.f32 %v14263_v32, %v8639_v7  ;;  %v8640_v18 = vld [vmem:[%s14467_s10 + $0x40] sm:$0xff] }
0x1c58   : > { %8922 = vmatmul.mubr.f32.gmra.mrb[236].mxu1 %v8582_v12  ;;  %v10284_v12 = vpop.f32.mrb[252].mxu0 }
0x1c59   : > { %9699 = vmatprep.mubr.msk.f32.mxu1 %vm8648_vm13, %v8587_v56  ;;  %v10285_v56 = vpop.f32.mrb[253].mxu0 }
0x1c5c   : > { %8927 = vmatmul.mubr.f32.gmra.mrb[238].mxu1 %v8586_v1  ;;  %v14275_v1 = vadd.f32 %v10285_v56, %v10284_v12 }
0x1c5d   : > { %9700 = vmatprep.mubr.msk.f32.mxu1 %vm8648_vm13, %v8591_v8  ;;  %v10287_v8 = vpop.f32.mrb[254].mxu0 }
0x1c60   : > { %8932 = vmatmul.mubr.f32.gmra.mrb[240].mxu1 %v8590_v34  ;;  %v10288_v34 = vpop.f32.mrb[255].mxu0 }
0x1c61   : > { %9701 = vmatprep.mubr.msk.f32.mxu1 %vm8648_vm13, %v8595_v13  ;;  %v14277_v13 = vadd.f32 %v10288_v34, %v10287_v8  ;;  %v8804_v8 = vadd.f32 %v14265_v14, %v8640_v18  ;;  %v8641_v34 = vld [vmem:[%s14467_s10 + $0x48] sm:$0xff]  ;;  %v9010_v18 = vld [vmem:[%s14468_s11 + $0x38] sm:$0xff] }
0x1c64   : > { %8937 = vmatmul.mubr.f32.gmra.mrb[242].mxu1 %v8594_v24  ;;  %v10290_v24 = vpop.f32.mrb[0].mxu0 }
0x1c65   : > { %9702 = vmatprep.mubr.msk.f32.mxu1 %vm8648_vm13, %v8599_v27  ;;  %v10291_v27 = vpop.f32.mrb[1].mxu0 }
0x1c68   : > { %8942 = vmatmul.mubr.f32.gmra.mrb[244].mxu1 %v8598_v28  ;;  %v14279_v28 = vadd.f32 %v10291_v27, %v10290_v24 }
0x1c69   : > { %9703 = vmatprep.mubr.msk.f32.mxu1 %vm8648_vm13, %v8603_v48  ;;  %v9003_v48 = vld [vmem:[%s14468_s11] sm:$0xff] }
0x1c6a   : > { %11479 = vmatprep.mubr.f32.mxu0 %v9003_v48 }
0x1c6c   : > { %8947 = vmatmul.mubr.f32.gmra.mrb[246].mxu1 %v8602_v29  ;;  %v8632_v29 = vld [vmem:[%s14467_s10] sm:$0xff] }
0x1c6d   : > { %9704 = vmatprep.mubr.msk.f32.mxu1 %vm8648_vm13, %v8607_v47  ;;  %v8764_v47 = vadd.f32 %v10247_v46, %v8632_v29 }
0x1c70   : > { %8952 = vmatmul.mubr.f32.gmra.mrb[248].mxu1 %v8606_v63  ;;  %v8633_v63 = vld [vmem:[%s14467_s10 + $0x8] sm:$0xff] }
0x1c71   : > { %9705 = vmatprep.mubr.msk.f32.mxu1 %vm8648_vm13, %v8611_v57 }
0x1c74   : > { %8957 = vmatmul.mubr.f32.gmra.mrb[250].mxu1 %v8610_v58 }
0x1c75   : > { %9706 = vmatprep.mubr.msk.f32.mxu1 %vm8648_vm13, %v8615_v23 }
0x1c78   : > { %8962 = vmatmul.mubr.f32.gmra.mrb[252].mxu1 %v8614_v16  ;;  %v8769_v16 = vadd.f32 %v10250_v49, %v8633_v63  ;;  %v8636_v49 = vld [vmem:[%s14467_s10 + $0x20] sm:$0xff]  ;;  %v8809_v63 = vadd.f32 %v14267_v30, %v8641_v34 }
0x1c79   : > { %9707 = vmatprep.mubr.msk.f32.mxu1 %vm8648_vm13, %v8619_v55  ;;  %v8634_v55 = vld [vmem:[%s14467_s10 + $0x10] sm:$0xff]  ;;  %v8784_v54 = vadd.f32 %v10259_v60, %v8636_v49  ;;  %v9015_v34 = vld [vmem:[%s14468_s11 + $0x60] sm:$0xff] }
0x1c7c   : > { %8967 = vmatmul.mubr.f32.gmra.mrb[254].mxu1 %v8618_v33 }
0x1c7d   : > { %9708 = vmatprep.mubr.msk.f32.mxu1 %vm8648_vm13, %v8623_v50 }
0x1c80   : > { %8972 = vmatmul.mubr.f32.gmra.mrb[0].mxu1 %v8622_v51 }
0x1c81   : > { %9709 = vmatprep.mubr.msk.f32.mxu1 %vm8648_vm13, %v8627_v39  ;;  %v8774_v39 = vadd.f32 %v10253_v3, %v8634_v55  ;;  %v8643_v55 = vld [vmem:[%s14467_s10 + $0x58] sm:$0xff] }
0x1c84   : > { %8977 = vmatmul.mubr.f32.gmra.mrb[2].mxu1 %v8626_v40  ;;  %v8635_v40 = vld [vmem:[%s14467_s10 + $0x18] sm:$0xff] }
0x1c85   : > { %9710 = vmatprep.mubr.msk.f32.mxu1 %vm8648_vm13, %v8631_v41  ;;  %v8779_v52 = vadd.f32 %v10256_v38, %v8635_v40 }
0x1c88   : > { %8982 = vmatmul.mubr.f32.gmra.mrb[4].mxu1 %v8630_v0 }
0x1d1f   : > { %v8908_v57 = vpop.f32.mrb[230].mxu1 }
0x1d20   : > { %v8909_v58 = vadd.f32 %v8908_v57, %v8764_v47  ;;  %v8910_v23 = vpop.f32.mrb[231].mxu1  ;;  %v8642_v57 = vld [vmem:[%s14467_s10 + $0x50] sm:$0xff] }
0x1d22   : > { %v8987_v41 = vmax.f32 %v8909_v58, 0.0 }
0x1d23   : > { %v8913_v33 = vpop.f32.mrb[232].mxu1 }
0x1d24   : > { %v8914_v50 = vadd.f32 %v8913_v33, %v8769_v16  ;;  %v8915_v51 = vpop.f32.mrb[233].mxu1  ;;  %v8814_v16 = vadd.f32 %v14269_v45, %v8642_v57 }
0x1d26   : > { %v8988_v0 = vmax.f32 %v8914_v50, 0.0 }
0x1d27   : > { %v8918_v42 = vpop.f32.mrb[234].mxu1 }
0x1d28   : > { %v11933_v43 = vpack.c.bf16 %v8988_v0, %v8987_v41  ;;  %v8919_v46 = vadd.f32 %v8918_v42, %v8774_v39  ;;  %v8920_v4 = vpop.f32.mrb[235].mxu1  ;;  %v8819_v41 = vadd.f32 %v14271_v19, %v8643_v55  ;;  %v8644_v0 = vld [vmem:[%s14467_s10 + $0x60] sm:$0xff]  ;;  %v9021_v55 = vld [vmem:[%s14469_s12 + $0x10] sm:$0xff] }
0x1d29   : > { %v8645_v4 = vld [vmem:[%s14467_s10 + $0x68] sm:$0xff] }
0x1d2a   : > { %11934 = vmatprep.subr.bf16.mxu0 %v11933_v43  ;;  %v8989_v35 = vmax.f32 %v8919_v46, 0.0  ;;  %v8824_v46 = vadd.f32 %v14273_v11, %v8644_v0 }
0x1d2b   : > { %v8923_v53 = vpop.f32.mrb[236].mxu1  ;;  %11936 = vmatpush3.bf16.msra.mxu0 %v11933_v43 }
0x1d2c   : > { %v8924_v5 = vadd.f32 %v8923_v53, %v8779_v52  ;;  %v8925_v3 = vpop.f32.mrb[237].mxu1 }
0x1d2e   : > { %v8990_v59 = vmax.f32 %v8924_v5, 0.0 }
0x1d2f   : > { %v8928_v61 = vpop.f32.mrb[238].mxu1 }
0x1d30   : > { %v11937_v62 = vpack.c.bf16 %v8990_v59, %v8989_v35  ;;  %v8929_v21 = vadd.f32 %v8928_v61, %v8784_v54  ;;  %v8930_v38 = vpop.f32.mrb[239].mxu1  ;;  %v8829_v54 = vadd.f32 %v14275_v1, %v8645_v4  ;;  %v8834_v61 = vadd.f32 %v14277_v13, %v8646_v6 }
0x1d32   : > { %11938 = vmatprep.subr.bf16.mxu0 %v11937_v62  ;;  %v8991_v20 = vmax.f32 %v8929_v21, 0.0 }
0x1d33   : > { %v8933_v15 = vpop.f32.mrb[240].mxu1  ;;  %11940 = vmatpush3.bf16.msra.mxu0 %v11937_v62  ;;  %v8647_v62 = vld [vmem:[%s14467_s10 + $0x78] sm:$0xff] }
0x1d34   : > { %v8934_v60 = vadd.f32 %v8933_v15, %v8789_v9  ;;  %v8935_v36 = vpop.f32.mrb[241].mxu1 }
0x1d36   : > { %v8992_v26 = vmax.f32 %v8934_v60, 0.0  ;;  %v8839_v60 = vadd.f32 %v14279_v28, %v8647_v62  ;;  %v9006_v28 = vld [vmem:[%s14468_s11 + $0x18] sm:$0xff] }
0x1d37   : > { %v8938_v22 = vpop.f32.mrb[242].mxu1 }
0x1d38   : > { %v11941_v37 = vpack.c.bf16 %v8992_v26, %v8991_v20  ;;  %v8939_v17 = vadd.f32 %v8938_v22, %v8794_v31  ;;  %v8940_v10 = vpop.f32.mrb[243].mxu1  ;;  %v9004_v22 = vld [vmem:[%s14468_s11 + $0x8] sm:$0xff] }
0x1d39   : > { %v9008_v10 = vld [vmem:[%s14468_s11 + $0x28] sm:$0xff] }
0x1d3a   : > { %11942 = vmatprep.subr.bf16.mxu0 %v11941_v37  ;;  %v8993_v24 = vmax.f32 %v8939_v17, 0.0  ;;  %v9007_v17 = vld [vmem:[%s14468_s11 + $0x20] sm:$0xff] }
0x1d3b   : > { %v8943_v12 = vpop.f32.mrb[244].mxu1  ;;  %11944 = vmatpush3.bf16.msra.mxu0 %v11941_v37  ;;  %v9005_v37 = vld [vmem:[%s14468_s11 + $0x10] sm:$0xff] }
0x1d3c   : > { %v8944_v2 = vadd.f32 %v8943_v12, %v8799_v25  ;;  %v8945_v56 = vpop.f32.mrb[245].mxu1  ;;  %v9009_v25 = vld [vmem:[%s14468_s11 + $0x30] sm:$0xff]  ;;  %v9011_v12 = vld [vmem:[%s14468_s11 + $0x40] sm:$0xff] }
0x1d3d   : > { %v9013_v56 = vld [vmem:[%s14468_s11 + $0x50] sm:$0xff] }
0x1d3e   : > { %v8994_v27 = vmax.f32 %v8944_v2, 0.0  ;;  %v9012_v2 = vld [vmem:[%s14468_s11 + $0x48] sm:$0xff] }
0x1d3f   : > { %v8948_v48 = vpop.f32.mrb[246].mxu1 }
0x1d40   : > { %v11945_v29 = vpack.c.bf16 %v8994_v27, %v8993_v24  ;;  %v8949_v32 = vadd.f32 %v8948_v48, %v8804_v8  ;;  %v8950_v47 = vpop.f32.mrb[247].mxu1  ;;  %v9014_v8 = vld [vmem:[%s14468_s11 + $0x58] sm:$0xff]  ;;  %v9016_v24 = vld [vmem:[%s14468_s11 + $0x68] sm:$0xff]  ;;  %v9017_v27 = vld [vmem:[%s14468_s11 + $0x70] sm:$0xff] }
0x1d41   : > { %v9018_v48 = vld [vmem:[%s14468_s11 + $0x78] sm:$0xff]  ;;  %v9019_v47 = vld [vmem:[%s14469_s12] sm:$0xff] }
0x1d42   : > { %11946 = vmatprep.subr.bf16.mxu0 %v11945_v29  ;;  %v8995_v33 = vmax.f32 %v8949_v32, 0.0  ;;  %v9020_v32 = vld [vmem:[%s14469_s12 + $0x8] sm:$0xff] }
0x1d43   : > { %v8953_v58 = vpop.f32.mrb[248].mxu1  ;;  %11948 = vmatpush3.bf16.msra.mxu0 %v11945_v29  ;;  %v9196_v29 = vld [vmem:[%s14470_s13] sm:$0xff] }
0x1d44   : > { %v8954_v14 = vadd.f32 %v8953_v58, %v8809_v63  ;;  %v8955_v23 = vpop.f32.mrb[249].mxu1  ;;  %11535 = vmatprep.mubr.f32.mxu1 %v9196_v29 }
0x1d45   : > { %v9022_v23 = vld [vmem:[%s14469_s12 + $0x18] sm:$0xff] }
0x1d46   : > { %v8996_v50 = vmax.f32 %v8954_v14, 0.0 }
0x1d47   : > { %v8958_v51 = vpop.f32.mrb[250].mxu1 }
0x1d48   : > { %v11949_v39 = vpack.c.bf16 %v8996_v50, %v8995_v33  ;;  %v8959_v30 = vadd.f32 %v8958_v51, %v8814_v16  ;;  %v8960_v40 = vpop.f32.mrb[251].mxu1 }
0x1d4a   : > { %11950 = vmatprep.subr.bf16.mxu0 %v11949_v39  ;;  %v8997_v52 = vmax.f32 %v8959_v30, 0.0 }
0x1d4b   : > { %v8963_v42 = vpop.f32.mrb[252].mxu1  ;;  %11952 = vmatpush3.bf16.msra.mxu0 %v11949_v39 }
0x1d4c   : > { %v8964_v45 = vadd.f32 %v8963_v42, %v8819_v41  ;;  %v8965_v43 = vpop.f32.mrb[253].mxu1  ;;  %v9024_v41 = vld [vmem:[%s14469_s12 + $0x28] sm:$0xff]  ;;  %v9023_v42 = vld [vmem:[%s14469_s12 + $0x20] sm:$0xff] }
0x1d4e   : > { %v8998_v49 = vmax.f32 %v8964_v45, 0.0 }
0x1d4f   : > { %v8968_v53 = vpop.f32.mrb[254].mxu1 }
0x1d50   : > { %v11953_v5 = vpack.c.bf16 %v8998_v49, %v8997_v52  ;;  %v8969_v19 = vadd.f32 %v8968_v53, %v8824_v46  ;;  %v8970_v3 = vpop.f32.mrb[255].mxu1  ;;  %v9026_v53 = vld [vmem:[%s14469_s12 + $0x38] sm:$0xff] }
0x1d52   : > { %11954 = vmatprep.subr.bf16.mxu0 %v11953_v5  ;;  %v8999_v21 = vmax.f32 %v8969_v19, 0.0  ;;  %v9025_v19 = vld [vmem:[%s14469_s12 + $0x30] sm:$0xff] }
0x1d53   : > { %v8973_v35 = vpop.f32.mrb[0].mxu1  ;;  %11956 = vmatpush3.bf16.msra.mxu0 %v11953_v5 }
0x1d54   : > { %v8974_v11 = vadd.f32 %v8973_v35, %v8829_v54  ;;  %v8975_v59 = vpop.f32.mrb[1].mxu1 }
0x1d56   : > { %v9000_v38 = vmax.f32 %v8974_v11, 0.0 }
0x1d57   : > { %v8978_v9 = vpop.f32.mrb[2].mxu1 }
0x1d58   : > { %v11957_v44 = vpack.c.bf16 %v9000_v38, %v8999_v21  ;;  %v8979_v1 = vadd.f32 %v8978_v9, %v8834_v61  ;;  %v8980_v15 = vpop.f32.mrb[3].mxu1  ;;  %v9028_v61 = vld [vmem:[%s14469_s12 + $0x48] sm:$0xff]  ;;  %v9027_v21 = vld [vmem:[%s14469_s12 + $0x40] sm:$0xff] }
0x1d5a   : > { %11958 = vmatprep.subr.bf16.mxu0 %v11957_v44  ;;  %v9001_v20 = vmax.f32 %v8979_v1, 0.0 }
0x1d5b   : > { %v8983_v36 = vpop.f32.mrb[4].mxu1  ;;  %11960 = vmatpush3.bf16.msra.mxu0 %v11957_v44 }
0x1d5c   : > { %v8984_v31 = vadd.f32 %v8983_v36, %v8839_v60  ;;  %v8985_v7 = vpop.f32.mrb[5].mxu1  ;;  %v9030_v36 = vld [vmem:[%s14469_s12 + $0x58] sm:$0xff] }
0x1d5d   : > { %v9029_v7 = vld [vmem:[%s14469_s12 + $0x50] sm:$0xff] }
0x1d5e   : > { %v9002_v26 = vmax.f32 %v8984_v31, 0.0 }
0x1d60   : > { %v11961_v13 = vpack.c.bf16 %v9002_v26, %v9001_v20 }
0x1d62   : > { %11962 = vmatprep.subr.bf16.mxu0 %v11961_v13 }
0x1d63   : > { %11964 = vmatpush3.bf16.msra.mxu0 %v11961_v13 }
0x1d66   : > { %11480 = vmatmul.mubr.f32.vlgmr.msra.gmra.mrb[2].mxu0 %v9004_v22 }
0x1d67   : > { %11482 = vmatprep.mubr.f32.mxu0 %v9005_v37 }
0x1d6a   : > { %11483 = vmatmul.mubr.f32.gmra.mrb[4].mxu0 %v9006_v28 }
0x1d6b   : > { %11485 = vmatprep.mubr.f32.mxu0 %v9007_v17  ;;  %v9032_v17 = vld [vmem:[%s14469_s12 + $0x68] sm:$0xff] }
0x1d6e   : > { %11486 = vmatmul.mubr.f32.gmra.mrb[6].mxu0 %v9008_v10 }
0x1d6f   : > { %11488 = vmatprep.mubr.f32.mxu0 %v9009_v25  ;;  %v9031_v25 = vld [vmem:[%s14469_s12 + $0x60] sm:$0xff] }
0x1d72   : > { %11489 = vmatmul.mubr.f32.gmra.mrb[8].mxu0 %v9010_v18 }
0x1d73   : > { %11491 = vmatprep.mubr.f32.mxu0 %v9011_v12 }
0x1d76   : > { %11492 = vmatmul.mubr.f32.gmra.mrb[10].mxu0 %v9012_v2 }
0x1d77   : > { %11494 = vmatprep.mubr.f32.mxu0 %v9013_v56 }
0x1d7a   : > { %11495 = vmatmul.mubr.f32.gmra.mrb[12].mxu0 %v9014_v8 }
0x1d7b   : > { %11497 = vmatprep.mubr.f32.mxu0 %v9015_v34 }
0x1d7e   : > { %11498 = vmatmul.mubr.f32.gmra.mrb[14].mxu0 %v9016_v24  ;;  %v9034_v24 = vld [vmem:[%s14469_s12 + $0x78] sm:$0xff] }
0x1d7f   : > { %11500 = vmatprep.mubr.f32.mxu0 %v9017_v27 }
0x1d82   : > { %11501 = vmatmul.mubr.f32.gmra.mrb[16].mxu0 %v9018_v48  ;;  %v9033_v48 = vld [vmem:[%s14469_s12 + $0x70] sm:$0xff] }
0x1e39   : > { %v11481_v63 = vpop.f32.mrb[2].mxu0 }
0x1e3a   : > { %v9107_v57 = vadd.f32 %v11481_v63, %v9020_v32  ;;  %v9101_v58 = vpop.f32.mrb[3].mxu0 }
0x1e3b   : > { %v9102_v14 = vadd.f32 %v9101_v58, %v9019_v47 }
0x1e3c   : > { %v9181_v16 = vmax.f32 %v9107_v57, 0.0 }
0x1e3d   : > { %v9180_v33 = vmax.f32 %v9102_v14, 0.0  ;;  %v11484_v50 = vpop.f32.mrb[4].mxu0 }
0x1e3e   : > { %v9117_v51 = vadd.f32 %v11484_v50, %v9022_v23  ;;  %v9111_v39 = vpop.f32.mrb[5].mxu0  ;;  %v9198_v50 = vld [vmem:[%s14471_s14] sm:$0xff] }
0x1e3f   : > { %v11965_v30 = vpack.c.bf16 %v9181_v16, %v9180_v33  ;;  %v9112_v40 = vadd.f32 %v9111_v39, %v9021_v55  ;;  %v9197_v55 = vld [vmem:[%s14470_s13 + $0x8] sm:$0xff] }
0x1e40   : > { %v9183_v0 = vmax.f32 %v9117_v51, 0.0  ;;  %v9199_v33 = vld [vmem:[%s14471_s14 + $0x8] sm:$0xff] }
0x1e41   : > { %v9182_v45 = vmax.f32 %v9112_v40, 0.0  ;;  %11966 = vmatprep.subr.bf16.mxu1 %v11965_v30  ;;  %v11487_v43 = vpop.f32.mrb[6].mxu0 }
0x1e42   : > { %11968 = vmatpush3.bf16.msra.mxu1 %v11965_v30  ;;  %v9127_v46 = vadd.f32 %v11487_v43, %v9024_v41  ;;  %v9121_v4 = vpop.f32.mrb[7].mxu0 }
0x1e43   : > { %v11969_v52 = vpack.c.bf16 %v9183_v0, %v9182_v45  ;;  %v9122_v49 = vadd.f32 %v9121_v4, %v9023_v42 }
0x1e44   : > { %v9185_v5 = vmax.f32 %v9127_v46, 0.0 }
0x1e45   : > { %11970 = vmatprep.subr.bf16.mxu1 %v11969_v52  ;;  %v9184_v3 = vmax.f32 %v9122_v49, 0.0  ;;  %v11490_v54 = vpop.f32.mrb[8].mxu0 }
0x1e46   : > { %11972 = vmatpush3.bf16.msra.mxu1 %v11969_v52  ;;  %v9137_v6 = vadd.f32 %v11490_v54, %v9026_v53  ;;  %v9131_v35 = vpop.f32.mrb[9].mxu0 }
0x1e47   : > { %v11973_v11 = vpack.c.bf16 %v9185_v5, %v9184_v3  ;;  %v9132_v59 = vadd.f32 %v9131_v35, %v9025_v19 }
0x1e48   : > { %v9187_v62 = vmax.f32 %v9137_v6, 0.0 }
0x1e49   : > { %11974 = vmatprep.subr.bf16.mxu1 %v11973_v11  ;;  %v9186_v38 = vmax.f32 %v9132_v59, 0.0  ;;  %v11493_v9 = vpop.f32.mrb[10].mxu0 }
0x1e4a   : > { %11976 = vmatpush3.bf16.msra.mxu1 %v11973_v11  ;;  %v9147_v44 = vadd.f32 %v11493_v9, %v9028_v61  ;;  %v9141_v1 = vpop.f32.mrb[11].mxu0 }
0x1e4b   : > { %v11977_v15 = vpack.c.bf16 %v9187_v62, %v9186_v38  ;;  %v9142_v60 = vadd.f32 %v9141_v1, %v9027_v21 }
0x1e4c   : > { %v9189_v31 = vmax.f32 %v9147_v44, 0.0 }
0x1e4d   : > { %11978 = vmatprep.subr.bf16.mxu1 %v11977_v15  ;;  %v9188_v20 = vmax.f32 %v9142_v60, 0.0  ;;  %v11496_v26 = vpop.f32.mrb[12].mxu0 }
0x1e4e   : > { %11980 = vmatpush3.bf16.msra.mxu1 %v11977_v15  ;;  %v9157_v13 = vadd.f32 %v11496_v26, %v9030_v36  ;;  %v9151_v22 = vpop.f32.mrb[13].mxu0 }
0x1e4f   : > { %v11981_v37 = vpack.c.bf16 %v9189_v31, %v9188_v20  ;;  %v9152_v28 = vadd.f32 %v9151_v22, %v9029_v7 }
0x1e50   : > { %v9191_v10 = vmax.f32 %v9157_v13, 0.0 }
0x1e51   : > { %11982 = vmatprep.subr.bf16.mxu1 %v11981_v37  ;;  %v9190_v18 = vmax.f32 %v9152_v28, 0.0  ;;  %v11499_v12 = vpop.f32.mrb[14].mxu0 }
0x1e52   : > { %11984 = vmatpush3.bf16.msra.mxu1 %v11981_v37  ;;  %v9167_v2 = vadd.f32 %v11499_v12, %v9032_v17  ;;  %v9161_v56 = vpop.f32.mrb[15].mxu0 }
0x1e53   : > { %v11985_v8 = vpack.c.bf16 %v9191_v10, %v9190_v18  ;;  %v9162_v34 = vadd.f32 %v9161_v56, %v9031_v25 }
0x1e54   : > { %v9193_v27 = vmax.f32 %v9167_v2, 0.0 }
0x1e55   : > { %11986 = vmatprep.subr.bf16.mxu1 %v11985_v8  ;;  %v9192_v29 = vmax.f32 %v9162_v34, 0.0  ;;  %v11502_v32 = vpop.f32.mrb[16].mxu0 }
0x1e56   : > { %11988 = vmatpush3.bf16.msra.mxu1 %v11985_v8  ;;  %v9177_v47 = vadd.f32 %v11502_v32, %v9034_v24  ;;  %v9171_v63 = vpop.f32.mrb[17].mxu0 }
0x1e57   : > { %v11989_v57 = vpack.c.bf16 %v9193_v27, %v9192_v29  ;;  %v9172_v58 = vadd.f32 %v9171_v63, %v9033_v48 }
0x1e58   : > { %v9195_v14 = vmax.f32 %v9177_v47, 0.0 }
0x1e59   : > { %11990 = vmatprep.subr.bf16.mxu1 %v11989_v57  ;;  %v9194_v23 = vmax.f32 %v9172_v58, 0.0 }
0x1e5a   : > { %11992 = vmatpush3.bf16.msra.mxu1 %v11989_v57 }
0x1e5b   : > { %v11993_v16 = vpack.c.bf16 %v9195_v14, %v9194_v23 }
0x1e5d   : > { %11994 = vmatprep.subr.bf16.mxu1 %v11993_v16 }
0x1e5e   : > { %11996 = vmatpush3.bf16.msra.mxu1 %v11993_v16 }
0x1e61   : > { %11536 = vmatmul.mubr.f32.vlgmr.msra.gmra.mrb[6].mxu1 %v9197_v55 }
0x1f34   : > { %v11537_v51 = vpop.f32.mrb[6].mxu1 }
0x1f35   : > { %v9272_v39 = vadd.f32 %v11537_v51, %v9199_v33  ;;  %v9266_v30 = vpop.f32.mrb[7].mxu1 }
0x1f36   : > { %v9267_v40 = vadd.f32 %v9266_v30, %v9198_v50 }
0x1f37   : > { %9276 = vst.msk [vmem:[%s494_s25 + $0x8] sm:$0xff] %vm6385_vm12, %v9272_v39 }
0x1f38   : > { %9275 = vst.msk [vmem:[%s494_s25] sm:$0xff] %vm6385_vm12, %v9267_v40 }
0x1f39 PF: > { %s25_s18 = sadd.s32 1, %s12042_s18  }
0x1f3a   : > { %p22_p4 = scmp.ge.s32.totalorder %s25_s18, 4  }
0x1f3c   :  { %24 = sbr.rel (!%p22_p4) target bundleno = 1 (0x1), region = 110 }

</bundles_post_ra>
